<compile_context>
chip_gen: v6e
topology: v6e:2x2x1
jax: 0.10.0
libtpu: 0.0.40
codegen_flags: <defaults>
</compile_context>

<pallas_src>
import jax
import jax.numpy as jnp
from jax import lax
from jax.experimental import pallas as pl
from jax.experimental.pallas import tpu as pltpu


# ----------------------------------------------------------------------------
# fused FlowHead kernel (one grid step = one batch element)
# ----------------------------------------------------------------------------
def _flow_head_kernel(xp_ref, w1_ref, b1_ref, w2_ref, b2_ref, o_ref,
                      col_ref, tpad_ref):
    # xp_ref : (1, Hp, Wp, Cin)  bf16   spatially padded input
    # w1_ref : (9*Cin, Ch)       bf16   conv1 weight, K-folded (tap-major)
    # b1_ref : (1, Ch)           f32
    # w2_ref : (Ch, 9*Co)        bf16   conv2 weight, N-folded (tap-major, co minor)
    # b2_ref : (1, Co)           f32
    # o_ref  : (1, H, W, Co)     f32
    # col_ref: (H, W, 9*Cin)     bf16   im2col slab (VMEM scratch)
    # tpad_ref:(Hp, Wp, 9*Co)    f32    zero-halo per-tap conv2 contributions
    H, W, Co = o_ref.shape[1], o_ref.shape[2], o_ref.shape[3]
    Hp, Wp = xp_ref.shape[1], xp_ref.shape[2]
    Cin = xp_ref.shape[3]
    Ch = w1_ref.shape[1]

    # ---- im2col for conv1: lane-aligned writes, shifted reads ----------------
    for dy in range(3):
        for dx in range(3):
            t = dy * 3 + dx
            col_ref[:, :, t * Cin:(t + 1) * Cin] = xp_ref[0, dy:dy + H, dx:dx + W, :]

    # ---- conv1 as ONE bf16 MXU dot (M=H*W, K=9*Cin, N=Ch), f32 accumulation --
    acc = jnp.dot(col_ref[...].reshape(H * W, 9 * Cin), w1_ref[...],
                  preferred_element_type=jnp.float32)
    hid = jnp.maximum(acc + b1_ref[...], 0.0).astype(jnp.bfloat16)   # (H*W, Ch)

    # ---- conv2 as ONE bf16 MXU dot vs the N-folded weight (N = 9*Co = 18) ----
    taps = jnp.dot(hid, w2_ref[...], preferred_element_type=jnp.float32)  # (H*W, 18)

    # Stage tap contributions into a zero-halo buffer; clear only the 4 border
    # strips (cheap), never the full buffer, and never gated on program_id.
    tpad_ref[0:1, :, :] = jnp.zeros((1, Wp, 9 * Co), jnp.float32)
    tpad_ref[Hp - 1:Hp, :, :] = jnp.zeros((1, Wp, 9 * Co), jnp.float32)
    tpad_ref[:, 0:1, :] = jnp.zeros((Hp, 1, 9 * Co), jnp.float32)
    tpad_ref[:, Wp - 1:Wp, :] = jnp.zeros((Hp, 1, 9 * Co), jnp.float32)
    tpad_ref[1:1 + H, 1:1 + W, :] = taps.reshape(H, W, 9 * Co)

    # ---- combine the 9 shifted tap pairs (tiny f32 VPU work) + bias ----------
    out = jnp.zeros((H, W, Co), jnp.float32)
    for dy in range(3):
        for dx in range(3):
            t = dy * 3 + dx
            out = out + tpad_ref[dy:dy + H, dx:dx + W, t * Co:(t + 1) * Co]
    o_ref[...] = (out + b2_ref[...]).reshape(1, H, W, Co)


# ----------------------------------------------------------------------------
# wrappers
# ----------------------------------------------------------------------------
def flow_head_nhwc(params, x_nhwc):
    """x_nhwc: (B, H, W, C_in) f32  ->  (B, H, W, 2) f32."""
    B, H, W, Cin = x_nhwc.shape
    w1, b1 = params["w1"], params["b1"]
    w2, b2 = params["w2"], params["b2"]
    Ch = w1.shape[3]
    Co = w2.shape[3]
    Hp, Wp = H + 2, W + 2

    # bf16 once + spatial zero-pad (single cheap XLA fusion around the kernel).
    xp = jnp.pad(x_nhwc.astype(jnp.bfloat16), ((0, 0), (1, 1), (1, 1), (0, 0)))

    # Fold weights to match the in-kernel matmul shapes.
    w1f = w1.reshape(9 * Cin, Ch)                                  # (tap*Cin+ci, ch)
    w2f = jnp.transpose(w2, (2, 0, 1, 3)).reshape(Ch, 9 * Co)      # (ch, tap*Co+co)

    flops = 2 * B * H * W * (9 * Cin * Ch + 9 * Ch * Co)
    bytes_accessed = (xp.size * 2 + w1f.size * 2 + w2f.size * 2
                      + b1.size * 4 + b2.size * 4 + B * H * W * Co * 4)
    cost = pl.CostEstimate(flops=flops, transcendentals=0,
                           bytes_accessed=bytes_accessed)

    return pl.pallas_call(
        _flow_head_kernel,
        out_shape=jax.ShapeDtypeStruct((B, H, W, Co), jnp.float32),
        grid=(B,),
        in_specs=[
            pl.BlockSpec((1, Hp, Wp, Cin), lambda b: (b, 0, 0, 0)),   # padded input
            pl.BlockSpec((9 * Cin, Ch), lambda b: (0, 0)),            # conv1 weight (folded)
            pl.BlockSpec((1, Ch), lambda b: (0, 0)),                  # conv1 bias
            pl.BlockSpec((Ch, 9 * Co), lambda b: (0, 0)),             # conv2 weight (folded)
            pl.BlockSpec((1, Co), lambda b: (0, 0)),                  # conv2 bias
        ],
        out_specs=pl.BlockSpec((1, H, W, Co), lambda b: (b, 0, 0, 0)),
        scratch_shapes=[
            pltpu.VMEM((H, W, 9 * Cin), jnp.bfloat16),   # im2col slab (bf16)
            pltpu.VMEM((Hp, Wp, 9 * Co), jnp.float32),   # zero-halo tap buffer
        ],
        compiler_params=pltpu.CompilerParams(
            dimension_semantics=("parallel",),
            vmem_limit_bytes=32 * 1024 * 1024),
        cost_estimate=cost,
    )(xp, w1f, b1.reshape(1, Ch), w2f, b2.reshape(1, Co))


def flow_head(params, x_nchw):
    """Public entry point matching the PyTorch module: NCHW in, NCHW out.

    NHWC callers should use flow_head_nhwc directly and skip both transposes.
    """
    y_nhwc = flow_head_nhwc(params, jnp.transpose(x_nchw, (0, 2, 3, 1)))
    return jnp.transpose(y_nhwc, (0, 3, 1, 2))


# ----------------------------------------------------------------------------
# params (synthetic, deterministic) + pure-JAX reference
# ----------------------------------------------------------------------------
def init_flow_head(key, input_dim=128, hidden_dim=256):
    # TODO(synk): real PyTorch Conv2d weights are (C_out, C_in, kH, kW); permute to
    # (kH, kW, C_in, C_out) before casting to bf16 when porting checkpoints.
    k1, k2, k3, k4 = jax.random.split(key, 4)
    s1 = 1.0 / (9 * input_dim) ** 0.5
    s2 = 1.0 / (9 * hidden_dim) ** 0.5
    return {
        "w1": (s1 * jax.random.normal(k1, (3, 3, input_dim, hidden_dim),
                                      jnp.float32)).astype(jnp.bfloat16),
        "b1": s1 * jax.random.normal(k2, (hidden_dim,), jnp.float32),
        "w2": (s2 * jax.random.normal(k3, (3, 3, hidden_dim, 2),
                                      jnp.float32)).astype(jnp.bfloat16),
        "b2": s2 * jax.random.normal(k4, (2,), jnp.float32),
    }


def flow_head_ref(params, x_nchw):
    """Pure-JAX reference (f32 convs) of conv2(relu(conv1(x)))."""
    dn = ("NHWC", "HWIO", "NHWC")
    x = jnp.transpose(x_nchw, (0, 2, 3, 1))
    h = lax.conv_general_dilated(x, params["w1"].astype(jnp.float32), (1, 1),
                                 "SAME", dimension_numbers=dn) + params["b1"]
    h = jnp.maximum(h, 0.0)
    o = lax.conv_general_dilated(h, params["w2"].astype(jnp.float32), (1, 1),
                                 "SAME", dimension_numbers=dn) + params["b2"]
    return jnp.transpose(o, (0, 3, 1, 2))


# ----------------------------------------------------------------------------
if __name__ == "__main__":
    B, C_IN, C_HID, H, W = 2, 128, 256, 16, 16   # module defaults, small spatial

    kp, kx = jax.random.split(jax.random.PRNGKey(0))
    params = init_flow_head(kp, C_IN, C_HID)
    x = jax.random.normal(kx, (B, C_IN, H, W), jnp.float32)

    fwd = jax.jit(flow_head)
    out = fwd(params, x)
    jax.block_until_ready(out)

    assert out.shape == (B, 2, H, W)
    assert bool(jnp.all(jnp.isfinite(out)))

    ref = flow_head_ref(params, x)
    err = float(jnp.max(jnp.abs(out - ref)))
    scale = float(jnp.max(jnp.abs(ref))) + 1e-6
    assert err <= 0.05 * scale + 1e-3, f"max abs err {err} vs ref scale {scale}"

    print("KERNEL_OK")
</pallas_src>

<mosaic_0001>
module attributes {stable_mosaic.version = 11 : i64} {
  func.func @_flow_head_kernel(%arg0: i32, %arg1: memref<1x18x18x128xbf16, #tpu.memory_space<vmem>>, %arg2: memref<1152x256xbf16, #tpu.memory_space<vmem>>, %arg3: memref<1x256xf32, #tpu.memory_space<vmem>>, %arg4: memref<256x18xbf16, #tpu.memory_space<vmem>>, %arg5: memref<1x2xf32, #tpu.memory_space<vmem>>, %arg6: memref<1x16x16x2xf32, #tpu.memory_space<vmem>>, %arg7: memref<16x16x1152xbf16, #tpu.memory_space<vmem>>, %arg8: memref<18x18x18xf32, #tpu.memory_space<vmem>>) attributes {dimension_semantics = [#tpu.dimension_semantics<parallel>], iteration_bounds = array<i64: 2>, scalar_prefetch = 0 : i64, scratch_operands = 2 : i64, tpu.core_type = #tpu.core_type<tc>, window_params = [{transform_indices = @transform_0, window_bounds = array<i64: 1, 18, 18, 128>}, {pipeline_mode = #tpu.pipeline_mode<synchronous>, transform_indices = @transform_1, window_bounds = array<i64: 1152, 256>}, {pipeline_mode = #tpu.pipeline_mode<synchronous>, transform_indices = @transform_2, window_bounds = array<i64: 1, 256>}, {pipeline_mode = #tpu.pipeline_mode<synchronous>, transform_indices = @transform_3, window_bounds = array<i64: 256, 18>}, {pipeline_mode = #tpu.pipeline_mode<synchronous>, transform_indices = @transform_4, window_bounds = array<i64: 1, 2>}, {transform_indices = @transform_5, window_bounds = array<i64: 1, 16, 16, 2>}]} {
    %c0 = arith.constant 0 : index
    %c0_0 = arith.constant 0 : index
    %c0_1 = arith.constant 0 : index
    %c0_2 = arith.constant 0 : index
    %0 = vector.load %arg1[%c0, %c0_0, %c0_1, %c0_2] : memref<1x18x18x128xbf16, #tpu.memory_space<vmem>>, vector<1x16x16x128xbf16>
    %1 = vector.shape_cast %0 : vector<1x16x16x128xbf16> to vector<16x16x128xbf16>
    %c0_3 = arith.constant 0 : index
    %c0_4 = arith.constant 0 : index
    %c0_5 = arith.constant 0 : index
    %2 = vector.load %arg7[%c0_3, %c0_4, %c0_5] : memref<16x16x1152xbf16, #tpu.memory_space<vmem>>, vector<16x16x128xbf16>
    tpu.vector_store %arg7[%c0_3, %c0_4, %c0_5], %1 {strides = array<i32>} : memref<16x16x1152xbf16, #tpu.memory_space<vmem>>, vector<16x16x128xbf16>,
    %c0_6 = arith.constant 0 : index
    %c0_7 = arith.constant 0 : index
    %c1 = arith.constant 1 : index
    %c0_8 = arith.constant 0 : index
    %3 = vector.load %arg1[%c0_6, %c0_7, %c1, %c0_8] : memref<1x18x18x128xbf16, #tpu.memory_space<vmem>>, vector<1x16x16x128xbf16>
    %4 = vector.shape_cast %3 : vector<1x16x16x128xbf16> to vector<16x16x128xbf16>
    %c0_9 = arith.constant 0 : index
    %c0_10 = arith.constant 0 : index
    %c128 = arith.constant 128 : index
    %5 = vector.load %arg7[%c0_9, %c0_10, %c128] : memref<16x16x1152xbf16, #tpu.memory_space<vmem>>, vector<16x16x128xbf16>
    tpu.vector_store %arg7[%c0_9, %c0_10, %c128], %4 {strides = array<i32>} : memref<16x16x1152xbf16, #tpu.memory_space<vmem>>, vector<16x16x128xbf16>,
    %c0_11 = arith.constant 0 : index
    %c0_12 = arith.constant 0 : index
    %c2 = arith.constant 2 : index
    %c0_13 = arith.constant 0 : index
    %6 = vector.load %arg1[%c0_11, %c0_12, %c2, %c0_13] : memref<1x18x18x128xbf16, #tpu.memory_space<vmem>>, vector<1x16x16x128xbf16>
    %7 = vector.shape_cast %6 : vector<1x16x16x128xbf16> to vector<16x16x128xbf16>
    %c0_14 = arith.constant 0 : index
    %c0_15 = arith.constant 0 : index
    %c256 = arith.constant 256 : index
    %8 = vector.load %arg7[%c0_14, %c0_15, %c256] : memref<16x16x1152xbf16, #tpu.memory_space<vmem>>, vector<16x16x128xbf16>
    tpu.vector_store %arg7[%c0_14, %c0_15, %c256], %7 {strides = array<i32>} : memref<16x16x1152xbf16, #tpu.memory_space<vmem>>, vector<16x16x128xbf16>,
    %c0_16 = arith.constant 0 : index
    %c1_17 = arith.constant 1 : index
    %c0_18 = arith.constant 0 : index
    %c0_19 = arith.constant 0 : index
    %9 = vector.load %arg1[%c0_16, %c1_17, %c0_18, %c0_19] : memref<1x18x18x128xbf16, #tpu.memory_space<vmem>>, vector<1x16x16x128xbf16>
    %10 = vector.shape_cast %9 : vector<1x16x16x128xbf16> to vector<16x16x128xbf16>
    %c0_20 = arith.constant 0 : index
    %c0_21 = arith.constant 0 : index
    %c384 = arith.constant 384 : index
    %11 = vector.load %arg7[%c0_20, %c0_21, %c384] : memref<16x16x1152xbf16, #tpu.memory_space<vmem>>, vector<16x16x128xbf16>
    tpu.vector_store %arg7[%c0_20, %c0_21, %c384], %10 {strides = array<i32>} : memref<16x16x1152xbf16, #tpu.memory_space<vmem>>, vector<16x16x128xbf16>,
    %c0_22 = arith.constant 0 : index
    %c1_23 = arith.constant 1 : index
    %c1_24 = arith.constant 1 : index
    %c0_25 = arith.constant 0 : index
    %12 = vector.load %arg1[%c0_22, %c1_23, %c1_24, %c0_25] : memref<1x18x18x128xbf16, #tpu.memory_space<vmem>>, vector<1x16x16x128xbf16>
    %13 = vector.shape_cast %12 : vector<1x16x16x128xbf16> to vector<16x16x128xbf16>
    %c0_26 = arith.constant 0 : index
    %c0_27 = arith.constant 0 : index
    %c512 = arith.constant 512 : index
    %14 = vector.load %arg7[%c0_26, %c0_27, %c512] : memref<16x16x1152xbf16, #tpu.memory_space<vmem>>, vector<16x16x128xbf16>
    tpu.vector_store %arg7[%c0_26, %c0_27, %c512], %13 {strides = array<i32>} : memref<16x16x1152xbf16, #tpu.memory_space<vmem>>, vector<16x16x128xbf16>,
    %c0_28 = arith.constant 0 : index
    %c1_29 = arith.constant 1 : index
    %c2_30 = arith.constant 2 : index
    %c0_31 = arith.constant 0 : index
    %15 = vector.load %arg1[%c0_28, %c1_29, %c2_30, %c0_31] : memref<1x18x18x128xbf16, #tpu.memory_space<vmem>>, vector<1x16x16x128xbf16>
    %16 = vector.shape_cast %15 : vector<1x16x16x128xbf16> to vector<16x16x128xbf16>
    %c0_32 = arith.constant 0 : index
    %c0_33 = arith.constant 0 : index
    %c640 = arith.constant 640 : index
    %17 = vector.load %arg7[%c0_32, %c0_33, %c640] : memref<16x16x1152xbf16, #tpu.memory_space<vmem>>, vector<16x16x128xbf16>
    tpu.vector_store %arg7[%c0_32, %c0_33, %c640], %16 {strides = array<i32>} : memref<16x16x1152xbf16, #tpu.memory_space<vmem>>, vector<16x16x128xbf16>,
    %c0_34 = arith.constant 0 : index
    %c2_35 = arith.constant 2 : index
    %c0_36 = arith.constant 0 : index
    %c0_37 = arith.constant 0 : index
    %18 = vector.load %arg1[%c0_34, %c2_35, %c0_36, %c0_37] : memref<1x18x18x128xbf16, #tpu.memory_space<vmem>>, vector<1x16x16x128xbf16>
    %19 = vector.shape_cast %18 : vector<1x16x16x128xbf16> to vector<16x16x128xbf16>
    %c0_38 = arith.constant 0 : index
    %c0_39 = arith.constant 0 : index
    %c768 = arith.constant 768 : index
    %20 = vector.load %arg7[%c0_38, %c0_39, %c768] : memref<16x16x1152xbf16, #tpu.memory_space<vmem>>, vector<16x16x128xbf16>
    tpu.vector_store %arg7[%c0_38, %c0_39, %c768], %19 {strides = array<i32>} : memref<16x16x1152xbf16, #tpu.memory_space<vmem>>, vector<16x16x128xbf16>,
    %c0_40 = arith.constant 0 : index
    %c2_41 = arith.constant 2 : index
    %c1_42 = arith.constant 1 : index
    %c0_43 = arith.constant 0 : index
    %21 = vector.load %arg1[%c0_40, %c2_41, %c1_42, %c0_43] : memref<1x18x18x128xbf16, #tpu.memory_space<vmem>>, vector<1x16x16x128xbf16>
    %22 = vector.shape_cast %21 : vector<1x16x16x128xbf16> to vector<16x16x128xbf16>
    %c0_44 = arith.constant 0 : index
    %c0_45 = arith.constant 0 : index
    %c896 = arith.constant 896 : index
    %23 = vector.load %arg7[%c0_44, %c0_45, %c896] : memref<16x16x1152xbf16, #tpu.memory_space<vmem>>, vector<16x16x128xbf16>
    tpu.vector_store %arg7[%c0_44, %c0_45, %c896], %22 {strides = array<i32>} : memref<16x16x1152xbf16, #tpu.memory_space<vmem>>, vector<16x16x128xbf16>,
    %c0_46 = arith.constant 0 : index
    %c2_47 = arith.constant 2 : index
    %c2_48 = arith.constant 2 : index
    %c0_49 = arith.constant 0 : index
    %24 = vector.load %arg1[%c0_46, %c2_47, %c2_48, %c0_49] : memref<1x18x18x128xbf16, #tpu.memory_space<vmem>>, vector<1x16x16x128xbf16>
    %25 = vector.shape_cast %24 : vector<1x16x16x128xbf16> to vector<16x16x128xbf16>
    %c0_50 = arith.constant 0 : index
    %c0_51 = arith.constant 0 : index
    %c1024 = arith.constant 1024 : index
    %26 = vector.load %arg7[%c0_50, %c0_51, %c1024] : memref<16x16x1152xbf16, #tpu.memory_space<vmem>>, vector<16x16x128xbf16>
    tpu.vector_store %arg7[%c0_50, %c0_51, %c1024], %25 {strides = array<i32>} : memref<16x16x1152xbf16, #tpu.memory_space<vmem>>, vector<16x16x128xbf16>,
    %c0_52 = arith.constant 0 : index
    %c0_53 = arith.constant 0 : index
    %c0_54 = arith.constant 0 : index
    %27 = vector.load %arg7[%c0_52, %c0_53, %c0_54] : memref<16x16x1152xbf16, #tpu.memory_space<vmem>>, vector<16x16x1152xbf16>
    %28 = vector.shape_cast %27 : vector<16x16x1152xbf16> to vector<256x1152xbf16>
    %c0_55 = arith.constant 0 : index
    %c0_56 = arith.constant 0 : index
    %29 = vector.load %arg2[%c0_55, %c0_56] : memref<1152x256xbf16, #tpu.memory_space<vmem>>, vector<1152x256xbf16>
    %cst = arith.constant dense<0.000000e+00> : vector<256x256xf32>
    %30 = tpu.matmul %28, %29, %cst {dimension_numbers = #tpu.dot_dimension_numbers<[1], [0], [0], [1], [0, 0, 1, 1], [], []>} : vector<256x1152xbf16>, vector<1152x256xbf16>, vector<256x256xf32> -> vector<256x256xf32>
    %c0_57 = arith.constant 0 : index
    %c0_58 = arith.constant 0 : index
    %31 = vector.load %arg3[%c0_57, %c0_58] : memref<1x256xf32, #tpu.memory_space<vmem>>, vector<1x256xf32>
    %32 = vector.broadcast %31 : vector<1x256xf32> to vector<256x256xf32>
    %33 = arith.addf %30, %32 : vector<256x256xf32>
    %cst_59 = arith.constant 0.000000e+00 : f32
    %34 = vector.broadcast %cst_59 : f32 to vector<256x256xf32>
    %35 = arith.maximumf %33, %34 : vector<256x256xf32>
    %36 = arith.truncf %35 : vector<256x256xf32> to vector<256x256xbf16>
    %c0_60 = arith.constant 0 : index
    %c0_61 = arith.constant 0 : index
    %37 = vector.load %arg4[%c0_60, %c0_61] : memref<256x18xbf16, #tpu.memory_space<vmem>>, vector<256x18xbf16>
    %cst_62 = arith.constant dense<0.000000e+00> : vector<256x18xf32>
    %38 = tpu.matmul %36, %37, %cst_62 {dimension_numbers = #tpu.dot_dimension_numbers<[1], [0], [0], [1], [0, 0, 1, 1], [], []>} : vector<256x256xbf16>, vector<256x18xbf16>, vector<256x18xf32> -> vector<256x18xf32>
    %cst_63 = arith.constant 0.000000e+00 : f32
    %39 = vector.broadcast %cst_63 : f32 to vector<1x18x18xf32>
    %c0_64 = arith.constant 0 : index
    %c0_65 = arith.constant 0 : index
    %c0_66 = arith.constant 0 : index
    %40 = vector.load %arg8[%c0_64, %c0_65, %c0_66] : memref<18x18x18xf32, #tpu.memory_space<vmem>>, vector<1x18x18xf32>
    tpu.vector_store %arg8[%c0_64, %c0_65, %c0_66], %39 {strides = array<i32>} : memref<18x18x18xf32, #tpu.memory_space<vmem>>, vector<1x18x18xf32>,
    %cst_67 = arith.constant 0.000000e+00 : f32
    %41 = vector.broadcast %cst_67 : f32 to vector<1x18x18xf32>
    %c17 = arith.constant 17 : index
    %c0_68 = arith.constant 0 : index
    %c0_69 = arith.constant 0 : index
    %42 = vector.load %arg8[%c17, %c0_68, %c0_69] : memref<18x18x18xf32, #tpu.memory_space<vmem>>, vector<1x18x18xf32>
    tpu.vector_store %arg8[%c17, %c0_68, %c0_69], %41 {strides = array<i32>} : memref<18x18x18xf32, #tpu.memory_space<vmem>>, vector<1x18x18xf32>,
    %cst_70 = arith.constant 0.000000e+00 : f32
    %43 = vector.broadcast %cst_70 : f32 to vector<18x1x18xf32>
    %c0_71 = arith.constant 0 : index
    %c0_72 = arith.constant 0 : index
    %c0_73 = arith.constant 0 : index
    %44 = vector.load %arg8[%c0_71, %c0_72, %c0_73] : memref<18x18x18xf32, #tpu.memory_space<vmem>>, vector<18x1x18xf32>
    tpu.vector_store %arg8[%c0_71, %c0_72, %c0_73], %43 {strides = array<i32>} : memref<18x18x18xf32, #tpu.memory_space<vmem>>, vector<18x1x18xf32>,
    %cst_74 = arith.constant 0.000000e+00 : f32
    %45 = vector.broadcast %cst_74 : f32 to vector<18x1x18xf32>
    %c0_75 = arith.constant 0 : index
    %c17_76 = arith.constant 17 : index
    %c0_77 = arith.constant 0 : index
    %46 = vector.load %arg8[%c0_75, %c17_76, %c0_77] : memref<18x18x18xf32, #tpu.memory_space<vmem>>, vector<18x1x18xf32>
    tpu.vector_store %arg8[%c0_75, %c17_76, %c0_77], %45 {strides = array<i32>} : memref<18x18x18xf32, #tpu.memory_space<vmem>>, vector<18x1x18xf32>,
    %47 = vector.shape_cast %38 : vector<256x18xf32> to vector<16x16x18xf32>
    %c1_78 = arith.constant 1 : index
    %c1_79 = arith.constant 1 : index
    %c0_80 = arith.constant 0 : index
    %48 = vector.load %arg8[%c1_78, %c1_79, %c0_80] : memref<18x18x18xf32, #tpu.memory_space<vmem>>, vector<16x16x18xf32>
    tpu.vector_store %arg8[%c1_78, %c1_79, %c0_80], %47 {strides = array<i32>} : memref<18x18x18xf32, #tpu.memory_space<vmem>>, vector<16x16x18xf32>,
    %cst_81 = arith.constant 0.000000e+00 : f32
    %49 = vector.broadcast %cst_81 : f32 to vector<16x16x2xf32>
    %c0_82 = arith.constant 0 : index
    %c0_83 = arith.constant 0 : index
    %c0_84 = arith.constant 0 : index
    %50 = vector.load %arg8[%c0_82, %c0_83, %c0_84] : memref<18x18x18xf32, #tpu.memory_space<vmem>>, vector<16x16x2xf32>
    %51 = arith.addf %49, %50 : vector<16x16x2xf32>
    %c0_85 = arith.constant 0 : index
    %c1_86 = arith.constant 1 : index
    %c2_87 = arith.constant 2 : index
    %52 = vector.load %arg8[%c0_85, %c1_86, %c2_87] : memref<18x18x18xf32, #tpu.memory_space<vmem>>, vector<16x16x2xf32>
    %53 = arith.addf %51, %52 : vector<16x16x2xf32>
    %c0_88 = arith.constant 0 : index
    %c2_89 = arith.constant 2 : index
    %c4 = arith.constant 4 : index
    %54 = vector.load %arg8[%c0_88, %c2_89, %c4] : memref<18x18x18xf32, #tpu.memory_space<vmem>>, vector<16x16x2xf32>
    %55 = arith.addf %53, %54 : vector<16x16x2xf32>
    %c1_90 = arith.constant 1 : index
    %c0_91 = arith.constant 0 : index
    %c6 = arith.constant 6 : index
    %56 = vector.load %arg8[%c1_90, %c0_91, %c6] : memref<18x18x18xf32, #tpu.memory_space<vmem>>, vector<16x16x2xf32>
    %57 = arith.addf %55, %56 : vector<16x16x2xf32>
    %c1_92 = arith.constant 1 : index
    %c1_93 = arith.constant 1 : index
    %c8 = arith.constant 8 : index
    %58 = vector.load %arg8[%c1_92, %c1_93, %c8] : memref<18x18x18xf32, #tpu.memory_space<vmem>>, vector<16x16x2xf32>
    %59 = arith.addf %57, %58 : vector<16x16x2xf32>
    %c1_94 = arith.constant 1 : index
    %c2_95 = arith.constant 2 : index
    %c10 = arith.constant 10 : index
    %60 = vector.load %arg8[%c1_94, %c2_95, %c10] : memref<18x18x18xf32, #tpu.memory_space<vmem>>, vector<16x16x2xf32>
    %61 = arith.addf %59, %60 : vector<16x16x2xf32>
    %c2_96 = arith.constant 2 : index
    %c0_97 = arith.constant 0 : index
    %c12 = arith.constant 12 : index
    %62 = vector.load %arg8[%c2_96, %c0_97, %c12] : memref<18x18x18xf32, #tpu.memory_space<vmem>>, vector<16x16x2xf32>
    %63 = arith.addf %61, %62 : vector<16x16x2xf32>
    %c2_98 = arith.constant 2 : index
    %c1_99 = arith.constant 1 : index
    %c14 = arith.constant 14 : index
    %64 = vector.load %arg8[%c2_98, %c1_99, %c14] : memref<18x18x18xf32, #tpu.memory_space<vmem>>, vector<16x16x2xf32>
    %65 = arith.addf %63, %64 : vector<16x16x2xf32>
    %c2_100 = arith.constant 2 : index
    %c2_101 = arith.constant 2 : index
    %c16 = arith.constant 16 : index
    %66 = vector.load %arg8[%c2_100, %c2_101, %c16] : memref<18x18x18xf32, #tpu.memory_space<vmem>>, vector<16x16x2xf32>
    %67 = arith.addf %65, %66 : vector<16x16x2xf32>
    %c0_102 = arith.constant 0 : index
    %c0_103 = arith.constant 0 : index
    %68 = vector.load %arg5[%c0_102, %c0_103] : memref<1x2xf32, #tpu.memory_space<vmem>>, vector<1x2xf32>
    %69 = vector.shape_cast %68 : vector<1x2xf32> to vector<1x1x2xf32>
    %70 = vector.broadcast %69 : vector<1x1x2xf32> to vector<16x16x2xf32>
    %71 = arith.addf %67, %70 : vector<16x16x2xf32>
    %72 = vector.shape_cast %71 : vector<16x16x2xf32> to vector<1x16x16x2xf32>
    %c0_104 = arith.constant 0 : index
    %c0_105 = arith.constant 0 : index
    %c0_106 = arith.constant 0 : index
    %c0_107 = arith.constant 0 : index
    %73 = vector.load %arg6[%c0_104, %c0_105, %c0_106, %c0_107] : memref<1x16x16x2xf32, #tpu.memory_space<vmem>>, vector<1x16x16x2xf32>
    tpu.vector_store %arg6[%c0_104, %c0_105, %c0_106, %c0_107], %72 {strides = array<i32>} : memref<1x16x16x2xf32, #tpu.memory_space<vmem>>, vector<1x16x16x2xf32>,
    return
  }
  func.func @transform_0(%arg0: i32) -> (i32, i32, i32, i32) {
    %c0_i32 = arith.constant 0 : i32
    %c0_i32_0 = arith.constant 0 : i32
    %c0_i32_1 = arith.constant 0 : i32
    %c0_i32_2 = arith.constant 0 : i32
    return %arg0, %c0_i32, %c0_i32_0, %c0_i32_1 : i32, i32, i32, i32
  }
  func.func @transform_1(%arg0: i32) -> (i32, i32) {
    %c0_i32 = arith.constant 0 : i32
    %c0_i32_0 = arith.constant 0 : i32
    %c0_i32_1 = arith.constant 0 : i32
    return %c0_i32, %c0_i32_0 : i32, i32
  }
  func.func @transform_2(%arg0: i32) -> (i32, i32) {
    %c0_i32 = arith.constant 0 : i32
    %c0_i32_0 = arith.constant 0 : i32
    %c0_i32_1 = arith.constant 0 : i32
    return %c0_i32, %c0_i32_0 : i32, i32
  }
  func.func @transform_3(%arg0: i32) -> (i32, i32) {
    %c0_i32 = arith.constant 0 : i32
    %c0_i32_0 = arith.constant 0 : i32
    %c0_i32_1 = arith.constant 0 : i32
    return %c0_i32, %c0_i32_0 : i32, i32
  }
  func.func @transform_4(%arg0: i32) -> (i32, i32) {
    %c0_i32 = arith.constant 0 : i32
    %c0_i32_0 = arith.constant 0 : i32
    %c0_i32_1 = arith.constant 0 : i32
    return %c0_i32, %c0_i32_0 : i32, i32
  }
  func.func @transform_5(%arg0: i32) -> (i32, i32, i32, i32) {
    %c0_i32 = arith.constant 0 : i32
    %c0_i32_0 = arith.constant 0 : i32
    %c0_i32_1 = arith.constant 0 : i32
    %c0_i32_2 = arith.constant 0 : i32
    return %arg0, %c0_i32, %c0_i32_0, %c0_i32_1 : i32, i32, i32, i32
  }
}

</mosaic_0001>

<bundles_post_ra>
// kernel: flow_head.1
= control target key start
LH: loop header
LB: loop body
LE: loop exit
PB: predicated region body
PF: predicated region fallthrough
CT: control target
= control target key end

     0   :  { %s8899_s18 = smov 0   ;;  %s12119_s0 = inlined_call_operand.vmem [shape: bf16[2,18,18,128], index: 0, kind: input, shape index: {}]   ;;  %s12120_s1 = inlined_call_operand.vmem [shape: bf16[1152,256], index: 1, kind: input, shape index: {}]   ;;  %s12121_s2 = inlined_call_operand.vmem [shape: f32[1,256], index: 2, kind: input, shape index: {}]   ;;  %s12122_s3 = inlined_call_operand.vmem [shape: bf16[256,18], index: 3, kind: input, shape index: {}]   ;;  %s12123_s4 = inlined_call_operand.vmem [shape: f32[1,2], index: 4, kind: input, shape index: {}]   ;;  %s12124_s5 = inlined_call_operand.vmem [shape: f32[2,16,16,2], index: 5, kind: output, shape index: {}]  }
   0x1 LB: > { %s7659_s19 = sadd.s32 4294967295, %s8857_s18   ;;  %p7663_p0 = scmp.ge.s32.totalorder %s8857_s18, 1  ;;  %s8857_s18 = sphi %s8899_s18, %s15_s18  }
   0x2   : > { %p187_p1 = scmp.lt.s32.totalorder %s8857_s18, 3 }
   0x4   : > { %p188_p2 = pnand %p7663_p0, %p187_p1 }
   0x6   : > { %191 = sbr.rel (%p188_p2) target bundleno = 1486 (0x5ce), region = 40 }
   0xb   : > { %v8410_v0 = vld [vmem:[%s12120_s1 + $0x74] ss:$8 sps:$4 sm:$0xff]   ;;  %v8412_v1 = vld [vmem:[%s12120_s1 + $0x70] ss:$8 sps:$4 sm:$0xff]   ;;  %v8416_v4 = vld [vmem:[%s12120_s1 + $0x64] ss:$8 sps:$4 sm:$0xff]  }
   0xc   : > { %4502 = vmatprep.subr.bf16.mxu0 %v8410_v0  ;;  %v8413_v2 = vld [vmem:[%s12120_s1 + $0x174] ss:$8 sps:$4 sm:$0xff]   ;;  %v8415_v3 = vld [vmem:[%s12120_s1 + $0x170] ss:$8 sps:$4 sm:$0xff]   ;;  %v8418_v5 = vld [vmem:[%s12120_s1 + $0x60] ss:$8 sps:$4 sm:$0xff]  }
   0xd   : > { %4503 = vmatpush1.bf16.msra.mxu0 %v8412_v1  ;;  %4695 = vmatprep.subr.bf16.mxu1 %v8413_v2  ;;  %v8419_v6 = vld [vmem:[%s12120_s1 + $0x164] ss:$8 sps:$4 sm:$0xff]   ;;  %v8421_v7 = vld [vmem:[%s12120_s1 + $0x160] ss:$8 sps:$4 sm:$0xff]   ;;  %v8422_v8 = vld [vmem:[%s12120_s1 + $0x54] ss:$8 sps:$4 sm:$0xff]  }
   0xe   : > { %4696 = vmatpush1.bf16.msra.mxu1 %v8415_v3  ;;  %4504 = vmatprep.subr.bf16.mxu0 %v8416_v4  ;;  %v8424_v9 = vld [vmem:[%s12120_s1 + $0x50] ss:$8 sps:$4 sm:$0xff]   ;;  %v8425_v10 = vld [vmem:[%s12120_s1 + $0x154] ss:$8 sps:$4 sm:$0xff]   ;;  %v8428_v11 = vld [vmem:[%s12120_s1 + $0x44] ss:$8 sps:$4 sm:$0xff]  }
   0xf   : > { %4697 = vmatprep.subr.bf16.mxu1 %v8419_v6  ;;  %v8427_v12 = vld [vmem:[%s12120_s1 + $0x150] ss:$8 sps:$4 sm:$0xff]   ;;  %v8431_v13 = vld [vmem:[%s12120_s1 + $0x144] ss:$8 sps:$4 sm:$0xff]   ;;  %v8430_v14 = vld [vmem:[%s12120_s1 + $0x40] ss:$8 sps:$4 sm:$0xff]  }
  0x10   : > { %v8434_v15 = vld [vmem:[%s12120_s1 + $0x34] ss:$8 sps:$4 sm:$0xff]   ;;  %v8433_v16 = vld [vmem:[%s12120_s1 + $0x140] ss:$8 sps:$4 sm:$0xff]   ;;  %v8436_v18 = vld [vmem:[%s12120_s1 + $0x30] ss:$8 sps:$4 sm:$0xff]  }
  0x11   : > { %4505 = vmatpush1.bf16.msra.mxu0 %v8418_v5  ;;  %v8437_v17 = vld [vmem:[%s12120_s1 + $0x134] ss:$8 sps:$4 sm:$0xff]   ;;  %v8440_v19 = vld [vmem:[%s12120_s1 + $0x24] ss:$8 sps:$4 sm:$0xff]   ;;  %v8439_v20 = vld [vmem:[%s12120_s1 + $0x130] ss:$8 sps:$4 sm:$0xff]  }
  0x12   : > { %4506 = vmatprep.subr.bf16.mxu0 %v8422_v8  ;;  %4698 = vmatpush1.bf16.msra.mxu1 %v8421_v7  ;;  %v8443_v21 = vld [vmem:[%s12120_s1 + $0x124] ss:$8 sps:$4 sm:$0xff]   ;;  %v8442_v22 = vld [vmem:[%s12120_s1 + $0x20] ss:$8 sps:$4 sm:$0xff]   ;;  %v8446_v23 = vld [vmem:[%s12120_s1 + $0x14] ss:$8 sps:$4 sm:$0xff]  }
  0x13   : > { %4699 = vmatprep.subr.bf16.mxu1 %v8425_v10  ;;  %v8445_v24 = vld [vmem:[%s12120_s1 + $0x120] ss:$8 sps:$4 sm:$0xff]   ;;  %v8449_v25 = vld [vmem:[%s12120_s1 + $0x114] ss:$8 sps:$4 sm:$0xff]   ;;  %v8448_v26 = vld [vmem:[%s12120_s1 + $0x10] ss:$8 sps:$4 sm:$0xff]  }
  0x14   : > { %v8452_v27 = vld [vmem:[%s12120_s1 + $0x4] ss:$8 sps:$4 sm:$0xff]   ;;  %v8451_v28 = vld [vmem:[%s12120_s1 + $0x110] ss:$8 sps:$4 sm:$0xff]   ;;  %v8454_v30 = vld [vmem:[%s12120_s1] ss:$8 sps:$4 sm:$0xff]  }
  0x15   : > { %4507 = vmatpush1.bf16.msra.mxu0 %v8424_v9  ;;  %v8455_v29 = vld [vmem:[%s12120_s1 + $0x104] ss:$8 sps:$4 sm:$0xff]   ;;  %v8458_v31 = vld [vmem:[%s12120_s1 + $0xf4] ss:$8 sps:$4 sm:$0xff]   ;;  %p215_p3 = scmp.lt.s32.totalorder %s7659_s19, 1  ;;  %vm885_vm1 = vcmask 1042432  }
  0x16   : > { %4508 = vmatprep.subr.bf16.mxu0 %v8428_v11  ;;  %4700 = vmatpush1.bf16.msra.mxu1 %v8427_v12  ;;  %v8457_v32 = vld [vmem:[%s12120_s1 + $0x100] ss:$8 sps:$4 sm:$0xff]   ;;  %v8461_v33 = vld [vmem:[%s12120_s1 + $0x1f4] ss:$8 sps:$4 sm:$0xff]   ;;  %v8460_v34 = vld [vmem:[%s12120_s1 + $0xf0] ss:$8 sps:$4 sm:$0xff]  }
  0x17   : > { %4701 = vmatprep.subr.bf16.mxu1 %v8431_v13  ;;  %v8464_v35 = vld [vmem:[%s12120_s1 + $0xe4] ss:$8 sps:$4 sm:$0xff]   ;;  %s12349_s19 = smov (!%p215_p3, %s7659_s19), 1  ;;  %v8463_v36 = vld [vmem:[%s12120_s1 + $0x1f0] ss:$8 sps:$4 sm:$0xff]   ;;  %vm886_vm2 = vcmask 1046532  }
  0x18   : > { %v8467_v37 = vld [vmem:[%s12120_s1 + $0x1e4] ss:$8 sps:$4 sm:$0xff]   ;;  %v8466_v38 = vld [vmem:[%s12120_s1 + $0xe0] ss:$8 sps:$4 sm:$0xff]   ;;  %v8470_v39 = vld [vmem:[%s12120_s1 + $0xd4] ss:$8 sps:$4 sm:$0xff]  }
  0x19   : > { %4509 = vmatpush1.bf16.msra.mxu0 %v8430_v14  ;;  %s8391_s6 = smul.u32 216, %s12349_s19  ;;  %v8469_v40 = vld [vmem:[%s12120_s1 + $0x1e0] ss:$8 sps:$4 sm:$0xff]   ;;  %v8473_v41 = vld [vmem:[%s12120_s1 + $0x1d4] ss:$8 sps:$4 sm:$0xff]   ;;  %vm9082_vm4 = vmor %vm885_vm1, %vm886_vm2  ;;  %vm5852_vm6 = vcmask 146432  }
  0x1a   : > { %4510 = vmatprep.subr.bf16.mxu0 %v8434_v15  ;;  %4702 = vmatpush1.bf16.msra.mxu1 %v8433_v16  ;;  %vm338_vm0 = vsmask.f32 3328  ;;  %v8472_v42 = vld [vmem:[%s12120_s1 + $0xd0] ss:$8 sps:$4 sm:$0xff]   ;;  %v8476_v44 = vld [vmem:[%s12120_s1 + $0xc4] ss:$8 sps:$4 sm:$0xff]  }
  0x1b   : > { %4703 = vmatprep.subr.bf16.mxu1 %v8437_v17  ;;  %v8475_v43 = vld [vmem:[%s12120_s1 + $0x1d0] ss:$8 sps:$4 sm:$0xff]   ;;  %s9052_s21 = scalar_lea.vmem %s12119_s0, %s8391_s6  ;;  %v8478_v45 = vld [vmem:[%s12120_s1 + $0xc0] ss:$8 sps:$4 sm:$0xff]   ;;  %vm339_vm3 = vsmask.f32 7440 }
  0x1c   : > { %v8479_v46 = vld [vmem:[%s12120_s1 + $0x1c4] ss:$8 sps:$4 sm:$0xff]   ;;  %v226_v47 = vld [vmem:[%s9052_s21] sm:$0xf]  ;;  %v292_v52 = vld [vmem:[%s9052_s21 + $0x8] sm:$0x1] }
  0x1d   : > { %4511 = vmatpush1.bf16.msra.mxu0 %v8436_v18  ;;  %v227_v48 = vld [vmem:[%s9052_s21 + $0x4] sm:$0xf]  ;;  %v8481_v49 = vld [vmem:[%s12120_s1 + $0x1c0] ss:$8 sps:$4 sm:$0xff]   ;;  %258 = vst [vmem:[#allocation2] sm:$0xf] %v226_v47  ;;  %vm9096_vm5 = vmor %vm338_vm0, %vm339_vm3 }
  0x1e   : > { %4512 = vmatprep.subr.bf16.mxu0 %v8440_v19  ;;  %4704 = vmatpush1.bf16.msra.mxu1 %v8439_v20  ;;  %259 = vst [vmem:[#allocation2 + $0x24] sm:$0xf] %v227_v48  ;;  %v290_v50 = vld [vmem:[%s9052_s21] sm:$0xf]  ;;  %v291_v51 = vld [vmem:[%s9052_s21 + $0x4] sm:$0xf] }
  0x1f   : > { %4705 = vmatprep.subr.bf16.mxu1 %v8443_v21  ;;  %v8482_v53 = vld [vmem:[%s12120_s1 + $0xb4] ss:$8 sps:$4 sm:$0xff]   ;;  %v342_v54 = vshrl.u32 %v290_v50, 16  ;;  %v345_v55 = vshll.u32 %v290_v50, 16  ;;  %v351_v56 = vshll.u32 %v291_v51, 16  ;;  %v355_v57 = vshrl.u32 %v291_v51, 16 }
  0x20   : > { %v8484_v58 = vld [vmem:[%s12120_s1 + $0xb0] ss:$8 sps:$4 sm:$0xff]   ;;  %v8485_v59 = vld [vmem:[%s12120_s1 + $0x1b4] ss:$8 sps:$4 sm:$0xff]   ;;  %v361_v60 = vshll.u32 %v292_v52, 16  ;;  %vm5855_vm7 = vcmask 140288  }
  0x21   : > { %4513 = vmatpush1.bf16.msra.mxu0 %v8442_v22  ;;  %v8488_v61 = vld [vmem:[%s12120_s1 + $0xa4] ss:$8 sps:$4 sm:$0xff]   ;;  %v344_v62 = vrot.slane %v342_v54, 4  ;;  %v347_v63 = vrot.slane %v345_v55, 5  ;;  %v353_v0 = vrot.slane %v351_v56, 5  ;;  %v357_v1 = vrot.slane %v355_v57, 4 }
  0x22   : > { %4514 = vmatprep.subr.bf16.mxu0 %v8446_v23  ;;  %4706 = vmatpush1.bf16.msra.mxu1 %v8445_v24  ;;  %v8487_v3 = vld [vmem:[%s12120_s1 + $0x1b0] ss:$8 sps:$4 sm:$0xff]   ;;  %v363_v4 = vrot.slane %v361_v60, 5  ;;  %v789_v5 = vld [vmem:[%s9052_s21] sm:$0xe]  ;;  %s8861_s8 = smov 126  }
  0x23   : > { %4707 = vmatprep.subr.bf16.mxu1 %v8449_v25  ;;  %v790_v6 = vld [vmem:[%s9052_s21 + $0x4] sm:$0xf]  ;;  %v348_v9 = vor.u32 %v347_v63, %v344_v62  ;;  %v358_v10 = vor.u32 %v357_v1, %v353_v0  ;;  %v791_v11 = vld [vmem:[%s9052_s21 + $0x8] sm:$0x1]  ;;  %v7667_v12 = vrot.slane %v789_v5, 9  ;;  %vm5861_vm8 = vcmask 139264  }
  0x24   : > { %v8491_v7 = vld [vmem:[%s12120_s1 + $0x1a4] ss:$8 sps:$4 sm:$0xff]   ;;  %v890_v13 = vrot.slane %v790_v6, 5  ;;  %v8490_v15 = vld [vmem:[%s12120_s1 + $0xa0] ss:$8 sps:$4 sm:$0xff]   ;;  %v893_v16 = vrot.slane %v791_v11, 5 }
  0x25   : > { %4515 = vmatpush1.bf16.msra.mxu0 %v8448_v26  ;;  %v7683_v14 = vld [vmem:[%s9052_s21 + $0xc] sm:$0xf]  ;;  %v7684_v17 = vld [vmem:[%s9052_s21 + $0x10] sm:$0xf]  ;;  %v349_v19 = vrot.slane %v348_v9, 4  ;;  %v359_v20 = vrot.slane %v358_v10, 4 }
  0x26   : > { %4516 = vmatprep.subr.bf16.mxu0 %v8452_v27  ;;  %4708 = vmatpush1.bf16.msra.mxu1 %v8451_v28  ;;  %1097 = vst [vmem:[#allocation2 + $0xc] sm:$0xf] %v7683_v14  ;;  %v228_v18 = vld [vmem:[%s9052_s21 + $0xc] sm:$0xf]  ;;  %v891_v21 = vsel %vm9082_vm4, %v7667_v12, %v890_v13  ;;  %v892_v22 = vrot.slane %v890_v13, 4  ;;  %s8862_s9 = smov 124  }
  0x27   : > { %4709 = vmatprep.subr.bf16.mxu1 %v8455_v29  ;;  %1098 = vst [vmem:[#allocation2 + $0x30] sm:$0xf] %v7684_v17  ;;  %v229_v23 = vld [vmem:[%s9052_s21 + $0x10] sm:$0xf]  ;;  %260 = vst [vmem:[#allocation2 + $0x48] sm:$0xf] %v228_v18 }
  0x28   : > { %v8493_v24 = vld [vmem:[%s12120_s1 + $0x1a0] ss:$8 sps:$4 sm:$0xff]   ;;  %1032 = vst [vmem:[#allocation2 + $0x8] sm:$0xf] %v891_v21  ;;  %261 = vst [vmem:[#allocation2 + $0x6c] sm:$0xf] %v229_v23 }
  0x29   : > { %4517 = vmatpush1.bf16.msra.mxu0 %v8454_v30  ;;  %v293_v25 = vld [vmem:[%s9052_s21 + $0xc] sm:$0xf]  ;;  %v294_v26 = vld [vmem:[%s9052_s21 + $0x10] sm:$0xf]  ;;  %v295_v27 = vld [vmem:[%s9052_s21 + $0x14] sm:$0x1]  ;;  %v354_v30 = vsel %vm9096_vm5, %v349_v19, %v353_v0 }
  0x2a   : > { %4518 = vmatprep.subr.bf16.mxu0 %v8458_v31  ;;  %4710 = vmatpush1.bf16.msra.mxu1 %v8457_v32  ;;  %v8494_v28 = vld [vmem:[%s12120_s1 + $0x94] ss:$8 sps:$4 sm:$0xff]   ;;  %v364_v31 = vsel %vm9096_vm5, %v359_v20, %v363_v4  ;;  %v894_v32 = vsel %vm9082_vm4, %v892_v22, %v893_v16  ;;  %757 = vst [vmem:[#allocation2 + $0x4] sm:$0xf] %v354_v30  ;;  %v7685_v50 = vld [vmem:[%s9052_s21 + $0x18] sm:$0xf] }
  0x2b   : > { %4711 = vmatprep.subr.bf16.mxu1 %v8461_v33  ;;  %v8497_v29 = vld [vmem:[%s12120_s1 + $0x194] ss:$8 sps:$4 sm:$0xff]   ;;  %v366_v33 = vshrl.u32 %v293_v25, 16  ;;  %758 = vst [vmem:[#allocation2 + $0x28] sm:$0xf] %v364_v31  ;;  %s8863_s10 = smov 116  }
  0x2c   : > { %1033 = vst [vmem:[#allocation2 + $0x2c] sm:$0xf] %v894_v32  ;;  %1099 = vst [vmem:[#allocation2 + $0x54] sm:$0xf] %v7685_v50  ;;  %v230_v54 = vld [vmem:[%s9052_s21 + $0x18] sm:$0xf] }
  0x2d   : > { %4519 = vmatpush2.bf16.msra.mxu0 %v8460_v34  ;;  %v8496_v34 = vld [vmem:[%s12120_s1 + $0x90] ss:$8 sps:$4 sm:$0xff]   ;;  %v8502_v55 = vld [vmem:[%s12120_s1 + $0x80] ss:$8 sps:$4 sm:$0xff]   ;;  %262 = vst [vmem:[#allocation2 + $0x90] sm:$0xf] %v230_v54 }
  0x2e   : > { %4520 = vmatprep.subr.bf16.mxu0 %v8464_v35  ;;  %4712 = vmatpush2.bf16.msra.mxu1 %v8463_v36  ;;  %v369_v35 = vshll.u32 %v293_v25, 16  ;;  %v375_v36 = vshll.u32 %v294_v26, 16  ;;  %v297_v60 = vld [vmem:[%s9052_s21 + $0x1c] sm:$0xf]  ;;  %v298_v6 = vld [vmem:[%s9052_s21 + $0x20] sm:$0x1] }
  0x2f   : > { %4713 = vmatprep.subr.bf16.mxu1 %v8467_v37  ;;  %v379_v37 = vshrl.u32 %v294_v26, 16  ;;  %v403_v9 = vshrl.u32 %v297_v60, 16  ;;  %v8511_v10 = vld [vmem:[%s12120_s1 + $0x274] ss:$8 sps:$4 sm:$0xff]   ;;  %v8505_v14 = vld [vmem:[#allocation2] ss:$36 sps:$4 sm:$0xff]  }
  0x30   : > { %v377_v47 = vrot.slane %v375_v36, 5  ;;  %v8509_v16 = vld [vmem:[%s12120_s1 + $0x270] ss:$8 sps:$4 sm:$0xff]   ;;  %v8520_v22 = vld [vmem:[%s12120_s1 + $0x264] ss:$8 sps:$4 sm:$0xff]   ;;  %v409_v25 = vshll.u32 %v298_v6, 16 }
  0x31   : > { %4521 = vmatpush2.bf16.msra.mxu0 %v8466_v38  ;;  %v385_v38 = vshll.u32 %v295_v27, 16  ;;  %v381_v48 = vrot.slane %v379_v37, 4  ;;  %v8514_v21 = vld [vmem:[#allocation2 + $0xc] ss:$36 sps:$4 sm:$0xff]   ;;  %v795_v26 = vld [vmem:[%s9052_s21 + $0x18] sm:$0xe] }
  0x32   : > { %4522 = vmatprep.subr.bf16.mxu0 %v8470_v39  ;;  %4714 = vmatpush2.bf16.msra.mxu1 %v8469_v40  ;;  %v792_v39 = vld [vmem:[%s9052_s21 + $0xc] sm:$0xe]  ;;  %v796_v27 = vld [vmem:[%s9052_s21 + $0x1c] sm:$0xf]  ;;  %v411_v31 = vrot.slane %v409_v25, 5  ;;  %v7669_v32 = vrot.slane %v795_v26, 9 }
  0x33   : > { %4715 = vmatprep.subr.bf16.mxu1 %v8473_v41  ;;  %v8500_v40 = vld [vmem:[%s12120_s1 + $0x84] ss:$8 sps:$4 sm:$0xff]   ;;  %v368_v41 = vrot.slane %v366_v33, 4  ;;  %v382_v57 = vor.u32 %v381_v48, %v377_v47  ;;  %4727 = vmatprep.mubr.bf16.mxu1 %v8514_v21  ;;  %v7688_v37 = vld [vmem:[%s9052_s21 + $0x28] sm:$0xf]  ;;  %s8864_s11 = smov 114  }
  0x34   : > { %v8512_v20 = vld [vmem:[#allocation2 + $0x8] ss:$36 sps:$4 sm:$0xff]   ;;  %v7687_v33 = vld [vmem:[%s9052_s21 + $0x24] sm:$0xf]  ;;  %1102 = vst [vmem:[#allocation2 + $0xc0] sm:$0xf] %v7688_v37 }
  0x35   : > { %4523 = vmatpush2.bf16.msra.mxu0 %v8472_v42  ;;  %v793_v42 = vld [vmem:[%s9052_s21 + $0x10] sm:$0xf]  ;;  %v383_v5 = vrot.slane %v382_v57, 4  ;;  %1101 = vst [vmem:[#allocation2 + $0x9c] sm:$0xf] %v7687_v33  ;;  %s8865_s12 = smov 122  }
  0x36   : > { %4524 = vmatprep.subr.bf16.mxu0 %v8476_v44  ;;  %4716 = vmatpush2.bf16.msra.mxu1 %v8475_v43  ;;  %v794_v43 = vld [vmem:[%s9052_s21 + $0x14] sm:$0x1]  ;;  %v7668_v44 = vrot.slane %v792_v39, 9  ;;  %v897_v51 = vrot.slane %v793_v42, 5  ;;  %v299_v42 = vld [vmem:[%s9052_s21 + $0x24] sm:$0xf] }
  0x37   : > { %4717 = vmatprep.subr.bf16.mxu1 %v8479_v46  ;;  %v371_v46 = vrot.slane %v369_v35, 5  ;;  %v900_v52 = vrot.slane %v794_v43, 5  ;;  %v904_v35 = vrot.slane %v796_v27, 5  ;;  %v8529_v50 = vld [vmem:[%s12120_s1 + $0x254] ss:$8 sps:$4 sm:$0xff]   ;;  %s8866_s13 = smov 120  }
  0x38   : > { %v898_v62 = vsel %vm9082_vm4, %v7668_v44, %v897_v51  ;;  %v899_v63 = vrot.slane %v897_v51, 4  ;;  %v417_v51 = vshll.u32 %v299_v42, 16  ;;  %v8517_v57 = vld [vmem:[#allocation2 + $0x48] ss:$36 sps:$4 sm:$0xff]   ;;  %v8547_v37 = vld [vmem:[%s12120_s1 + $0x234] ss:$8 sps:$4 sm:$0xff]  }
  0x39   : > { %4525 = vmatpush2.bf16.msra.mxu0 %v8478_v45  ;;  %v8499_v45 = vld [vmem:[%s12120_s1 + $0x190] ss:$8 sps:$4 sm:$0xff]   ;;  %v372_v56 = vor.u32 %v371_v46, %v368_v41  ;;  %1034 = vst [vmem:[#allocation2 + $0x50] sm:$0xf] %v898_v62  ;;  %v233_v41 = vld [vmem:[%s9052_s21 + $0x28] sm:$0xf]  ;;  %v905_v43 = vsel %vm9082_vm4, %v7669_v32, %v904_v35 }
  0x3a   : > { %4526 = vmatprep.subr.bf16.mxu0 %v8482_v53  ;;  %4718 = vmatpush2.bf16.msra.mxu1 %v8481_v49  ;;  %v387_v49 = vrot.slane %v385_v38, 5  ;;  %v7686_v53 = vld [vmem:[%s9052_s21 + $0x1c] sm:$0xf]  ;;  %v901_v11 = vsel %vm9082_vm4, %v899_v63, %v900_v52  ;;  %v232_v38 = vld [vmem:[%s9052_s21 + $0x24] sm:$0xf]  ;;  %v906_v44 = vrot.slane %v904_v35, 4 }
  0x3b   : > { %4719 = vmatprep.subr.bf16.mxu1 %v8485_v59  ;;  %1100 = vst [vmem:[#allocation2 + $0x78] sm:$0xf] %v7686_v53  ;;  %v296_v59 = vld [vmem:[%s9052_s21 + $0x18] sm:$0xf]  ;;  %v373_v4 = vrot.slane %v372_v56, 4  ;;  %s8867_s14 = smov 118  }
  0x3c   : > { %v390_v0 = vshrl.u32 %v296_v59, 16  ;;  %v393_v1 = vshll.u32 %v296_v59, 16  ;;  %v388_v18 = vsel %vm9096_vm5, %v383_v5, %v387_v49  ;;  %1035 = vst [vmem:[#allocation2 + $0x74] sm:$0xf] %v901_v11  ;;  %264 = vst [vmem:[#allocation2 + $0xd8] sm:$0xf] %v232_v38 }
  0x3d   : > { %4527 = vmatpush2.bf16.msra.mxu0 %v8484_v58  ;;  %v231_v58 = vld [vmem:[%s9052_s21 + $0x1c] sm:$0xf]  ;;  %v378_v17 = vsel %vm9096_vm5, %v373_v4, %v377_v47  ;;  %760 = vst [vmem:[#allocation2 + $0x70] sm:$0xf] %v388_v18  ;;  %265 = vst [vmem:[#allocation2 + $0xfc] sm:$0xf] %v233_v41 }
  0x3e   : > { %4528 = vmatprep.subr.bf16.mxu0 %v8488_v61  ;;  %4720 = vmatpush2.bf16.msra.mxu1 %v8487_v3  ;;  %v8503_v61 = vld [vmem:[%s12120_s1 + $0x184] ss:$8 sps:$4 sm:$0xff]   ;;  %263 = vst [vmem:[#allocation2 + $0xb4] sm:$0xf] %v231_v58  ;;  %v8508_v3 = vld [vmem:[%s12120_s1 + $0x180] ss:$8 sps:$4 sm:$0xff]  }
  0x3f   : > { %4721 = vmatprep.subr.bf16.mxu1 %v8491_v7  ;;  %v399_v7 = vshll.u32 %v297_v60, 16  ;;  %v392_v12 = vrot.slane %v390_v0, 4  ;;  %v395_v13 = vrot.slane %v393_v1, 5  ;;  %759 = vst [vmem:[#allocation2 + $0x4c] sm:$0xf] %v378_v17  ;;  %v414_v47 = vshrl.u32 %v299_v42, 16 }
  0x40   : > { %v301_v46 = vld [vmem:[%s9052_s21 + $0x2c] sm:$0x1]  ;;  %1036 = vst [vmem:[#allocation2 + $0x98] sm:$0xf] %v905_v43  ;;  %v8527_v53 = vld [vmem:[%s12120_s1 + $0x250] ss:$8 sps:$4 sm:$0xff]  }
  0x41   : > { %4529 = vmatpush2.bf16.msra.mxu0 %v8490_v15  ;;  %v8507_v15 = vld [vmem:[#allocation2 + $0x4] ss:$36 sps:$4 sm:$0xff]   ;;  %v401_v19 = vrot.slane %v399_v7, 5  ;;  %v396_v23 = vor.u32 %v395_v13, %v392_v12  ;;  %v419_v58 = vrot.slane %v417_v51, 5  ;;  %v433_v60 = vshll.u32 %v301_v46, 16  ;;  %s8868_s15 = smov 112  }
  0x42   : > { %4530 = vmatprep.subr.bf16.mxu0 %v8494_v28  ;;  %4722 = vmatpush2.bf16.msra.mxu1 %v8493_v24  ;;  %v405_v24 = vrot.slane %v403_v9, 4  ;;  %v797_v28 = vld [vmem:[%s9052_s21 + $0x20] sm:$0x1]  ;;  %v8521_v48 = vld [vmem:[#allocation2 + $0x54] ss:$36 sps:$4 sm:$0xff]   ;;  %s8278_s16 = sshll.u32 %s12349_s19, 8 }
  0x43   : > { %4723 = vmatprep.subr.bf16.mxu1 %v8497_v29  ;;  %4534 = vmatprep.mubr.bf16.mxu0 %v8507_v15  ;;  %v397_v29 = vrot.slane %v396_v23, 4  ;;  %v907_v36 = vrot.slane %v797_v28, 5  ;;  %v8538_v63 = vld [vmem:[%s12120_s1 + $0x244] ss:$8 sps:$4 sm:$0xff]   ;;  %v799_v5 = vld [vmem:[%s9052_s21 + $0x28] sm:$0xf]  ;;  %s11448_s24 = scalar_lea.vmem %s12124_s5, %s8278_s16 }
  0x44   : > { %v406_v30 = vor.u32 %v405_v24, %v401_v19  ;;  %v798_v4 = vld [vmem:[%s9052_s21 + $0x24] sm:$0xe]  ;;  %v8536_v6 = vld [vmem:[%s12120_s1 + $0x240] ss:$8 sps:$4 sm:$0xff]   ;;  %v800_v7 = vld [vmem:[%s9052_s21 + $0x2c] sm:$0x1] }
  0x45   : > { %4531 = vmatpush2.bf16.msra.mxu0 %v8496_v34  ;;  %v8518_v34 = vld [vmem:[%s12120_s1 + $0x260] ss:$8 sps:$4 sm:$0xff]   ;;  %v402_v39 = vsel %vm9096_vm5, %v397_v29, %v401_v19  ;;  %v908_v54 = vsel %vm9082_vm4, %v906_v44, %v907_v36  ;;  %v7670_v9 = vrot.slane %v798_v4, 9  ;;  %v7689_v11 = vld [vmem:[%s9052_s21 + $0x30] sm:$0xf]  ;;  %vm7571_vm9 = vcmask 15360  }
  0x46   : > { %4532 = vmatprep.subr.bf16.mxu0 %v8500_v40  ;;  %4724 = vmatpush2.bf16.msra.mxu1 %v8499_v45  ;;  %v407_v40 = vrot.slane %v406_v30, 4  ;;  %761 = vst [vmem:[#allocation2 + $0x94] sm:$0xf] %v402_v39  ;;  %v300_v45 = vld [vmem:[%s9052_s21 + $0x28] sm:$0xf] }
  0x47   : > { %4725 = vmatprep.subr.bf16.mxu1 %v8503_v61  ;;  %v8515_v52 = vld [vmem:[#allocation2 + $0x4c] ss:$36 sps:$4 sm:$0xff]   ;;  %v423_v56 = vshll.u32 %v300_v45, 16  ;;  %1037 = vst [vmem:[#allocation2 + $0xbc] sm:$0xf] %v908_v54  ;;  %v427_v59 = vshrl.u32 %v300_v45, 16 }
  0x48   : > { %v412_v49 = vsel %vm9096_vm5, %v407_v40, %v411_v31  ;;  %v8523_v61 = vld [vmem:[#allocation2 + $0x50] ss:$36 sps:$4 sm:$0xff]   ;;  %1103 = vst [vmem:[#allocation2 + $0xe4] sm:$0xf] %v7689_v11  ;;  %v8530_v24 = vld [vmem:[#allocation2 + $0x9c] ss:$36 sps:$4 sm:$0xff]  }
  0x49   : > { %4533 = vmatpush2.bf16.msra.mxu0 %v8502_v55  ;;  %762 = vst [vmem:[#allocation2 + $0xb8] sm:$0xf] %v412_v49  ;;  %v416_v55 = vrot.slane %v414_v47, 4  ;;  %v425_v62 = vrot.slane %v423_v56, 5  ;;  %v429_v1 = vrot.slane %v427_v59, 4 }
  0x4a   : > { %4888 = vmatprep.subr.bf16.mxu0 %v8511_v10  ;;  %4726 = vmatpush2.bf16.msra.mxu1 %v8508_v3  ;;  %v435_v3 = vrot.slane %v433_v60, 5  ;;  %v911_v10 = vrot.slane %v799_v5, 5  ;;  %v7690_v15 = vld [vmem:[%s9052_s21 + $0x34] sm:$0xf]  ;;  %v234_v18 = vld [vmem:[%s9052_s21 + $0x30] sm:$0xf] }
  0x4b   : > { %v420_v0 = vor.u32 %v419_v58, %v416_v55  ;;  %v430_v13 = vor.u32 %v429_v1, %v425_v62  ;;  %1104 = vst [vmem:[#allocation2 + $0x108] sm:$0xf] %v7690_v15  ;;  %v235_v19 = vld [vmem:[%s9052_s21 + $0x34] sm:$0xf]  ;;  %266 = vst [vmem:[#allocation2 + $0x120] sm:$0xf] %v234_v18 }
  0x4c   : > { %4535 = vmatmul.mubr.bf16.vlgmr.msra.gmra.mxu0 %v8505_v14  ;;  %v914_v14 = vrot.slane %v800_v7, 5  ;;  %v913_v17 = vrot.slane %v911_v10, 4  ;;  %267 = vst [vmem:[#allocation2 + $0x144] sm:$0xf] %v235_v19  ;;  %v8526_v23 = vld [vmem:[#allocation2 + $0x90] ss:$36 sps:$4 sm:$0xff]  }
  0x4d   : > { %4889 = vmatpush1.bf16.msra.mxu0 %v8509_v16  ;;  %4728 = vmatmul.mubr.bf16.vlgmr.msra.gmra.mxu1 %v8512_v20  ;;  %v421_v12 = vrot.slane %v420_v0, 4  ;;  %v912_v16 = vsel %vm9082_vm4, %v7670_v9, %v911_v10  ;;  %v302_v28 = vld [vmem:[%s9052_s21 + $0x30] sm:$0xf]  ;;  %v303_v29 = vld [vmem:[%s9052_s21 + $0x34] sm:$0xf] }
  0x4e   : > { %4890 = vmatprep.subr.bf16.mxu0 %v8520_v22  ;;  %4737 = vmatprep.mubr.bf16.mxu1 %v8521_v48  ;;  %v431_v22 = vrot.slane %v430_v13, 4  ;;  %1038 = vst [vmem:[#allocation2 + $0xe0] sm:$0xf] %v912_v16  ;;  %v915_v25 = vsel %vm9082_vm4, %v913_v17, %v914_v14  ;;  %v8532_v26 = vld [vmem:[#allocation2 + $0x98] ss:$36 sps:$4 sm:$0xff]   ;;  %v438_v31 = vshrl.u32 %v302_v28, 16 }
  0x4f   : > { %4544 = vmatprep.mubr.bf16.mxu0 %v8515_v52  ;;  %v426_v21 = vsel %vm9096_vm5, %v421_v12, %v425_v62  ;;  %1039 = vst [vmem:[#allocation2 + $0x104] sm:$0xf] %v915_v25  ;;  %v304_v30 = vld [vmem:[%s9052_s21 + $0x38] sm:$0x1]  ;;  %v441_v32 = vshll.u32 %v302_v28, 16  ;;  %v447_v33 = vshll.u32 %v303_v29, 16 }
  0x50   : > { %v8524_v20 = vld [vmem:[#allocation2 + $0x94] ss:$36 sps:$4 sm:$0xff]   ;;  %763 = vst [vmem:[#allocation2 + $0xdc] sm:$0xf] %v426_v21  ;;  %v436_v27 = vsel %vm9096_vm5, %v431_v22, %v435_v3  ;;  %v457_v36 = vshll.u32 %v304_v30, 16  ;;  %v440_v39 = vrot.slane %v438_v31, 4 }
  0x51   : > { %4891 = vmatpush1.bf16.msra.mxu0 %v8518_v34  ;;  %764 = vst [vmem:[#allocation2 + $0x100] sm:$0xf] %v436_v27  ;;  %v451_v34 = vshrl.u32 %v303_v29, 16  ;;  %v8545_v35 = vld [vmem:[%s12120_s1 + $0x230] ss:$8 sps:$4 sm:$0xff]   ;;  %v443_v40 = vrot.slane %v441_v32, 5 }
  0x52   : > { %4892 = vmatprep.subr.bf16.mxu0 %v8529_v50  ;;  %v801_v38 = vld [vmem:[%s9052_s21 + $0x30] sm:$0xe]  ;;  %v449_v41 = vrot.slane %v447_v33, 5  ;;  %v802_v43 = vld [vmem:[%s9052_s21 + $0x34] sm:$0xf]  ;;  %v459_v44 = vrot.slane %v457_v36, 5 }
  0x53   : > { %v453_v42 = vrot.slane %v451_v34, 4  ;;  %v803_v45 = vld [vmem:[%s9052_s21 + $0x38] sm:$0x1]  ;;  %v7671_v46 = vrot.slane %v801_v38, 9  ;;  %v918_v47 = vrot.slane %v802_v43, 5  ;;  %v444_v48 = vor.u32 %v443_v40, %v440_v39 }
  0x54   : > { %4545 = vmatmul.mubr.bf16.gmra.mxu0 %v8517_v57  ;;  %v921_v50 = vrot.slane %v803_v45, 5  ;;  %v7691_v51 = vld [vmem:[%s9052_s21 + $0x3c] sm:$0xf]  ;;  %v7692_v52 = vld [vmem:[%s9052_s21 + $0x40] sm:$0xf] }
  0x55   : > { %4893 = vmatpush1.bf16.msra.mxu0 %v8527_v53  ;;  %4738 = vmatmul.mubr.bf16.gmra.mxu1 %v8523_v61  ;;  %v454_v49 = vor.u32 %v453_v42, %v449_v41  ;;  %v919_v53 = vsel %vm9082_vm4, %v7671_v46, %v918_v47  ;;  %v920_v54 = vrot.slane %v918_v47, 4  ;;  %1105 = vst [vmem:[#allocation2 + $0x12c] sm:$0xf] %v7691_v51  ;;  %1106 = vst [vmem:[#allocation2 + $0x150] sm:$0xf] %v7692_v52 }
  0x56   : > { %4894 = vmatprep.subr.bf16.mxu0 %v8538_v63  ;;  %4554 = vmatprep.mubr.bf16.mxu0 %v8524_v20  ;;  %v236_v55 = vld [vmem:[%s9052_s21 + $0x3c] sm:$0xf]  ;;  %v237_v56 = vld [vmem:[%s9052_s21 + $0x40] sm:$0xf]  ;;  %v8539_v57 = vld [vmem:[#allocation2 + $0xe4] ss:$36 sps:$4 sm:$0xff]  }
  0x57   : > { %4747 = vmatprep.mubr.bf16.mxu1 %v8530_v24  ;;  %v445_v58 = vrot.slane %v444_v48, 4  ;;  %1040 = vst [vmem:[#allocation2 + $0x128] sm:$0xf] %v919_v53  ;;  %268 = vst [vmem:[#allocation2 + $0x168] sm:$0xf] %v236_v55  ;;  %v455_v62 = vrot.slane %v454_v49, 4  ;;  %v922_v63 = vsel %vm9082_vm4, %v920_v54, %v921_v50 }
  0x58   : > { %269 = vst [vmem:[#allocation2 + $0x18c] sm:$0xf] %v237_v56  ;;  %v8533_v59 = vld [vmem:[#allocation2 + $0xdc] ss:$36 sps:$4 sm:$0xff]   ;;  %1041 = vst [vmem:[#allocation2 + $0x14c] sm:$0xf] %v922_v63 }
  0x59   : > { %4895 = vmatpush1.bf16.msra.mxu0 %v8536_v6  ;;  %v8535_v60 = vld [vmem:[#allocation2 + $0xd8] ss:$36 sps:$4 sm:$0xff]   ;;  %v8541_v61 = vld [vmem:[#allocation2 + $0xe0] ss:$36 sps:$4 sm:$0xff]   ;;  %v450_v0 = vsel %vm9096_vm5, %v445_v58, %v449_v41  ;;  %v460_v5 = vsel %vm9096_vm5, %v455_v62, %v459_v44  ;;  %v7694_v27 = vld [vmem:[%s9052_s21 + $0x4c] sm:$0xf] }
  0x5a   : > { %4896 = vmatprep.subr.bf16.mxu0 %v8547_v37  ;;  %v305_v1 = vld [vmem:[%s9052_s21 + $0x3c] sm:$0xf]  ;;  %v306_v3 = vld [vmem:[%s9052_s21 + $0x40] sm:$0xf]  ;;  %v307_v4 = vld [vmem:[%s9052_s21 + $0x44] sm:$0x1] }
  0x5b   : > { %765 = vst [vmem:[#allocation2 + $0x124] sm:$0xf] %v450_v0  ;;  %v462_v6 = vshrl.u32 %v305_v1, 16  ;;  %v465_v7 = vshll.u32 %v305_v1, 16  ;;  %v471_v9 = vshll.u32 %v306_v3, 16  ;;  %v475_v11 = vshrl.u32 %v306_v3, 16 }
  0x5c   : > { %4555 = vmatmul.mubr.bf16.gmra.mxu0 %v8526_v23  ;;  %v8554_v10 = vld [vmem:[%s12120_s1 + $0x220] ss:$8 sps:$4 sm:$0xff]   ;;  %766 = vst [vmem:[#allocation2 + $0x148] sm:$0xf] %v460_v5  ;;  %v481_v12 = vshll.u32 %v307_v4, 16 }
  0x5d   : > { %4897 = vmatpush1.bf16.msra.mxu0 %v8545_v35  ;;  %4748 = vmatmul.mubr.bf16.gmra.mxu1 %v8532_v26  ;;  %v8556_v13 = vld [vmem:[%s12120_s1 + $0x224] ss:$8 sps:$4 sm:$0xff]   ;;  %v804_v14 = vld [vmem:[%s9052_s21 + $0x3c] sm:$0xe]  ;;  %v464_v15 = vrot.slane %v462_v6, 4  ;;  %v467_v16 = vrot.slane %v465_v7, 5 }
  0x5e   : > { %4757 = vmatprep.mubr.bf16.mxu1 %v8539_v57  ;;  %4564 = vmatprep.mubr.bf16.mxu0 %v8533_v59  ;;  %v473_v17 = vrot.slane %v471_v9, 5  ;;  %v805_v18 = vld [vmem:[%s9052_s21 + $0x40] sm:$0xf]  ;;  %v7672_v19 = vrot.slane %v804_v14, 9  ;;  %v477_v20 = vrot.slane %v475_v11, 4  ;;  %v483_v21 = vrot.slane %v481_v12, 5 }
  0x5f   : > { %4898 = vmatprep.subr.bf16.mxu0 %v8556_v13  ;;  %v806_v22 = vld [vmem:[%s9052_s21 + $0x44] sm:$0x1]  ;;  %v925_v23 = vrot.slane %v805_v18, 5  ;;  %v468_v24 = vor.u32 %v467_v16, %v464_v15  ;;  %v7693_v26 = vld [vmem:[%s9052_s21 + $0x48] sm:$0xf] }
  0x60   : > { %v928_v25 = vrot.slane %v806_v22, 5  ;;  %v478_v28 = vor.u32 %v477_v20, %v473_v17  ;;  %1107 = vst [vmem:[#allocation2 + $0x174] sm:$0xf] %v7693_v26  ;;  %1108 = vst [vmem:[#allocation2 + $0x198] sm:$0xf] %v7694_v27 }
  0x61   : > { %4899 = vmatpush1.bf16.msra.mxu0 %v8554_v10  ;;  %v926_v29 = vsel %vm9082_vm4, %v7672_v19, %v925_v23  ;;  %v927_v30 = vrot.slane %v925_v23, 4  ;;  %v238_v31 = vld [vmem:[%s9052_s21 + $0x48] sm:$0xf]  ;;  %v239_v32 = vld [vmem:[%s9052_s21 + $0x4c] sm:$0xf]  ;;  %v469_v35 = vrot.slane %v468_v24, 4 }
  0x62   : > { %v8548_v33 = vld [vmem:[#allocation2 + $0x12c] ss:$36 sps:$4 sm:$0xff]   ;;  %1042 = vst [vmem:[#allocation2 + $0x170] sm:$0xf] %v926_v29  ;;  %270 = vst [vmem:[#allocation2 + $0x1b0] sm:$0xf] %v238_v31 }
  0x63   : > { %v8550_v34 = vld [vmem:[#allocation2 + $0x128] ss:$36 sps:$4 sm:$0xff]   ;;  %271 = vst [vmem:[#allocation2 + $0x1d4] sm:$0xf] %v239_v32  ;;  %v479_v36 = vrot.slane %v478_v28, 4  ;;  %v929_v37 = vsel %vm9082_vm4, %v927_v30, %v928_v25  ;;  %v474_v42 = vsel %vm9096_vm5, %v469_v35, %v473_v17 }
  0x64   : > { %4565 = vmatmul.mubr.bf16.gmra.mxu0 %v8535_v60  ;;  %v308_v38 = vld [vmem:[%s9052_s21 + $0x48] sm:$0xf]  ;;  %v309_v39 = vld [vmem:[%s9052_s21 + $0x4c] sm:$0xf]  ;;  %v8544_v41 = vld [vmem:[#allocation2 + $0x120] ss:$36 sps:$4 sm:$0xff]  }
  0x65   : > { %4758 = vmatmul.mubr.bf16.gmra.mxu1 %v8541_v61  ;;  %v8542_v40 = vld [vmem:[#allocation2 + $0x124] ss:$36 sps:$4 sm:$0xff]   ;;  %1043 = vst [vmem:[#allocation2 + $0x194] sm:$0xf] %v929_v37  ;;  %v486_v43 = vshrl.u32 %v308_v38, 16  ;;  %v484_v44 = vsel %vm9096_vm5, %v479_v36, %v483_v21  ;;  %v489_v46 = vshll.u32 %v308_v38, 16 }
  0x66   : > { %4767 = vmatprep.mubr.bf16.mxu1 %v8548_v33  ;;  %767 = vst [vmem:[#allocation2 + $0x16c] sm:$0xf] %v474_v42  ;;  %v310_v45 = vld [vmem:[%s9052_s21 + $0x50] sm:$0x1]  ;;  %v495_v47 = vshll.u32 %v309_v39, 16  ;;  %v499_v48 = vshrl.u32 %v309_v39, 16  ;;  %4574 = vmatprep.mubr.bf16.mxu0 %v8542_v40 }
  0x67   : > { %768 = vst [vmem:[#allocation2 + $0x190] sm:$0xf] %v484_v44  ;;  %v488_v49 = vrot.slane %v486_v43, 4  ;;  %v505_v50 = vshll.u32 %v310_v45, 16  ;;  %v8563_v51 = vld [vmem:[%s12120_s1 + $0x210] ss:$8 sps:$4 sm:$0xff]  }
  0x68   : > { %v8565_v52 = vld [vmem:[%s12120_s1 + $0x214] ss:$8 sps:$4 sm:$0xff]   ;;  %v491_v53 = vrot.slane %v489_v46, 5  ;;  %v497_v54 = vrot.slane %v495_v47, 5  ;;  %v501_v55 = vrot.slane %v499_v48, 4 }
  0x69   : > { %v807_v56 = vld [vmem:[%s9052_s21 + $0x48] sm:$0xe]  ;;  %v507_v57 = vrot.slane %v505_v50, 5  ;;  %4900 = vmatprep.subr.bf16.mxu0 %v8565_v52  ;;  %v808_v58 = vld [vmem:[%s9052_s21 + $0x4c] sm:$0xf] }
  0x6a   : > { %v809_v59 = vld [vmem:[%s9052_s21 + $0x50] sm:$0x1]  ;;  %v7673_v60 = vrot.slane %v807_v56, 9  ;;  %v492_v61 = vor.u32 %v491_v53, %v488_v49  ;;  %v502_v62 = vor.u32 %v501_v55, %v497_v54  ;;  %v932_v63 = vrot.slane %v808_v58, 5  ;;  %v7695_v1 = vld [vmem:[%s9052_s21 + $0x54] sm:$0xf]  ;;  %4901 = vmatpush1.bf16.msra.mxu0 %v8563_v51 }
  0x6b   : > { %v935_v0 = vrot.slane %v809_v59, 5  ;;  %v7696_v3 = vld [vmem:[%s9052_s21 + $0x58] sm:$0xf]  ;;  %1109 = vst [vmem:[#allocation2 + $0x1bc] sm:$0xf] %v7695_v1 }
  0x6c   : > { %4575 = vmatmul.mubr.bf16.gmra.mxu0 %v8544_v41  ;;  %v240_v4 = vld [vmem:[%s9052_s21 + $0x54] sm:$0xf]  ;;  %v241_v5 = vld [vmem:[%s9052_s21 + $0x58] sm:$0xf]  ;;  %v493_v9 = vrot.slane %v492_v61, 4  ;;  %v933_v10 = vsel %vm9082_vm4, %v7673_v60, %v932_v63  ;;  %v503_v11 = vrot.slane %v502_v62, 4 }
  0x6d   : > { %4768 = vmatmul.mubr.bf16.gmra.mxu1 %v8550_v34  ;;  %v8557_v6 = vld [vmem:[#allocation2 + $0x174] ss:$36 sps:$4 sm:$0xff]   ;;  %1110 = vst [vmem:[#allocation2 + $0x1e0] sm:$0xf] %v7696_v3  ;;  %272 = vst [vmem:[#allocation2 + $0x1f8] sm:$0xf] %v240_v4 }
  0x6e   : > { %v8559_v7 = vld [vmem:[#allocation2 + $0x170] ss:$36 sps:$4 sm:$0xff]   ;;  %273 = vst [vmem:[#allocation2 + $0x21c] sm:$0xf] %v241_v5  ;;  %v934_v12 = vrot.slane %v932_v63, 4  ;;  %4777 = vmatprep.mubr.bf16.mxu1 %v8557_v6  ;;  %v498_v16 = vsel %vm9096_vm5, %v493_v9, %v497_v54  ;;  %v508_v18 = vsel %vm9096_vm5, %v503_v11, %v507_v57 }
  0x6f   : > { %1044 = vst [vmem:[#allocation2 + $0x1b8] sm:$0xf] %v933_v10  ;;  %v311_v13 = vld [vmem:[%s9052_s21 + $0x54] sm:$0xf]  ;;  %v8551_v14 = vld [vmem:[#allocation2 + $0x16c] ss:$36 sps:$4 sm:$0xff]  }
  0x70   : > { %v8553_v15 = vld [vmem:[#allocation2 + $0x168] ss:$36 sps:$4 sm:$0xff]   ;;  %v510_v17 = vshrl.u32 %v311_v13, 16  ;;  %769 = vst [vmem:[#allocation2 + $0x1b4] sm:$0xf] %v498_v16  ;;  %v936_v19 = vsel %vm9082_vm4, %v934_v12, %v935_v0  ;;  %v513_v22 = vshll.u32 %v311_v13, 16  ;;  %4584 = vmatprep.mubr.bf16.mxu0 %v8551_v14 }
  0x71   : > { %v312_v20 = vld [vmem:[%s9052_s21 + $0x58] sm:$0xf]  ;;  %v313_v21 = vld [vmem:[%s9052_s21 + $0x5c] sm:$0x1]  ;;  %770 = vst [vmem:[#allocation2 + $0x1d8] sm:$0xf] %v508_v18 }
  0x72   : > { %1045 = vst [vmem:[#allocation2 + $0x1dc] sm:$0xf] %v936_v19  ;;  %v512_v23 = vrot.slane %v510_v17, 4  ;;  %v519_v24 = vshll.u32 %v312_v20, 16  ;;  %v523_v25 = vshrl.u32 %v312_v20, 16  ;;  %v529_v26 = vshll.u32 %v313_v21, 16 }
  0x73   : > { %v8572_v27 = vld [vmem:[%s12120_s1 + $0x200] ss:$8 sps:$4 sm:$0xff]   ;;  %v515_v28 = vrot.slane %v513_v22, 5  ;;  %v8574_v29 = vld [vmem:[%s12120_s1 + $0x204] ss:$8 sps:$4 sm:$0xff]  }
  0x74   : > { %4585 = vmatmul.mubr.bf16.gmra.mxu0 %v8553_v15  ;;  %v810_v30 = vld [vmem:[%s9052_s21 + $0x54] sm:$0xe]  ;;  %v521_v31 = vrot.slane %v519_v24, 5  ;;  %v525_v32 = vrot.slane %v523_v25, 4  ;;  %v531_v33 = vrot.slane %v529_v26, 5  ;;  %4902 = vmatprep.subr.bf16.mxu0 %v8574_v29 }
  0x75   : > { %4778 = vmatmul.mubr.bf16.gmra.mxu1 %v8559_v7  ;;  %v811_v34 = vld [vmem:[%s9052_s21 + $0x58] sm:$0xf]  ;;  %v7674_v35 = vrot.slane %v810_v30, 9  ;;  %v516_v36 = vor.u32 %v515_v28, %v512_v23  ;;  %v812_v37 = vld [vmem:[%s9052_s21 + $0x5c] sm:$0x1]  ;;  %4903 = vmatpush1.bf16.msra.mxu0 %v8572_v27 }
  0x76   : > { %v939_v38 = vrot.slane %v811_v34, 5  ;;  %v7697_v39 = vld [vmem:[%s9052_s21 + $0x60] sm:$0xf]  ;;  %v526_v40 = vor.u32 %v525_v32, %v521_v31  ;;  %v942_v41 = vrot.slane %v812_v37, 5  ;;  %v7698_v42 = vld [vmem:[%s9052_s21 + $0x64] sm:$0xf] }
  0x77   : > { %1111 = vst [vmem:[#allocation2 + $0x204] sm:$0xf] %v7697_v39  ;;  %v242_v43 = vld [vmem:[%s9052_s21 + $0x60] sm:$0xf]  ;;  %v517_v44 = vrot.slane %v516_v36, 4 }
  0x78   : > { %v940_v45 = vsel %vm9082_vm4, %v7674_v35, %v939_v38  ;;  %v941_v46 = vrot.slane %v939_v38, 4  ;;  %1112 = vst [vmem:[#allocation2 + $0x228] sm:$0xf] %v7698_v42  ;;  %v243_v47 = vld [vmem:[%s9052_s21 + $0x64] sm:$0xf]  ;;  %v527_v49 = vrot.slane %v526_v40, 4 }
  0x79   : > { %274 = vst [vmem:[#allocation2 + $0x240] sm:$0xf] %v242_v43  ;;  %v314_v48 = vld [vmem:[%s9052_s21 + $0x60] sm:$0xf]  ;;  %1046 = vst [vmem:[#allocation2 + $0x200] sm:$0xf] %v940_v45  ;;  %v522_v54 = vsel %vm9096_vm5, %v517_v44, %v521_v31 }
  0x7a   : > { %275 = vst [vmem:[#allocation2 + $0x264] sm:$0xf] %v243_v47  ;;  %v315_v50 = vld [vmem:[%s9052_s21 + $0x64] sm:$0xf]  ;;  %v316_v51 = vld [vmem:[%s9052_s21 + $0x68] sm:$0x1]  ;;  %v943_v55 = vsel %vm9082_vm4, %v941_v46, %v942_v41  ;;  %v532_v59 = vsel %vm9096_vm5, %v527_v49, %v531_v33 }
  0x7b   : > { %v8560_v52 = vld [vmem:[#allocation2 + $0x1b4] ss:$36 sps:$4 sm:$0xff]   ;;  %v534_v56 = vshrl.u32 %v314_v48, 16  ;;  %v8566_v57 = vld [vmem:[#allocation2 + $0x1bc] ss:$36 sps:$4 sm:$0xff]   ;;  %v537_v60 = vshll.u32 %v314_v48, 16 }
  0x7c   : > { %v8562_v53 = vld [vmem:[#allocation2 + $0x1b0] ss:$36 sps:$4 sm:$0xff]   ;;  %v8568_v58 = vld [vmem:[#allocation2 + $0x1b8] ss:$36 sps:$4 sm:$0xff]   ;;  %771 = vst [vmem:[#allocation2 + $0x1fc] sm:$0xf] %v522_v54  ;;  %4594 = vmatprep.mubr.bf16.mxu0 %v8560_v52  ;;  %4787 = vmatprep.mubr.bf16.mxu1 %v8566_v57 }
  0x7d   : > { %1047 = vst [vmem:[#allocation2 + $0x224] sm:$0xf] %v943_v55  ;;  %772 = vst [vmem:[#allocation2 + $0x220] sm:$0xf] %v532_v59  ;;  %v536_v61 = vrot.slane %v534_v56, 4  ;;  %v543_v62 = vshll.u32 %v315_v50, 16  ;;  %4595 = vmatmul.mubr.bf16.gmra.mxu0 %v8562_v53  ;;  %4788 = vmatmul.mubr.bf16.gmra.mxu1 %v8568_v58 }
  0x7e   : > { %v547_v63 = vshrl.u32 %v315_v50, 16  ;;  %v553_v0 = vshll.u32 %v316_v51, 16  ;;  %v8581_v1 = vld [vmem:[%s12120_s1 + $0x2f0] ss:$8 sps:$4 sm:$0xff]   ;;  %v539_v3 = vrot.slane %v537_v60, 5 }
  0x7f   : > { %v8583_v4 = vld [vmem:[%s12120_s1 + $0x2f4] ss:$8 sps:$4 sm:$0xff]   ;;  %v813_v5 = vld [vmem:[%s9052_s21 + $0x60] sm:$0xe]  ;;  %v545_v6 = vrot.slane %v543_v62, 5 }
  0x80   : > { %v549_v7 = vrot.slane %v547_v63, 4  ;;  %v555_v9 = vrot.slane %v553_v0, 5  ;;  %v814_v10 = vld [vmem:[%s9052_s21 + $0x64] sm:$0xf]  ;;  %v7675_v11 = vrot.slane %v813_v5, 9  ;;  %v540_v12 = vor.u32 %v539_v3, %v536_v61  ;;  %4904 = vmatprep.subr.bf16.mxu0 %v8583_v4 }
  0x81   : > { %v815_v13 = vld [vmem:[%s9052_s21 + $0x68] sm:$0x1]  ;;  %v946_v14 = vrot.slane %v814_v10, 5  ;;  %v7699_v15 = vld [vmem:[%s9052_s21 + $0x6c] sm:$0xf]  ;;  %4905 = vmatpush2.bf16.msra.mxu0 %v8581_v1 }
  0x82   : > { %v550_v16 = vor.u32 %v549_v7, %v545_v6  ;;  %v949_v17 = vrot.slane %v815_v13, 5  ;;  %v7700_v18 = vld [vmem:[%s9052_s21 + $0x70] sm:$0xf]  ;;  %1113 = vst [vmem:[#allocation2 + $0x24c] sm:$0xf] %v7699_v15  ;;  %v541_v20 = vrot.slane %v540_v12, 4 }
  0x83   : > { %v8587_v19 = vld [vmem:[%s12120_s1 + $0x370] ss:$8 sps:$4 sm:$0xff]   ;;  %v947_v21 = vsel %vm9082_vm4, %v7675_v11, %v946_v14  ;;  %v948_v22 = vrot.slane %v946_v14, 4  ;;  %1114 = vst [vmem:[#allocation2 + $0x270] sm:$0xf] %v7700_v18 }
  0x84   : > { %v8589_v23 = vld [vmem:[%s12120_s1 + $0x374] ss:$8 sps:$4 sm:$0xff]   ;;  %v8575_v24 = vld [vmem:[#allocation2 + $0x204] ss:$36 sps:$4 sm:$0xff]   ;;  %v551_v25 = vrot.slane %v550_v16, 4  ;;  %v546_v29 = vsel %vm9096_vm5, %v541_v20, %v545_v6 }
  0x85   : > { %1048 = vst [vmem:[#allocation2 + $0x248] sm:$0xf] %v947_v21  ;;  %v8590_v26 = vld [vmem:[%s12120_s1 + $0x360] ss:$8 sps:$4 sm:$0xff]   ;;  %v8571_v28 = vld [vmem:[#allocation2 + $0x1f8] ss:$36 sps:$4 sm:$0xff]   ;;  %v950_v30 = vsel %vm9082_vm4, %v948_v22, %v949_v17  ;;  %5081 = vmatprep.subr.bf16.mxu1 %v8589_v23  ;;  %4797 = vmatprep.mubr.bf16.mxu1 %v8575_v24 }
  0x86   : > { %v8569_v27 = vld [vmem:[#allocation2 + $0x1fc] ss:$36 sps:$4 sm:$0xff]   ;;  %v556_v32 = vsel %vm9096_vm5, %v551_v25, %v555_v9  ;;  %773 = vst [vmem:[#allocation2 + $0x244] sm:$0xf] %v546_v29  ;;  %1049 = vst [vmem:[#allocation2 + $0x26c] sm:$0xf] %v950_v30  ;;  %5082 = vmatpush1.bf16.msra.mxu1 %v8587_v19 }
  0x87   : > { %v8577_v31 = vld [vmem:[#allocation2 + $0x200] ss:$36 sps:$4 sm:$0xff]   ;;  %v244_v34 = vld [vmem:[%s9052_s21 + $0x6c] sm:$0xf]  ;;  %4604 = vmatprep.mubr.bf16.mxu0 %v8569_v27  ;;  %774 = vst [vmem:[#allocation2 + $0x268] sm:$0xf] %v556_v32 }
  0x88   : > { %v8592_v33 = vld [vmem:[%s12120_s1 + $0x364] ss:$8 sps:$4 sm:$0xff]   ;;  %v245_v35 = vld [vmem:[%s9052_s21 + $0x70] sm:$0xf]  ;;  %276 = vst [vmem:[#allocation2 + $0x288] sm:$0xf] %v244_v34  ;;  %4605 = vmatmul.mubr.bf16.gmra.mxu0 %v8571_v28  ;;  %4798 = vmatmul.mubr.bf16.gmra.mxu1 %v8577_v31 }
  0x89   : > { %v317_v36 = vld [vmem:[%s9052_s21 + $0x6c] sm:$0xf]  ;;  %v318_v37 = vld [vmem:[%s9052_s21 + $0x70] sm:$0xf]  ;;  %277 = vst [vmem:[#allocation2 + $0x2ac] sm:$0xf] %v245_v35  ;;  %5083 = vmatprep.subr.bf16.mxu1 %v8592_v33 }
  0x8a   : > { %v319_v38 = vld [vmem:[%s9052_s21 + $0x74] sm:$0x1]  ;;  %v558_v39 = vshrl.u32 %v317_v36, 16  ;;  %v561_v40 = vshll.u32 %v317_v36, 16  ;;  %v567_v41 = vshll.u32 %v318_v37, 16  ;;  %v571_v42 = vshrl.u32 %v318_v37, 16  ;;  %5084 = vmatpush1.bf16.msra.mxu1 %v8590_v26 }
  0x8b   : > { %v577_v43 = vshll.u32 %v319_v38, 16  ;;  %v8596_v44 = vld [vmem:[%s12120_s1 + $0x2e0] ss:$8 sps:$4 sm:$0xff]   ;;  %v8598_v45 = vld [vmem:[%s12120_s1 + $0x2e4] ss:$8 sps:$4 sm:$0xff]  }
  0x8c   : > { %v560_v46 = vrot.slane %v558_v39, 4  ;;  %v563_v47 = vrot.slane %v561_v40, 5  ;;  %v569_v48 = vrot.slane %v567_v41, 5  ;;  %v573_v49 = vrot.slane %v571_v42, 4  ;;  %v816_v50 = vld [vmem:[%s9052_s21 + $0x6c] sm:$0xe]  ;;  %4906 = vmatprep.subr.bf16.mxu0 %v8598_v45 }
  0x8d   : > { %v817_v51 = vld [vmem:[%s9052_s21 + $0x70] sm:$0xf]  ;;  %v818_v52 = vld [vmem:[%s9052_s21 + $0x74] sm:$0x1]  ;;  %v7676_v55 = vrot.slane %v816_v50, 9  ;;  %4907 = vmatpush2.bf16.msra.mxu0 %v8596_v44  ;;  %v579_v60 = vrot.slane %v577_v43, 5 }
  0x8e   : > { %v564_v53 = vor.u32 %v563_v47, %v560_v46  ;;  %v574_v54 = vor.u32 %v573_v49, %v569_v48  ;;  %v953_v56 = vrot.slane %v817_v51, 5  ;;  %v7701_v57 = vld [vmem:[%s9052_s21 + $0x78] sm:$0xf]  ;;  %v7702_v58 = vld [vmem:[%s9052_s21 + $0x7c] sm:$0xf]  ;;  %v956_v61 = vrot.slane %v818_v52, 5 }
  0x8f   : > { %v8584_v59 = vld [vmem:[#allocation2 + $0x24c] ss:$36 sps:$4 sm:$0xff]   ;;  %1115 = vst [vmem:[#allocation2 + $0x294] sm:$0xf] %v7701_v57  ;;  %1116 = vst [vmem:[#allocation2 + $0x2b8] sm:$0xf] %v7702_v58 }
  0x90   : > { %v8578_v62 = vld [vmem:[#allocation2 + $0x244] ss:$36 sps:$4 sm:$0xff]   ;;  %v565_v0 = vrot.slane %v564_v53, 4  ;;  %v954_v1 = vsel %vm9082_vm4, %v7676_v55, %v953_v56  ;;  %4807 = vmatprep.mubr.bf16.mxu1 %v8584_v59  ;;  %v575_v4 = vrot.slane %v574_v54, 4  ;;  %v955_v5 = vrot.slane %v953_v56, 4 }
  0x91   : > { %v8580_v63 = vld [vmem:[#allocation2 + $0x240] ss:$36 sps:$4 sm:$0xff]   ;;  %v8586_v3 = vld [vmem:[#allocation2 + $0x248] ss:$36 sps:$4 sm:$0xff]   ;;  %1050 = vst [vmem:[#allocation2 + $0x290] sm:$0xf] %v954_v1  ;;  %4614 = vmatprep.mubr.bf16.mxu0 %v8578_v62 }
  0x92   : > { %v570_v6 = vsel %vm9096_vm5, %v565_v0, %v569_v48  ;;  %v8602_v7 = vld [vmem:[%s12120_s1 + $0x350] ss:$8 sps:$4 sm:$0xff]   ;;  %v8604_v9 = vld [vmem:[%s12120_s1 + $0x354] ss:$8 sps:$4 sm:$0xff]   ;;  %4615 = vmatmul.mubr.bf16.gmra.mxu0 %v8580_v63  ;;  %4808 = vmatmul.mubr.bf16.gmra.mxu1 %v8586_v3  ;;  %v580_v10 = vsel %vm9096_vm5, %v575_v4, %v579_v60  ;;  %v957_v11 = vsel %vm9082_vm4, %v955_v5, %v956_v61  ;;  %v8605_v12 = vld [vmem:[%s12120_s1 + $0x340] ss:$8 sps:$4 sm:$0xff]  }
  0x93   : > { %775 = vst [vmem:[#allocation2 + $0x28c] sm:$0xf] %v570_v6  ;;  %v8607_v13 = vld [vmem:[%s12120_s1 + $0x344] ss:$8 sps:$4 sm:$0xff]   ;;  %v246_v14 = vld [vmem:[%s9052_s21 + $0x78] sm:$0xf]  ;;  %5085 = vmatprep.subr.bf16.mxu1 %v8604_v9 }
  0x94   : > { %776 = vst [vmem:[#allocation2 + $0x2b0] sm:$0xf] %v580_v10  ;;  %1051 = vst [vmem:[#allocation2 + $0x2b4] sm:$0xf] %v957_v11  ;;  %v247_v15 = vld [vmem:[%s9052_s21 + $0x7c] sm:$0xf]  ;;  %5086 = vmatpush1.bf16.msra.mxu1 %v8602_v7 }
  0x95   : > { %278 = vst [vmem:[#allocation2 + $0x2d0] sm:$0xf] %v246_v14  ;;  %v320_v16 = vld [vmem:[%s9052_s21 + $0x78] sm:$0xf]  ;;  %v321_v17 = vld [vmem:[%s9052_s21 + $0x7c] sm:$0xf]  ;;  %5087 = vmatprep.subr.bf16.mxu1 %v8607_v13 }
  0x96   : > { %279 = vst [vmem:[#allocation2 + $0x2f4] sm:$0xf] %v247_v15  ;;  %v322_v18 = vld [vmem:[%s9052_s21 + $0x80] sm:$0x1]  ;;  %v582_v19 = vshrl.u32 %v320_v16, 16  ;;  %v585_v20 = vshll.u32 %v320_v16, 16 }
  0x97   : > { %v591_v21 = vshll.u32 %v321_v17, 16  ;;  %v595_v22 = vshrl.u32 %v321_v17, 16  ;;  %v601_v23 = vshll.u32 %v322_v18, 16  ;;  %v8611_v24 = vld [vmem:[%s12120_s1 + $0x2d0] ss:$8 sps:$4 sm:$0xff]  }
  0x98   : > { %v584_v25 = vrot.slane %v582_v19, 4  ;;  %v587_v26 = vrot.slane %v585_v20, 5  ;;  %v8613_v29 = vld [vmem:[%s12120_s1 + $0x2d4] ss:$8 sps:$4 sm:$0xff]   ;;  %v819_v30 = vld [vmem:[%s9052_s21 + $0x78] sm:$0xe]  ;;  %5088 = vmatpush1.bf16.msra.mxu1 %v8605_v12 }
  0x99   : > { %v593_v27 = vrot.slane %v591_v21, 5  ;;  %v597_v28 = vrot.slane %v595_v22, 4  ;;  %v820_v31 = vld [vmem:[%s9052_s21 + $0x7c] sm:$0xf]  ;;  %4908 = vmatprep.subr.bf16.mxu0 %v8613_v29  ;;  %v821_v34 = vld [vmem:[%s9052_s21 + $0x80] sm:$0x1] }
  0x9a   : > { %v588_v32 = vor.u32 %v587_v26, %v584_v25  ;;  %v7677_v35 = vrot.slane %v819_v30, 9  ;;  %v960_v36 = vrot.slane %v820_v31, 5  ;;  %v7703_v37 = vld [vmem:[%s9052_s21 + $0x84] sm:$0xf]  ;;  %v603_v38 = vrot.slane %v601_v23, 5  ;;  %4909 = vmatpush2.bf16.msra.mxu0 %v8611_v24 }
  0x9b   : > { %v598_v33 = vor.u32 %v597_v28, %v593_v27  ;;  %v963_v39 = vrot.slane %v821_v34, 5  ;;  %v7704_v40 = vld [vmem:[%s9052_s21 + $0x88] sm:$0xf]  ;;  %1117 = vst [vmem:[#allocation2 + $0x2dc] sm:$0xf] %v7703_v37 }
  0x9c   : > { %v8593_v41 = vld [vmem:[#allocation2 + $0x28c] ss:$36 sps:$4 sm:$0xff]   ;;  %v589_v43 = vrot.slane %v588_v32, 4  ;;  %v961_v44 = vsel %vm9082_vm4, %v7677_v35, %v960_v36  ;;  %1118 = vst [vmem:[#allocation2 + $0x300] sm:$0xf] %v7704_v40  ;;  %v962_v49 = vrot.slane %v960_v36, 4 }
  0x9d   : > { %v8595_v42 = vld [vmem:[#allocation2 + $0x288] ss:$36 sps:$4 sm:$0xff]   ;;  %v8599_v45 = vld [vmem:[#allocation2 + $0x294] ss:$36 sps:$4 sm:$0xff]   ;;  %v599_v47 = vrot.slane %v598_v33, 4  ;;  %4624 = vmatprep.mubr.bf16.mxu0 %v8593_v41 }
  0x9e   : > { %v8601_v46 = vld [vmem:[#allocation2 + $0x290] ss:$36 sps:$4 sm:$0xff]   ;;  %1052 = vst [vmem:[#allocation2 + $0x2d8] sm:$0xf] %v961_v44  ;;  %v594_v48 = vsel %vm9096_vm5, %v589_v43, %v593_v27  ;;  %4625 = vmatmul.mubr.bf16.gmra.mxu0 %v8595_v42  ;;  %4817 = vmatprep.mubr.bf16.mxu1 %v8599_v45  ;;  %v8620_v53 = vld [vmem:[%s12120_s1 + $0x320] ss:$8 sps:$4 sm:$0xff]   ;;  %v964_v54 = vsel %vm9082_vm4, %v962_v49, %v963_v39 }
  0x9f   : > { %v8617_v50 = vld [vmem:[%s12120_s1 + $0x330] ss:$8 sps:$4 sm:$0xff]   ;;  %v8619_v51 = vld [vmem:[%s12120_s1 + $0x334] ss:$8 sps:$4 sm:$0xff]   ;;  %v604_v52 = vsel %vm9096_vm5, %v599_v47, %v603_v38  ;;  %777 = vst [vmem:[#allocation2 + $0x2d4] sm:$0xf] %v594_v48  ;;  %4818 = vmatmul.mubr.bf16.gmra.mxu1 %v8601_v46 }
  0xa0   : > { %778 = vst [vmem:[#allocation2 + $0x2f8] sm:$0xf] %v604_v52  ;;  %5089 = vmatprep.subr.bf16.mxu1 %v8619_v51  ;;  %v8622_v55 = vld [vmem:[%s12120_s1 + $0x324] ss:$8 sps:$4 sm:$0xff]   ;;  %v249_v57 = vld [vmem:[%s9052_s21 + $0x88] sm:$0xf] }
  0xa1   : > { %v248_v56 = vld [vmem:[%s9052_s21 + $0x84] sm:$0xf]  ;;  %1053 = vst [vmem:[#allocation2 + $0x2fc] sm:$0xf] %v964_v54  ;;  %5090 = vmatpush1.bf16.msra.mxu1 %v8617_v50  ;;  %281 = vst [vmem:[#allocation2 + $0x33c] sm:$0xf] %v249_v57 }
  0xa2   : > { %280 = vst [vmem:[#allocation2 + $0x318] sm:$0xf] %v248_v56  ;;  %v323_v58 = vld [vmem:[%s9052_s21 + $0x84] sm:$0xf]  ;;  %v324_v59 = vld [vmem:[%s9052_s21 + $0x88] sm:$0xf]  ;;  %5091 = vmatprep.subr.bf16.mxu1 %v8622_v55 }
  0xa3   : > { %v325_v60 = vld [vmem:[%s9052_s21 + $0x8c] sm:$0x1]  ;;  %v606_v61 = vshrl.u32 %v323_v58, 16  ;;  %v609_v62 = vshll.u32 %v323_v58, 16  ;;  %v615_v63 = vshll.u32 %v324_v59, 16  ;;  %v619_v0 = vshrl.u32 %v324_v59, 16 }
  0xa4   : > { %v625_v1 = vshll.u32 %v325_v60, 16  ;;  %v8626_v3 = vld [vmem:[%s12120_s1 + $0x2c0] ss:$8 sps:$4 sm:$0xff]   ;;  %v8628_v4 = vld [vmem:[%s12120_s1 + $0x2c4] ss:$8 sps:$4 sm:$0xff]  }
  0xa5   : > { %v608_v5 = vrot.slane %v606_v61, 4  ;;  %v611_v6 = vrot.slane %v609_v62, 5  ;;  %v617_v7 = vrot.slane %v615_v63, 5  ;;  %v621_v9 = vrot.slane %v619_v0, 4  ;;  %5092 = vmatpush1.bf16.msra.mxu1 %v8620_v53  ;;  %4910 = vmatprep.subr.bf16.mxu0 %v8628_v4  ;;  %v822_v11 = vld [vmem:[%s9052_s21 + $0x84] sm:$0xe] }
  0xa6   : > { %v627_v10 = vrot.slane %v625_v1, 5  ;;  %v823_v12 = vld [vmem:[%s9052_s21 + $0x88] sm:$0xf]  ;;  %v824_v15 = vld [vmem:[%s9052_s21 + $0x8c] sm:$0x1]  ;;  %v7678_v16 = vrot.slane %v822_v11, 9  ;;  %4911 = vmatpush2.bf16.msra.mxu0 %v8626_v3 }
  0xa7   : > { %v612_v13 = vor.u32 %v611_v6, %v608_v5  ;;  %v622_v14 = vor.u32 %v621_v9, %v617_v7  ;;  %v967_v17 = vrot.slane %v823_v12, 5  ;;  %v8608_v18 = vld [vmem:[#allocation2 + $0x2d4] ss:$36 sps:$4 sm:$0xff]   ;;  %v970_v20 = vrot.slane %v824_v15, 5  ;;  %v8614_v21 = vld [vmem:[#allocation2 + $0x2dc] ss:$36 sps:$4 sm:$0xff]  }
  0xa8   : > { %v8610_v19 = vld [vmem:[#allocation2 + $0x2d0] ss:$36 sps:$4 sm:$0xff]   ;;  %v8616_v22 = vld [vmem:[#allocation2 + $0x2d8] ss:$36 sps:$4 sm:$0xff]   ;;  %4634 = vmatprep.mubr.bf16.mxu0 %v8608_v18  ;;  %4827 = vmatprep.mubr.bf16.mxu1 %v8614_v21  ;;  %v8635_v34 = vld [vmem:[%s12120_s1 + $0x300] ss:$8 sps:$4 sm:$0xff]  }
  0xa9   : > { %v613_v23 = vrot.slane %v612_v13, 4  ;;  %v968_v24 = vsel %vm9082_vm4, %v7678_v16, %v967_v17  ;;  %v623_v25 = vrot.slane %v622_v14, 4  ;;  %v969_v26 = vrot.slane %v967_v17, 4  ;;  %v7705_v27 = vld [vmem:[%s9052_s21 + $0x90] sm:$0xf]  ;;  %4635 = vmatmul.mubr.bf16.gmra.mxu0 %v8610_v19  ;;  %4828 = vmatmul.mubr.bf16.gmra.mxu1 %v8616_v22 }
  0xaa   : > { %1054 = vst [vmem:[#allocation2 + $0x320] sm:$0xf] %v968_v24  ;;  %v7706_v28 = vld [vmem:[%s9052_s21 + $0x94] sm:$0xf]  ;;  %1119 = vst [vmem:[#allocation2 + $0x324] sm:$0xf] %v7705_v27 }
  0xab   : > { %v618_v29 = vsel %vm9096_vm5, %v613_v23, %v617_v7  ;;  %1120 = vst [vmem:[#allocation2 + $0x348] sm:$0xf] %v7706_v28  ;;  %v8632_v30 = vld [vmem:[%s12120_s1 + $0x310] ss:$8 sps:$4 sm:$0xff]   ;;  %v8634_v31 = vld [vmem:[%s12120_s1 + $0x314] ss:$8 sps:$4 sm:$0xff]   ;;  %v628_v32 = vsel %vm9096_vm5, %v623_v25, %v627_v10  ;;  %v971_v33 = vsel %vm9082_vm4, %v969_v26, %v970_v20 }
  0xac   : > { %779 = vst [vmem:[#allocation2 + $0x31c] sm:$0xf] %v618_v29  ;;  %v8637_v35 = vld [vmem:[%s12120_s1 + $0x304] ss:$8 sps:$4 sm:$0xff]   ;;  %v250_v36 = vld [vmem:[%s9052_s21 + $0x90] sm:$0xf]  ;;  %5093 = vmatprep.subr.bf16.mxu1 %v8634_v31 }
  0xad   : > { %v251_v37 = vld [vmem:[%s9052_s21 + $0x94] sm:$0xf]  ;;  %780 = vst [vmem:[#allocation2 + $0x340] sm:$0xf] %v628_v32  ;;  %1055 = vst [vmem:[#allocation2 + $0x344] sm:$0xf] %v971_v33  ;;  %5094 = vmatpush1.bf16.msra.mxu1 %v8632_v30 }
  0xae   : > { %282 = vst [vmem:[#allocation2 + $0x360] sm:$0xf] %v250_v36  ;;  %283 = vst [vmem:[#allocation2 + $0x384] sm:$0xf] %v251_v37  ;;  %v326_v38 = vld [vmem:[%s9052_s21 + $0x90] sm:$0xf]  ;;  %5095 = vmatprep.subr.bf16.mxu1 %v8637_v35 }
  0xaf   : > { %v327_v39 = vld [vmem:[%s9052_s21 + $0x94] sm:$0xf]  ;;  %v328_v40 = vld [vmem:[%s9052_s21 + $0x98] sm:$0x1]  ;;  %v630_v41 = vshrl.u32 %v326_v38, 16  ;;  %v633_v42 = vshll.u32 %v326_v38, 16 }
  0xb0   : > { %v639_v43 = vshll.u32 %v327_v39, 16  ;;  %v643_v44 = vshrl.u32 %v327_v39, 16  ;;  %v649_v45 = vshll.u32 %v328_v40, 16  ;;  %v8641_v46 = vld [vmem:[%s12120_s1 + $0x2b0] ss:$8 sps:$4 sm:$0xff]  }
  0xb1   : > { %v8643_v47 = vld [vmem:[%s12120_s1 + $0x2b4] ss:$8 sps:$4 sm:$0xff]   ;;  %v632_v48 = vrot.slane %v630_v41, 4  ;;  %v635_v49 = vrot.slane %v633_v42, 5  ;;  %v825_v52 = vld [vmem:[%s9052_s21 + $0x90] sm:$0xe]  ;;  %5096 = vmatpush1.bf16.msra.mxu1 %v8635_v34 }
  0xb2   : > { %v641_v50 = vrot.slane %v639_v43, 5  ;;  %v645_v51 = vrot.slane %v643_v44, 4  ;;  %4912 = vmatprep.subr.bf16.mxu0 %v8643_v47  ;;  %v826_v53 = vld [vmem:[%s9052_s21 + $0x94] sm:$0xf]  ;;  %v827_v54 = vld [vmem:[%s9052_s21 + $0x98] sm:$0x1] }
  0xb3   : > { %v7679_v55 = vrot.slane %v825_v52, 9  ;;  %v636_v56 = vor.u32 %v635_v49, %v632_v48  ;;  %v651_v58 = vrot.slane %v649_v45, 5  ;;  %v974_v59 = vrot.slane %v826_v53, 5  ;;  %v7707_v60 = vld [vmem:[%s9052_s21 + $0x9c] sm:$0xf]  ;;  %4913 = vmatpush2.bf16.msra.mxu0 %v8641_v46 }
  0xb4   : > { %v646_v57 = vor.u32 %v645_v51, %v641_v50  ;;  %v977_v61 = vrot.slane %v827_v54, 5  ;;  %v7708_v62 = vld [vmem:[%s9052_s21 + $0xa0] sm:$0xf]  ;;  %1121 = vst [vmem:[#allocation2 + $0x36c] sm:$0xf] %v7707_v60 }
  0xb5   : > { %v8647_v63 = vld [vmem:[%s12120_s1 + $0x3f0] ss:$8 sps:$4 sm:$0xff]   ;;  %v8623_v0 = vld [vmem:[#allocation2 + $0x31c] ss:$36 sps:$4 sm:$0xff]   ;;  %v637_v3 = vrot.slane %v636_v56, 4  ;;  %v975_v4 = vsel %vm9082_vm4, %v7679_v55, %v974_v59  ;;  %v976_v10 = vrot.slane %v974_v59, 4 }
  0xb6   : > { %v8625_v1 = vld [vmem:[#allocation2 + $0x318] ss:$36 sps:$4 sm:$0xff]   ;;  %1122 = vst [vmem:[#allocation2 + $0x390] sm:$0xf] %v7708_v62  ;;  %v8629_v5 = vld [vmem:[#allocation2 + $0x324] ss:$36 sps:$4 sm:$0xff]   ;;  %4644 = vmatprep.mubr.bf16.mxu0 %v8623_v0 }
  0xb7   : > { %v8631_v6 = vld [vmem:[#allocation2 + $0x320] ss:$36 sps:$4 sm:$0xff]   ;;  %v647_v7 = vrot.slane %v646_v57, 4  ;;  %1056 = vst [vmem:[#allocation2 + $0x368] sm:$0xf] %v975_v4  ;;  %v642_v9 = vsel %vm9096_vm5, %v637_v3, %v641_v50  ;;  %4645 = vmatmul.mubr.bf16.gmra.mxu0 %v8625_v1  ;;  %4837 = vmatprep.mubr.bf16.mxu1 %v8629_v5  ;;  %v978_v16 = vsel %vm9082_vm4, %v976_v10, %v977_v61 }
  0xb8   : > { %v8649_v11 = vld [vmem:[%s12120_s1 + $0x3f4] ss:$8 sps:$4 sm:$0xff]   ;;  %781 = vst [vmem:[#allocation2 + $0x364] sm:$0xf] %v642_v9  ;;  %v8650_v13 = vld [vmem:[%s12120_s1 + $0x3e0] ss:$8 sps:$4 sm:$0xff]   ;;  %4838 = vmatmul.mubr.bf16.gmra.mxu1 %v8631_v6 }
  0xb9   : > { %v652_v12 = vsel %vm9096_vm5, %v647_v7, %v651_v58  ;;  %v8652_v14 = vld [vmem:[%s12120_s1 + $0x3e4] ss:$8 sps:$4 sm:$0xff]   ;;  %v252_v15 = vld [vmem:[%s9052_s21 + $0x9c] sm:$0xf]  ;;  %5097 = vmatprep.subr.bf16.mxu1 %v8649_v11  ;;  %v253_v17 = vld [vmem:[%s9052_s21 + $0xa0] sm:$0xf] }
  0xba   : > { %782 = vst [vmem:[#allocation2 + $0x388] sm:$0xf] %v652_v12  ;;  %284 = vst [vmem:[#allocation2 + $0x3a8] sm:$0xf] %v252_v15  ;;  %v329_v18 = vld [vmem:[%s9052_s21 + $0x9c] sm:$0xf]  ;;  %5098 = vmatpush2.bf16.msra.mxu1 %v8647_v63 }
  0xbb   : > { %v330_v19 = vld [vmem:[%s9052_s21 + $0xa0] sm:$0xf]  ;;  %1057 = vst [vmem:[#allocation2 + $0x38c] sm:$0xf] %v978_v16  ;;  %285 = vst [vmem:[#allocation2 + $0x3cc] sm:$0xf] %v253_v17  ;;  %5099 = vmatprep.subr.bf16.mxu1 %v8652_v14 }
  0xbc   : > { %v331_v20 = vld [vmem:[%s9052_s21 + $0xa4] sm:$0x1]  ;;  %v654_v21 = vshrl.u32 %v329_v18, 16  ;;  %v657_v22 = vshll.u32 %v329_v18, 16  ;;  %v663_v23 = vshll.u32 %v330_v19, 16  ;;  %v667_v24 = vshrl.u32 %v330_v19, 16 }
  0xbd   : > { %v673_v25 = vshll.u32 %v331_v20, 16  ;;  %v8656_v26 = vld [vmem:[%s12120_s1 + $0x2a0] ss:$8 sps:$4 sm:$0xff]   ;;  %v8658_v31 = vld [vmem:[%s12120_s1 + $0x2a4] ss:$8 sps:$4 sm:$0xff]  }
  0xbe   : > { %v656_v27 = vrot.slane %v654_v21, 4  ;;  %v659_v28 = vrot.slane %v657_v22, 5  ;;  %v665_v29 = vrot.slane %v663_v23, 5  ;;  %v669_v30 = vrot.slane %v667_v24, 4  ;;  %v828_v32 = vld [vmem:[%s9052_s21 + $0x9c] sm:$0xe]  ;;  %5100 = vmatpush2.bf16.msra.mxu1 %v8650_v13  ;;  %4914 = vmatprep.subr.bf16.mxu0 %v8658_v31 }
  0xbf   : > { %v829_v33 = vld [vmem:[%s9052_s21 + $0xa0] sm:$0xf]  ;;  %v830_v36 = vld [vmem:[%s9052_s21 + $0xa4] sm:$0x1]  ;;  %v7680_v37 = vrot.slane %v828_v32, 9  ;;  %v675_v40 = vrot.slane %v673_v25, 5  ;;  %4915 = vmatpush2.bf16.msra.mxu0 %v8656_v26 }
  0xc0   : > { %v660_v34 = vor.u32 %v659_v28, %v656_v27  ;;  %v670_v35 = vor.u32 %v669_v30, %v665_v29  ;;  %v981_v38 = vrot.slane %v829_v33, 5  ;;  %v7709_v39 = vld [vmem:[%s9052_s21 + $0xa8] sm:$0xf]  ;;  %v984_v41 = vrot.slane %v830_v36, 5  ;;  %v7710_v42 = vld [vmem:[%s9052_s21 + $0xac] sm:$0xf] }
  0xc1   : > { %1123 = vst [vmem:[#allocation2 + $0x3b4] sm:$0xf] %v7709_v39  ;;  %v8638_v43 = vld [vmem:[#allocation2 + $0x364] ss:$36 sps:$4 sm:$0xff]   ;;  %1124 = vst [vmem:[#allocation2 + $0x3d8] sm:$0xf] %v7710_v42 }
  0xc2   : > { %v8640_v44 = vld [vmem:[#allocation2 + $0x360] ss:$36 sps:$4 sm:$0xff]   ;;  %v661_v45 = vrot.slane %v660_v34, 4  ;;  %v982_v46 = vsel %vm9082_vm4, %v7680_v37, %v981_v38  ;;  %v8644_v47 = vld [vmem:[#allocation2 + $0x36c] ss:$36 sps:$4 sm:$0xff]   ;;  %v671_v49 = vrot.slane %v670_v35, 4  ;;  %4654 = vmatprep.mubr.bf16.mxu0 %v8638_v43 }
  0xc3   : > { %v8646_v48 = vld [vmem:[#allocation2 + $0x368] ss:$36 sps:$4 sm:$0xff]   ;;  %1058 = vst [vmem:[#allocation2 + $0x3b0] sm:$0xf] %v982_v46  ;;  %v983_v51 = vrot.slane %v981_v38, 4  ;;  %4655 = vmatmul.mubr.bf16.gmra.mxu0 %v8640_v44  ;;  %4847 = vmatprep.mubr.bf16.mxu1 %v8644_v47 }
  0xc4   : > { %v666_v50 = vsel %vm9096_vm5, %v661_v45, %v665_v29  ;;  %v8662_v52 = vld [vmem:[%s12120_s1 + $0x3d0] ss:$8 sps:$4 sm:$0xff]   ;;  %v8664_v53 = vld [vmem:[%s12120_s1 + $0x3d4] ss:$8 sps:$4 sm:$0xff]   ;;  %v676_v54 = vsel %vm9096_vm5, %v671_v49, %v675_v40  ;;  %v8665_v55 = vld [vmem:[%s12120_s1 + $0x3c0] ss:$8 sps:$4 sm:$0xff]   ;;  %4848 = vmatmul.mubr.bf16.gmra.mxu1 %v8646_v48 }
  0xc5   : > { %783 = vst [vmem:[#allocation2 + $0x3ac] sm:$0xf] %v666_v50  ;;  %784 = vst [vmem:[#allocation2 + $0x3d0] sm:$0xf] %v676_v54  ;;  %v985_v56 = vsel %vm9082_vm4, %v983_v51, %v984_v41  ;;  %5101 = vmatprep.subr.bf16.mxu1 %v8664_v53  ;;  %v8667_v57 = vld [vmem:[%s12120_s1 + $0x3c4] ss:$8 sps:$4 sm:$0xff]  }
  0xc6   : > { %v254_v58 = vld [vmem:[%s9052_s21 + $0xa8] sm:$0xf]  ;;  %v255_v59 = vld [vmem:[%s9052_s21 + $0xac] sm:$0xf]  ;;  %1059 = vst [vmem:[#allocation2 + $0x3d4] sm:$0xf] %v985_v56  ;;  %5102 = vmatpush2.bf16.msra.mxu1 %v8662_v52 }
  0xc7   : > { %286 = vst [vmem:[#allocation2 + $0x3f0] sm:$0xf] %v254_v58  ;;  %287 = vst [vmem:[#allocation2 + $0x414] sm:$0xf] %v255_v59  ;;  %v332_v60 = vld [vmem:[%s9052_s21 + $0xa8] sm:$0xf]  ;;  %5103 = vmatprep.subr.bf16.mxu1 %v8667_v57 }
  0xc8   : > { %v333_v61 = vld [vmem:[%s9052_s21 + $0xac] sm:$0xf]  ;;  %v334_v62 = vld [vmem:[%s9052_s21 + $0xb0] sm:$0x1]  ;;  %v678_v63 = vshrl.u32 %v332_v60, 16  ;;  %v681_v0 = vshll.u32 %v332_v60, 16 }
  0xc9   : > { %v687_v1 = vshll.u32 %v333_v61, 16  ;;  %v691_v3 = vshrl.u32 %v333_v61, 16  ;;  %v697_v4 = vshll.u32 %v334_v62, 16  ;;  %v8671_v5 = vld [vmem:[%s12120_s1 + $0x290] ss:$8 sps:$4 sm:$0xff]  }
  0xca   : > { %v8673_v6 = vld [vmem:[%s12120_s1 + $0x294] ss:$8 sps:$4 sm:$0xff]   ;;  %v680_v7 = vrot.slane %v678_v63, 4  ;;  %v683_v9 = vrot.slane %v681_v0, 5  ;;  %5104 = vmatpush2.bf16.msra.mxu1 %v8665_v55  ;;  %v831_v13 = vld [vmem:[%s9052_s21 + $0xa8] sm:$0xe] }
  0xcb   : > { %v689_v10 = vrot.slane %v687_v1, 5  ;;  %v693_v11 = vrot.slane %v691_v3, 4  ;;  %v699_v12 = vrot.slane %v697_v4, 5  ;;  %4916 = vmatprep.subr.bf16.mxu0 %v8673_v6  ;;  %v832_v14 = vld [vmem:[%s9052_s21 + $0xac] sm:$0xf]  ;;  %v7681_v18 = vrot.slane %v831_v13, 9 }
  0xcc   : > { %v684_v15 = vor.u32 %v683_v9, %v680_v7  ;;  %v833_v17 = vld [vmem:[%s9052_s21 + $0xb0] sm:$0x1]  ;;  %v988_v19 = vrot.slane %v832_v14, 5  ;;  %4917 = vmatpush2.bf16.msra.mxu0 %v8671_v5  ;;  %v8655_v21 = vld [vmem:[#allocation2 + $0x3a8] ss:$36 sps:$4 sm:$0xff]  }
  0xcd   : > { %v694_v16 = vor.u32 %v693_v11, %v689_v10  ;;  %v8653_v20 = vld [vmem:[#allocation2 + $0x3ac] ss:$36 sps:$4 sm:$0xff]   ;;  %v991_v22 = vrot.slane %v833_v17, 5  ;;  %v8659_v23 = vld [vmem:[#allocation2 + $0x3b4] ss:$36 sps:$4 sm:$0xff]  }
  0xce   : > { %v8661_v24 = vld [vmem:[#allocation2 + $0x3b0] ss:$36 sps:$4 sm:$0xff]   ;;  %v685_v25 = vrot.slane %v684_v15, 4  ;;  %v989_v26 = vsel %vm9082_vm4, %v7681_v18, %v988_v19  ;;  %4664 = vmatprep.mubr.bf16.mxu0 %v8653_v20  ;;  %v990_v28 = vrot.slane %v988_v19, 4  ;;  %v7712_v30 = vld [vmem:[%s9052_s21 + $0xb8] sm:$0xf]  ;;  %4857 = vmatprep.mubr.bf16.mxu1 %v8659_v23 }
  0xcf   : > { %v695_v27 = vrot.slane %v694_v16, 4  ;;  %1060 = vst [vmem:[#allocation2 + $0x3f8] sm:$0xf] %v989_v26  ;;  %v7711_v29 = vld [vmem:[%s9052_s21 + $0xb4] sm:$0xf]  ;;  %4665 = vmatmul.mubr.bf16.gmra.mxu0 %v8655_v21  ;;  %4858 = vmatmul.mubr.bf16.gmra.mxu1 %v8661_v24 }
  0xd0   : > { %v690_v31 = vsel %vm9096_vm5, %v685_v25, %v689_v10  ;;  %1125 = vst [vmem:[#allocation2 + $0x3fc] sm:$0xf] %v7711_v29  ;;  %1126 = vst [vmem:[#allocation2 + $0x420] sm:$0xf] %v7712_v30  ;;  %v8677_v32 = vld [vmem:[%s12120_s1 + $0x3b0] ss:$8 sps:$4 sm:$0xff]   ;;  %v992_v35 = vsel %vm9082_vm4, %v990_v28, %v991_v22 }
  0xd1   : > { %v8679_v33 = vld [vmem:[%s12120_s1 + $0x3b4] ss:$8 sps:$4 sm:$0xff]   ;;  %v700_v34 = vsel %vm9096_vm5, %v695_v27, %v699_v12  ;;  %785 = vst [vmem:[#allocation2 + $0x3f4] sm:$0xf] %v690_v31  ;;  %v8680_v36 = vld [vmem:[%s12120_s1 + $0x3a0] ss:$8 sps:$4 sm:$0xff]  }
  0xd2   : > { %v8682_v37 = vld [vmem:[%s12120_s1 + $0x3a4] ss:$8 sps:$4 sm:$0xff]   ;;  %v256_v38 = vld [vmem:[%s9052_s21 + $0xb4] sm:$0xf]  ;;  %v257_v39 = vld [vmem:[%s9052_s21 + $0xb8] sm:$0xf]  ;;  %5105 = vmatprep.subr.bf16.mxu1 %v8679_v33 }
  0xd3   : > { %786 = vst [vmem:[#allocation2 + $0x418] sm:$0xf] %v700_v34  ;;  %1061 = vst [vmem:[#allocation2 + $0x41c] sm:$0xf] %v992_v35  ;;  %v335_v40 = vld [vmem:[%s9052_s21 + $0xb4] sm:$0xf]  ;;  %5106 = vmatpush2.bf16.msra.mxu1 %v8677_v32 }
  0xd4   : > { %288 = vst [vmem:[#allocation2 + $0x438] sm:$0xf] %v256_v38  ;;  %289 = vst [vmem:[#allocation2 + $0x45c] sm:$0xf] %v257_v39  ;;  %v336_v41 = vld [vmem:[%s9052_s21 + $0xb8] sm:$0xf]  ;;  %5107 = vmatprep.subr.bf16.mxu1 %v8682_v37 }
  0xd5   : > { %v337_v42 = vld [vmem:[%s9052_s21 + $0xbc] sm:$0x1]  ;;  %v702_v43 = vshrl.u32 %v335_v40, 16  ;;  %v705_v44 = vshll.u32 %v335_v40, 16  ;;  %v711_v45 = vshll.u32 %v336_v41, 16  ;;  %v715_v46 = vshrl.u32 %v336_v41, 16 }
  0xd6   : > { %v721_v47 = vshll.u32 %v337_v42, 16  ;;  %v8686_v48 = vld [vmem:[%s12120_s1 + $0x280] ss:$8 sps:$4 sm:$0xff]   ;;  %v8688_v49 = vld [vmem:[%s12120_s1 + $0x284] ss:$8 sps:$4 sm:$0xff]  }
  0xd7   : > { %v704_v50 = vrot.slane %v702_v43, 4  ;;  %v707_v51 = vrot.slane %v705_v44, 5  ;;  %v713_v52 = vrot.slane %v711_v45, 5  ;;  %v717_v53 = vrot.slane %v715_v46, 4  ;;  %v834_v54 = vld [vmem:[%s9052_s21 + $0xb4] sm:$0xe]  ;;  %4918 = vmatprep.subr.bf16.mxu0 %v8688_v49  ;;  %5108 = vmatpush2.bf16.msra.mxu1 %v8680_v36 }
  0xd8   : > { %v835_v55 = vld [vmem:[%s9052_s21 + $0xb8] sm:$0xf]  ;;  %v836_v56 = vld [vmem:[%s9052_s21 + $0xbc] sm:$0x1]  ;;  %v7682_v57 = vrot.slane %v834_v54, 9  ;;  %v723_v60 = vrot.slane %v721_v47, 5  ;;  %4919 = vmatpush2.bf16.msra.mxu0 %v8686_v48 }
  0xd9   : > { %v708_v58 = vor.u32 %v707_v51, %v704_v50  ;;  %v718_v59 = vor.u32 %v717_v53, %v713_v52  ;;  %v995_v61 = vrot.slane %v835_v55, 5  ;;  %v7713_v62 = vld [vmem:[%s9052_s21 + $0xc0] sm:$0xf]  ;;  %v998_v63 = vrot.slane %v836_v56, 5  ;;  %v7714_v0 = vld [vmem:[%s9052_s21 + $0xc4] sm:$0xf] }
  0xda   : > { %1127 = vst [vmem:[#allocation2 + $0x444] sm:$0xf] %v7713_v62  ;;  %v8692_v1 = vld [vmem:[%s12120_s1 + $0x390] ss:$8 sps:$4 sm:$0xff]   ;;  %1128 = vst [vmem:[#allocation2 + $0x468] sm:$0xf] %v7714_v0 }
  0xdb   : > { %v8668_v3 = vld [vmem:[#allocation2 + $0x3f4] ss:$36 sps:$4 sm:$0xff]   ;;  %v709_v5 = vrot.slane %v708_v58, 4  ;;  %v996_v6 = vsel %vm9082_vm4, %v7682_v57, %v995_v61  ;;  %v8674_v7 = vld [vmem:[#allocation2 + $0x3fc] ss:$36 sps:$4 sm:$0xff]   ;;  %v719_v10 = vrot.slane %v718_v59, 4 }
  0xdc   : > { %v8670_v4 = vld [vmem:[#allocation2 + $0x3f0] ss:$36 sps:$4 sm:$0xff]   ;;  %v8676_v9 = vld [vmem:[#allocation2 + $0x3f8] ss:$36 sps:$4 sm:$0xff]   ;;  %1062 = vst [vmem:[#allocation2 + $0x440] sm:$0xf] %v996_v6  ;;  %4674 = vmatprep.mubr.bf16.mxu0 %v8668_v3  ;;  %4867 = vmatprep.mubr.bf16.mxu1 %v8674_v7 }
  0xdd   : > { %v714_v11 = vsel %vm9096_vm5, %v709_v5, %v713_v52  ;;  %v997_v12 = vrot.slane %v995_v61, 4  ;;  %v8694_v13 = vld [vmem:[%s12120_s1 + $0x394] ss:$8 sps:$4 sm:$0xff]   ;;  %4675 = vmatmul.mubr.bf16.gmra.mxu0 %v8670_v4  ;;  %v724_v14 = vsel %vm9096_vm5, %v719_v10, %v723_v60  ;;  %v8695_v15 = vld [vmem:[%s12120_s1 + $0x380] ss:$8 sps:$4 sm:$0xff]   ;;  %4868 = vmatmul.mubr.bf16.gmra.mxu1 %v8676_v9 }
  0xde   : > { %787 = vst [vmem:[#allocation2 + $0x43c] sm:$0xf] %v714_v11  ;;  %v8697_v16 = vld [vmem:[%s12120_s1 + $0x384] ss:$8 sps:$4 sm:$0xff]   ;;  %788 = vst [vmem:[#allocation2 + $0x460] sm:$0xf] %v724_v14  ;;  %5109 = vmatprep.subr.bf16.mxu1 %v8694_v13 }
  0xdf   : > { %v7715_v17 = vld [vmem:[%s9052_s21 + $0xc] sm:$0xf]  ;;  %v999_v18 = vsel %vm9082_vm4, %v997_v12, %v998_v63  ;;  %v7716_v19 = vld [vmem:[%s9052_s21 + $0x10] sm:$0xf]  ;;  %v7717_v20 = vld [vmem:[%s9052_s21 + $0x14] sm:$0x1]  ;;  %5110 = vmatpush2.bf16.msra.mxu1 %v8692_v1 }
  0xe0   : > { %v1178_v21 = vshrl.u32 %v7715_v17, 16  ;;  %v1181_v22 = vshll.u32 %v7715_v17, 16  ;;  %1063 = vst [vmem:[#allocation2 + $0x464] sm:$0xf] %v999_v18  ;;  %v1187_v23 = vshll.u32 %v7716_v19, 16  ;;  %v1191_v24 = vshrl.u32 %v7716_v19, 16  ;;  %5111 = vmatprep.subr.bf16.mxu1 %v8697_v16 }
  0xe1   : > { %v1197_v25 = vshll.u32 %v7717_v20, 16  ;;  %v7763_v26 = vld [vmem:[%s9052_s21 + $0xc] sm:$0xe]  ;;  %v7764_v29 = vld [vmem:[%s9052_s21 + $0x10] sm:$0xf] }
  0xe2   : > { %v1180_v27 = vrot.slane %v1178_v21, 4  ;;  %v1183_v28 = vrot.slane %v1181_v22, 5  ;;  %v7765_v30 = vld [vmem:[%s9052_s21 + $0x14] sm:$0x1]  ;;  %v1189_v31 = vrot.slane %v1187_v23, 5  ;;  %v1193_v32 = vrot.slane %v1191_v24, 4 }
  0xe3   : > { %v7811_v33 = vrot.slane %v7763_v26, 9  ;;  %v1199_v35 = vrot.slane %v1197_v25, 5  ;;  %v1723_v36 = vrot.slane %v7764_v29, 5  ;;  %v1726_v37 = vrot.slane %v7765_v30, 5  ;;  %5112 = vmatpush2.bf16.msra.mxu1 %v8695_v15  ;;  %v8703_v39 = vld [vmem:[%s12120_s1 + $0x474] ss:$8 sps:$4 sm:$0xff]  }
  0xe4   : > { %v1184_v34 = vor.u32 %v1183_v28, %v1180_v27  ;;  %v1194_v38 = vor.u32 %v1193_v32, %v1189_v31  ;;  %v7827_v40 = vld [vmem:[%s9052_s21 + $0x18] sm:$0xf]  ;;  %v7828_v41 = vld [vmem:[%s9052_s21 + $0x1c] sm:$0xf]  ;;  %5274 = vmatprep.subr.bf16.mxu0 %v8703_v39  ;;  %v8689_v49 = vld [vmem:[#allocation2 + $0x444] ss:$36 sps:$4 sm:$0xff]  }
  0xe5   : > { %v1724_v43 = vsel %vm9082_vm4, %v7811_v33, %v1723_v36  ;;  %v1725_v44 = vrot.slane %v1723_v36, 4  ;;  %1930 = vst [vmem:[#allocation2 + $0x18] sm:$0xf] %v7827_v40  ;;  %1931 = vst [vmem:[#allocation2 + $0x3c] sm:$0xf] %v7828_v41  ;;  %4877 = vmatprep.mubr.bf16.mxu1 %v8689_v49 }
  0xe6   : > { %v1185_v42 = vrot.slane %v1184_v34, 4  ;;  %v7859_v45 = vld [vmem:[%s9052_s21 + $0x18] sm:$0xf]  ;;  %v8683_v46 = vld [vmem:[#allocation2 + $0x43c] ss:$36 sps:$4 sm:$0xff]   ;;  %v1195_v48 = vrot.slane %v1194_v38, 4 }
  0xe7   : > { %v8685_v47 = vld [vmem:[#allocation2 + $0x438] ss:$36 sps:$4 sm:$0xff]   ;;  %1865 = vst [vmem:[#allocation2 + $0x14] sm:$0xf] %v1724_v43  ;;  %v8691_v50 = vld [vmem:[#allocation2 + $0x440] ss:$36 sps:$4 sm:$0xff]   ;;  %v1727_v52 = vsel %vm9082_vm4, %v1725_v44, %v1726_v37  ;;  %4684 = vmatprep.mubr.bf16.mxu0 %v8683_v46 }
  0xe8   : > { %v1190_v51 = vsel %vm9096_vm5, %v1185_v42, %v1189_v31  ;;  %v2011_v53 = vshrl.u32 %v7859_v45, 16  ;;  %v1200_v54 = vsel %vm9096_vm5, %v1195_v48, %v1199_v35  ;;  %1866 = vst [vmem:[#allocation2 + $0x38] sm:$0xf] %v1727_v52  ;;  %v7860_v55 = vld [vmem:[%s9052_s21 + $0x1c] sm:$0xf]  ;;  %v2014_v57 = vshll.u32 %v7859_v45, 16  ;;  %4685 = vmatmul.mubr.bf16.gmra.mxu0 %v8685_v47  ;;  %4878 = vmatmul.mubr.bf16.gmra.mxu1 %v8691_v50 }
  0xe9   : > { %1593 = vst [vmem:[#allocation2 + $0x10] sm:$0xf] %v1190_v51  ;;  %v7861_v56 = vld [vmem:[%s9052_s21 + $0x20] sm:$0x1]  ;;  %1594 = vst [vmem:[#allocation2 + $0x34] sm:$0xf] %v1200_v54 }
  0xea   : > { %v2013_v58 = vrot.slane %v2011_v53, 4  ;;  %v2020_v59 = vshll.u32 %v7860_v55, 16  ;;  %v2024_v60 = vshrl.u32 %v7860_v55, 16  ;;  %v2030_v61 = vshll.u32 %v7861_v56, 16  ;;  %v7718_v62 = vld [vmem:[%s9052_s21 + $0x18] sm:$0xf] }
  0xeb   : > { %v2016_v63 = vrot.slane %v2014_v57, 5  ;;  %v7719_v0 = vld [vmem:[%s9052_s21 + $0x1c] sm:$0xf]  ;;  %v7720_v1 = vld [vmem:[%s9052_s21 + $0x20] sm:$0x1]  ;;  %v1202_v3 = vshrl.u32 %v7718_v62, 16 }
  0xec   : > { %v2022_v4 = vrot.slane %v2020_v59, 5  ;;  %v2026_v5 = vrot.slane %v2024_v60, 4  ;;  %v2032_v6 = vrot.slane %v2030_v61, 5  ;;  %v1205_v7 = vshll.u32 %v7718_v62, 16  ;;  %v7766_v9 = vld [vmem:[%s9052_s21 + $0x18] sm:$0xe] }
  0xed   : > { %v2017_v10 = vor.u32 %v2016_v63, %v2013_v58  ;;  %v1204_v11 = vrot.slane %v1202_v3, 4  ;;  %v1211_v12 = vshll.u32 %v7719_v0, 16  ;;  %v1215_v13 = vshrl.u32 %v7719_v0, 16  ;;  %v7767_v14 = vld [vmem:[%s9052_s21 + $0x1c] sm:$0xf] }
  0xee   : > { %v2027_v15 = vor.u32 %v2026_v5, %v2022_v4  ;;  %v1207_v16 = vrot.slane %v1205_v7, 5  ;;  %v1221_v17 = vshll.u32 %v7720_v1, 16  ;;  %v7768_v18 = vld [vmem:[%s9052_s21 + $0x20] sm:$0x1]  ;;  %v7812_v19 = vrot.slane %v7766_v9, 9 }
  0xef   : > { %v8701_v20 = vld [vmem:[%s12120_s1 + $0x470] ss:$8 sps:$4 sm:$0xff]   ;;  %v2018_v21 = vrot.slane %v2017_v10, 4  ;;  %v1213_v22 = vrot.slane %v1211_v12, 5  ;;  %v1217_v23 = vrot.slane %v1215_v13, 4  ;;  %v1730_v24 = vrot.slane %v7767_v14, 5 }
  0xf0   : > { %v7829_v25 = vld [vmem:[%s9052_s21 + $0x24] sm:$0xf]  ;;  %v2028_v26 = vrot.slane %v2027_v15, 4  ;;  %v1208_v27 = vor.u32 %v1207_v16, %v1204_v11  ;;  %v1223_v28 = vrot.slane %v1221_v17, 5  ;;  %v1733_v29 = vrot.slane %v7768_v18, 5 }
  0xf1   : > { %v7830_v30 = vld [vmem:[%s9052_s21 + $0x28] sm:$0xf]  ;;  %1932 = vst [vmem:[#allocation2 + $0x60] sm:$0xf] %v7829_v25  ;;  %v8698_v31 = vld [vmem:[#allocation2 + $0x10] ss:$36 sps:$4 sm:$0xff]   ;;  %v2023_v33 = vsel %vm9096_vm5, %v2018_v21, %v2022_v4  ;;  %v1218_v34 = vor.u32 %v1217_v23, %v1213_v22  ;;  %v1731_v35 = vsel %vm9082_vm4, %v7812_v19, %v1730_v24 }
  0xf2   : > { %v8700_v32 = vld [vmem:[#allocation2 + $0x14] ss:$36 sps:$4 sm:$0xff]   ;;  %v1732_v36 = vrot.slane %v1730_v24, 4  ;;  %1933 = vst [vmem:[#allocation2 + $0x84] sm:$0xf] %v7830_v30  ;;  %v2033_v37 = vsel %vm9096_vm5, %v2028_v26, %v2032_v6  ;;  %v1209_v38 = vrot.slane %v1208_v27, 4 }
  0xf3   : > { %2426 = vst [vmem:[#allocation2 + $0x1c] sm:$0xf] %v2023_v33  ;;  %1867 = vst [vmem:[#allocation2 + $0x5c] sm:$0xf] %v1731_v35  ;;  %v7862_v39 = vld [vmem:[%s9052_s21 + $0x24] sm:$0xf]  ;;  %4920 = vmatprep.mubr.bf16.mxu0 %v8700_v32 }
  0xf4   : > { %v7863_v40 = vld [vmem:[%s9052_s21 + $0x28] sm:$0xf]  ;;  %2427 = vst [vmem:[#allocation2 + $0x40] sm:$0xf] %v2033_v37  ;;  %v1219_v41 = vrot.slane %v1218_v34, 4  ;;  %v1734_v42 = vsel %vm9082_vm4, %v1732_v36, %v1733_v29  ;;  %v2035_v44 = vshrl.u32 %v7862_v39, 16  ;;  %4921 = vmatmul.mubr.bf16.vlgmr.msra.gmra.mxu0 %v8698_v31  ;;  %v1214_v46 = vsel %vm9096_vm5, %v1209_v38, %v1213_v22 }
  0xf5   : > { %v7864_v43 = vld [vmem:[%s9052_s21 + $0x2c] sm:$0x1]  ;;  %v2038_v45 = vshll.u32 %v7862_v39, 16  ;;  %1868 = vst [vmem:[#allocation2 + $0x80] sm:$0xf] %v1734_v42  ;;  %v2044_v47 = vshll.u32 %v7863_v40, 16  ;;  %5275 = vmatpush1.bf16.msra.mxu0 %v8701_v20 }
  0xf6   : > { %v2048_v48 = vshrl.u32 %v7863_v40, 16  ;;  %v2054_v49 = vshll.u32 %v7864_v43, 16  ;;  %v7721_v50 = vld [vmem:[%s9052_s21 + $0x24] sm:$0xf]  ;;  %v1224_v51 = vsel %vm9096_vm5, %v1219_v41, %v1223_v28  ;;  %1595 = vst [vmem:[#allocation2 + $0x58] sm:$0xf] %v1214_v46 }
  0xf7   : > { %v2037_v52 = vrot.slane %v2035_v44, 4  ;;  %v2040_v53 = vrot.slane %v2038_v45, 5  ;;  %v7722_v54 = vld [vmem:[%s9052_s21 + $0x28] sm:$0xf]  ;;  %v7723_v55 = vld [vmem:[%s9052_s21 + $0x2c] sm:$0x1] }
  0xf8   : > { %1596 = vst [vmem:[#allocation2 + $0x7c] sm:$0xf] %v1224_v51  ;;  %v2046_v56 = vrot.slane %v2044_v47, 5  ;;  %v2050_v57 = vrot.slane %v2048_v48, 4  ;;  %v2056_v58 = vrot.slane %v2054_v49, 5  ;;  %v1226_v59 = vshrl.u32 %v7721_v50, 16 }
  0xf9   : > { %v7769_v60 = vld [vmem:[%s9052_s21 + $0x24] sm:$0xe]  ;;  %v2041_v61 = vor.u32 %v2040_v53, %v2037_v52  ;;  %v1229_v62 = vshll.u32 %v7721_v50, 16  ;;  %v1235_v63 = vshll.u32 %v7722_v54, 16  ;;  %v1239_v0 = vshrl.u32 %v7722_v54, 16 }
  0xfa   : > { %v7770_v1 = vld [vmem:[%s9052_s21 + $0x28] sm:$0xf]  ;;  %v2051_v3 = vor.u32 %v2050_v57, %v2046_v56  ;;  %v1228_v4 = vrot.slane %v1226_v59, 4  ;;  %v1245_v5 = vshll.u32 %v7723_v55, 16  ;;  %v7771_v6 = vld [vmem:[%s9052_s21 + $0x2c] sm:$0x1] }
  0xfb   : > { %v7813_v7 = vrot.slane %v7769_v60, 9  ;;  %v2042_v9 = vrot.slane %v2041_v61, 4  ;;  %v1231_v10 = vrot.slane %v1229_v62, 5  ;;  %v1237_v11 = vrot.slane %v1235_v63, 5  ;;  %v8704_v13 = vld [vmem:[#allocation2 + $0x18] ss:$36 sps:$4 sm:$0xff]  }
  0xfc   : > { %v1241_v12 = vrot.slane %v1239_v0, 4  ;;  %v8706_v14 = vld [vmem:[#allocation2 + $0x1c] ss:$36 sps:$4 sm:$0xff]   ;;  %v2052_v15 = vrot.slane %v2051_v3, 4  ;;  %v8718_v20 = vld [vmem:[%s12120_s1 + $0x464] ss:$8 sps:$4 sm:$0xff]  }
  0xfd   : > { %v2047_v16 = vsel %vm9096_vm5, %v2042_v9, %v2046_v56  ;;  %v1232_v17 = vor.u32 %v1231_v10, %v1228_v4  ;;  %v8716_v19 = vld [vmem:[%s12120_s1 + $0x460] ss:$8 sps:$4 sm:$0xff]   ;;  %5113 = vmatprep.mubr.bf16.mxu1 %v8706_v14  ;;  %v1247_v22 = vrot.slane %v1245_v5, 5  ;;  %v1737_v23 = vrot.slane %v7770_v1, 5  ;;  %v7831_v25 = vld [vmem:[%s9052_s21 + $0x30] sm:$0xf]  ;;  %5276 = vmatprep.subr.bf16.mxu0 %v8718_v20 }
  0xfe   : > { %v1242_v18 = vor.u32 %v1241_v12, %v1237_v11  ;;  %v2057_v21 = vsel %vm9096_vm5, %v2052_v15, %v2056_v58  ;;  %2428 = vst [vmem:[#allocation2 + $0x64] sm:$0xf] %v2047_v16  ;;  %v1740_v24 = vrot.slane %v7771_v6, 5  ;;  %5114 = vmatmul.mubr.bf16.vlgmr.msra.gmra.mxu1 %v8704_v13  ;;  %v8707_v26 = vld [vmem:[#allocation2 + $0x5c] ss:$36 sps:$4 sm:$0xff]   ;;  %5277 = vmatpush1.bf16.msra.mxu0 %v8716_v19 }
  0xff   : > { %v8709_v27 = vld [vmem:[#allocation2 + $0x58] ss:$36 sps:$4 sm:$0xff]   ;;  %2429 = vst [vmem:[#allocation2 + $0x88] sm:$0xf] %v2057_v21  ;;  %v1233_v28 = vrot.slane %v1232_v17, 4  ;;  %v1738_v30 = vsel %vm9082_vm4, %v7813_v7, %v1737_v23  ;;  %v1739_v31 = vrot.slane %v1737_v23, 4  ;;  %4930 = vmatprep.mubr.bf16.mxu0 %v8707_v26 }
 0x100   : > { %1934 = vst [vmem:[#allocation2 + $0xa8] sm:$0xf] %v7831_v25  ;;  %v1243_v29 = vrot.slane %v1242_v18, 4  ;;  %v7832_v32 = vld [vmem:[%s9052_s21 + $0x34] sm:$0xf]  ;;  %4931 = vmatmul.mubr.bf16.gmra.mxu0 %v8709_v27 }
 0x101   : > { %v7865_v33 = vld [vmem:[%s9052_s21 + $0x30] sm:$0xf]  ;;  %v1238_v34 = vsel %vm9096_vm5, %v1233_v28, %v1237_v11  ;;  %1869 = vst [vmem:[#allocation2 + $0xa4] sm:$0xf] %v1738_v30  ;;  %1935 = vst [vmem:[#allocation2 + $0xcc] sm:$0xf] %v7832_v32  ;;  %v1741_v40 = vsel %vm9082_vm4, %v1739_v31, %v1740_v24 }
 0x102   : > { %v7866_v35 = vld [vmem:[%s9052_s21 + $0x34] sm:$0xf]  ;;  %v7867_v36 = vld [vmem:[%s9052_s21 + $0x38] sm:$0x1]  ;;  %v2059_v37 = vshrl.u32 %v7865_v33, 16  ;;  %v2062_v38 = vshll.u32 %v7865_v33, 16  ;;  %v1248_v39 = vsel %vm9096_vm5, %v1243_v29, %v1247_v22 }
 0x103   : > { %1597 = vst [vmem:[#allocation2 + $0xa0] sm:$0xf] %v1238_v34  ;;  %v2068_v41 = vshll.u32 %v7866_v35, 16  ;;  %v2072_v42 = vshrl.u32 %v7866_v35, 16  ;;  %v7724_v43 = vld [vmem:[%s9052_s21 + $0x30] sm:$0xf] }
 0x104   : > { %v7725_v44 = vld [vmem:[%s9052_s21 + $0x34] sm:$0xf]  ;;  %1598 = vst [vmem:[#allocation2 + $0xc4] sm:$0xf] %v1248_v39  ;;  %1870 = vst [vmem:[#allocation2 + $0xc8] sm:$0xf] %v1741_v40 }
 0x105   : > { %v2061_v45 = vrot.slane %v2059_v37, 4  ;;  %v2064_v46 = vrot.slane %v2062_v38, 5  ;;  %v2078_v47 = vshll.u32 %v7867_v36, 16  ;;  %v7726_v48 = vld [vmem:[%s9052_s21 + $0x38] sm:$0x1]  ;;  %v1250_v49 = vshrl.u32 %v7724_v43, 16 }
 0x106   : > { %v2070_v50 = vrot.slane %v2068_v41, 5  ;;  %v2074_v51 = vrot.slane %v2072_v42, 4  ;;  %v1253_v52 = vshll.u32 %v7724_v43, 16  ;;  %v1259_v53 = vshll.u32 %v7725_v44, 16  ;;  %v7772_v54 = vld [vmem:[%s9052_s21 + $0x30] sm:$0xe] }
 0x107   : > { %v2065_v55 = vor.u32 %v2064_v46, %v2061_v45  ;;  %v2080_v56 = vrot.slane %v2078_v47, 5  ;;  %v1252_v57 = vrot.slane %v1250_v49, 4  ;;  %v1263_v58 = vshrl.u32 %v7725_v44, 16  ;;  %v7773_v59 = vld [vmem:[%s9052_s21 + $0x34] sm:$0xf] }
 0x108   : > { %v8710_v60 = vld [vmem:[#allocation2 + $0x64] ss:$36 sps:$4 sm:$0xff]   ;;  %v2075_v62 = vor.u32 %v2074_v51, %v2070_v50  ;;  %v1255_v63 = vrot.slane %v1253_v52, 5  ;;  %v1261_v1 = vrot.slane %v1259_v53, 5  ;;  %v1269_v4 = vshll.u32 %v7726_v48, 16 }
 0x109   : > { %v8712_v61 = vld [vmem:[#allocation2 + $0x60] ss:$36 sps:$4 sm:$0xff]   ;;  %v2066_v0 = vrot.slane %v2065_v55, 4  ;;  %v1265_v3 = vrot.slane %v1263_v58, 4  ;;  %v7774_v5 = vld [vmem:[%s9052_s21 + $0x38] sm:$0x1]  ;;  %5123 = vmatprep.mubr.bf16.mxu1 %v8710_v60 }
 0x10a   : > { %v2076_v6 = vrot.slane %v2075_v62, 4  ;;  %v1256_v7 = vor.u32 %v1255_v63, %v1252_v57  ;;  %v7814_v9 = vrot.slane %v7772_v54, 9  ;;  %v1744_v10 = vrot.slane %v7773_v59, 5  ;;  %v7833_v11 = vld [vmem:[%s9052_s21 + $0x3c] sm:$0xf]  ;;  %5124 = vmatmul.mubr.bf16.gmra.mxu1 %v8712_v61 }
 0x10b   : > { %v2071_v12 = vsel %vm9096_vm5, %v2066_v0, %v2070_v50  ;;  %v1266_v13 = vor.u32 %v1265_v3, %v1261_v1  ;;  %v1271_v14 = vrot.slane %v1269_v4, 5  ;;  %v1747_v15 = vrot.slane %v7774_v5, 5  ;;  %v7834_v16 = vld [vmem:[%s9052_s21 + $0x40] sm:$0xf]  ;;  %1936 = vst [vmem:[#allocation2 + $0xf0] sm:$0xf] %v7833_v11 }
 0x10c   : > { %v8713_v17 = vld [vmem:[#allocation2 + $0xa4] ss:$36 sps:$4 sm:$0xff]   ;;  %v2081_v19 = vsel %vm9096_vm5, %v2076_v6, %v2080_v56  ;;  %2430 = vst [vmem:[#allocation2 + $0xac] sm:$0xf] %v2071_v12  ;;  %v1257_v20 = vrot.slane %v1256_v7, 4  ;;  %v1745_v21 = vsel %vm9082_vm4, %v7814_v9, %v1744_v10  ;;  %v1746_v23 = vrot.slane %v1744_v10, 4 }
 0x10d   : > { %v8715_v18 = vld [vmem:[#allocation2 + $0xa0] ss:$36 sps:$4 sm:$0xff]   ;;  %1937 = vst [vmem:[#allocation2 + $0x114] sm:$0xf] %v7834_v16  ;;  %2431 = vst [vmem:[#allocation2 + $0xd0] sm:$0xf] %v2081_v19  ;;  %4940 = vmatprep.mubr.bf16.mxu0 %v8713_v17 }
 0x10e   : > { %v1267_v22 = vrot.slane %v1266_v13, 4  ;;  %1871 = vst [vmem:[#allocation2 + $0xec] sm:$0xf] %v1745_v21  ;;  %v7868_v24 = vld [vmem:[%s9052_s21 + $0x3c] sm:$0xf]  ;;  %v1262_v26 = vsel %vm9096_vm5, %v1257_v20, %v1261_v1  ;;  %4941 = vmatmul.mubr.bf16.gmra.mxu0 %v8715_v18  ;;  %v1748_v32 = vsel %vm9082_vm4, %v1746_v23, %v1747_v15 }
 0x10f   : > { %v7869_v25 = vld [vmem:[%s9052_s21 + $0x40] sm:$0xf]  ;;  %v7870_v27 = vld [vmem:[%s9052_s21 + $0x44] sm:$0x1]  ;;  %v2083_v28 = vshrl.u32 %v7868_v24, 16  ;;  %v2086_v29 = vshll.u32 %v7868_v24, 16 }
 0x110   : > { %v2092_v30 = vshll.u32 %v7869_v25, 16  ;;  %v1272_v31 = vsel %vm9096_vm5, %v1267_v22, %v1271_v14  ;;  %1599 = vst [vmem:[#allocation2 + $0xe8] sm:$0xf] %v1262_v26  ;;  %v2096_v33 = vshrl.u32 %v7869_v25, 16  ;;  %v2102_v34 = vshll.u32 %v7870_v27, 16  ;;  %v9730_v25 = vpop.f32.mrf.mxu0 }
 0x111   : > { %v7727_v35 = vld [vmem:[%s9052_s21 + $0x3c] sm:$0xf]  ;;  %v7728_v36 = vld [vmem:[%s9052_s21 + $0x40] sm:$0xf]  ;;  %1600 = vst [vmem:[#allocation2 + $0x10c] sm:$0xf] %v1272_v31  ;;  %v3036_v31 = vlaneseq }
 0x112   : > { %1872 = vst [vmem:[#allocation2 + $0x110] sm:$0xf] %v1748_v32  ;;  %v2085_v37 = vrot.slane %v2083_v28, 4  ;;  %v2088_v38 = vrot.slane %v2086_v29, 5  ;;  %v2094_v39 = vrot.slane %v2092_v30, 5  ;;  %v1274_v41 = vshrl.u32 %v7727_v35, 16 }
 0x113   : > { %v7729_v40 = vld [vmem:[%s9052_s21 + $0x44] sm:$0x1]  ;;  %v2098_v42 = vrot.slane %v2096_v33, 4  ;;  %v2104_v43 = vrot.slane %v2102_v34, 5  ;;  %v1277_v44 = vshll.u32 %v7727_v35, 16  ;;  %v1283_v45 = vshll.u32 %v7728_v36, 16 }
 0x114   : > { %v7775_v46 = vld [vmem:[%s9052_s21 + $0x3c] sm:$0xe]  ;;  %v2089_v47 = vor.u32 %v2088_v38, %v2085_v37  ;;  %v1276_v48 = vrot.slane %v1274_v41, 4  ;;  %v1287_v49 = vshrl.u32 %v7728_v36, 16  ;;  %v1293_v50 = vshll.u32 %v7729_v40, 16  ;;  %v9737_v37 = vpop.f32.mrf.mxu0  ;;  %v9739_v38 = vpop.f32.mrf.mxu1 }
 0x115   : > { %v7776_v51 = vld [vmem:[%s9052_s21 + $0x40] sm:$0xf]  ;;  %v2099_v52 = vor.u32 %v2098_v42, %v2094_v39  ;;  %v1279_v53 = vrot.slane %v1277_v44, 5  ;;  %v1285_v54 = vrot.slane %v1283_v45, 5  ;;  %v7777_v55 = vld [vmem:[%s9052_s21 + $0x44] sm:$0x1] }
 0x116   : > { %v7815_v56 = vrot.slane %v7775_v46, 9  ;;  %v8719_v57 = vld [vmem:[#allocation2 + $0xac] ss:$36 sps:$4 sm:$0xff]   ;;  %v2090_v59 = vrot.slane %v2089_v47, 4  ;;  %v1289_v62 = vrot.slane %v1287_v49, 4  ;;  %v1295_v1 = vrot.slane %v1293_v50, 5  ;;  %v9743_v49 = vpop.f32.mrf.mxu0  ;;  %v9745_v50 = vpop.f32.mrf.mxu1 }
 0x117   : > { %v8721_v58 = vld [vmem:[#allocation2 + $0xa8] ss:$36 sps:$4 sm:$0xff]   ;;  %v2100_v60 = vrot.slane %v2099_v52, 4  ;;  %v1280_v61 = vor.u32 %v1279_v53, %v1276_v48  ;;  %v8731_v63 = vld [vmem:[%s12120_s1 + $0x450] ss:$8 sps:$4 sm:$0xff]   ;;  %5133 = vmatprep.mubr.bf16.mxu1 %v8719_v57  ;;  %v1751_v3 = vrot.slane %v7776_v51, 5 }
 0x118   : > { %v2095_v0 = vsel %vm9096_vm5, %v2090_v59, %v2094_v39  ;;  %v1754_v4 = vrot.slane %v7777_v55, 5  ;;  %v8733_v5 = vld [vmem:[%s12120_s1 + $0x454] ss:$8 sps:$4 sm:$0xff]   ;;  %5134 = vmatmul.mubr.bf16.gmra.mxu1 %v8721_v58  ;;  %v8724_v7 = vld [vmem:[#allocation2 + $0xe8] ss:$36 sps:$4 sm:$0xff]   ;;  %v1290_v11 = vor.u32 %v1289_v62, %v1285_v54  ;;  %v9748_v59 = vshrl.u32 %v3036_v31, 7 }
 0x119   : > { %v8722_v6 = vld [vmem:[#allocation2 + $0xec] ss:$36 sps:$4 sm:$0xff]   ;;  %v2105_v9 = vsel %vm9096_vm5, %v2100_v60, %v2104_v43  ;;  %2432 = vst [vmem:[#allocation2 + $0xf4] sm:$0xf] %v2095_v0  ;;  %v1281_v10 = vrot.slane %v1280_v61, 4  ;;  %v1752_v12 = vsel %vm9082_vm4, %v7815_v56, %v1751_v3  ;;  %v1753_v13 = vrot.slane %v1751_v3, 4  ;;  %5278 = vmatprep.subr.bf16.mxu0 %v8733_v5  ;;  %v9750_v60 = vpop.f32.mrf.mxu0  ;;  %v9752_v61 = vpop.f32.mrf.mxu1 }
 0x11a   : > { %2433 = vst [vmem:[#allocation2 + $0x118] sm:$0xf] %v2105_v9  ;;  %v7835_v14 = vld [vmem:[%s9052_s21 + $0x48] sm:$0xf]  ;;  %v7836_v15 = vld [vmem:[%s9052_s21 + $0x4c] sm:$0xf]  ;;  %4950 = vmatprep.mubr.bf16.mxu0 %v8722_v6  ;;  %5279 = vmatpush1.bf16.msra.mxu0 %v8731_v63 }
 0x11b   : > { %v1286_v16 = vsel %vm9096_vm5, %v1281_v10, %v1285_v54  ;;  %v1291_v17 = vrot.slane %v1290_v11, 4  ;;  %1873 = vst [vmem:[#allocation2 + $0x134] sm:$0xf] %v1752_v12  ;;  %1938 = vst [vmem:[#allocation2 + $0x138] sm:$0xf] %v7835_v14  ;;  %4951 = vmatmul.mubr.bf16.gmra.mxu0 %v8724_v7  ;;  %v1755_v20 = vsel %vm9082_vm4, %v1753_v13, %v1754_v4  ;;  %v9759_v11 = vpop.f32.mrf.mxu0  ;;  %v9761_v12 = vpop.f32.mrf.mxu1 }
 0x11c   : > { %1939 = vst [vmem:[#allocation2 + $0x15c] sm:$0xf] %v7836_v15  ;;  %v7871_v18 = vld [vmem:[%s9052_s21 + $0x48] sm:$0xf]  ;;  %v7872_v19 = vld [vmem:[%s9052_s21 + $0x4c] sm:$0xf] }
 0x11d   : > { %1601 = vst [vmem:[#allocation2 + $0x130] sm:$0xf] %v1286_v16  ;;  %v7873_v21 = vld [vmem:[%s9052_s21 + $0x50] sm:$0x1]  ;;  %v2107_v22 = vshrl.u32 %v7871_v18, 16  ;;  %v2110_v23 = vshll.u32 %v7871_v18, 16  ;;  %v1296_v26 = vsel %vm9096_vm5, %v1291_v17, %v1295_v1 }
 0x11e   : > { %v2116_v24 = vshll.u32 %v7872_v19, 16  ;;  %1874 = vst [vmem:[#allocation2 + $0x158] sm:$0xf] %v1755_v20  ;;  %v2120_v27 = vshrl.u32 %v7872_v19, 16  ;;  %v2126_v28 = vshll.u32 %v7873_v21, 16  ;;  %12131 = vst [vmem:[#allocation4_spill] sm:$0xff] %v9750_v60 }
 0x11f   : > { %v7730_v29 = vld [vmem:[%s9052_s21 + $0x48] sm:$0xf]  ;;  %v7731_v30 = vld [vmem:[%s9052_s21 + $0x4c] sm:$0xf]  ;;  %1602 = vst [vmem:[#allocation2 + $0x154] sm:$0xf] %v1296_v26 }
 0x120   : > { %v2109_v32 = vrot.slane %v2107_v22, 4  ;;  %v2112_v33 = vrot.slane %v2110_v23, 5  ;;  %v2118_v34 = vrot.slane %v2116_v24, 5  ;;  %v7732_v35 = vld [vmem:[%s9052_s21 + $0x50] sm:$0x1]  ;;  %v1298_v36 = vshrl.u32 %v7730_v29, 16  ;;  %v9769_v22 = vpop.f32.mrf.mxu0  ;;  %v9771_v23 = vpop.f32.mrf.mxu1 }
 0x121   : > { %v2122_v39 = vrot.slane %v2120_v27, 4  ;;  %v2128_v40 = vrot.slane %v2126_v28, 5  ;;  %v1301_v41 = vshll.u32 %v7730_v29, 16  ;;  %v1307_v42 = vshll.u32 %v7731_v30, 16  ;;  %v7778_v43 = vld [vmem:[%s9052_s21 + $0x48] sm:$0xe] }
 0x122   : > { %v2113_v44 = vor.u32 %v2112_v33, %v2109_v32  ;;  %v1300_v45 = vrot.slane %v1298_v36, 4  ;;  %v1311_v46 = vshrl.u32 %v7731_v30, 16  ;;  %v1317_v47 = vshll.u32 %v7732_v35, 16  ;;  %v7779_v48 = vld [vmem:[%s9052_s21 + $0x4c] sm:$0xf]  ;;  %12132 = vst [vmem:[#allocation5_spill] sm:$0xff] %v9761_v12  ;;  %v9782_v36 = vpop.f32.mrf.mxu0 }
 0x123   : > { %v8725_v51 = vld [vmem:[#allocation2 + $0xf4] ss:$36 sps:$4 sm:$0xff]   ;;  %v2123_v53 = vor.u32 %v2122_v39, %v2118_v34  ;;  %v1303_v54 = vrot.slane %v1301_v41, 5  ;;  %v1309_v56 = vrot.slane %v1307_v42, 5  ;;  %v7780_v58 = vld [vmem:[%s9052_s21 + $0x50] sm:$0x1]  ;;  %v9784_v39 = vpop.f32.mrf.mxu1 }
 0x124   : > { %v8727_v52 = vld [vmem:[#allocation2 + $0xf0] ss:$36 sps:$4 sm:$0xff]   ;;  %v2114_v55 = vrot.slane %v2113_v44, 4  ;;  %v1313_v57 = vrot.slane %v1311_v46, 4  ;;  %5143 = vmatprep.mubr.bf16.mxu1 %v8725_v51  ;;  %v7816_v0 = vrot.slane %v7778_v43, 9  ;;  %v1758_v1 = vrot.slane %v7779_v48, 5 }
 0x125   : > { %v2124_v62 = vrot.slane %v2123_v53, 4  ;;  %v1304_v63 = vor.u32 %v1303_v54, %v1300_v45  ;;  %v7837_v3 = vld [vmem:[%s9052_s21 + $0x54] sm:$0xf]  ;;  %5144 = vmatmul.mubr.bf16.gmra.mxu1 %v8727_v52  ;;  %v1319_v6 = vrot.slane %v1317_v47, 5  ;;  %v1761_v7 = vrot.slane %v7780_v58, 5  ;;  %v9788_v52 = vpop.f32.mrf.mxu0  ;;  %v9790_v53 = vpop.f32.mrf.mxu1 }
 0x126   : > { %v2119_v4 = vsel %vm9096_vm5, %v2114_v55, %v2118_v34  ;;  %v1314_v5 = vor.u32 %v1313_v57, %v1309_v56  ;;  %v7838_v9 = vld [vmem:[%s9052_s21 + $0x58] sm:$0xf]  ;;  %1940 = vst [vmem:[#allocation2 + $0x180] sm:$0xf] %v7837_v3  ;;  %v7874_v10 = vld [vmem:[%s9052_s21 + $0x54] sm:$0xf]  ;;  %v1759_v17 = vsel %vm9082_vm4, %v7816_v0, %v1758_v1 }
 0x127   : > { %v8728_v13 = vld [vmem:[#allocation2 + $0x134] ss:$36 sps:$4 sm:$0xff]   ;;  %v2129_v15 = vsel %vm9096_vm5, %v2124_v62, %v2128_v40  ;;  %2434 = vst [vmem:[#allocation2 + $0x13c] sm:$0xf] %v2119_v4  ;;  %v1305_v16 = vrot.slane %v1304_v63, 4  ;;  %v1760_v19 = vrot.slane %v1758_v1, 4  ;;  %v9796_v4 = vpop.f32.mrf.mxu0 }
 0x128   : > { %v8730_v14 = vld [vmem:[#allocation2 + $0x130] ss:$36 sps:$4 sm:$0xff]   ;;  %1941 = vst [vmem:[#allocation2 + $0x1a4] sm:$0xf] %v7838_v9  ;;  %2435 = vst [vmem:[#allocation2 + $0x160] sm:$0xf] %v2129_v15  ;;  %4960 = vmatprep.mubr.bf16.mxu0 %v8728_v13 }
 0x129   : > { %v1315_v18 = vrot.slane %v1314_v5, 4  ;;  %1875 = vst [vmem:[#allocation2 + $0x17c] sm:$0xf] %v1759_v17  ;;  %v7875_v20 = vld [vmem:[%s9052_s21 + $0x58] sm:$0xf]  ;;  %v1310_v24 = vsel %vm9096_vm5, %v1305_v16, %v1309_v56  ;;  %v2131_v26 = vshrl.u32 %v7874_v10, 16  ;;  %4961 = vmatmul.mubr.bf16.gmra.mxu0 %v8730_v14  ;;  %v1762_v31 = vsel %vm9082_vm4, %v1760_v19, %v1761_v7  ;;  %v9798_v5 = vpop.f32.mrf.mxu1  ;;  %v9804_v17 = vpop.f32.mrf.mxu0 }
 0x12a   : > { %v7876_v21 = vld [vmem:[%s9052_s21 + $0x5c] sm:$0x1]  ;;  %v2134_v27 = vshll.u32 %v7874_v10, 16  ;;  %v2140_v28 = vshll.u32 %v7875_v20, 16  ;;  %v7733_v29 = vld [vmem:[%s9052_s21 + $0x54] sm:$0xf] }
 0x12b   : > { %v1320_v30 = vsel %vm9096_vm5, %v1315_v18, %v1319_v6  ;;  %1603 = vst [vmem:[#allocation2 + $0x178] sm:$0xf] %v1310_v24  ;;  %v2144_v32 = vshrl.u32 %v7875_v20, 16  ;;  %v2150_v33 = vshll.u32 %v7876_v21, 16  ;;  %v7734_v34 = vld [vmem:[%s9052_s21 + $0x58] sm:$0xf]  ;;  %v9806_v18 = vpop.f32.mrf.mxu1 }
 0x12c   : > { %v7735_v35 = vld [vmem:[%s9052_s21 + $0x5c] sm:$0x1]  ;;  %1604 = vst [vmem:[#allocation2 + $0x19c] sm:$0xf] %v1320_v30  ;;  %1876 = vst [vmem:[#allocation2 + $0x1a0] sm:$0xf] %v1762_v31 }
 0x12d   : > { %v2133_v40 = vrot.slane %v2131_v26, 4  ;;  %v2136_v41 = vrot.slane %v2134_v27, 5  ;;  %v2142_v42 = vrot.slane %v2140_v28, 5  ;;  %v1322_v43 = vshrl.u32 %v7733_v29, 16  ;;  %v7781_v44 = vld [vmem:[%s9052_s21 + $0x54] sm:$0xe] }
 0x12e   : > { %v2146_v45 = vrot.slane %v2144_v32, 4  ;;  %v2152_v46 = vrot.slane %v2150_v33, 5  ;;  %v1325_v47 = vshll.u32 %v7733_v29, 16  ;;  %v1331_v48 = vshll.u32 %v7734_v34, 16  ;;  %v7782_v51 = vld [vmem:[%s9052_s21 + $0x58] sm:$0xf]  ;;  %v9813_v32 = vpop.f32.mrf.mxu0  ;;  %v9815_v33 = vpop.f32.mrf.mxu1 }
 0x12f   : > { %12133 = vst [vmem:[#allocation6_spill] sm:$0xff] %v9788_v52  ;;  %v2137_v54 = vor.u32 %v2136_v41, %v2133_v40  ;;  %v1324_v55 = vrot.slane %v1322_v43, 4  ;;  %v1335_v56 = vshrl.u32 %v7734_v34, 16  ;;  %v1341_v57 = vshll.u32 %v7735_v35, 16  ;;  %v7783_v58 = vld [vmem:[%s9052_s21 + $0x5c] sm:$0x1] }
 0x130   : > { %v2147_v62 = vor.u32 %v2146_v45, %v2142_v42  ;;  %v1327_v63 = vrot.slane %v1325_v47, 5  ;;  %v1333_v0 = vrot.slane %v1331_v48, 5  ;;  %v7817_v1 = vrot.slane %v7781_v44, 9  ;;  %v8746_v3 = vld [vmem:[%s12120_s1 + $0x440] ss:$8 sps:$4 sm:$0xff]   ;;  %12134 = vst [vmem:[#allocation7_spill] sm:$0xff] %v9798_v5  ;;  %v9826_v48 = vpop.f32.mrf.mxu0 }
 0x131   : > { %v8734_v6 = vld [vmem:[#allocation2 + $0x13c] ss:$36 sps:$4 sm:$0xff]   ;;  %v2138_v9 = vrot.slane %v2137_v54, 4  ;;  %v1337_v14 = vrot.slane %v1335_v56, 4  ;;  %v8748_v15 = vld [vmem:[%s12120_s1 + $0x444] ss:$8 sps:$4 sm:$0xff]  }
 0x132   : > { %v8736_v7 = vld [vmem:[#allocation2 + $0x138] ss:$36 sps:$4 sm:$0xff]   ;;  %v2148_v10 = vrot.slane %v2147_v62, 4  ;;  %v1328_v13 = vor.u32 %v1327_v63, %v1324_v55  ;;  %5153 = vmatprep.mubr.bf16.mxu1 %v8734_v6  ;;  %v1343_v20 = vrot.slane %v1341_v57, 5  ;;  %v1765_v21 = vrot.slane %v7782_v51, 5  ;;  %5280 = vmatprep.subr.bf16.mxu0 %v8748_v15  ;;  %12135 = vst [vmem:[#allocation8_spill] sm:$0xff] %v9826_v48  ;;  %v9828_v51 = vpop.f32.mrf.mxu1  ;;  %v9837_v6 = vpop.f32.mrf.mxu0 }
 0x133   : > { %v2143_v19 = vsel %vm9096_vm5, %v2138_v9, %v2142_v42  ;;  %v1768_v24 = vrot.slane %v7783_v58, 5  ;;  %v7839_v26 = vld [vmem:[%s9052_s21 + $0x60] sm:$0xf]  ;;  %5154 = vmatmul.mubr.bf16.gmra.mxu1 %v8736_v7  ;;  %v8739_v28 = vld [vmem:[#allocation2 + $0x178] ss:$36 sps:$4 sm:$0xff]   ;;  %v1338_v31 = vor.u32 %v1337_v14, %v1333_v0  ;;  %5281 = vmatpush1.bf16.msra.mxu0 %v8746_v3 }
 0x134   : > { %v8737_v27 = vld [vmem:[#allocation2 + $0x17c] ss:$36 sps:$4 sm:$0xff]   ;;  %v2153_v29 = vsel %vm9096_vm5, %v2148_v10, %v2152_v46  ;;  %2436 = vst [vmem:[#allocation2 + $0x184] sm:$0xf] %v2143_v19  ;;  %v1329_v30 = vrot.slane %v1328_v13, 4  ;;  %v1766_v34 = vsel %vm9082_vm4, %v7817_v1, %v1765_v21  ;;  %v1767_v35 = vrot.slane %v1765_v21, 4  ;;  %v9839_v7 = vpop.f32.mrf.mxu1 }
 0x135   : > { %1942 = vst [vmem:[#allocation2 + $0x1c8] sm:$0xf] %v7839_v26  ;;  %2437 = vst [vmem:[#allocation2 + $0x1a8] sm:$0xf] %v2153_v29  ;;  %v7840_v40 = vld [vmem:[%s9052_s21 + $0x64] sm:$0xf]  ;;  %4970 = vmatprep.mubr.bf16.mxu0 %v8737_v27  ;;  %v9843_v27 = vpop.f32.mrf.mxu0 }
 0x136   : > { %v7877_v41 = vld [vmem:[%s9052_s21 + $0x60] sm:$0xf]  ;;  %v1334_v43 = vsel %vm9096_vm5, %v1329_v30, %v1333_v0  ;;  %v1339_v44 = vrot.slane %v1338_v31, 4  ;;  %1877 = vst [vmem:[#allocation2 + $0x1c4] sm:$0xf] %v1766_v34  ;;  %4971 = vmatmul.mubr.bf16.gmra.mxu0 %v8739_v28  ;;  %v1769_v54 = vsel %vm9082_vm4, %v1767_v35, %v1768_v24  ;;  %12136 = vst [vmem:[#allocation9_spill] sm:$0xff] %v9839_v7  ;;  %v9845_v28 = vpop.f32.mrf.mxu1 }
 0x137   : > { %1943 = vst [vmem:[#allocation2 + $0x1ec] sm:$0xf] %v7840_v40  ;;  %v7878_v45 = vld [vmem:[%s9052_s21 + $0x64] sm:$0xf]  ;;  %v7879_v46 = vld [vmem:[%s9052_s21 + $0x68] sm:$0x1] }
 0x138   : > { %v2155_v47 = vshrl.u32 %v7877_v41, 16  ;;  %1605 = vst [vmem:[#allocation2 + $0x1c0] sm:$0xf] %v1334_v43  ;;  %v2158_v55 = vshll.u32 %v7877_v41, 16  ;;  %v2164_v56 = vshll.u32 %v7878_v45, 16  ;;  %v2168_v57 = vshrl.u32 %v7878_v45, 16  ;;  %v9850_v45 = vpop.f32.mrf.mxu1 }
 0x139   : > { %v7736_v58 = vld [vmem:[%s9052_s21 + $0x60] sm:$0xf]  ;;  %v1344_v62 = vsel %vm9096_vm5, %v1339_v44, %v1343_v20  ;;  %1878 = vst [vmem:[#allocation2 + $0x1e8] sm:$0xf] %v1769_v54  ;;  %v2174_v0 = vshll.u32 %v7879_v46, 16  ;;  %v9848_v44 = vpop.f32.mrf.mxu0 }
 0x13a   : > { %v2157_v63 = vrot.slane %v2155_v47, 4  ;;  %v7737_v1 = vld [vmem:[%s9052_s21 + $0x64] sm:$0xf]  ;;  %v7738_v3 = vld [vmem:[%s9052_s21 + $0x68] sm:$0x1]  ;;  %v2160_v9 = vrot.slane %v2158_v55, 5 }
 0x13b   : > { %1606 = vst [vmem:[#allocation2 + $0x1e4] sm:$0xf] %v1344_v62  ;;  %v2166_v10 = vrot.slane %v2164_v56, 5  ;;  %v2170_v13 = vrot.slane %v2168_v57, 4  ;;  %v1346_v14 = vshrl.u32 %v7736_v58, 16  ;;  %v2176_v19 = vrot.slane %v2174_v0, 5 }
 0x13c   : > { %v7784_v15 = vld [vmem:[%s9052_s21 + $0x60] sm:$0xe]  ;;  %v1349_v21 = vshll.u32 %v7736_v58, 16  ;;  %v1355_v20 = vshll.u32 %v7737_v1, 16  ;;  %v1359_v24 = vshrl.u32 %v7737_v1, 16  ;;  %v2161_v29 = vor.u32 %v2160_v9, %v2157_v63  ;;  %v9854_v1 = vpop.f32.mrf.mxu0 }
 0x13d   : > { %v7785_v26 = vld [vmem:[%s9052_s21 + $0x64] sm:$0xf]  ;;  %v2171_v30 = vor.u32 %v2170_v13, %v2166_v10  ;;  %v1348_v31 = vrot.slane %v1346_v14, 4  ;;  %v1365_v34 = vshll.u32 %v7738_v3, 16  ;;  %v7786_v35 = vld [vmem:[%s9052_s21 + $0x68] sm:$0x1]  ;;  %v9856_v3 = vpop.f32.mrf.mxu1 }
 0x13e   : > { %v8740_v40 = vld [vmem:[#allocation2 + $0x184] ss:$36 sps:$4 sm:$0xff]   ;;  %v1351_v43 = vrot.slane %v1349_v21, 5  ;;  %v2162_v46 = vrot.slane %v2161_v29, 4  ;;  %v1357_v54 = vrot.slane %v1355_v20, 5  ;;  %v1361_v55 = vrot.slane %v1359_v24, 4 }
 0x13f   : > { %v8742_v41 = vld [vmem:[#allocation2 + $0x180] ss:$36 sps:$4 sm:$0xff]   ;;  %v2172_v47 = vrot.slane %v2171_v30, 4  ;;  %v7841_v56 = vld [vmem:[%s9052_s21 + $0x6c] sm:$0xf]  ;;  %5163 = vmatprep.mubr.bf16.mxu1 %v8740_v40  ;;  %v1367_v58 = vrot.slane %v1365_v34, 5 }
 0x140   : > { %v1352_v57 = vor.u32 %v1351_v43, %v1348_v31  ;;  %v7818_v62 = vrot.slane %v7784_v15, 9  ;;  %v1772_v63 = vrot.slane %v7785_v26, 5  ;;  %v7842_v0 = vld [vmem:[%s9052_s21 + $0x70] sm:$0xf]  ;;  %1944 = vst [vmem:[#allocation2 + $0x210] sm:$0xf] %v7841_v56  ;;  %5164 = vmatmul.mubr.bf16.gmra.mxu1 %v8742_v41  ;;  %v2167_v9 = vsel %vm9096_vm5, %v2162_v46, %v2166_v10  ;;  %v9866_v31 = vpop.f32.mrf.mxu1  ;;  %v9869_v41 = vpop.f32.mrf.mxu0 }
 0x141   : > { %12137 = vst [vmem:[#allocation10_spill] sm:$0xff] %v9854_v1  ;;  %v2177_v13 = vsel %vm9096_vm5, %v2172_v47, %v2176_v19  ;;  %v1362_v14 = vor.u32 %v1361_v55, %v1357_v54  ;;  %v1775_v21 = vrot.slane %v7786_v35, 5  ;;  %1945 = vst [vmem:[#allocation2 + $0x234] sm:$0xf] %v7842_v0  ;;  %v7880_v20 = vld [vmem:[%s9052_s21 + $0x6c] sm:$0xf] }
 0x142   : > { %v7881_v15 = vld [vmem:[%s9052_s21 + $0x70] sm:$0xf]  ;;  %v8743_v24 = vld [vmem:[#allocation2 + $0x1c4] ss:$36 sps:$4 sm:$0xff]   ;;  %2438 = vst [vmem:[#allocation2 + $0x1cc] sm:$0xf] %v2167_v9  ;;  %v1773_v30 = vsel %vm9082_vm4, %v7818_v62, %v1772_v63 }
 0x143   : > { %v8745_v26 = vld [vmem:[#allocation2 + $0x1c0] ss:$36 sps:$4 sm:$0xff]   ;;  %2439 = vst [vmem:[#allocation2 + $0x1f0] sm:$0xf] %v2177_v13  ;;  %v1353_v29 = vrot.slane %v1352_v57, 4  ;;  %12138 = vst [vmem:[#allocation11_spill] sm:$0xff] %v9866_v31  ;;  %4980 = vmatprep.mubr.bf16.mxu0 %v8743_v24  ;;  %v9874_v57 = vpop.f32.mrf.mxu1 }
 0x144   : > { %v1363_v10 = vrot.slane %v1362_v14, 4  ;;  %v1774_v34 = vrot.slane %v1772_v63, 4  ;;  %1879 = vst [vmem:[#allocation2 + $0x20c] sm:$0xf] %v1773_v30  ;;  %v7882_v19 = vld [vmem:[%s9052_s21 + $0x74] sm:$0x1]  ;;  %4981 = vmatmul.mubr.bf16.gmra.mxu0 %v8745_v26  ;;  %v9882_v14 = vpop.f32.mrf.mxu0 }
 0x145   : > { %v2179_v40 = vshrl.u32 %v7880_v20, 16  ;;  %v2182_v35 = vshll.u32 %v7880_v20, 16  ;;  %v1358_v43 = vsel %vm9096_vm5, %v1353_v29, %v1357_v54  ;;  %v2188_v46 = vshll.u32 %v7881_v15, 16  ;;  %v7739_v56 = vld [vmem:[%s9052_s21 + $0x6c] sm:$0xf] }
 0x146   : > { %v2192_v47 = vshrl.u32 %v7881_v15, 16  ;;  %v2198_v55 = vshll.u32 %v7882_v19, 16  ;;  %v1368_v62 = vsel %vm9096_vm5, %v1363_v10, %v1367_v58  ;;  %1607 = vst [vmem:[#allocation2 + $0x208] sm:$0xf] %v1358_v43  ;;  %v1776_v63 = vsel %vm9082_vm4, %v1774_v34, %v1775_v21  ;;  %v7740_v13 = vld [vmem:[%s9052_s21 + $0x70] sm:$0xf]  ;;  %v9885_v58 = vpop.f32.mrf.mxu1 }
 0x147   : > { %v2181_v0 = vrot.slane %v2179_v40, 4  ;;  %v2184_v9 = vrot.slane %v2182_v35, 5  ;;  %v7741_v54 = vld [vmem:[%s9052_s21 + $0x74] sm:$0x1]  ;;  %1608 = vst [vmem:[#allocation2 + $0x22c] sm:$0xf] %v1368_v62  ;;  %v9888_v40 = vpop.f32.mrf.mxu0 }
 0x148   : > { %1880 = vst [vmem:[#allocation2 + $0x230] sm:$0xf] %v1776_v63  ;;  %v2190_v20 = vrot.slane %v2188_v46, 5  ;;  %v2194_v15 = vrot.slane %v2192_v47, 4  ;;  %v2200_v24 = vrot.slane %v2198_v55, 5  ;;  %v1370_v26 = vshrl.u32 %v7739_v56, 16  ;;  %v9891_v16 = vpop.f32.mrf.mxu1 }
 0x149   : > { %v7787_v29 = vld [vmem:[%s9052_s21 + $0x6c] sm:$0xe]  ;;  %v2185_v30 = vor.u32 %v2184_v9, %v2181_v0  ;;  %v1373_v10 = vshll.u32 %v7739_v56, 16  ;;  %v1379_v21 = vshll.u32 %v7740_v13, 16  ;;  %v1383_v34 = vshrl.u32 %v7740_v13, 16  ;;  %v9893_v31 = vpop.f32.mrf.mxu0 }
 0x14a   : > { %v7788_v19 = vld [vmem:[%s9052_s21 + $0x70] sm:$0xf]  ;;  %v2195_v35 = vor.u32 %v2194_v15, %v2190_v20  ;;  %v1372_v43 = vrot.slane %v1370_v26, 4  ;;  %v1389_v42 = vshll.u32 %v7741_v54, 16  ;;  %v7789_v62 = vld [vmem:[%s9052_s21 + $0x74] sm:$0x1]  ;;  %v9895_v7 = vpop.f32.mrf.mxu1 }
 0x14b   : > { %v7819_v63 = vrot.slane %v7787_v29, 9  ;;  %v8749_v46 = vld [vmem:[#allocation2 + $0x1cc] ss:$36 sps:$4 sm:$0xff]   ;;  %v2186_v47 = vrot.slane %v2185_v30, 4  ;;  %v1375_v55 = vrot.slane %v1373_v10, 5  ;;  %12139 = vst [vmem:[#allocation12_spill] sm:$0xff] %v9893_v31 }
 0x14c   : > { %v8751_v1 = vld [vmem:[#allocation2 + $0x1c8] ss:$36 sps:$4 sm:$0xff]   ;;  %v2196_v0 = vrot.slane %v2195_v35, 4  ;;  %v1381_v56 = vrot.slane %v1379_v21, 5  ;;  %v1385_v9 = vrot.slane %v1383_v34, 4  ;;  %v1391_v13 = vrot.slane %v1389_v42, 5  ;;  %5173 = vmatprep.mubr.bf16.mxu1 %v8749_v46 }
 0x14d   : > { %12140 = vst [vmem:[#allocation13_spill] sm:$0xff] %v9895_v7  ;;  %v2191_v54 = vsel %vm9096_vm5, %v2186_v47, %v2190_v20  ;;  %v1376_v15 = vor.u32 %v1375_v55, %v1372_v43  ;;  %v1779_v26 = vrot.slane %v7788_v19, 5  ;;  %v1782_v29 = vrot.slane %v7789_v62, 5  ;;  %v3034_v30 = vld [vmem:[%s12121_s2] sm:$0x3]  ;;  %5174 = vmatmul.mubr.bf16.gmra.mxu1 %v8751_v1  ;;  %v9919_v1 = vpop.f32.mrf.mxu0 }
 0x14e   : > { %v8761_v10 = vld [vmem:[%s12120_s1 + $0x430] ss:$8 sps:$4 sm:$0xff]   ;;  %v2201_v42 = vsel %vm9096_vm5, %v2196_v0, %v2200_v24  ;;  %2440 = vst [vmem:[#allocation2 + $0x214] sm:$0xf] %v2191_v54  ;;  %v1386_v21 = vor.u32 %v1385_v9, %v1381_v56  ;;  %v12141_v34 = vsub.s32 0, %v9748_v59  ;;  %v12142_v43 = vsub.s32 1, %v9748_v59  ;;  %v9921_v24 = vpop.f32.mrf.mxu1 }
 0x14f   : > { %v8763_v19 = vld [vmem:[%s12120_s1 + $0x434] ss:$8 sps:$4 sm:$0xff]   ;;  %v7843_v35 = vld [vmem:[%s9052_s21 + $0x78] sm:$0xf]  ;;  %v8752_v46 = vld [vmem:[#allocation2 + $0x20c] ss:$36 sps:$4 sm:$0xff]   ;;  %v1780_v0 = vsel %vm9082_vm4, %v7819_v63, %v1779_v26 }
 0x150   : > { %v9909_v20 = vrot.slane %v3034_v30, %v12141_v34  ;;  %v9917_v62 = vrot.slane %v3034_v30, %v12142_v43  ;;  %v8754_v47 = vld [vmem:[#allocation2 + $0x208] ss:$36 sps:$4 sm:$0xff]   ;;  %2441 = vst [vmem:[#allocation2 + $0x238] sm:$0xf] %v2201_v42  ;;  %v1377_v55 = vrot.slane %v1376_v15, 4  ;;  %v1387_v9 = vrot.slane %v1386_v21, 4  ;;  %5282 = vmatprep.subr.bf16.mxu0 %v8763_v19  ;;  %v9931_v42 = vpop.f32.mrf.mxu0  ;;  %v9933_v15 = vpop.f32.mrf.mxu1  ;;  %4990 = vmatprep.mubr.bf16.mxu0 %v8752_v46 }
 0x151   : > { %1946 = vst [vmem:[#allocation2 + $0x258] sm:$0xf] %v7843_v35  ;;  %v1781_v54 = vrot.slane %v1779_v26, 4  ;;  %1881 = vst [vmem:[#allocation2 + $0x254] sm:$0xf] %v1780_v0  ;;  %5283 = vmatpush1.bf16.msra.mxu0 %v8761_v10 }
 0x152   : > { %v4537_v59 = vadd.f32 %v9730_v25, %v9909_v20  ;;  %v7844_v30 = vld [vmem:[%s9052_s21 + $0x7c] sm:$0xf]  ;;  %v7883_v34 = vld [vmem:[%s9052_s21 + $0x78] sm:$0xf]  ;;  %v4539_v43 = vadd.f32 %v9737_v37, %v9917_v62  ;;  %v1382_v63 = vsel %vm9096_vm5, %v1377_v55, %v1381_v56  ;;  %v7885_v21 = vld [vmem:[%s9052_s21 + $0x80] sm:$0x1]  ;;  %v4541_v19 = vadd.f32 %v9743_v49, %v9909_v20  ;;  %4991 = vmatmul.mubr.bf16.gmra.mxu0 %v8754_v47  ;;  %v9948_v10 = vpop.f32.mrf.mxu1 }
 0x153   : > { %1947 = vst [vmem:[#allocation2 + $0x27c] sm:$0xf] %v7844_v30  ;;  %v7884_v26 = vld [vmem:[%s9052_s21 + $0x7c] sm:$0xf]  ;;  %v2203_v35 = vshrl.u32 %v7883_v34, 16  ;;  %v2206_v25 = vshll.u32 %v7883_v34, 16  ;;  %v1392_v37 = vsel %vm9096_vm5, %v1387_v9, %v1391_v13  ;;  %v1783_v46 = vsel %vm9082_vm4, %v1781_v54, %v1782_v29  ;;  %v9946_v30 = vpop.f32.mrf.mxu0 }
 0x154   : > { %1609 = vst [vmem:[#allocation2 + $0x250] sm:$0xf] %v1382_v63  ;;  %v2212_v56 = vshll.u32 %v7884_v26, 16  ;;  %v2216_v55 = vshrl.u32 %v7884_v26, 16  ;;  %v7742_v0 = vld [vmem:[%s9052_s21 + $0x78] sm:$0xf]  ;;  %v9951_v13 = vadd.f32 %v9739_v38, %v4537_v59  ;;  %v9955_v63 = vadd.f32 %v9745_v50, %v4539_v43 }
 0x155   : > { %1610 = vst [vmem:[#allocation2 + $0x274] sm:$0xf] %v1392_v37  ;;  %1882 = vst [vmem:[#allocation2 + $0x278] sm:$0xf] %v1783_v46  ;;  %v2205_v49 = vrot.slane %v2203_v35, 4  ;;  %v2208_v47 = vrot.slane %v2206_v25, 5  ;;  %v9959_v31 = vpop.f32.mrf.mxu0  ;;  %v9961_v37 = vpop.f32.mrf.mxu1  ;;  %v9970_v48 = vadd.f32 %v9759_v11, %v9909_v20 }
 0x156   : > { %v2222_v34 = vshll.u32 %v7885_v21, 16  ;;  %12143 = vst [vmem:[#allocation14_spill] sm:$0xff] %v9951_v13  ;;  %v7743_v9 = vld [vmem:[%s9052_s21 + $0x7c] sm:$0xf]  ;;  %v2214_v29 = vrot.slane %v2212_v56, 5  ;;  %v2218_v54 = vrot.slane %v2216_v55, 4  ;;  %v9964_v21 = vadd.f32 %v9752_v61, %v4541_v19 }
 0x157   : > { %12144 = vst [vmem:[#allocation15_spill] sm:$0xff] %v9955_v63  ;;  %v7744_v26 = vld [vmem:[%s9052_s21 + $0x80] sm:$0x1]  ;;  %v7790_v7 = vld [vmem:[%s9052_s21 + $0x78] sm:$0xe]  ;;  %12145 = vst [vmem:[#allocation16_spill] sm:$0xff] %v9959_v31  ;;  %v2209_v35 = vor.u32 %v2208_v47, %v2205_v49  ;;  %v9973_v61 = vpop.f32.mrf.mxu0 }
 0x158   : > { %12146 = vst [vmem:[#allocation17_spill] sm:$0xff] %v9961_v37  ;;  %v2224_v25 = vrot.slane %v2222_v34, 5  ;;  %12147 = vst [vmem:[#allocation18_spill] sm:$0xff] %v9964_v21  ;;  %v1394_v38 = vshrl.u32 %v7742_v0, 16  ;;  %v7791_v59 = vld [vmem:[%s9052_s21 + $0x7c] sm:$0xf]  ;;  %v2219_v55 = vor.u32 %v2218_v54, %v2214_v29 }
 0x159   : > { %v8755_v46 = vld [vmem:[#allocation2 + $0x214] ss:$36 sps:$4 sm:$0xff]   ;;  %v1397_v50 = vshll.u32 %v7742_v0, 16  ;;  %v7792_v43 = vld [vmem:[%s9052_s21 + $0x80] sm:$0x1]  ;;  %v2210_v31 = vrot.slane %v2209_v35, 4  ;;  %v9976_v0 = vpop.f32.mrf.mxu1 }
 0x15a   : > { %v8757_v56 = vld [vmem:[#allocation2 + $0x210] ss:$36 sps:$4 sm:$0xff]   ;;  %v1396_v37 = vrot.slane %v1394_v38, 4  ;;  %v1403_v5 = vshll.u32 %v7743_v9, 16  ;;  %v1407_v49 = vshrl.u32 %v7743_v9, 16  ;;  %5183 = vmatprep.mubr.bf16.mxu1 %v8755_v46  ;;  %v2220_v19 = vrot.slane %v2219_v55, 4  ;;  %v9981_v46 = vpop.f32.mrf.mxu0 }
 0x15b   : > { %v7845_v47 = vld [vmem:[%s9052_s21 + $0x84] sm:$0xf]  ;;  %v1399_v34 = vrot.slane %v1397_v50, 5  ;;  %v1413_v52 = vshll.u32 %v7744_v26, 16  ;;  %v7820_v12 = vrot.slane %v7790_v7, 9  ;;  %5184 = vmatmul.mubr.bf16.gmra.mxu1 %v8757_v56  ;;  %v2215_v11 = vsel %vm9096_vm5, %v2210_v31, %v2214_v29 }
 0x15c   : > { %v7846_v54 = vld [vmem:[%s9052_s21 + $0x88] sm:$0xf]  ;;  %1948 = vst [vmem:[#allocation2 + $0x2a0] sm:$0xf] %v7845_v47  ;;  %v1405_v35 = vrot.slane %v1403_v5, 5  ;;  %v1409_v38 = vrot.slane %v1407_v49, 4  ;;  %v2225_v7 = vsel %vm9096_vm5, %v2220_v19, %v2224_v25  ;;  %v4549_v31 = vadd.f32 %v9769_v22, %v9917_v62  ;;  %v9987_v5 = vpop.f32.mrf.mxu1  ;;  %v9993_v63 = vpop.f32.mrf.mxu0 }
 0x15d   : > { %v1786_v9 = vrot.slane %v7791_v59, 5  ;;  %1949 = vst [vmem:[#allocation2 + $0x2c4] sm:$0xf] %v7846_v54  ;;  %v7886_v60 = vld [vmem:[%s9052_s21 + $0x84] sm:$0xf]  ;;  %v1400_v50 = vor.u32 %v1399_v34, %v1396_v37  ;;  %v1415_v56 = vrot.slane %v1413_v52, 5 }
 0x15e   : > { %v8758_v55 = vld [vmem:[#allocation2 + $0x254] ss:$36 sps:$4 sm:$0xff]   ;;  %2442 = vst [vmem:[#allocation2 + $0x25c] sm:$0xf] %v2215_v11  ;;  %2443 = vst [vmem:[#allocation2 + $0x280] sm:$0xf] %v2225_v7  ;;  %v1410_v29 = vor.u32 %v1409_v38, %v1405_v35  ;;  %v9995_v19 = vpop.f32.mrf.mxu1 }
 0x15f   : > { %v8760_v26 = vld [vmem:[#allocation2 + $0x250] ss:$36 sps:$4 sm:$0xff]   ;;  %v1787_v59 = vsel %vm9082_vm4, %v7820_v12, %v1786_v9  ;;  %v1788_v49 = vrot.slane %v1786_v9, 4  ;;  %v1789_v47 = vrot.slane %v7792_v43, 5  ;;  %v7887_v54 = vld [vmem:[%s9052_s21 + $0x88] sm:$0xf]  ;;  %5000 = vmatprep.mubr.bf16.mxu0 %v8758_v55  ;;  %v10000_v9 = vpop.f32.mrf.mxu0 }
 0x160   : > { %v7888_v21 = vld [vmem:[%s9052_s21 + $0x8c] sm:$0x1]  ;;  %v1401_v37 = vrot.slane %v1400_v50, 4  ;;  %1883 = vst [vmem:[#allocation2 + $0x29c] sm:$0xf] %v1787_v59  ;;  %v2227_v52 = vshrl.u32 %v7886_v60, 16  ;;  %5001 = vmatmul.mubr.bf16.gmra.mxu0 %v8760_v26 }
 0x161   : > { %v2230_v22 = vshll.u32 %v7886_v60, 16  ;;  %v2236_v25 = vshll.u32 %v7887_v54, 16  ;;  %v1411_v34 = vrot.slane %v1410_v29, 4  ;;  %v1790_v12 = vsel %vm9082_vm4, %v1788_v49, %v1789_v47  ;;  %v7745_v38 = vld [vmem:[%s9052_s21 + $0x84] sm:$0xf]  ;;  %12148 = vst [vmem:[#allocation19_spill] sm:$0xff] %v10000_v9  ;;  %v10005_v29 = vpop.f32.mrf.mxu1 }
 0x162   : > { %v2240_v43 = vshrl.u32 %v7887_v54, 16  ;;  %v2246_v11 = vshll.u32 %v7888_v21, 16  ;;  %v1406_v55 = vsel %vm9096_vm5, %v1401_v37, %v1405_v35  ;;  %1884 = vst [vmem:[#allocation2 + $0x2c0] sm:$0xf] %v1790_v12  ;;  %v2229_v60 = vrot.slane %v2227_v52, 4  ;;  %12149 = vst [vmem:[#allocation20_spill] sm:$0xff] %v10005_v29 }
 0x163   : > { %v2232_v7 = vrot.slane %v2230_v22, 5  ;;  %v2238_v26 = vrot.slane %v2236_v25, 5  ;;  %v7746_v50 = vld [vmem:[%s9052_s21 + $0x88] sm:$0xf]  ;;  %v1416_v59 = vsel %vm9096_vm5, %v1411_v34, %v1415_v56  ;;  %1611 = vst [vmem:[#allocation2 + $0x298] sm:$0xf] %v1406_v55  ;;  %v10011_v47 = vadd.f32 %v9771_v23, %v9970_v48  ;;  %v10030_v48 = vpop.f32.mrf.mxu0  ;;  %v10032_v12 = vpop.f32.mrf.mxu1 }
 0x164   : > { %v2242_v21 = vrot.slane %v2240_v43, 4  ;;  %v2248_v49 = vrot.slane %v2246_v11, 5  ;;  %v7747_v35 = vld [vmem:[%s9052_s21 + $0x8c] sm:$0x1]  ;;  %v7793_v54 = vld [vmem:[%s9052_s21 + $0x84] sm:$0xe]  ;;  %v4551_v52 = vadd.f32 %v9782_v36, %v9909_v20  ;;  %v10018_v22 = vadd.f32 %v9784_v39, %v4549_v31 }
 0x165   : > { %12150 = vst [vmem:[#allocation21_spill] sm:$0xff] %v10011_v47  ;;  %1612 = vst [vmem:[#allocation2 + $0x2bc] sm:$0xf] %v1416_v59  ;;  %v2233_v37 = vor.u32 %v2232_v7, %v2229_v60  ;;  %v7794_v25 = vld [vmem:[%s9052_s21 + $0x88] sm:$0xf]  ;;  %v1418_v36 = vshrl.u32 %v7745_v38, 16  ;;  %v4557_v29 = vadd.f32 %v9796_v4, %v9909_v20  ;;  %v10040_v9 = vpop.f32.mrf.mxu0 }
 0x166   : > { %12151 = vst [vmem:[#allocation22_spill] sm:$0xff] %v10018_v22  ;;  %v10022_v56 = vld [vmem:[%s9052_s21 + $0x8c] sm:$0x1]  ;;  %v8776_v34 = vld [vmem:[%s12120_s1 + $0x420] ss:$8 sps:$4 sm:$0xff]   ;;  %12152 = vst [vmem:[#allocation23_spill] sm:$0xff] %v10032_v12  ;;  %v2243_v43 = vor.u32 %v2242_v21, %v2238_v26  ;;  %v10036_v59 = vadd.f32 %v9790_v53, %v4551_v52  ;;  %v10042_v21 = vpop.f32.mrf.mxu1 }
 0x167   : > { %v8778_v23 = vld [vmem:[%s12120_s1 + $0x424] ss:$8 sps:$4 sm:$0xff]   ;;  %v1421_v11 = vshll.u32 %v7745_v38, 16  ;;  %v1427_v39 = vshll.u32 %v7746_v50, 16  ;;  %v7847_v31 = vld [vmem:[%s9052_s21 + $0x90] sm:$0xf] }
 0x168   : > { %v8764_v55 = vld [vmem:[#allocation2 + $0x25c] ss:$36 sps:$4 sm:$0xff]   ;;  %v2234_v7 = vrot.slane %v2233_v37, 4  ;;  %12153 = vst [vmem:[#allocation24_spill] sm:$0xff] %v10036_v59  ;;  %5284 = vmatprep.subr.bf16.mxu0 %v8778_v23  ;;  %1950 = vst [vmem:[#allocation2 + $0x2e8] sm:$0xf] %v7847_v31  ;;  %v10048_v31 = vpop.f32.mrf.mxu0  ;;  %v10050_v59 = vpop.f32.mrf.mxu1 }
 0x169   : > { %v8766_v60 = vld [vmem:[#allocation2 + $0x258] ss:$36 sps:$4 sm:$0xff]   ;;  %v2244_v38 = vrot.slane %v2243_v43, 4  ;;  %v1420_v22 = vrot.slane %v1418_v36, 4  ;;  %v1423_v47 = vrot.slane %v1421_v11, 5  ;;  %v1429_v13 = vrot.slane %v1427_v39, 5  ;;  %5285 = vmatpush1.bf16.msra.mxu0 %v8776_v34  ;;  %5193 = vmatprep.mubr.bf16.mxu1 %v8764_v55 }
 0x16a   : > { %v7848_v12 = vld [vmem:[%s9052_s21 + $0x94] sm:$0xf]  ;;  %v2239_v53 = vsel %vm9096_vm5, %v2234_v7, %v2238_v26  ;;  %v1431_v4 = vshrl.u32 %v7746_v50, 16  ;;  %v1437_v37 = vshll.u32 %v7747_v35, 16  ;;  %v7821_v52 = vrot.slane %v7793_v54, 9  ;;  %12154 = vst [vmem:[#allocation25_spill] sm:$0xff] %v10050_v59  ;;  %5194 = vmatmul.mubr.bf16.gmra.mxu1 %v8766_v60  ;;  %v10057_v55 = vpop.f32.mrf.mxu0  ;;  %v10059_v7 = vpop.f32.mrf.mxu1 }
 0x16b   : > { %1951 = vst [vmem:[#allocation2 + $0x30c] sm:$0xf] %v7848_v12  ;;  %v7889_v23 = vld [vmem:[%s9052_s21 + $0x90] sm:$0xf]  ;;  %v2249_v43 = vsel %vm9096_vm5, %v2244_v38, %v2248_v49  ;;  %2444 = vst [vmem:[#allocation2 + $0x2a4] sm:$0xf] %v2239_v53  ;;  %v1424_v34 = vor.u32 %v1423_v47, %v1420_v22  ;;  %v4559_v22 = vadd.f32 %v9804_v17, %v9917_v62 }
 0x16c   : > { %v1793_v36 = vrot.slane %v7794_v25, 5  ;;  %v1796_v11 = vrot.slane %v10022_v56, 5  ;;  %v7890_v39 = vld [vmem:[%s9052_s21 + $0x94] sm:$0xf]  ;;  %v7891_v26 = vld [vmem:[%s9052_s21 + $0x98] sm:$0x1]  ;;  %v10066_v25 = vadd.f32 %v9806_v18, %v4557_v29  ;;  %v10072_v17 = vpop.f32.mrf.mxu0  ;;  %v10074_v18 = vpop.f32.mrf.mxu1 }
 0x16d   : > { %2445 = vst [vmem:[#allocation2 + $0x2c8] sm:$0xf] %v2249_v43  ;;  %v1433_v50 = vrot.slane %v1431_v4, 4  ;;  %v1439_v35 = vrot.slane %v1437_v37, 5  ;;  %v2251_v54 = vshrl.u32 %v7889_v23, 16  ;;  %v2254_v12 = vshll.u32 %v7889_v23, 16 }
 0x16e   : > { %12155 = vst [vmem:[#allocation26_spill] sm:$0xff] %v10057_v55  ;;  %12156 = vst [vmem:[#allocation27_spill] sm:$0xff] %v10059_v7  ;;  %v8767_v60 = vld [vmem:[#allocation2 + $0x29c] ss:$36 sps:$4 sm:$0xff]   ;;  %v1425_v49 = vrot.slane %v1424_v34, 4  ;;  %v1794_v47 = vsel %vm9082_vm4, %v7821_v52, %v1793_v36  ;;  %v1795_v38 = vrot.slane %v1793_v36, 4 }
 0x16f   : > { %v8769_v59 = vld [vmem:[#allocation2 + $0x298] ss:$36 sps:$4 sm:$0xff]   ;;  %12157 = vst [vmem:[#allocation28_spill] sm:$0xff] %v10066_v25  ;;  %v1434_v56 = vor.u32 %v1433_v50, %v1429_v13  ;;  %1885 = vst [vmem:[#allocation2 + $0x2e4] sm:$0xf] %v1794_v47  ;;  %v2253_v53 = vrot.slane %v2251_v54, 4  ;;  %5010 = vmatprep.mubr.bf16.mxu0 %v8767_v60  ;;  %v10086_v47 = vpop.f32.mrf.mxu0 }
 0x170   : > { %v2256_v4 = vrot.slane %v2254_v12, 5  ;;  %v7748_v37 = vld [vmem:[%s9052_s21 + $0x90] sm:$0xf]  ;;  %v1430_v23 = vsel %vm9096_vm5, %v1425_v49, %v1429_v13  ;;  %v2260_v43 = vshll.u32 %v7890_v39, 16  ;;  %v2264_v52 = vshrl.u32 %v7890_v39, 16  ;;  %5011 = vmatmul.mubr.bf16.gmra.mxu0 %v8769_v59 }
 0x171   : > { %v2270_v34 = vshll.u32 %v7891_v26, 16  ;;  %v7749_v7 = vld [vmem:[%s9052_s21 + $0x94] sm:$0xf]  ;;  %v1435_v29 = vrot.slane %v1434_v56, 4  ;;  %1613 = vst [vmem:[#allocation2 + $0x2e0] sm:$0xf] %v1430_v23  ;;  %v1797_v36 = vsel %vm9082_vm4, %v1795_v38, %v1796_v11  ;;  %v4561_v13 = vadd.f32 %v9813_v32, %v9909_v20  ;;  %v10088_v56 = vpop.f32.mrf.mxu1 }
 0x172   : > { %v2257_v50 = vor.u32 %v2256_v4, %v2253_v53  ;;  %v7750_v39 = vld [vmem:[%s9052_s21 + $0x98] sm:$0x1]  ;;  %v7796_v26 = vld [vmem:[%s9052_s21 + $0x90] sm:$0xe]  ;;  %1886 = vst [vmem:[#allocation2 + $0x308] sm:$0xf] %v1797_v36  ;;  %v10083_v49 = vadd.f32 %v9815_v33, %v4559_v22 }
 0x173   : > { %v2262_v54 = vrot.slane %v2260_v43, 5  ;;  %v2266_v12 = vrot.slane %v2264_v52, 4  ;;  %v2272_v60 = vrot.slane %v2270_v34, 5  ;;  %v7797_v59 = vld [vmem:[%s9052_s21 + $0x94] sm:$0xf]  ;;  %v1440_v11 = vsel %vm9096_vm5, %v1435_v29, %v1439_v35  ;;  %v10099_v34 = vpop.f32.mrf.mxu0  ;;  %v10101_v35 = vpop.f32.mrf.mxu1 }
 0x174   : > { %12158 = vst [vmem:[#allocation29_spill] sm:$0xff] %v10083_v49  ;;  %v2258_v38 = vrot.slane %v2257_v50, 4  ;;  %v10093_v32 = vadd.f32 %v9828_v51, %v4561_v13  ;;  %v7798_v53 = vld [vmem:[%s9052_s21 + $0x98] sm:$0x1]  ;;  %v7849_v4 = vld [vmem:[%s9052_s21 + $0x9c] sm:$0xf]  ;;  %v4567_v52 = vadd.f32 %v9837_v6, %v9909_v20 }
 0x175   : > { %v8770_v23 = vld [vmem:[#allocation2 + $0x2a4] ss:$36 sps:$4 sm:$0xff]   ;;  %1614 = vst [vmem:[#allocation2 + $0x304] sm:$0xf] %v1440_v11  ;;  %v2267_v33 = vor.u32 %v2266_v12, %v2262_v54  ;;  %v1442_v22 = vshrl.u32 %v7748_v37, 16  ;;  %12160 = vst [vmem:[#allocation31_spill] sm:$0xff] %v10101_v35 }
 0x176   : > { %12159 = vst [vmem:[#allocation30_spill] sm:$0xff] %v10093_v32  ;;  %v8772_v43 = vld [vmem:[#allocation2 + $0x2a0] ss:$36 sps:$4 sm:$0xff]   ;;  %1952 = vst [vmem:[#allocation2 + $0x330] sm:$0xf] %v7849_v4  ;;  %v2263_v51 = vsel %vm9096_vm5, %v2258_v38, %v2262_v54  ;;  %v1445_v29 = vshll.u32 %v7748_v37, 16  ;;  %5203 = vmatprep.mubr.bf16.mxu1 %v8770_v23  ;;  %v10108_v37 = vpop.f32.mrf.mxu0 }
 0x177   : > { %v1451_v36 = vshll.u32 %v7749_v7, 16  ;;  %v1455_v50 = vshrl.u32 %v7749_v7, 16  ;;  %v7850_v13 = vld [vmem:[%s9052_s21 + $0xa0] sm:$0xf]  ;;  %v2268_v12 = vrot.slane %v2267_v33, 4  ;;  %v1444_v11 = vrot.slane %v1442_v22, 4  ;;  %5204 = vmatmul.mubr.bf16.gmra.mxu1 %v8772_v43 }
 0x178   : > { %2446 = vst [vmem:[#allocation2 + $0x2ec] sm:$0xf] %v2263_v51  ;;  %v1461_v55 = vshll.u32 %v7750_v39, 16  ;;  %v7822_v6 = vrot.slane %v7796_v26, 9  ;;  %1953 = vst [vmem:[#allocation2 + $0x354] sm:$0xf] %v7850_v13  ;;  %v4569_v39 = vadd.f32 %v9843_v27, %v9917_v62  ;;  %v10114_v26 = vpop.f32.mrf.mxu1 }
 0x179   : > { %v7892_v4 = vld [vmem:[%s9052_s21 + $0x9c] sm:$0xf]  ;;  %v1447_v32 = vrot.slane %v1445_v29, 5  ;;  %v1453_v49 = vrot.slane %v1451_v36, 5  ;;  %v1457_v25 = vrot.slane %v1455_v50, 4  ;;  %v1800_v35 = vrot.slane %v7797_v59, 5 }
 0x17a   : > { %v7893_v54 = vld [vmem:[%s9052_s21 + $0xa0] sm:$0xf]  ;;  %12161 = vst [vmem:[#allocation32_spill] sm:$0xff] %v10108_v37  ;;  %v2273_v7 = vsel %vm9096_vm5, %v2268_v12, %v2272_v60  ;;  %v1463_v38 = vrot.slane %v1461_v55, 5  ;;  %v1803_v23 = vrot.slane %v7798_v53, 5  ;;  %12162 = vst [vmem:[#allocation33_spill] sm:$0xff] %v10114_v26 }
 0x17b   : > { %2447 = vst [vmem:[#allocation2 + $0x310] sm:$0xf] %v2273_v7  ;;  %v1448_v43 = vor.u32 %v1447_v32, %v1444_v11  ;;  %v1458_v33 = vor.u32 %v1457_v25, %v1453_v49  ;;  %v1801_v59 = vsel %vm9082_vm4, %v7822_v6, %v1800_v35  ;;  %v1802_v22 = vrot.slane %v1800_v35, 4  ;;  %v7894_v51 = vld [vmem:[%s9052_s21 + $0xa4] sm:$0x1]  ;;  %v10127_v35 = vpop.f32.mrf.mxu0 }
 0x17c   : > { %1887 = vst [vmem:[#allocation2 + $0x32c] sm:$0xf] %v1801_v59  ;;  %v2275_v29 = vshrl.u32 %v7892_v4, 16  ;;  %v2278_v36 = vshll.u32 %v7892_v4, 16  ;;  %v2284_v60 = vshll.u32 %v7893_v54, 16  ;;  %v2288_v55 = vshrl.u32 %v7893_v54, 16 }
 0x17d   : > { %v7751_v53 = vld [vmem:[%s9052_s21 + $0x9c] sm:$0xf]  ;;  %v8773_v50 = vld [vmem:[#allocation2 + $0x2e4] ss:$36 sps:$4 sm:$0xff]   ;;  %v1449_v27 = vrot.slane %v1448_v43, 4  ;;  %v1804_v12 = vsel %vm9082_vm4, %v1802_v22, %v1803_v23  ;;  %v10123_v25 = vadd.f32 %v9845_v28, %v4567_v52  ;;  %v4571_v32 = vadd.f32 %v9848_v44, %v9909_v20  ;;  %v10130_v43 = vpop.f32.mrf.mxu1 }
 0x17e   : > { %v8775_v13 = vld [vmem:[#allocation2 + $0x2e0] ss:$36 sps:$4 sm:$0xff]   ;;  %v1459_v11 = vrot.slane %v1458_v33, 4  ;;  %1888 = vst [vmem:[#allocation2 + $0x350] sm:$0xf] %v1804_v12  ;;  %v2277_v6 = vrot.slane %v2275_v29, 4  ;;  %5020 = vmatprep.mubr.bf16.mxu0 %v8773_v50  ;;  %v10135_v59 = vadd.f32 %v9850_v45, %v4569_v39  ;;  %v10139_v33 = vpop.f32.mrf.mxu0 }
 0x17f   : > { %12163 = vst [vmem:[#allocation34_spill] sm:$0xff] %v10123_v25  ;;  %v2280_v4 = vrot.slane %v2278_v36, 5  ;;  %v2286_v54 = vrot.slane %v2284_v60, 5  ;;  %v7752_v7 = vld [vmem:[%s9052_s21 + $0xa0] sm:$0xf]  ;;  %v1454_v28 = vsel %vm9096_vm5, %v1449_v27, %v1453_v49  ;;  %v2290_v52 = vrot.slane %v2288_v55, 4  ;;  %5021 = vmatmul.mubr.bf16.gmra.mxu0 %v8775_v13 }
 0x180   : > { %v2294_v23 = vshll.u32 %v7894_v51, 16  ;;  %12164 = vst [vmem:[#allocation35_spill] sm:$0xff] %v10135_v59  ;;  %v7753_v44 = vld [vmem:[%s9052_s21 + $0xa4] sm:$0x1]  ;;  %v7799_v22 = vld [vmem:[%s9052_s21 + $0x9c] sm:$0xe]  ;;  %v1464_v29 = vsel %vm9096_vm5, %v1459_v11, %v1463_v38  ;;  %v10144_v60 = vadd.f32 %v9856_v3, %v4571_v32  ;;  %v10153_v51 = vpop.f32.mrf.mxu1  ;;  %v10157_v12 = vpop.f32.mrf.mxu0 }
 0x181   : > { %1615 = vst [vmem:[#allocation2 + $0x328] sm:$0xf] %v1454_v28  ;;  %v2281_v36 = vor.u32 %v2280_v4, %v2277_v6  ;;  %v7800_v49 = vld [vmem:[%s9052_s21 + $0xa0] sm:$0xf]  ;;  %v8791_v45 = vld [vmem:[%s12120_s1 + $0x410] ss:$8 sps:$4 sm:$0xff]   ;;  %v2291_v55 = vor.u32 %v2290_v52, %v2286_v54  ;;  %v4577_v4 = vadd.f32 %v9869_v41, %v9909_v20  ;;  %v4579_v28 = vadd.f32 %v9882_v14, %v9917_v62 }
 0x182   : > { %12165 = vst [vmem:[#allocation36_spill] sm:$0xff] %v10144_v60  ;;  %v8793_v39 = vld [vmem:[%s12120_s1 + $0x414] ss:$8 sps:$4 sm:$0xff]   ;;  %1616 = vst [vmem:[#allocation2 + $0x34c] sm:$0xf] %v1464_v29  ;;  %v2296_v50 = vrot.slane %v2294_v23, 5  ;;  %v10163_v52 = vpop.f32.mrf.mxu1  ;;  %v10169_v59 = vpop.f32.mrf.mxu0  ;;  %v4631_v8 = vadd.f32 %v10157_v12, %v9909_v20 }
 0x183   : > { %v1466_v38 = vshrl.u32 %v7751_v53, 16  ;;  %v1469_v13 = vshll.u32 %v7751_v53, 16  ;;  %v7801_v27 = vld [vmem:[%s9052_s21 + $0xa4] sm:$0x1]  ;;  %v7851_v3 = vld [vmem:[%s9052_s21 + $0xa8] sm:$0xf]  ;;  %5286 = vmatprep.subr.bf16.mxu0 %v8793_v39 }
 0x184   : > { %v8779_v32 = vld [vmem:[#allocation2 + $0x2ec] ss:$36 sps:$4 sm:$0xff]   ;;  %v2282_v6 = vrot.slane %v2281_v36, 4  ;;  %1954 = vst [vmem:[#allocation2 + $0x378] sm:$0xf] %v7851_v3  ;;  %v2292_v53 = vrot.slane %v2291_v55, 4  ;;  %5287 = vmatpush1.bf16.msra.mxu0 %v8791_v45 }
 0x185   : > { %v8781_v11 = vld [vmem:[#allocation2 + $0x2e8] ss:$36 sps:$4 sm:$0xff]   ;;  %v1468_v23 = vrot.slane %v1466_v38, 4  ;;  %v1471_v29 = vrot.slane %v1469_v13, 5  ;;  %v1475_v26 = vshll.u32 %v7752_v7, 16  ;;  %5213 = vmatprep.mubr.bf16.mxu1 %v8779_v32  ;;  %v1479_v60 = vshrl.u32 %v7752_v7, 16  ;;  %v10173_v13 = vpop.f32.mrf.mxu1 }
 0x186   : > { %v7852_v37 = vld [vmem:[%s9052_s21 + $0xac] sm:$0xf]  ;;  %v2287_v36 = vsel %vm9096_vm5, %v2282_v6, %v2286_v54  ;;  %v1485_v41 = vshll.u32 %v7753_v44, 16  ;;  %v7823_v39 = vrot.slane %v7799_v22, 9  ;;  %v7895_v3 = vld [vmem:[%s9052_s21 + $0xa8] sm:$0xf]  ;;  %5214 = vmatmul.mubr.bf16.gmra.mxu1 %v8781_v11  ;;  %v2297_v14 = vsel %vm9096_vm5, %v2292_v53, %v2296_v50 }
 0x187   : > { %1955 = vst [vmem:[#allocation2 + $0x39c] sm:$0xf] %v7852_v37  ;;  %12166 = vst [vmem:[#allocation37_spill] sm:$0xff] %v10169_v59  ;;  %v1472_v55 = vor.u32 %v1471_v29, %v1468_v23  ;;  %v1477_v45 = vrot.slane %v1475_v26, 5  ;;  %v1807_v38 = vrot.slane %v7800_v49, 5  ;;  %v1481_v54 = vrot.slane %v1479_v60, 4 }
 0x188   : > { %2448 = vst [vmem:[#allocation2 + $0x334] sm:$0xf] %v2287_v36  ;;  %12167 = vst [vmem:[#allocation38_spill] sm:$0xff] %v10173_v13  ;;  %v1487_v7 = vrot.slane %v1485_v41, 5  ;;  %v1810_v44 = vrot.slane %v7801_v27, 5  ;;  %v2299_v37 = vshrl.u32 %v7895_v3, 16  ;;  %v10180_v60 = vadd.f32 %v9874_v57, %v4577_v4  ;;  %v10184_v36 = vpop.f32.mrf.mxu0 }
 0x189   : > { %2449 = vst [vmem:[#allocation2 + $0x358] sm:$0xf] %v2297_v14  ;;  %v7896_v22 = vld [vmem:[%s9052_s21 + $0xac] sm:$0xf]  ;;  %v1473_v32 = vrot.slane %v1472_v55, 4  ;;  %v1808_v11 = vsel %vm9082_vm4, %v7823_v39, %v1807_v38  ;;  %v1809_v6 = vrot.slane %v1807_v38, 4  ;;  %v1482_v49 = vor.u32 %v1481_v54, %v1477_v45  ;;  %v10192_v54 = vpop.f32.mrf.mxu1 }
 0x18a   : > { %v7897_v50 = vld [vmem:[%s9052_s21 + $0xb0] sm:$0x1]  ;;  %v2302_v53 = vshll.u32 %v7895_v3, 16  ;;  %v8784_v26 = vld [vmem:[#allocation2 + $0x328] ss:$36 sps:$4 sm:$0xff]   ;;  %v2301_v29 = vrot.slane %v2299_v37, 4  ;;  %v4581_v27 = vadd.f32 %v9888_v40, %v9909_v20  ;;  %v10195_v37 = vadd.f32 %v9885_v58, %v4579_v28 }
 0x18b   : > { %v8782_v23 = vld [vmem:[#allocation2 + $0x32c] ss:$36 sps:$4 sm:$0xff]   ;;  %1889 = vst [vmem:[#allocation2 + $0x374] sm:$0xf] %v1808_v11  ;;  %12168 = vst [vmem:[#allocation39_spill] sm:$0xff] %v10180_v60  ;;  %v1478_v41 = vsel %vm9096_vm5, %v1473_v32, %v1477_v45  ;;  %v1811_v39 = vsel %vm9082_vm4, %v1809_v6, %v1810_v44  ;;  %v2308_v14 = vshll.u32 %v7896_v22, 16  ;;  %v10199_v32 = vpop.f32.mrf.mxu0  ;;  %v10209_v58 = vpop.f32.mrf.mxu1  ;;  %v4587_v59 = vadd.f32 %v9919_v1, %v9909_v20 }
 0x18c   : > { %v2304_v3 = vrot.slane %v2302_v53, 5  ;;  %v7754_v55 = vld [vmem:[%s9052_s21 + $0xa8] sm:$0xf]  ;;  %v7755_v38 = vld [vmem:[%s9052_s21 + $0xac] sm:$0xf]  ;;  %5030 = vmatprep.mubr.bf16.mxu0 %v8782_v23  ;;  %v1483_v57 = vrot.slane %v1482_v49, 4  ;;  %v10205_v23 = vadd.f32 %v9891_v16, %v4581_v27 }
 0x18d   : > { %1617 = vst [vmem:[#allocation2 + $0x370] sm:$0xf] %v1478_v41  ;;  %1890 = vst [vmem:[#allocation2 + $0x398] sm:$0xf] %v1811_v39  ;;  %v2312_v40 = vshrl.u32 %v7896_v22, 16  ;;  %v2318_v4 = vshll.u32 %v7897_v50, 16  ;;  %5031 = vmatmul.mubr.bf16.gmra.mxu0 %v8784_v26  ;;  %v10218_v16 = vpop.f32.mrf.mxu0 }
 0x18e   : > { %12169 = vst [vmem:[#allocation40_spill] sm:$0xff] %v10195_v37  ;;  %v7756_v45 = vld [vmem:[%s9052_s21 + $0xb0] sm:$0x1]  ;;  %v7802_v44 = vld [vmem:[%s9052_s21 + $0xa8] sm:$0xe]  ;;  %v8828_v11 = vld [vmem:[%s12122_s3 + $0x78] sm:$0xff]   ;;  %v2305_v6 = vor.u32 %v2304_v3, %v2301_v29  ;;  %v1488_v49 = vsel %vm9096_vm5, %v1483_v57, %v1487_v7  ;;  %v4589_v7 = vadd.f32 %v9931_v42, %v9917_v62  ;;  %v10224_v57 = vpop.f32.mrf.mxu1 }
 0x18f   : > { %v2310_v53 = vrot.slane %v2308_v14, 5  ;;  %12170 = vst [vmem:[#allocation41_spill] sm:$0xff] %v10205_v23  ;;  %v7803_v22 = vld [vmem:[%s9052_s21 + $0xac] sm:$0xf]  ;;  %v7853_v50 = vld [vmem:[%s9052_s21 + $0xb4] sm:$0xf]  ;;  %8279 = vmatprep.subr.bf16.mxu1 %v8828_v11  ;;  %v10230_v25 = vpop.f32.mrf.mxu0 }
 0x190   : > { %12171 = vst [vmem:[#allocation42_spill] sm:$0xff] %v10209_v58  ;;  %v8829_v28 = vld [vmem:[%s12122_s3 + $0x38] sm:$0xff]   ;;  %v2314_v41 = vrot.slane %v2312_v40, 4  ;;  %v2320_v39 = vrot.slane %v2318_v4, 5  ;;  %v1490_v13 = vshrl.u32 %v7754_v55, 16  ;;  %v2306_v14 = vrot.slane %v2305_v6, 4  ;;  %v10232_v58 = vpop.f32.mrf.mxu1 }
 0x191   : > { %v7804_v26 = vld [vmem:[%s9052_s21 + $0xb0] sm:$0x1]  ;;  %v7854_v29 = vld [vmem:[%s9052_s21 + $0xb8] sm:$0xf]  ;;  %1956 = vst [vmem:[#allocation2 + $0x3c0] sm:$0xf] %v7853_v50  ;;  %8280 = vmatpush3.bf16.msra.mxu1 %v8829_v28 }
 0x192   : > { %v8785_v27 = vld [vmem:[#allocation2 + $0x334] ss:$36 sps:$4 sm:$0xff]   ;;  %1618 = vst [vmem:[#allocation2 + $0x394] sm:$0xf] %v1488_v49  ;;  %1957 = vst [vmem:[#allocation2 + $0x3e4] sm:$0xf] %v7854_v29  ;;  %v2315_v40 = vor.u32 %v2314_v41, %v2310_v53  ;;  %v2311_v6 = vsel %vm9096_vm5, %v2306_v14, %v2310_v53 }
 0x193   : > { %v8787_v3 = vld [vmem:[#allocation2 + $0x330] ss:$36 sps:$4 sm:$0xff]   ;;  %12172 = vst [vmem:[#allocation43_spill] sm:$0xff] %v10224_v57  ;;  %v1492_v4 = vrot.slane %v1490_v13, 4  ;;  %v1493_v50 = vshll.u32 %v7754_v55, 16  ;;  %v1499_v23 = vshll.u32 %v7755_v38, 16  ;;  %5223 = vmatprep.mubr.bf16.mxu1 %v8785_v27 }
 0x194   : > { %v7898_v11 = vld [vmem:[%s9052_s21 + $0xb4] sm:$0xf]  ;;  %v1503_v49 = vshrl.u32 %v7755_v38, 16  ;;  %v1509_v37 = vshll.u32 %v7756_v45, 16  ;;  %v7824_v1 = vrot.slane %v7802_v44, 9  ;;  %5224 = vmatmul.mubr.bf16.gmra.mxu1 %v8787_v3  ;;  %v2316_v29 = vrot.slane %v2315_v40, 4 }
 0x195   : > { %2450 = vst [vmem:[#allocation2 + $0x37c] sm:$0xf] %v2311_v6  ;;  %v1495_v42 = vrot.slane %v1493_v50, 5  ;;  %v1501_v60 = vrot.slane %v1499_v23, 5  ;;  %v1814_v28 = vrot.slane %v7803_v22, 5  ;;  %12173 = vst [vmem:[#allocation44_spill] sm:$0xff] %v10230_v25 }
 0x196   : > { %v7899_v41 = vld [vmem:[%s9052_s21 + $0xb8] sm:$0xf]  ;;  %v1505_v13 = vrot.slane %v1503_v49, 4  ;;  %v1511_v55 = vrot.slane %v1509_v37, 5  ;;  %v1817_v27 = vrot.slane %v7804_v26, 5  ;;  %v2323_v57 = vshrl.u32 %v7898_v11, 16 }
 0x197   : > { %12174 = vst [vmem:[#allocation45_spill] sm:$0xff] %v10232_v58  ;;  %v2321_v38 = vsel %vm9096_vm5, %v2316_v29, %v2320_v39  ;;  %v1496_v45 = vor.u32 %v1495_v42, %v1492_v4  ;;  %v1815_v44 = vsel %vm9082_vm4, %v7824_v1, %v1814_v28  ;;  %v1816_v53 = vrot.slane %v1814_v28, 4  ;;  %v7900_v23 = vld [vmem:[%s9052_s21 + $0xbc] sm:$0x1]  ;;  %v7757_v26 = vld [vmem:[%s9052_s21 + $0xb4] sm:$0xf]  ;;  %v10247_v1 = vpop.f32.mrf.mxu0 }
 0x198   : > { %2451 = vst [vmem:[#allocation2 + $0x3a0] sm:$0xf] %v2321_v38  ;;  %v1506_v22 = vor.u32 %v1505_v13, %v1501_v60  ;;  %1891 = vst [vmem:[#allocation2 + $0x3bc] sm:$0xf] %v1815_v44  ;;  %v2325_v3 = vrot.slane %v2323_v57, 4  ;;  %v2326_v14 = vshll.u32 %v7898_v11, 16  ;;  %v10243_v4 = vadd.f32 %v9921_v24, %v4587_v59  ;;  %v10250_v13 = vpop.f32.mrf.mxu1 }
 0x199   : > { %v2332_v37 = vshll.u32 %v7899_v41, 16  ;;  %v8788_v40 = vld [vmem:[#allocation2 + $0x370] ss:$36 sps:$4 sm:$0xff]   ;;  %v1497_v6 = vrot.slane %v1496_v45, 4  ;;  %v1818_v39 = vsel %vm9082_vm4, %v1816_v53, %v1817_v27  ;;  %v4591_v49 = vadd.f32 %v9946_v30, %v9909_v20  ;;  %v7758_v28 = vld [vmem:[%s9052_s21 + $0xb8] sm:$0xf]  ;;  %v10258_v38 = vpop.f32.mrf.mxu0 }
 0x19a   : > { %v8790_v50 = vld [vmem:[#allocation2 + $0x374] ss:$36 sps:$4 sm:$0xff]   ;;  %v1507_v57 = vrot.slane %v1506_v22, 4  ;;  %1892 = vst [vmem:[#allocation2 + $0x3e0] sm:$0xf] %v1818_v39  ;;  %v2328_v11 = vrot.slane %v2326_v14, 5  ;;  %v10255_v27 = vadd.f32 %v9933_v15, %v4589_v7  ;;  %v10273_v22 = vpop.f32.mrf.mxu1  ;;  %v4597_v58 = vadd.f32 %v9973_v61, %v9909_v20 }
 0x19b   : > { %v2334_v29 = vrot.slane %v2332_v37, 5  ;;  %v2336_v42 = vshrl.u32 %v7899_v41, 16  ;;  %5040 = vmatprep.mubr.bf16.mxu0 %v8790_v50  ;;  %v1502_v24 = vsel %vm9096_vm5, %v1497_v6, %v1501_v60  ;;  %v2342_v59 = vshll.u32 %v7900_v23, 16  ;;  %v7759_v30 = vld [vmem:[%s9052_s21 + $0xbc] sm:$0x1]  ;;  %v10277_v50 = vpop.f32.mrf.mxu0  ;;  %v8833_v61 = vld [vmem:[%s12122_s3 + $0x30] sm:$0xff]  }
 0x19c   : > { %5041 = vmatmul.mubr.bf16.gmra.mxu0 %v8788_v40  ;;  %v1512_v41 = vsel %vm9096_vm5, %v1507_v57, %v1511_v55  ;;  %1619 = vst [vmem:[#allocation2 + $0x3b8] sm:$0xf] %v1502_v24  ;;  %v2329_v45 = vor.u32 %v2328_v11, %v2325_v3  ;;  %v10263_v53 = vadd.f32 %v9948_v10, %v4591_v49  ;;  %v7805_v60 = vld [vmem:[%s9052_s21 + $0xb4] sm:$0xe]  ;;  %v7806_v23 = vld [vmem:[%s9052_s21 + $0xb8] sm:$0xf] }
 0x19d   : > { %v2338_v44 = vrot.slane %v2336_v42, 4  ;;  %v8806_v15 = vld [vmem:[%s12120_s1 + $0x400] ss:$8 sps:$4 sm:$0xff]   ;;  %v8808_v7 = vld [vmem:[%s12120_s1 + $0x404] ss:$8 sps:$4 sm:$0xff]   ;;  %v2344_v55 = vrot.slane %v2342_v59, 5  ;;  %v10280_v42 = vpop.f32.mrf.mxu1  ;;  %v10292_v25 = vpop.f32.mrf.mxu0 }
 0x19e   : > { %12175 = vst [vmem:[#allocation46_spill] sm:$0xff] %v10263_v53  ;;  %1620 = vst [vmem:[#allocation2 + $0x3dc] sm:$0xf] %v1512_v41  ;;  %v1514_v3 = vshrl.u32 %v7757_v26, 16  ;;  %v1517_v14 = vshll.u32 %v7757_v26, 16  ;;  %v1523_v37 = vshll.u32 %v7758_v28, 16  ;;  %5288 = vmatprep.subr.bf16.mxu0 %v8808_v7 }
 0x19f   : > { %v7807_v10 = vld [vmem:[%s9052_s21 + $0xbc] sm:$0x1]  ;;  %v7855_v40 = vld [vmem:[%s9052_s21 + $0xc0] sm:$0xf]  ;;  %v2330_v6 = vrot.slane %v2329_v45, 4  ;;  %v2339_v39 = vor.u32 %v2338_v44, %v2334_v29  ;;  %v1527_v49 = vshrl.u32 %v7758_v28, 16  ;;  %5289 = vmatpush1.bf16.msra.mxu0 %v8806_v15  ;;  %v4599_v28 = vadd.f32 %v9981_v46, %v9917_v62 }
 0x1a0   : > { %v1533_v57 = vshll.u32 %v7759_v30, 16  ;;  %v7856_v11 = vld [vmem:[%s9052_s21 + $0xc4] sm:$0xf]  ;;  %1958 = vst [vmem:[#allocation2 + $0x408] sm:$0xf] %v7855_v40  ;;  %v8832_v24 = vld [vmem:[%s12122_s3 + $0x70] sm:$0xff]  }
 0x1a1   : > { %v8794_v26 = vld [vmem:[#allocation2 + $0x378] ss:$36 sps:$4 sm:$0xff]   ;;  %v1516_v41 = vrot.slane %v1514_v3, 4  ;;  %1959 = vst [vmem:[#allocation2 + $0x42c] sm:$0xf] %v7856_v11  ;;  %v2335_v30 = vsel %vm9096_vm5, %v2330_v6, %v2334_v29  ;;  %v2340_v45 = vrot.slane %v2339_v39, 4  ;;  %8281 = vmatprep.subr.bf16.mxu1 %v8832_v24  ;;  %v10297_v29 = vpop.f32.mrf.mxu1 }
 0x1a2   : > { %v8796_v59 = vld [vmem:[#allocation2 + $0x37c] ss:$36 sps:$4 sm:$0xff]   ;;  %v1519_v44 = vrot.slane %v1517_v14, 5  ;;  %v1525_v7 = vrot.slane %v1523_v37, 5  ;;  %12176 = vst [vmem:[#allocation47_spill] sm:$0xff] %v10292_v25  ;;  %v1529_v15 = vrot.slane %v1527_v49, 4  ;;  %8282 = vmatpush3.bf16.msra.mxu1 %v8833_v61 }
 0x1a3   : > { %v7901_v40 = vld [vmem:[%s9052_s21 + $0xc0] sm:$0xf]  ;;  %5233 = vmatprep.mubr.bf16.mxu1 %v8796_v59  ;;  %2452 = vst [vmem:[#allocation2 + $0x3c4] sm:$0xf] %v2335_v30  ;;  %v1535_v46 = vrot.slane %v1533_v57, 5  ;;  %v7825_v3 = vrot.slane %v7805_v60, 9  ;;  %v2345_v14 = vsel %vm9096_vm5, %v2340_v45, %v2344_v55  ;;  %v10306_v55 = vadd.f32 %v9976_v0, %v4597_v58  ;;  %v10313_v45 = vpop.f32.mrf.mxu0  ;;  %v10318_v0 = vpop.f32.mrf.mxu1 }
 0x1a4   : > { %v1821_v11 = vrot.slane %v7806_v23, 5  ;;  %12177 = vst [vmem:[#allocation48_spill] sm:$0xff] %v10297_v29  ;;  %5234 = vmatmul.mubr.bf16.gmra.mxu1 %v8794_v26  ;;  %v1520_v37 = vor.u32 %v1519_v44, %v1516_v41  ;;  %v1824_v6 = vrot.slane %v7807_v10, 5  ;;  %v7902_v39 = vld [vmem:[%s9052_s21 + $0xc4] sm:$0xf]  ;;  %v2347_v24 = vshrl.u32 %v7901_v40, 16 }
 0x1a5   : > { %2453 = vst [vmem:[#allocation2 + $0x3e8] sm:$0xf] %v2345_v14  ;;  %v1530_v25 = vor.u32 %v1529_v15, %v1525_v7  ;;  %v7903_v49 = vld [vmem:[%s9052_s21 + $0xc8] sm:$0x1]  ;;  %v2350_v60 = vshll.u32 %v7901_v40, 16  ;;  %12178 = vst [vmem:[#allocation49_spill] sm:$0xff] %v10306_v55  ;;  %v4601_v10 = vadd.f32 %v9993_v63, %v9909_v20  ;;  %v10311_v41 = vadd.f32 %v9987_v5, %v4599_v28 }
 0x1a6   : > { %v1822_v59 = vsel %vm9082_vm4, %v7825_v3, %v1821_v11  ;;  %v1823_v30 = vrot.slane %v1821_v11, 4  ;;  %v8797_v23 = vld [vmem:[#allocation2 + $0x3b8] ss:$36 sps:$4 sm:$0xff]   ;;  %v1521_v26 = vrot.slane %v1520_v37, 4  ;;  %v2349_v61 = vrot.slane %v2347_v24, 4  ;;  %v10323_v11 = vpop.f32.mrf.mxu0 }
 0x1a7   : > { %v8799_v57 = vld [vmem:[#allocation2 + $0x3bc] ss:$36 sps:$4 sm:$0xff]   ;;  %1893 = vst [vmem:[#allocation2 + $0x404] sm:$0xf] %v1822_v59  ;;  %12179 = vst [vmem:[#allocation50_spill] sm:$0xff] %v10311_v41  ;;  %v1531_v44 = vrot.slane %v1530_v25, 4 }
 0x1a8   : > { %v1825_v40 = vsel %vm9082_vm4, %v1823_v30, %v1824_v6  ;;  %v2352_v15 = vrot.slane %v2350_v60, 5  ;;  %v7760_v3 = vld [vmem:[%s9052_s21 + $0xc0] sm:$0xf]  ;;  %5050 = vmatprep.mubr.bf16.mxu0 %v8799_v57  ;;  %v1526_v63 = vsel %vm9096_vm5, %v1521_v26, %v1525_v7  ;;  %v2356_v5 = vshll.u32 %v7902_v39, 16  ;;  %v7761_v28 = vld [vmem:[%s9052_s21 + $0xc4] sm:$0xf] }
 0x1a9   : > { %1894 = vst [vmem:[#allocation2 + $0x428] sm:$0xf] %v1825_v40  ;;  %v2360_v58 = vshrl.u32 %v7902_v39, 16  ;;  %v2366_v25 = vshll.u32 %v7903_v49, 16  ;;  %5051 = vmatmul.mubr.bf16.gmra.mxu0 %v8797_v23  ;;  %v1536_v14 = vsel %vm9096_vm5, %v1531_v44, %v1535_v46  ;;  %1621 = vst [vmem:[#allocation2 + $0x400] sm:$0xf] %v1526_v63  ;;  %v10328_v6 = vadd.f32 %v9995_v19, %v4601_v10  ;;  %v10334_v39 = vpop.f32.mrf.mxu1  ;;  %v10337_v46 = vpop.f32.mrf.mxu0 }
 0x1aa   : > { %v2353_v37 = vor.u32 %v2352_v15, %v2349_v61  ;;  %v7762_v24 = vld [vmem:[%s9052_s21 + $0xc8] sm:$0x1]  ;;  %v7808_v59 = vld [vmem:[%s9052_s21 + $0xc0] sm:$0xe]  ;;  %v7809_v7 = vld [vmem:[%s9052_s21 + $0xc4] sm:$0xf] }
 0x1ab   : > { %12180 = vst [vmem:[#allocation51_spill] sm:$0xff] %v10328_v6  ;;  %v7857_v30 = vld [vmem:[%s9052_s21 + $0xcc] sm:$0xf]  ;;  %1622 = vst [vmem:[#allocation2 + $0x424] sm:$0xf] %v1536_v14  ;;  %v2358_v49 = vrot.slane %v2356_v5, 5  ;;  %v10340_v15 = vpop.f32.mrf.mxu1  ;;  %v4607_v5 = vadd.f32 %v10030_v48, %v9909_v20 }
 0x1ac   : > { %v2362_v60 = vrot.slane %v2360_v58, 4  ;;  %v2368_v57 = vrot.slane %v2366_v25, 5  ;;  %v1538_v23 = vshrl.u32 %v7760_v3, 16  ;;  %v7810_v26 = vld [vmem:[%s9052_s21 + $0xc8] sm:$0x1]  ;;  %v2354_v44 = vrot.slane %v2353_v37, 4 }
 0x1ad   : > { %1960 = vst [vmem:[#allocation2 + $0x450] sm:$0xf] %v7857_v30  ;;  %v1541_v19 = vshll.u32 %v7760_v3, 16  ;;  %v1547_v10 = vshll.u32 %v7761_v28, 16  ;;  %v1551_v40 = vshrl.u32 %v7761_v28, 16  ;;  %v10347_v28 = vpop.f32.mrf.mxu0  ;;  %v1828_v55 = vrot.slane %v7809_v7, 5  ;;  %v10349_v53 = vpop.f32.mrf.mxu1 }
 0x1ae   : > { %v7858_v61 = vld [vmem:[%s9052_s21 + $0xd0] sm:$0xf]  ;;  %v8800_v63 = vld [vmem:[#allocation2 + $0x3c0] ss:$36 sps:$4 sm:$0xff]   ;;  %v2363_v6 = vor.u32 %v2362_v60, %v2358_v49  ;;  %v1540_v14 = vrot.slane %v1538_v23, 4  ;;  %v2359_v58 = vsel %vm9096_vm5, %v2354_v44, %v2358_v49  ;;  %12181 = vst [vmem:[#allocation52_spill] sm:$0xff] %v10347_v28 }
 0x1af   : > { %v8802_v29 = vld [vmem:[#allocation2 + $0x3c4] ss:$36 sps:$4 sm:$0xff]   ;;  %1961 = vst [vmem:[#allocation2 + $0x474] sm:$0xf] %v7858_v61  ;;  %v1543_v25 = vrot.slane %v1541_v19, 5  ;;  %v1549_v37 = vrot.slane %v1547_v10, 5 }
 0x1b0   : > { %v1553_v3 = vrot.slane %v1551_v40, 4  ;;  %v7904_v30 = vld [vmem:[%s9052_s21 + $0xcc] sm:$0xf]  ;;  %5243 = vmatprep.mubr.bf16.mxu1 %v8802_v29  ;;  %v2364_v41 = vrot.slane %v2363_v6, 4  ;;  %2454 = vst [vmem:[#allocation2 + $0x40c] sm:$0xf] %v2359_v58 }
 0x1b1   : > { %v1557_v60 = vshll.u32 %v7762_v24, 16  ;;  %v7826_v23 = vrot.slane %v7808_v59, 9  ;;  %12182 = vst [vmem:[#allocation53_spill] sm:$0xff] %v10349_v53  ;;  %5244 = vmatmul.mubr.bf16.gmra.mxu1 %v8800_v63  ;;  %v1544_v48 = vor.u32 %v1543_v25, %v1540_v14  ;;  %v1831_v49 = vrot.slane %v7810_v26, 5  ;;  %v7905_v44 = vld [vmem:[%s9052_s21 + $0xd0] sm:$0xf] }
 0x1b2   : > { %v1554_v61 = vor.u32 %v1553_v3, %v1549_v37  ;;  %v2371_v19 = vshrl.u32 %v7904_v30, 16  ;;  %v2369_v10 = vsel %vm9096_vm5, %v2364_v41, %v2368_v57  ;;  %v1830_v6 = vrot.slane %v1828_v55, 4  ;;  %v7906_v58 = vld [vmem:[%s9052_s21 + $0xd4] sm:$0x1]  ;;  %v8836_v24 = vld [vmem:[%s12122_s3 + $0x68] sm:$0xff]   ;;  %v10367_v57 = vpop.f32.mrf.mxu0  ;;  %v12216_v53 = vld [vmem:[#allocation46_spill] sm:$0xff] }
 0x1b3   : > { %v1559_v40 = vrot.slane %v1557_v60, 5  ;;  %v1829_v29 = vsel %vm9082_vm4, %v7826_v23, %v1828_v55  ;;  %v8803_v59 = vld [vmem:[#allocation2 + $0x400] ss:$36 sps:$4 sm:$0xff]   ;;  %2455 = vst [vmem:[#allocation2 + $0x430] sm:$0xf] %v2369_v10  ;;  %v1545_v63 = vrot.slane %v1544_v48, 4  ;;  %v4609_v26 = vadd.f32 %v10040_v9, %v9917_v62  ;;  %v10371_v48 = vpop.f32.mrf.mxu1  ;;  %8283 = vmatprep.subr.bf16.mxu1 %v8836_v24 }
 0x1b4   : > { %v8805_v7 = vld [vmem:[#allocation2 + $0x404] ss:$36 sps:$4 sm:$0xff]   ;;  %1895 = vst [vmem:[#allocation2 + $0x44c] sm:$0xf] %v1829_v29  ;;  %v4611_v55 = vadd.f32 %v10048_v31, %v9909_v20  ;;  %v1555_v25 = vrot.slane %v1554_v61, 4  ;;  %v1832_v3 = vsel %vm9082_vm4, %v1830_v6, %v1831_v49  ;;  %v2373_v60 = vrot.slane %v2371_v19, 4  ;;  %v10379_v19 = vpop.f32.mrf.mxu0 }
 0x1b5   : > { %v12183_v14 = vld [vmem:[#allocation23_spill] sm:$0xff]  ;;  %v2374_v23 = vshll.u32 %v7904_v30, 16  ;;  %5060 = vmatprep.mubr.bf16.mxu0 %v8805_v7  ;;  %v1550_v31 = vsel %vm9096_vm5, %v1545_v63, %v1549_v37  ;;  %1896 = vst [vmem:[#allocation2 + $0x470] sm:$0xf] %v1832_v3  ;;  %v2384_v61 = vshrl.u32 %v7905_v44, 16  ;;  %v2390_v10 = vshll.u32 %v7906_v58, 16 }
 0x1b6   : > { %v10363_v41 = vadd.f32 %v12183_v14, %v4607_v5  ;;  %v8837_v9 = vld [vmem:[%s12122_s3 + $0x28] sm:$0xff]   ;;  %v2380_v5 = vshll.u32 %v7905_v44, 16  ;;  %v7907_v49 = vld [vmem:[%s9052_s21 + $0x18] sm:$0xe]  ;;  %5061 = vmatmul.mubr.bf16.gmra.mxu0 %v8803_v59  ;;  %v1560_v30 = vsel %vm9096_vm5, %v1555_v25, %v1559_v40  ;;  %1623 = vst [vmem:[#allocation2 + $0x448] sm:$0xf] %v1550_v31  ;;  %v10384_v6 = vadd.f32 %v10042_v21, %v4609_v26  ;;  %v10388_v14 = vpop.f32.mrf.mxu1  ;;  %v10393_v63 = vpop.f32.mrf.mxu0 }
 0x1b7   : > { %v2376_v29 = vrot.slane %v2374_v23, 5  ;;  %v7908_v24 = vld [vmem:[%s9052_s21 + $0x1c] sm:$0xf]  ;;  %v7909_v7 = vld [vmem:[%s9052_s21 + $0x20] sm:$0x1]  ;;  %8284 = vmatpush3.bf16.msra.mxu1 %v8837_v9  ;;  %v2386_v44 = vrot.slane %v2384_v61, 4  ;;  %v4617_v21 = vadd.f32 %v10072_v17, %v9909_v20  ;;  %v4621_v17 = vadd.f32 %v10099_v34, %v9909_v20 }
 0x1b8   : > { %1624 = vst [vmem:[#allocation2 + $0x46c] sm:$0xf] %v1560_v30  ;;  %v2382_v37 = vrot.slane %v2380_v5, 5  ;;  %v12184_v58 = vld [vmem:[#allocation25_spill] sm:$0xff]  ;;  %v2392_v25 = vrot.slane %v2390_v10, 5  ;;  %v7955_v26 = vrot.slane %v7907_v49, 9  ;;  %v10397_v3 = vpop.f32.mrf.mxu1  ;;  %v4619_v5 = vadd.f32 %v10086_v47, %v9917_v62 }
 0x1b9   : > { %v10391_v59 = vadd.f32 %v12184_v58, %v4611_v55  ;;  %v2377_v40 = vor.u32 %v2376_v29, %v2373_v60  ;;  %v2556_v9 = vrot.slane %v7908_v24, 5  ;;  %v2559_v31 = vrot.slane %v7909_v7, 5  ;;  %v7910_v61 = vld [vmem:[%s9052_s21 + $0x24] sm:$0xe]  ;;  %v7911_v55 = vld [vmem:[%s9052_s21 + $0x28] sm:$0xf] }
 0x1ba   : > { %v2387_v23 = vor.u32 %v2386_v44, %v2382_v37  ;;  %v8809_v30 = vld [vmem:[#allocation2 + $0x408] ss:$36 sps:$4 sm:$0xff]   ;;  %v10404_v10 = vadd.f32 %v10074_v18, %v4617_v21  ;;  %v10411_v47 = vadd.f32 %v10088_v56, %v4619_v5  ;;  %v10414_v44 = vpop.f32.mrf.mxu0  ;;  %v4627_v34 = vadd.f32 %v10127_v35, %v9909_v20 }
 0x1bb   : > { %v8811_v58 = vld [vmem:[#allocation2 + $0x40c] ss:$36 sps:$4 sm:$0xff]   ;;  %v2378_v60 = vrot.slane %v2377_v40, 4  ;;  %v2557_v29 = vsel %vm9082_vm4, %v7955_v26, %v2556_v9  ;;  %v2558_v24 = vrot.slane %v2556_v9, 4  ;;  %12185 = vst [vmem:[#allocation23_spill] sm:$0xff] %v10414_v44  ;;  %v10425_v9 = vpop.f32.mrf.mxu1 }
 0x1bc   : > { %v2388_v49 = vrot.slane %v2387_v23, 4  ;;  %v7912_v7 = vld [vmem:[%s9052_s21 + $0x2c] sm:$0x1]  ;;  %5253 = vmatprep.mubr.bf16.mxu1 %v8811_v58  ;;  %2698 = vst [vmem:[#allocation2 + $0x20] sm:$0xf] %v2557_v29  ;;  %12187 = vst [vmem:[#allocation25_spill] sm:$0xff] %v10425_v9 }
 0x1bd   : > { %v2383_v18 = vsel %vm9096_vm5, %v2378_v60, %v2382_v37  ;;  %v12186_v40 = vld [vmem:[#allocation31_spill] sm:$0xff]  ;;  %v7913_v26 = vld [vmem:[%s9052_s21 + $0x30] sm:$0xe]  ;;  %v7914_v23 = vld [vmem:[%s9052_s21 + $0x34] sm:$0xf]  ;;  %5254 = vmatmul.mubr.bf16.gmra.mxu1 %v8809_v30  ;;  %v2560_v5 = vsel %vm9082_vm4, %v2558_v24, %v2559_v31  ;;  %v7956_v37 = vrot.slane %v7910_v61, 9  ;;  %v10435_v30 = vadd.f32 %v10130_v43, %v4627_v34 }
 0x1be   : > { %v10419_v21 = vadd.f32 %v12186_v40, %v4621_v17  ;;  %v2393_v56 = vsel %vm9096_vm5, %v2388_v49, %v2392_v25  ;;  %2456 = vst [vmem:[#allocation2 + $0x454] sm:$0xf] %v2383_v18  ;;  %v2563_v58 = vrot.slane %v7911_v55, 5  ;;  %v7915_v60 = vld [vmem:[%s9052_s21 + $0x38] sm:$0x1]  ;;  %v2566_v35 = vrot.slane %v7912_v7, 5  ;;  %v10443_v55 = vpop.f32.mrf.mxu0  ;;  %v10452_v7 = vpop.f32.mrf.mxu1 }
 0x1bf   : > { %v8812_v17 = vld [vmem:[#allocation2 + $0x448] ss:$36 sps:$4 sm:$0xff]   ;;  %2457 = vst [vmem:[#allocation2 + $0x478] sm:$0xf] %v2393_v56  ;;  %2699 = vst [vmem:[#allocation2 + $0x44] sm:$0xf] %v2560_v5  ;;  %v4629_v40 = vadd.f32 %v10139_v33, %v9917_v62  ;;  %v4637_v61 = vadd.f32 %v10184_v36, %v9909_v20  ;;  %v10449_v43 = vadd.f32 %v10163_v52, %v4631_v8 }
 0x1c0   : > { %v8814_v29 = vld [vmem:[#allocation2 + $0x44c] ss:$36 sps:$4 sm:$0xff]   ;;  %v2564_v25 = vsel %vm9082_vm4, %v7956_v37, %v2563_v58  ;;  %v2565_v31 = vrot.slane %v2563_v58, 4  ;;  %v7957_v12 = vrot.slane %v7913_v26, 9  ;;  %v2570_v49 = vrot.slane %v7914_v23, 5  ;;  %v10460_v5 = vpop.f32.mrf.mxu0  ;;  %v8840_v52 = vld [vmem:[%s12122_s3 + $0x60] sm:$0xff]  }
 0x1c1   : > { %5070 = vmatprep.mubr.bf16.mxu0 %v8814_v29  ;;  %2700 = vst [vmem:[#allocation2 + $0x68] sm:$0xf] %v2564_v25  ;;  %v10446_v33 = vadd.f32 %v10153_v51, %v4629_v40  ;;  %v7916_v24 = vld [vmem:[%s9052_s21 + $0x3c] sm:$0xe]  ;;  %v2573_v18 = vrot.slane %v7915_v60, 5  ;;  %v4639_v34 = vadd.f32 %v10199_v32, %v9917_v62  ;;  %v12125_v26 = vmov 0   ;;  %8285 = vmatprep.subr.bf16.mxu1 %v8840_v52 }
 0x1c2   : > { %5071 = vmatmul.mubr.bf16.gmra.mxu0 %v8812_v17  ;;  %v2567_v36 = vsel %vm9082_vm4, %v2565_v31, %v2566_v35  ;;  %v7917_v56 = vld [vmem:[%s9052_s21 + $0x40] sm:$0xf]  ;;  %v7918_v51 = vld [vmem:[%s9052_s21 + $0x44] sm:$0x1]  ;;  %v2571_v23 = vsel %vm9082_vm4, %v7957_v12, %v2570_v49  ;;  %v2572_v37 = vrot.slane %v2570_v49, 4  ;;  %v10469_v58 = vadd.f32 %v10192_v54, %v4637_v61  ;;  %v10474_v17 = vpop.f32.mrf.mxu1  ;;  %v10485_v31 = vpop.f32.mrf.mxu0  ;;  %v12189_v61 = vld [vmem:[#allocation43_spill] sm:$0xff] }
 0x1c3   : > { %5306 = vmatprep.mubr.bf16.mxu0 %v12125_v26  ;;  %2701 = vst [vmem:[#allocation2 + $0x8c] sm:$0xf] %v2567_v36  ;;  %v4641_v32 = vadd.f32 %v10218_v16, %v9909_v20  ;;  %v7919_v60 = vld [vmem:[%s9052_s21 + $0x48] sm:$0xe]  ;;  %v8841_v29 = vld [vmem:[%s12122_s3 + $0x20] sm:$0xff]   ;;  %v4647_v8 = vadd.f32 %v10247_v1, %v9909_v20  ;;  %v7958_v54 = vrot.slane %v7916_v24, 9  ;;  %v4649_v1 = vadd.f32 %v10258_v38, %v9917_v62 }
 0x1c4   : > { %2702 = vst [vmem:[#allocation2 + $0xb0] sm:$0xf] %v2571_v23  ;;  %v12188_v35 = vld [vmem:[#allocation42_spill] sm:$0xff]  ;;  %v7920_v25 = vld [vmem:[%s9052_s21 + $0x4c] sm:$0xf]  ;;  %v2574_v16 = vsel %vm9082_vm4, %v2572_v37, %v2573_v18  ;;  %v2577_v49 = vrot.slane %v7917_v56, 5  ;;  %v10493_v26 = vpop.f32.mrf.mxu1  ;;  %8286 = vmatpush3.bf16.msra.mxu1 %v8841_v29  ;;  %v4651_v18 = vadd.f32 %v10277_v50, %v9909_v20  ;;  %v4657_v37 = vadd.f32 %v10313_v45, %v9909_v20 }
 0x1c5   : > { %v10480_v40 = vadd.f32 %v12188_v35, %v4639_v34  ;;  %v10490_v12 = vadd.f32 %v12189_v61, %v4641_v32  ;;  %v2580_v36 = vrot.slane %v7918_v51, 5  ;;  %v7921_v23 = vld [vmem:[%s9052_s21 + $0x50] sm:$0x1]  ;;  %2703 = vst [vmem:[#allocation2 + $0xd4] sm:$0xf] %v2574_v16  ;;  %v10498_v24 = vadd.f32 %v10250_v13, %v4647_v8  ;;  %v10506_v32 = vpop.f32.mrf.mxu0 }
 0x1c6   : > { %v8815_v34 = vld [vmem:[#allocation2 + $0x450] ss:$36 sps:$4 sm:$0xff]   ;;  %v8818_v52 = vld [vmem:[#allocation2 + $0x20] ss:$36 sps:$4 sm:$0xff]   ;;  %v2578_v56 = vsel %vm9082_vm4, %v7958_v54, %v2577_v49  ;;  %v2579_v51 = vrot.slane %v2577_v49, 4  ;;  %12190 = vst [vmem:[#allocation31_spill] sm:$0xff] %v10506_v32  ;;  %v10509_v13 = vadd.f32 %v10273_v22, %v4649_v1  ;;  %v10512_v38 = vadd.f32 %v10280_v42, %v4651_v18  ;;  %v10515_v54 = vpop.f32.mrf.mxu1 }
 0x1c7   : > { %v8817_v35 = vld [vmem:[#allocation2 + $0x454] ss:$36 sps:$4 sm:$0xff]   ;;  %2704 = vst [vmem:[#allocation2 + $0xf8] sm:$0xf] %v2578_v56  ;;  %v7959_v50 = vrot.slane %v7919_v60, 9  ;;  %v2584_v29 = vrot.slane %v7920_v25, 5  ;;  %v4659_v61 = vadd.f32 %v10323_v11, %v9917_v62  ;;  %v4686_v56 = vpop.f32.mrf.mxu0 }
 0x1c8   : > { %5263 = vmatprep.mubr.bf16.mxu1 %v8817_v35  ;;  %v7922_v8 = vld [vmem:[%s9052_s21 + $0x54] sm:$0xe]  ;;  %12191 = vst [vmem:[#allocation42_spill] sm:$0xff] %v10515_v54  ;;  %v2581_v45 = vsel %vm9082_vm4, %v2579_v51, %v2580_v36  ;;  %v2587_v16 = vrot.slane %v7921_v23, 5  ;;  %v7923_v22 = vld [vmem:[%s9052_s21 + $0x58] sm:$0xf]  ;;  %v4661_v36 = vadd.f32 %v10337_v46, %v9909_v20 }
 0x1c9   : > { %5264 = vmatmul.mubr.bf16.gmra.mxu1 %v8815_v34  ;;  %v7924_v49 = vld [vmem:[%s9052_s21 + $0x5c] sm:$0x1]  ;;  %2705 = vst [vmem:[#allocation2 + $0x11c] sm:$0xf] %v2581_v45  ;;  %v2585_v60 = vsel %vm9082_vm4, %v7959_v50, %v2584_v29  ;;  %v2586_v25 = vrot.slane %v2584_v29, 4  ;;  %v10529_v34 = vadd.f32 %v10318_v0, %v4657_v37  ;;  %v12192_v1 = vmov 0   ;;  %v4879_v29 = vpop.f32.mrf.mxu1 }
 0x1ca   : > { %v8842_v42 = vld [vmem:[%s12122_s3 + $0x58] sm:$0xff]   ;;  %5307 = vmatmul.mubr.bf16.vlgmr.msra.gmra.mxu0 %v8818_v52  ;;  %v7925_v23 = vld [vmem:[%s9052_s21 + $0x60] sm:$0xe]  ;;  %v7926_v11 = vld [vmem:[%s9052_s21 + $0x64] sm:$0xf]  ;;  %v10540_v18 = vadd.f32 %v10334_v39, %v4659_v61  ;;  %v4667_v0 = vadd.f32 %v10367_v57, %v9909_v20  ;;  %v7960_v52 = vrot.slane %v7922_v8, 9  ;;  %v10547_v51 = vadd.f32 %v10340_v15, %v4661_v36 }
 0x1cb   : > { %v8843_v35 = vld [vmem:[%s12122_s3 + $0x18] sm:$0xff]   ;;  %5316 = vmatprep.mubr.bf16.mxu0 %v12192_v1  ;;  %2706 = vst [vmem:[#allocation2 + $0x140] sm:$0xf] %v2585_v60  ;;  %8287 = vmatprep.subr.bf16.mxu1 %v8842_v42  ;;  %v2588_v46 = vsel %vm9082_vm4, %v2586_v25, %v2587_v16  ;;  %v2591_v37 = vrot.slane %v7923_v22, 5  ;;  %v2594_v50 = vrot.slane %v7924_v49, 5  ;;  %v4669_v39 = vadd.f32 %v10379_v19, %v9917_v62  ;;  %v4688_v16 = vpop.f32.mrf.mxu0 }
 0x1cc   : > { %8288 = vmatpush3.bf16.msra.mxu1 %v8843_v35  ;;  %2707 = vst [vmem:[#allocation2 + $0x164] sm:$0xf] %v2588_v46  ;;  %v10552_v57 = vadd.f32 %v10371_v48, %v4667_v0  ;;  %v4671_v8 = vadd.f32 %v10393_v63, %v9909_v20  ;;  %v7927_v45 = vld [vmem:[%s9052_s21 + $0x68] sm:$0x1]  ;;  %v4677_v49 = vadd.f32 %v10443_v55, %v9909_v20  ;;  %v7928_v42 = vld [vmem:[%s9052_s21 + $0x6c] sm:$0xe]  ;;  %v4881_v35 = vpop.f32.mrf.mxu1 }
 0x1cd   : > { %v8819_v61 = vld [vmem:[#allocation2 + $0x68] ss:$36 sps:$4 sm:$0xff]   ;;  %v2592_v15 = vsel %vm9082_vm4, %v7960_v52, %v2591_v37  ;;  %v2593_v22 = vrot.slane %v2591_v37, 4  ;;  %v10563_v48 = vadd.f32 %v10388_v14, %v4669_v39  ;;  %v7961_v63 = vrot.slane %v7925_v23, 9  ;;  %v7929_v25 = vld [vmem:[%s9052_s21 + $0x70] sm:$0xf]  ;;  %v4690_v36 = vpop.f32.mrf.mxu0 }
 0x1ce   : > { %2708 = vst [vmem:[#allocation2 + $0x188] sm:$0xf] %v2592_v15  ;;  %v10566_v19 = vadd.f32 %v10397_v3, %v4671_v8  ;;  %v2598_v60 = vrot.slane %v7926_v11, 5  ;;  %v2601_v52 = vrot.slane %v7927_v45, 5  ;;  %v4679_v55 = vadd.f32 %v10460_v5, %v9917_v62  ;;  %v7930_v14 = vld [vmem:[%s9052_s21 + $0x74] sm:$0x1] }
 0x1cf   : > { %v2595_v0 = vsel %vm9082_vm4, %v2593_v22, %v2594_v50  ;;  %v7931_v46 = vld [vmem:[%s9052_s21 + $0x78] sm:$0xe]  ;;  %v10578_v11 = vadd.f32 %v10452_v7, %v4677_v49  ;;  %v4681_v37 = vadd.f32 %v10485_v31, %v9909_v20  ;;  %v10582_v50 = vpop.f32.mrf.mxu0  ;;  %v7932_v39 = vld [vmem:[%s9052_s21 + $0x7c] sm:$0xf]  ;;  %v4687_v8 = vadd.f32 %v4686_v56, %v9909_v20  ;;  %v7933_v15 = vld [vmem:[%s9052_s21 + $0x80] sm:$0x1]  ;;  %v4883_v49 = vpop.f32.mrf.mxu1 }
 0x1d0   : > { %2709 = vst [vmem:[#allocation2 + $0x1ac] sm:$0xf] %v2595_v0  ;;  %v2599_v3 = vsel %vm9082_vm4, %v7961_v63, %v2598_v60  ;;  %v2600_v23 = vrot.slane %v2598_v60, 4  ;;  %12193 = vst [vmem:[#allocation43_spill] sm:$0xff] %v10582_v50  ;;  %v10586_v5 = vadd.f32 %v10474_v17, %v4679_v55  ;;  %v7962_v45 = vrot.slane %v7928_v42, 9 }
 0x1d1   : > { %2710 = vst [vmem:[#allocation2 + $0x1d0] sm:$0xf] %v2599_v3  ;;  %v7934_v7 = vld [vmem:[%s9052_s21 + $0x84] sm:$0xe]  ;;  %v10595_v22 = vadd.f32 %v10493_v26, %v4681_v37  ;;  %v2608_v17 = vrot.slane %v7930_v14, 5  ;;  %v4689_v42 = vadd.f32 %v4688_v16, %v9917_v62  ;;  %v10599_v60 = vadd.f32 %v4879_v29, %v4687_v8  ;;  %v4922_v14 = vpop.f32.mrf.mxu0 }
 0x1d2   : > { %5317 = vmatmul.mubr.bf16.gmra.mxu0 %v8819_v61  ;;  %v2602_v31 = vsel %vm9082_vm4, %v2600_v23, %v2601_v52  ;;  %v2605_v61 = vrot.slane %v7929_v25, 5  ;;  %v7935_v63 = vld [vmem:[%s9052_s21 + $0x88] sm:$0xf]  ;;  %v8820_v56 = vld [vmem:[#allocation2 + $0xb0] ss:$36 sps:$4 sm:$0xff]   ;;  %v4691_v0 = vadd.f32 %v4690_v36, %v9909_v20  ;;  %v7963_v23 = vrot.slane %v7931_v46, 9 }
 0x1d3   : > { %5326 = vmatprep.mubr.bf16.mxu0 %v12192_v1  ;;  %2711 = vst [vmem:[#allocation2 + $0x1f4] sm:$0xf] %v2602_v31  ;;  %v7936_v55 = vld [vmem:[%s9052_s21 + $0x8c] sm:$0x1]  ;;  %v7937_v3 = vld [vmem:[%s9052_s21 + $0x90] sm:$0xe]  ;;  %v10608_v31 = vadd.f32 %v4881_v35, %v4689_v42  ;;  %v4924_v50 = vpop.f32.mrf.mxu0 }
 0x1d4   : > { %v7938_v52 = vld [vmem:[%s9052_s21 + $0x94] sm:$0xf]  ;;  %v2606_v26 = vsel %vm9082_vm4, %v7962_v45, %v2605_v61  ;;  %v2607_v25 = vrot.slane %v2605_v61, 4  ;;  %v7939_v37 = vld [vmem:[%s9052_s21 + $0x98] sm:$0x1]  ;;  %v10610_v29 = vadd.f32 %v4883_v49, %v4691_v0  ;;  %v12194_v16 = vld [vmem:[#allocation14_spill] sm:$0xff] }
 0x1d5   : > { %2712 = vst [vmem:[#allocation2 + $0x218] sm:$0xf] %v2606_v26  ;;  %v10613_v20 = vadd.f32 %v4922_v14, %v12194_v16  ;;  %v2612_v36 = vrot.slane %v7932_v39, 5  ;;  %v7940_v8 = vld [vmem:[%s9052_s21 + $0x9c] sm:$0xe]  ;;  %v2615_v61 = vrot.slane %v7933_v15, 5  ;;  %v4926_v15 = vpop.f32.mrf.mxu0 }
 0x1d6   : > { %v2609_v45 = vsel %vm9082_vm4, %v2607_v25, %v2608_v17  ;;  %v7964_v46 = vrot.slane %v7934_v7, 9  ;;  %v7941_v54 = vld [vmem:[%s9052_s21 + $0xa0] sm:$0xf]  ;;  %v7942_v26 = vld [vmem:[%s9052_s21 + $0xa4] sm:$0x1]  ;;  %v12195_v42 = vld [vmem:[#allocation15_spill] sm:$0xff] }
 0x1d7   : > { %2713 = vst [vmem:[#allocation2 + $0x23c] sm:$0xf] %v2609_v45  ;;  %v2613_v35 = vsel %vm9082_vm4, %v7963_v23, %v2612_v36  ;;  %v2614_v49 = vrot.slane %v2612_v36, 4  ;;  %v10623_v0 = vadd.f32 %v4924_v50, %v12195_v42  ;;  %v2619_v14 = vrot.slane %v7935_v63, 5  ;;  %v7943_v39 = vld [vmem:[%s9052_s21 + $0xa8] sm:$0xe] }
 0x1d8   : > { %v7944_v16 = vld [vmem:[%s9052_s21 + $0xac] sm:$0xf]  ;;  %v7945_v32 = vld [vmem:[%s9052_s21 + $0xb0] sm:$0x1]  ;;  %2714 = vst [vmem:[#allocation2 + $0x260] sm:$0xf] %v2613_v35 }
 0x1d9   : > { %v2622_v17 = vrot.slane %v7936_v55, 5  ;;  %v7965_v7 = vrot.slane %v7937_v3, 9  ;;  %v2626_v25 = vrot.slane %v7938_v52, 5  ;;  %v2629_v45 = vrot.slane %v7939_v37, 5  ;;  %v12196_v36 = vld [vmem:[#allocation18_spill] sm:$0xff] }
 0x1da   : > { %5327 = vmatmul.mubr.bf16.gmra.mxu0 %v8820_v56  ;;  %v2616_v23 = vsel %vm9082_vm4, %v2614_v49, %v2615_v61  ;;  %v10631_v50 = vadd.f32 %v4926_v15, %v12196_v36  ;;  %v2620_v63 = vsel %vm9082_vm4, %v7964_v46, %v2619_v14  ;;  %v2621_v42 = vrot.slane %v2619_v14, 4  ;;  %v7946_v9 = vld [vmem:[%s9052_s21 + $0xb4] sm:$0xe]  ;;  %v7947_v44 = vld [vmem:[%s9052_s21 + $0xb8] sm:$0xf]  ;;  %v10643_v49 = vpop.f32.mrf.mxu0 }
 0x1db   : > { %5336 = vmatprep.mubr.bf16.mxu0 %v12192_v1  ;;  %2715 = vst [vmem:[#allocation2 + $0x284] sm:$0xf] %v2616_v23  ;;  %2716 = vst [vmem:[#allocation2 + $0x2a8] sm:$0xf] %v2620_v63  ;;  %v2627_v55 = vsel %vm9082_vm4, %v7965_v7, %v2626_v25  ;;  %v2628_v56 = vrot.slane %v2626_v25, 4  ;;  %v7966_v3 = vrot.slane %v7940_v8, 9 }
 0x1dc   : > { %v7948_v52 = vld [vmem:[%s9052_s21 + $0xbc] sm:$0x1]  ;;  %v2623_v61 = vsel %vm9082_vm4, %v2621_v42, %v2622_v17  ;;  %2718 = vst [vmem:[#allocation2 + $0x2f0] sm:$0xf] %v2627_v55  ;;  %v2633_v35 = vrot.slane %v7941_v54, 5  ;;  %v2636_v46 = vrot.slane %v7942_v26, 5 }
 0x1dd   : > { %v8821_v37 = vld [vmem:[#allocation2 + $0xf8] ss:$36 sps:$4 sm:$0xff]   ;;  %2717 = vst [vmem:[#allocation2 + $0x2cc] sm:$0xf] %v2623_v61  ;;  %v2630_v14 = vsel %vm9082_vm4, %v2628_v56, %v2629_v45  ;;  %v7967_v15 = vrot.slane %v7943_v39, 9  ;;  %v2640_v23 = vrot.slane %v7944_v16, 5 }
 0x1de   : > { %v2643_v36 = vrot.slane %v7945_v32, 5  ;;  %2719 = vst [vmem:[#allocation2 + $0x314] sm:$0xf] %v2630_v14  ;;  %v2634_v8 = vsel %vm9082_vm4, %v7966_v3, %v2633_v35  ;;  %v2635_v7 = vrot.slane %v2633_v35, 4  ;;  %v7968_v25 = vrot.slane %v7946_v9, 9  ;;  %v8844_v9 = vld [vmem:[%s12122_s3 + $0x50] sm:$0xff]  }
 0x1df   : > { %v2647_v17 = vrot.slane %v7947_v44, 5  ;;  %2720 = vst [vmem:[#allocation2 + $0x338] sm:$0xf] %v2634_v8  ;;  %v2641_v54 = vsel %vm9082_vm4, %v7967_v15, %v2640_v23  ;;  %v2642_v26 = vrot.slane %v2640_v23, 4  ;;  %v2650_v63 = vrot.slane %v7948_v52, 5  ;;  %v4932_v44 = vpop.f32.mrf.mxu0  ;;  %v12197_v3 = vld [vmem:[#allocation21_spill] sm:$0xff]  ;;  %8289 = vmatprep.subr.bf16.mxu1 %v8844_v9 }
 0x1e0   : > { %v2637_v39 = vsel %vm9082_vm4, %v2635_v7, %v2636_v46  ;;  %2722 = vst [vmem:[#allocation2 + $0x380] sm:$0xf] %v2641_v54  ;;  %v7949_v42 = vld [vmem:[%s9052_s21 + $0xc0] sm:$0xe]  ;;  %v7950_v55 = vld [vmem:[%s9052_s21 + $0xc4] sm:$0xf]  ;;  %v10664_v52 = vadd.f32 %v4932_v44, %v12197_v3 }
 0x1e1   : > { %v2648_v32 = vsel %vm9082_vm4, %v7968_v25, %v2647_v17  ;;  %v2649_v16 = vrot.slane %v2647_v17, 4  ;;  %2721 = vst [vmem:[#allocation2 + $0x35c] sm:$0xf] %v2637_v39  ;;  %v2644_v45 = vsel %vm9082_vm4, %v2642_v26, %v2643_v36  ;;  %v7951_v56 = vld [vmem:[%s9052_s21 + $0xc8] sm:$0x1]  ;;  %v4934_v35 = vpop.f32.mrf.mxu0  ;;  %v7969_v46 = vrot.slane %v7949_v42, 9 }
 0x1e2   : > { %2724 = vst [vmem:[#allocation2 + $0x3c8] sm:$0xf] %v2648_v32  ;;  %5337 = vmatmul.mubr.bf16.gmra.mxu0 %v8821_v37  ;;  %2723 = vst [vmem:[#allocation2 + $0x3a4] sm:$0xf] %v2644_v45  ;;  %v2654_v14 = vrot.slane %v7950_v55, 5  ;;  %v2657_v15 = vrot.slane %v7951_v56, 5 }
 0x1e3   : > { %v2651_v61 = vsel %vm9082_vm4, %v2649_v16, %v2650_v63  ;;  %5346 = vmatprep.mubr.bf16.mxu0 %v12192_v1  ;;  %v8845_v37 = vld [vmem:[%s12122_s3 + $0x10] sm:$0xff]   ;;  %v12198_v23 = vld [vmem:[#allocation22_spill] sm:$0xff]  ;;  %v7952_v8 = vld [vmem:[%s9052_s21 + $0xcc] sm:$0xe]  ;;  %v4936_v25 = vpop.f32.mrf.mxu0 }
 0x1e4   : > { %2725 = vst [vmem:[#allocation2 + $0x3ec] sm:$0xf] %v2651_v61  ;;  %v10673_v36 = vadd.f32 %v4934_v35, %v12198_v23  ;;  %v8822_v7 = vld [vmem:[#allocation2 + $0x140] ss:$36 sps:$4 sm:$0xff]   ;;  %v2655_v17 = vsel %vm9082_vm4, %v7969_v46, %v2654_v14  ;;  %v2656_v54 = vrot.slane %v2654_v14, 4  ;;  %v7970_v26 = vrot.slane %v7952_v8, 9  ;;  %8290 = vmatpush3.bf16.msra.mxu1 %v8845_v37 }
 0x1e5   : > { %v12199_v63 = vld [vmem:[#allocation24_spill] sm:$0xff]  ;;  %2726 = vst [vmem:[#allocation2 + $0x410] sm:$0xf] %v2655_v17  ;;  %v10685_v42 = vpop.f32.mrf.mxu0  ;;  %v8823_v61 = vld [vmem:[#allocation2 + $0x188] ss:$36 sps:$4 sm:$0xff]   ;;  %v12201_v37 = vld [vmem:[#allocation29_spill] sm:$0xff] }
 0x1e6   : > { %v10679_v39 = vadd.f32 %v4936_v25, %v12199_v63  ;;  %v7953_v32 = vld [vmem:[%s9052_s21 + $0xd0] sm:$0xf]  ;;  %v7954_v16 = vld [vmem:[%s9052_s21 + $0xd4] sm:$0x1]  ;;  %v2658_v9 = vsel %vm9082_vm4, %v2656_v54, %v2657_v15  ;;  %v12202_v25 = vld [vmem:[#allocation30_spill] sm:$0xff] }
 0x1e7   : > { %v2661_v44 = vrot.slane %v7953_v32, 5  ;;  %v2664_v45 = vrot.slane %v7954_v16, 5  ;;  %2727 = vst [vmem:[#allocation2 + $0x434] sm:$0xf] %v2658_v9  ;;  %v4942_v35 = vpop.f32.mrf.mxu0  ;;  %v12200_v46 = vld [vmem:[#allocation28_spill] sm:$0xff]  ;;  %v8847_v63 = vld [vmem:[%s12122_s3 + $0x8] sm:$0xff]  }
 0x1e8   : > { %v10693_v14 = vadd.f32 %v4942_v35, %v12200_v46  ;;  %v8824_v2 = vld [vmem:[#allocation2 + $0x1d0] ss:$36 sps:$4 sm:$0xff]   ;;  %v12203_v32 = vld [vmem:[#allocation34_spill] sm:$0xff] }
 0x1e9   : > { %v2662_v55 = vsel %vm9082_vm4, %v7970_v26, %v2661_v44  ;;  %v2663_v56 = vrot.slane %v2661_v44, 4  ;;  %v4944_v15 = vpop.f32.mrf.mxu0  ;;  %v8846_v26 = vld [vmem:[%s12122_s3 + $0x48] sm:$0xff]  }
 0x1ea   : > { %5347 = vmatmul.mubr.bf16.gmra.mxu0 %v8822_v7  ;;  %2728 = vst [vmem:[#allocation2 + $0x458] sm:$0xf] %v2662_v55  ;;  %v10696_v23 = vadd.f32 %v4944_v15, %v12201_v37  ;;  %8291 = vmatprep.subr.bf16.mxu1 %v8846_v26  ;;  %v12204_v44 = vld [vmem:[#allocation35_spill] sm:$0xff]  ;;  %v10723_v15 = vpop.f32.mrf.mxu1 }
 0x1eb   : > { %5356 = vmatprep.mubr.bf16.mxu0 %v12192_v1  ;;  %v2665_v3 = vsel %vm9082_vm4, %v2663_v56, %v2664_v45  ;;  %v4946_v8 = vpop.f32.mrf.mxu0  ;;  %8292 = vmatpush3.bf16.msra.mxu1 %v8847_v63  ;;  %v12205_v56 = vld [vmem:[#allocation36_spill] sm:$0xff]  ;;  %12206 = vst [vmem:[#allocation14_spill] sm:$0xff] %v10723_v15  ;;  %v12207_v37 = vld [vmem:[#allocation39_spill] sm:$0xff] }
 0x1ec   : > { %2729 = vst [vmem:[#allocation2 + $0x47c] sm:$0xf] %v2665_v3  ;;  %v10699_v17 = vadd.f32 %v4946_v8, %v12202_v25 }
 0x1ed   : > { %v10702_v7 = vpop.f32.mrf.mxu0 }
 0x1ef   : > { %v4952_v54 = vpop.f32.mrf.mxu0 }
 0x1f0   : > { %v10711_v16 = vadd.f32 %v4952_v54, %v12203_v32  ;;  %v12209_v54 = vld [vmem:[#allocation40_spill] sm:$0xff]  ;;  %v10731_v32 = vpop.f32.mrf.mxu1 }
 0x1f1   : > { %v4954_v9 = vpop.f32.mrf.mxu0 }
 0x1f2   : > { %5357 = vmatmul.mubr.bf16.gmra.mxu0 %v8823_v61  ;;  %v10714_v45 = vadd.f32 %v4954_v9, %v12204_v44  ;;  %v8825_v61 = vld [vmem:[#allocation2 + $0x218] ss:$36 sps:$4 sm:$0xff]  }
 0x1f3   : > { %5366 = vmatprep.mubr.bf16.mxu0 %v12192_v1  ;;  %v4956_v55 = vpop.f32.mrf.mxu0  ;;  %v12211_v9 = vld [vmem:[#allocation41_spill] sm:$0xff] }
 0x1f4   : > { %v10718_v3 = vadd.f32 %v4956_v55, %v12205_v56  ;;  %v10739_v56 = vpop.f32.mrf.mxu1 }
 0x1f5   : > { %v10720_v35 = vpop.f32.mrf.mxu0 }
 0x1f7   : > { %v4962_v46 = vpop.f32.mrf.mxu0 }
 0x1f8   : > { %v10726_v8 = vadd.f32 %v4962_v46, %v12207_v37  ;;  %v8848_v37 = vld [vmem:[%s12122_s3 + $0x40] sm:$0xff]  }
 0x1f9   : > { %v4964_v25 = vpop.f32.mrf.mxu0  ;;  %8293 = vmatprep.subr.bf16.mxu1 %v8848_v37 }
 0x1fa   : > { %5367 = vmatmul.mubr.bf16.gmra.mxu0 %v8824_v2  ;;  %12208 = vst [vmem:[#allocation15_spill] sm:$0xff] %v10726_v8  ;;  %v8826_v2 = vld [vmem:[#allocation2 + $0x260] ss:$36 sps:$4 sm:$0xff]   ;;  %v10729_v26 = vadd.f32 %v4964_v25, %v12209_v54 }
 0x1fb   : > { %5376 = vmatprep.mubr.bf16.mxu0 %v12192_v1  ;;  %v4966_v63 = vpop.f32.mrf.mxu0  ;;  %v8849_v25 = vld [vmem:[%s12122_s3] sm:$0xff]  }
 0x1fc   : > { %12210 = vst [vmem:[#allocation18_spill] sm:$0xff] %v10729_v26  ;;  %v10734_v44 = vadd.f32 %v4966_v63, %v12211_v9  ;;  %8294 = vmatpush3.bf16.msra.mxu1 %v8849_v25  ;;  %v8830_v26 = vld [vmem:[#allocation2 + $0x2f0] ss:$36 sps:$4 sm:$0xff]  }
 0x1fd   : > { %v10736_v55 = vpop.f32.mrf.mxu0 }
 0x1fe   : > { %12212 = vst [vmem:[#allocation21_spill] sm:$0xff] %v10734_v44  ;;  %12213 = vst [vmem:[#allocation22_spill] sm:$0xff] %v10736_v55 }
 0x1ff   : > { %v4972_v46 = vpop.f32.mrf.mxu0 }
 0x200   : > { %v10748_v54 = vadd.f32 %v4972_v46, %v10243_v4 }
 0x201   : > { %v4974_v63 = vpop.f32.mrf.mxu0 }
 0x202   : > { %5377 = vmatmul.mubr.bf16.gmra.mxu0 %v8825_v61  ;;  %v8827_v61 = vld [vmem:[#allocation2 + $0x2a8] ss:$36 sps:$4 sm:$0xff]   ;;  %12214 = vst [vmem:[#allocation24_spill] sm:$0xff] %v10748_v54  ;;  %v10753_v9 = vadd.f32 %v4974_v63, %v10255_v27  ;;  %v12219_v27 = vld [vmem:[#allocation49_spill] sm:$0xff] }
 0x203   : > { %5386 = vmatprep.mubr.bf16.mxu0 %v12192_v1  ;;  %v4976_v15 = vpop.f32.mrf.mxu0  ;;  %v12223_v54 = vld [vmem:[#allocation51_spill] sm:$0xff] }
 0x204   : > { %12215 = vst [vmem:[#allocation28_spill] sm:$0xff] %v10753_v9  ;;  %v10757_v28 = vadd.f32 %v4976_v15, %v12216_v53  ;;  %v12221_v9 = vld [vmem:[#allocation50_spill] sm:$0xff]  ;;  %v8831_v15 = vld [vmem:[#allocation2 + $0x338] ss:$36 sps:$4 sm:$0xff]  }
 0x205   : > { %v10761_v4 = vpop.f32.mrf.mxu0 }
 0x206   : > { %12217 = vst [vmem:[#allocation29_spill] sm:$0xff] %v10757_v28  ;;  %12218 = vst [vmem:[#allocation30_spill] sm:$0xff] %v10761_v4 }
 0x207   : > { %v4982_v37 = vpop.f32.mrf.mxu0 }
 0x208   : > { %v10767_v25 = vadd.f32 %v4982_v37, %v12219_v27 }
 0x209   : > { %v4984_v63 = vpop.f32.mrf.mxu0 }
 0x20a   : > { %5387 = vmatmul.mubr.bf16.gmra.mxu0 %v8826_v2  ;;  %v10750_v2 = vpop.f32.mrf.mxu1  ;;  %12220 = vst [vmem:[#allocation34_spill] sm:$0xff] %v10767_v25  ;;  %v10772_v53 = vadd.f32 %v4984_v63, %v12221_v9  ;;  %v8834_v25 = vld [vmem:[#allocation2 + $0x380] ss:$36 sps:$4 sm:$0xff]  }
 0x20b   : > { %5396 = vmatprep.mubr.bf16.mxu0 %v12192_v1  ;;  %v4986_v28 = vpop.f32.mrf.mxu0 }
 0x20c   : > { %v10759_v44 = vpop.f32.mrf.mxu1  ;;  %12222 = vst [vmem:[#allocation35_spill] sm:$0xff] %v10772_v53  ;;  %v10775_v8 = vadd.f32 %v4986_v28, %v12223_v54 }
 0x20e   : > { %v10763_v46 = vpop.f32.mrf.mxu1  ;;  %12224 = vst [vmem:[#allocation36_spill] sm:$0xff] %v10775_v8 }
 0x212   : > { %5397 = vmatmul.mubr.bf16.gmra.mxu0 %v8827_v61  ;;  %v10769_v61 = vpop.f32.mrf.mxu1 }
 0x213   : > { %5406 = vmatprep.mubr.bf16.mxu0 %v12192_v1 }
 0x214   : > { %v10777_v4 = vpop.f32.mrf.mxu1 }
 0x216   : > { %v10782_v37 = vpop.f32.mrf.mxu1 }
 0x218   : > { %v10787_v63 = vpop.f32.mrf.mxu1 }
 0x21a   : > { %5407 = vmatmul.mubr.bf16.gmra.mxu0 %v8830_v26  ;;  %v10779_v26 = vpop.f32.mrf.mxu0 }
 0x21b   : > { %5416 = vmatprep.mubr.bf16.mxu0 %v12192_v1  ;;  %12225 = vst [vmem:[#allocation39_spill] sm:$0xff] %v10779_v26  ;;  %v8835_v26 = vld [vmem:[#allocation2 + $0x3c8] ss:$36 sps:$4 sm:$0xff]  }
 0x21c   : > { %v4992_v27 = vpop.f32.mrf.mxu0 }
 0x21d   : > { %v10785_v55 = vadd.f32 %v4992_v27, %v10363_v41 }
 0x21e   : > { %v4994_v9 = vpop.f32.mrf.mxu0 }
 0x21f   : > { %12226 = vst [vmem:[#allocation40_spill] sm:$0xff] %v10785_v55  ;;  %v10790_v28 = vadd.f32 %v4994_v9, %v10384_v6 }
 0x220   : > { %v4996_v54 = vpop.f32.mrf.mxu0 }
 0x221   : > { %12227 = vst [vmem:[#allocation41_spill] sm:$0xff] %v10790_v28  ;;  %v10793_v8 = vadd.f32 %v4996_v54, %v10391_v59 }
 0x222   : > { %5417 = vmatmul.mubr.bf16.gmra.mxu0 %v8831_v15  ;;  %v10796_v15 = vpop.f32.mrf.mxu1  ;;  %v10798_v53 = vpop.f32.mrf.mxu0 }
 0x223   : > { %5426 = vmatprep.mubr.bf16.mxu0 %v12192_v1  ;;  %12228 = vst [vmem:[#allocation46_spill] sm:$0xff] %v10793_v8  ;;  %12229 = vst [vmem:[#allocation49_spill] sm:$0xff] %v10798_v53  ;;  %v8838_v8 = vld [vmem:[#allocation2 + $0x410] ss:$36 sps:$4 sm:$0xff]  }
 0x224   : > { %v10800_v41 = vpop.f32.mrf.mxu1  ;;  %v5002_v27 = vpop.f32.mrf.mxu0 }
 0x225   : > { %v10803_v55 = vadd.f32 %v5002_v27, %v10404_v10  ;;  %v8839_v27 = vld [vmem:[#allocation2 + $0x458] ss:$36 sps:$4 sm:$0xff]  }
 0x226   : > { %v5004_v6 = vpop.f32.mrf.mxu0 }
 0x227   : > { %12230 = vst [vmem:[#allocation50_spill] sm:$0xff] %v10803_v55  ;;  %v10807_v59 = vadd.f32 %v5004_v6, %v10411_v47 }
 0x228   : > { %v5006_v9 = vpop.f32.mrf.mxu0 }
 0x229   : > { %12231 = vst [vmem:[#allocation51_spill] sm:$0xff] %v10807_v59  ;;  %v10812_v54 = vadd.f32 %v5006_v9, %v10419_v21 }
 0x22a   : > { %5427 = vmatmul.mubr.bf16.gmra.mxu0 %v8834_v25  ;;  %v10809_v25 = vpop.f32.mrf.mxu1  ;;  %v10816_v53 = vpop.f32.mrf.mxu0 }
 0x22b   : > { %5436 = vmatprep.mubr.bf16.mxu0 %v12192_v1  ;;  %12232 = vst [vmem:[#allocation54_spill] sm:$0xff] %v10812_v54  ;;  %12233 = vst [vmem:[#allocation55_spill] sm:$0xff] %v10816_v53 }
 0x22c   : > { %v10814_v28 = vpop.f32.mrf.mxu1 }
 0x22e   : > { %v10819_v10 = vpop.f32.mrf.mxu1 }
 0x230   : > { %v10824_v59 = vpop.f32.mrf.mxu1 }
 0x232   : > { %5437 = vmatmul.mubr.bf16.gmra.mxu0 %v8835_v26  ;;  %v5012_v26 = vpop.f32.mrf.mxu0 }
 0x233   : > { %5446 = vmatprep.mubr.bf16.mxu0 %v12192_v1  ;;  %v10822_v47 = vadd.f32 %v5012_v26, %v10435_v30 }
 0x234   : > { %v5014_v6 = vpop.f32.mrf.mxu0 }
 0x235   : > { %12234 = vst [vmem:[#allocation56_spill] sm:$0xff] %v10822_v47  ;;  %v10827_v21 = vadd.f32 %v5014_v6, %v10446_v33 }
 0x236   : > { %v5016_v9 = vpop.f32.mrf.mxu0 }
 0x237   : > { %12235 = vst [vmem:[#allocation57_spill] sm:$0xff] %v10827_v21  ;;  %v10830_v54 = vadd.f32 %v5016_v9, %v10449_v43 }
 0x239   : > { %12236 = vst [vmem:[#allocation58_spill] sm:$0xff] %v10830_v54 }
 0x23a   : > { %5447 = vmatmul.mubr.bf16.gmra.mxu0 %v8838_v8  ;;  %v10832_v8 = vpop.f32.mrf.mxu1 }
 0x23b   : > { %5456 = vmatprep.mubr.bf16.mxu0 %v12192_v1  ;;  %v10834_v1 = vpop.f32.mrf.mxu0 }
 0x23c   : > { %12237 = vst [vmem:[#allocation59_spill] sm:$0xff] %v10834_v1  ;;  %v10836_v55 = vpop.f32.mrf.mxu1 }
 0x23e   : > { %v10841_v26 = vpop.f32.mrf.mxu1 }
 0x23f   : > { %v5022_v53 = vpop.f32.mrf.mxu0 }
 0x240   : > { %v10839_v30 = vadd.f32 %v5022_v53, %v10469_v58  ;;  %v10849_v6 = vpop.f32.mrf.mxu1 }
 0x241   : > { %v5024_v47 = vpop.f32.mrf.mxu0 }
 0x242   : > { %5457 = vmatmul.mubr.bf16.gmra.mxu0 %v8839_v27  ;;  %12238 = vst [vmem:[#allocation60_spill] sm:$0xff] %v10839_v30  ;;  %v10844_v33 = vadd.f32 %v5024_v47, %v10480_v40  ;;  %v10853_v54 = vpop.f32.mrf.mxu1 }
 0x243   : > { %v5026_v27 = vpop.f32.mrf.mxu0 }
 0x244   : > { %12239 = vst [vmem:[#allocation61_spill] sm:$0xff] %v10844_v33  ;;  %v10847_v43 = vadd.f32 %v5026_v27, %v10490_v12  ;;  %v10858_v30 = vpop.f32.mrf.mxu1 }
 0x245   : > { %v10851_v9 = vpop.f32.mrf.mxu0 }
 0x246   : > { %12240 = vst [vmem:[#allocation62_spill] sm:$0xff] %v10847_v43  ;;  %12241 = vst [vmem:[#allocation63_spill] sm:$0xff] %v10851_v9  ;;  %v10866_v27 = vpop.f32.mrf.mxu1 }
 0x248   : > { %v10870_v33 = vpop.f32.mrf.mxu1 }
 0x24d   : > { %v5032_v21 = vpop.f32.mrf.mxu0 }
 0x24e   : > { %v10856_v58 = vadd.f32 %v5032_v21, %v10498_v24 }
 0x24f   : > { %v5034_v53 = vpop.f32.mrf.mxu0 }
 0x250   : > { %12242 = vst [vmem:[#allocation64_spill] sm:$0xff] %v10856_v58  ;;  %v10861_v40 = vadd.f32 %v5034_v53, %v10509_v13  ;;  %v10875_v58 = vpop.f32.mrf.mxu1 }
 0x251   : > { %v5036_v47 = vpop.f32.mrf.mxu0 }
 0x252   : > { %12243 = vst [vmem:[#allocation65_spill] sm:$0xff] %v10861_v40  ;;  %v10864_v12 = vadd.f32 %v5036_v47, %v10512_v38  ;;  %v10883_v47 = vpop.f32.mrf.mxu1 }
 0x253   : > { %v10868_v43 = vpop.f32.mrf.mxu0 }
 0x254   : > { %12244 = vst [vmem:[#allocation66_spill] sm:$0xff] %v10864_v12  ;;  %12245 = vst [vmem:[#allocation67_spill] sm:$0xff] %v10868_v43  ;;  %v10887_v40 = vpop.f32.mrf.mxu1 }
 0x25c   : > { %v5042_v9 = vpop.f32.mrf.mxu0 }
 0x25d   : > { %v10873_v24 = vadd.f32 %v5042_v9, %v10529_v34 }
 0x25e   : > { %v5044_v21 = vpop.f32.mrf.mxu0 }
 0x25f   : > { %12246 = vst [vmem:[#allocation68_spill] sm:$0xff] %v10873_v24  ;;  %v10878_v13 = vadd.f32 %v5044_v21, %v10540_v18  ;;  %v10895_v18 = vpop.f32.mrf.mxu1 }
 0x260   : > { %v5046_v53 = vpop.f32.mrf.mxu0 }
 0x261   : > { %12247 = vst [vmem:[#allocation69_spill] sm:$0xff] %v10878_v13  ;;  %v10881_v38 = vadd.f32 %v5046_v53, %v10547_v51 }
 0x262   : > { %v10885_v12 = vpop.f32.mrf.mxu0 }
 0x263   : > { %12248 = vst [vmem:[#allocation70_spill] sm:$0xff] %v10881_v38  ;;  %12249 = vst [vmem:[#allocation71_spill] sm:$0xff] %v10885_v12  ;;  %v10902_v38 = vpop.f32.mrf.mxu1 }
 0x265   : > { %v10904_v12 = vpop.f32.mrf.mxu1 }
 0x269   : > { %v5052_v43 = vpop.f32.mrf.mxu0 }
 0x26a   : > { %v10890_v34 = vadd.f32 %v5052_v43, %v10552_v57 }
 0x26b   : > { %v5054_v9 = vpop.f32.mrf.mxu0 }
 0x26c   : > { %12250 = vst [vmem:[#allocation72_spill] sm:$0xff] %v10890_v34  ;;  %v10893_v24 = vadd.f32 %v5054_v9, %v10563_v48 }
 0x26d   : > { %v5056_v21 = vpop.f32.mrf.mxu0 }
 0x26e   : > { %12251 = vst [vmem:[#allocation73_spill] sm:$0xff] %v10893_v24  ;;  %v10898_v51 = vadd.f32 %v5056_v21, %v10566_v19  ;;  %v10912_v24 = vpop.f32.mrf.mxu1 }
 0x26f   : > { %v10900_v53 = vpop.f32.mrf.mxu0 }
 0x270   : > { %12252 = vst [vmem:[#allocation74_spill] sm:$0xff] %v10898_v51  ;;  %12253 = vst [vmem:[#allocation75_spill] sm:$0xff] %v10900_v53  ;;  %v10919_v51 = vpop.f32.mrf.mxu1 }
 0x276   : > { %v5062_v13 = vpop.f32.mrf.mxu0 }
 0x277   : > { %v10907_v57 = vadd.f32 %v5062_v13, %v10578_v11  ;;  %v10924_v11 = vpop.f32.mrf.mxu1 }
 0x278   : > { %v5064_v43 = vpop.f32.mrf.mxu0  ;;  %12259 = vst [vmem:[#allocation81_spill] sm:$0xff] %v10924_v11 }
 0x279   : > { %12254 = vst [vmem:[#allocation76_spill] sm:$0xff] %v10907_v57  ;;  %v10910_v48 = vadd.f32 %v5064_v43, %v10586_v5  ;;  %v12260_v5 = vld [vmem:[#allocation4_spill] sm:$0xff] }
 0x27a   : > { %v5066_v9 = vpop.f32.mrf.mxu0  ;;  %v4543_v43 = vadd.f32 %v12260_v5, %v9917_v62  ;;  %v12266_v5 = vld [vmem:[#allocation6_spill] sm:$0xff] }
 0x27b   : > { %12255 = vst [vmem:[#allocation77_spill] sm:$0xff] %v10910_v48  ;;  %v10915_v19 = vadd.f32 %v5066_v9, %v10595_v22  ;;  %v10934_v9 = vpop.f32.mrf.mxu1 }
 0x27c   : > { %v10917_v21 = vpop.f32.mrf.mxu0  ;;  %12263 = vst [vmem:[#allocation83_spill] sm:$0xff] %v10934_v9 }
 0x27d   : > { %12256 = vst [vmem:[#allocation78_spill] sm:$0xff] %v10915_v19  ;;  %12257 = vst [vmem:[#allocation79_spill] sm:$0xff] %v10917_v21  ;;  %v12265_v21 = vld [vmem:[#allocation5_spill] sm:$0xff] }
 0x282   : > { %v5072_v53 = vpop.f32.mrf.mxu0 }
 0x283   : > { %v10922_v34 = vadd.f32 %v5072_v53, %v10599_v60  ;;  %v4736_v60 = vadd.f32 %v12265_v21, %v4543_v43 }
 0x284   : > { %v5074_v13 = vpop.f32.mrf.mxu0 }
 0x285   : > { %12258 = vst [vmem:[#allocation80_spill] sm:$0xff] %v10922_v34  ;;  %v10929_v48 = vadd.f32 %v5074_v13, %v10608_v31  ;;  %v5116_v34 = vadd.f32 %v10731_v32, %v10613_v20  ;;  %v4929_v1 = vadd.f32 %v10643_v49, %v4736_v60  ;;  %v4553_v31 = vadd.f32 %v12266_v5, %v9917_v62  ;;  %v10944_v13 = vpop.f32.mrf.mxu1  ;;  %v12268_v32 = vld [vmem:[#allocation7_spill] sm:$0xff] }
 0x286   : > { %v5076_v57 = vpop.f32.mrf.mxu0  ;;  %12267 = vst [vmem:[#allocation5_spill] sm:$0xff] %v10944_v13 }
 0x287   : > { %12261 = vst [vmem:[#allocation4_spill] sm:$0xff] %v10929_v48  ;;  %v10932_v22 = vadd.f32 %v5076_v57, %v10610_v29  ;;  %v5118_v29 = vadd.f32 %v10739_v56, %v10623_v0  ;;  %v5120_v57 = vadd.f32 %v10750_v2, %v10631_v50  ;;  %v5122_v43 = vadd.f32 %v10759_v44, %v4929_v1  ;;  %v10952_v60 = vpop.f32.mrf.mxu1 }
 0x288   : > { %v10936_v19 = vpop.f32.mrf.mxu0  ;;  %v4746_v49 = vadd.f32 %v12268_v32, %v4553_v31  ;;  %v8860_v0 = vmov 0.0   ;;  %v5126_v56 = vadd.f32 %v10763_v46, %v10664_v52 }
 0x289   : > { %12262 = vst [vmem:[#allocation82_spill] sm:$0xff] %v10932_v22  ;;  %12264 = vst [vmem:[#allocation84_spill] sm:$0xff] %v10936_v19 }
 0x28a   : > { %v5308_v53 = vpop.f32.mrf.mxu0  ;;  %5853 = vst.msk [vmem:[#allocation3] sm:$0xff] %vm5852_vm6, %v8860_v0  ;;  %5854 = vst.msk [vmem:[#allocation3 + $0x8] sm:$0xff] %vm5852_vm6, %v8860_v0  ;;  %v4939_v50 = vadd.f32 %v10685_v42, %v4746_v49 }
 0x28b   : > { %v5309_v22 = vadd.f32 %v5308_v53, %v5116_v34  ;;  %5858 = vst.msk [vmem:[#allocation3 + $0x198] sm:$0xff] %vm5852_vm6, %v8860_v0  ;;  %5859 = vst.msk [vmem:[#allocation3 + $0x1a0] sm:$0xff] %vm5852_vm6, %v8860_v0  ;;  %v10969_v53 = vpop.f32.mrf.mxu1 }
 0x28c   : > { %v5310_v48 = vpop.f32.mrf.mxu0  ;;  %5856 = vst.msk [vmem:[#allocation3 + $0x10] sm:$0x3] %vm5855_vm7, %v8860_v0  ;;  %5860 = vst.msk [vmem:[#allocation3 + $0x1a8] sm:$0x3] %vm5855_vm7, %v8860_v0  ;;  %v5132_v52 = vadd.f32 %v10782_v37, %v4939_v50 }
 0x28d   : > { %v5311_v19 = vadd.f32 %v5310_v48, %v5118_v29  ;;  %v5467_v13 = vmax.f32 %v5309_v22, 0.0  ;;  %v12269_v48 = vld [vmem:[#allocation8_spill] sm:$0xff]  ;;  %v5128_v29 = vadd.f32 %v10769_v61, %v10673_v36  ;;  %5880 = vst.msk [vmem:[#allocation3 + $0x11] sm:$0x1] %vm5861_vm8, %v8860_v0  ;;  %5862 = vst.msk [vmem:[#allocation3] sm:$0x1] %vm5861_vm8, %v8860_v0 }
 0x28e   : > { %v5312_v21 = vpop.f32.mrf.mxu0  ;;  %v4563_v22 = vadd.f32 %v12269_v48, %v9917_v62  ;;  %5863 = vst.msk [vmem:[#allocation3 + $0x18] sm:$0x1] %vm5861_vm8, %v8860_v0  ;;  %5864 = vst.msk [vmem:[#allocation3 + $0x30] sm:$0x1] %vm5861_vm8, %v8860_v0 }
 0x28f   : > { %v5313_v20 = vadd.f32 %v5312_v21, %v5120_v57  ;;  %v5468_v2 = vmax.f32 %v5311_v19, 0.0  ;;  %v5130_v57 = vadd.f32 %v10777_v4, %v10679_v39  ;;  %5865 = vst.msk [vmem:[#allocation3 + $0x48] sm:$0x1] %vm5861_vm8, %v8860_v0  ;;  %5866 = vst.msk [vmem:[#allocation3 + $0x60] sm:$0x1] %vm5861_vm8, %v8860_v0 }
 0x290   : > { %v5314_v5 = vpop.f32.mrf.mxu0  ;;  %5867 = vst.msk [vmem:[#allocation3 + $0x78] sm:$0x1] %vm5861_vm8, %v8860_v0  ;;  %5868 = vst.msk [vmem:[#allocation3 + $0x90] sm:$0x1] %vm5861_vm8, %v8860_v0 }
 0x291   : > { %v5469_v9 = vmax.f32 %v5313_v20, 0.0  ;;  %v5315_v11 = vadd.f32 %v5314_v5, %v5122_v43  ;;  %v5995_v32 = vld [vmem:[#allocation3 + $0x1] sm:$0xff]  ;;  %v5136_v5 = vadd.f32 %v10787_v63, %v10693_v14  ;;  %5869 = vst.msk [vmem:[#allocation3 + $0xa8] sm:$0x1] %vm5861_vm8, %v8860_v0  ;;  %5870 = vst.msk [vmem:[#allocation3 + $0xc0] sm:$0x1] %vm5861_vm8, %v8860_v0 }
 0x292   : > { %v5318_v44 = vpop.f32.mrf.mxu0  ;;  %6059 = vrot.lane.b32.xlu0 %v5995_v32, %s8861_s8  ;;  %v12273_v32 = vld [vmem:[#allocation12_spill] sm:$0xff]  ;;  %5871 = vst.msk [vmem:[#allocation3 + $0xd8] sm:$0x1] %vm5861_vm8, %v8860_v0  ;;  %5872 = vst.msk [vmem:[#allocation3 + $0xf0] sm:$0x1] %vm5861_vm8, %v8860_v0 }
 0x293   : > { %v5531_v1 = vpack.c.bf16 %v5469_v9, %v5467_v13  ;;  %v5470_v34 = vmax.f32 %v5315_v11, 0.0  ;;  %v5319_v21 = vadd.f32 %v5318_v44, %v5126_v56  ;;  %v12270_v11 = vld [vmem:[#allocation9_spill] sm:$0xff]  ;;  %v10977_v13 = vpop.f32.mrf.mxu1  ;;  %v5996_v37 = vld [vmem:[#allocation3 + $0x9] sm:$0xff]  ;;  %5873 = vst.msk [vmem:[#allocation3 + $0x108] sm:$0x1] %vm5861_vm8, %v8860_v0 }
 0x294   : > { %v5320_v31 = vpop.f32.mrf.mxu0  ;;  %v4756_v9 = vadd.f32 %v12270_v11, %v4563_v22  ;;  %v5138_v22 = vadd.f32 %v10796_v15, %v10696_v23  ;;  %v5146_v11 = vadd.f32 %v10814_v28, %v10711_v16  ;;  %5874 = vst.msk [vmem:[#allocation3 + $0x120] sm:$0x1] %vm5861_vm8, %v8860_v0  ;;  %5875 = vst.msk [vmem:[#allocation3 + $0x138] sm:$0x1] %vm5861_vm8, %v8860_v0 }
 0x295   : > { %v5532_v42 = vpack.c.bf16 %v5470_v34, %v5468_v2  ;;  %v5321_v46 = vadd.f32 %v5320_v31, %v5128_v29  ;;  %v5471_v49 = vmax.f32 %v5319_v21, 0.0  ;;  %v12271_v2 = vld [vmem:[#allocation10_spill] sm:$0xff]  ;;  %v10985_v34 = vpop.f32.mrf.mxu1  ;;  %v12272_v21 = vld [vmem:[#allocation11_spill] sm:$0xff]  ;;  %5876 = vst.msk [vmem:[#allocation3 + $0x150] sm:$0x1] %vm5861_vm8, %v8860_v0 }
 0x296   : > { %v5322_v43 = vpop.f32.mrf.mxu0  ;;  %v4949_v39 = vadd.f32 %v10702_v7, %v4756_v9  ;;  %v5140_v7 = vadd.f32 %v10800_v41, %v10699_v17  ;;  %6061 = vrot.lane.b32.xlu0 %v5996_v37, %s8861_s8  ;;  %5877 = vst.msk [vmem:[#allocation3 + $0x168] sm:$0x1] %vm5861_vm8, %v8860_v0  ;;  %5878 = vst.msk [vmem:[#allocation3 + $0x180] sm:$0x1] %vm5861_vm8, %v8860_v0 }
 0x297   : > { %v5323_v19 = vadd.f32 %v5322_v43, %v5130_v57  ;;  %5723 = vmatprep.mubr.bf16.mxu1 %v5532_v42  ;;  %v5472_v50 = vmax.f32 %v5321_v46, 0.0  ;;  %5879 = vst.msk [vmem:[#allocation3 + $0x198] sm:$0x1] %vm5861_vm8, %v8860_v0  ;;  %5881 = vst.msk [vmem:[#allocation3 + $0x29] sm:$0x1] %vm5861_vm8, %v8860_v0 }
 0x298   : > { %v5324_v20 = vpop.f32.mrf.mxu0  ;;  %5724 = vmatmul.mubr.bf16.vlgmr.msra.gmra.mxu1 %v5531_v1  ;;  %v4573_v1 = vadd.f32 %v12271_v2, %v9917_v62  ;;  %v5142_v63 = vadd.f32 %v10809_v25, %v4949_v39  ;;  %v5148_v39 = vadd.f32 %v10819_v10, %v10714_v45  ;;  %v12275_v10 = vld [vmem:[#allocation22_spill] sm:$0xff]  ;;  %5882 = vst.msk [vmem:[#allocation3 + $0x41] sm:$0x1] %vm5861_vm8, %v8860_v0  ;;  %5883 = vst.msk [vmem:[#allocation3 + $0x59] sm:$0x1] %vm5861_vm8, %v8860_v0 }
 0x299   : > { %v5473_v36 = vmax.f32 %v5323_v19, 0.0  ;;  %v5325_v61 = vadd.f32 %v5324_v20, %v5132_v52  ;;  %v10994_v52 = vpop.f32.mrf.mxu1  ;;  %5884 = vst.msk [vmem:[#allocation3 + $0x71] sm:$0x1] %vm5861_vm8, %v8860_v0  ;;  %5885 = vst.msk [vmem:[#allocation3 + $0x89] sm:$0x1] %vm5861_vm8, %v8860_v0 }
 0x29a   : > { %v5328_v4 = vpop.f32.mrf.mxu0  ;;  %v4766_v43 = vadd.f32 %v12272_v21, %v4573_v1  ;;  %5886 = vst.msk [vmem:[#allocation3 + $0xa1] sm:$0x1] %vm5861_vm8, %v8860_v0  ;;  %5887 = vst.msk [vmem:[#allocation3 + $0xb9] sm:$0x1] %vm5861_vm8, %v8860_v0 }
 0x29b   : > { %v5533_v44 = vpack.c.bf16 %v5473_v36, %v5471_v49  ;;  %v5474_v56 = vmax.f32 %v5325_v61, 0.0  ;;  %v5329_v29 = vadd.f32 %v5328_v4, %v5136_v5  ;;  %v4583_v49 = vadd.f32 %v12273_v32, %v9917_v62  ;;  %v11001_v36 = vpop.f32.mrf.mxu1  ;;  %5888 = vst.msk [vmem:[#allocation3 + $0xd1] sm:$0x1] %vm5861_vm8, %v8860_v0  ;;  %5889 = vst.msk [vmem:[#allocation3 + $0xe9] sm:$0x1] %vm5861_vm8, %v8860_v0 }
 0x29c   : > { %v5330_v48 = vpop.f32.mrf.mxu0  ;;  %v4959_v17 = vadd.f32 %v10720_v35, %v4766_v43  ;;  %v5150_v4 = vadd.f32 %v10824_v59, %v10718_v3  ;;  %v12276_v59 = vld [vmem:[#allocation15_spill] sm:$0xff]  ;;  %v12278_v43 = vld [vmem:[#allocation18_spill] sm:$0xff]  ;;  %5890 = vst.msk [vmem:[#allocation3 + $0x101] sm:$0x1] %vm5861_vm8, %v8860_v0  ;;  %5891 = vst.msk [vmem:[#allocation3 + $0x119] sm:$0x1] %vm5861_vm8, %v8860_v0 }
 0x29d   : > { %v5534_v31 = vpack.c.bf16 %v5474_v56, %v5472_v50  ;;  %v5331_v57 = vadd.f32 %v5330_v48, %v5138_v22  ;;  %v5475_v23 = vmax.f32 %v5329_v29, 0.0  ;;  %v11009_v2 = vpop.f32.mrf.mxu1  ;;  %5892 = vst.msk [vmem:[#allocation3 + $0x131] sm:$0x1] %vm5861_vm8, %v8860_v0  ;;  %5893 = vst.msk [vmem:[#allocation3 + $0x149] sm:$0x1] %vm5861_vm8, %v8860_v0 }
 0x29e   : > { %v5332_v14 = vpop.f32.mrf.mxu0  ;;  %v5152_v16 = vadd.f32 %v10832_v8, %v4959_v17  ;;  %5894 = vst.msk [vmem:[#allocation3 + $0x161] sm:$0x1] %vm5861_vm8, %v8860_v0  ;;  %5895 = vst.msk [vmem:[#allocation3 + $0x179] sm:$0x1] %vm5861_vm8, %v8860_v0 }
 0x29f   : > { %v5333_v42 = vadd.f32 %v5332_v14, %v5140_v7  ;;  %5731 = vmatprep.mubr.bf16.mxu1 %v5534_v31  ;;  %v5476_v9 = vmax.f32 %v5331_v57, 0.0  ;;  %v5156_v31 = vadd.f32 %v10836_v55, %v12276_v59  ;;  %5896 = vst.msk [vmem:[#allocation3 + $0x191] sm:$0x1] %vm5861_vm8, %v8860_v0  ;;  %5897 = vst.msk [vmem:[#allocation3 + $0x1a9] sm:$0x1] %vm5861_vm8, %v8860_v0 }
 0x2a0   : > { %v5334_v46 = vpop.f32.mrf.mxu0  ;;  %5732 = vmatmul.mubr.bf16.gmra.mxu1 %v5533_v44  ;;  %v12274_v44 = vld [vmem:[#allocation13_spill] sm:$0xff] }
 0x2a1   : > { %v5477_v15 = vmax.f32 %v5333_v42, 0.0  ;;  %v5335_v19 = vadd.f32 %v5334_v46, %v5142_v63  ;;  %v4776_v56 = vadd.f32 %v12274_v44, %v4583_v49  ;;  %v12277_v63 = vld [vmem:[#allocation16_spill] sm:$0xff]  ;;  %v11016_v42 = vpop.f32.mrf.mxu1  ;;  %v5158_v46 = vadd.f32 %v10841_v26, %v12278_v43 }
 0x2a2   : > { %v5338_v41 = vpop.f32.mrf.mxu0  ;;  %v4593_v57 = vadd.f32 %v12277_v63, %v9917_v62 }
 0x2a3   : > { %v5535_v25 = vpack.c.bf16 %v5477_v15, %v5475_v23  ;;  %v5478_v20 = vmax.f32 %v5335_v19, 0.0  ;;  %v5339_v37 = vadd.f32 %v5338_v41, %v5146_v11  ;;  %v4969_v7 = vadd.f32 %v12275_v10, %v4776_v56  ;;  %v12279_v23 = vld [vmem:[#allocation21_spill] sm:$0xff]  ;;  %v11024_v32 = vpop.f32.mrf.mxu1 }
 0x2a4   : > { %v5340_v61 = vpop.f32.mrf.mxu0  ;;  %v5160_v15 = vadd.f32 %v10849_v6, %v12279_v23 }
 0x2a5   : > { %v5536_v35 = vpack.c.bf16 %v5478_v20, %v5476_v9  ;;  %v5341_v28 = vadd.f32 %v5340_v61, %v5148_v39  ;;  %v5479_v48 = vmax.f32 %v5339_v37, 0.0  ;;  %v5162_v55 = vadd.f32 %v10853_v54, %v4969_v7  ;;  %v12282_v37 = vld [vmem:[#allocation24_spill] sm:$0xff]  ;;  %v11031_v56 = vpop.f32.mrf.mxu1 }
 0x2a6   : > { %v5342_v5 = vpop.f32.mrf.mxu0 }
 0x2a7   : > { %v5343_v50 = vadd.f32 %v5342_v5, %v5150_v4  ;;  %5739 = vmatprep.mubr.bf16.mxu1 %v5536_v35  ;;  %v5480_v29 = vmax.f32 %v5341_v28, 0.0  ;;  %v12281_v4 = vld [vmem:[#allocation30_spill] sm:$0xff]  ;;  %v5166_v5 = vadd.f32 %v10858_v30, %v12282_v37  ;;  %v11039_v63 = vpop.f32.mrf.mxu1 }
 0x2a8   : > { %v5344_v1 = vpop.f32.mrf.mxu0  ;;  %5740 = vmatmul.mubr.bf16.gmra.mxu1 %v5535_v25  ;;  %v12280_v25 = vld [vmem:[#allocation17_spill] sm:$0xff] }
 0x2a9   : > { %v5481_v22 = vmax.f32 %v5343_v50, 0.0  ;;  %v5345_v45 = vadd.f32 %v5344_v1, %v5152_v16  ;;  %v4786_v20 = vadd.f32 %v12280_v25, %v4593_v57  ;;  %v12283_v50 = vld [vmem:[#allocation19_spill] sm:$0xff] }
 0x2aa   : > { %v5348_v3 = vpop.f32.mrf.mxu0  ;;  %v4603_v44 = vadd.f32 %v12283_v50, %v9917_v62 }
 0x2ab   : > { %v5537_v8 = vpack.c.bf16 %v5481_v22, %v5479_v48  ;;  %v5482_v14 = vmax.f32 %v5345_v45, 0.0  ;;  %v5349_v17 = vadd.f32 %v5348_v3, %v5156_v31  ;;  %v4979_v35 = vadd.f32 %v12281_v4, %v4786_v20  ;;  %v12284_v48 = vld [vmem:[#allocation28_spill] sm:$0xff]  ;;  %v12285_v45 = vld [vmem:[#allocation29_spill] sm:$0xff]  ;;  %v12290_v20 = vld [vmem:[#allocation35_spill] sm:$0xff] }
 0x2ac   : > { %v5350_v21 = vpop.f32.mrf.mxu0  ;;  %v5168_v22 = vadd.f32 %v10866_v27, %v12284_v48  ;;  %v5170_v10 = vadd.f32 %v10870_v33, %v12285_v45 }
 0x2ad   : > { %v5538_v19 = vpack.c.bf16 %v5482_v14, %v5480_v29  ;;  %v5351_v11 = vadd.f32 %v5350_v21, %v5158_v46  ;;  %v5483_v61 = vmax.f32 %v5349_v17, 0.0  ;;  %v5172_v30 = vadd.f32 %v10875_v58, %v4979_v35  ;;  %v12287_v46 = vld [vmem:[#allocation39_spill] sm:$0xff] }
 0x2ae   : > { %v5352_v41 = vpop.f32.mrf.mxu0 }
 0x2af   : > { %v5353_v9 = vadd.f32 %v5352_v41, %v5160_v15  ;;  %5747 = vmatprep.mubr.bf16.mxu1 %v5538_v19  ;;  %v5484_v16 = vmax.f32 %v5351_v11, 0.0  ;;  %v12288_v15 = vld [vmem:[#allocation34_spill] sm:$0xff] }
 0x2b0   : > { %v5354_v49 = vpop.f32.mrf.mxu0  ;;  %5748 = vmatmul.mubr.bf16.gmra.mxu1 %v5537_v8  ;;  %v12286_v8 = vld [vmem:[#allocation20_spill] sm:$0xff]  ;;  %v5176_v19 = vadd.f32 %v10883_v47, %v12288_v15  ;;  %v12299_v15 = vld [vmem:[#allocation33_spill] sm:$0xff] }
 0x2b1   : > { %v5485_v39 = vmax.f32 %v5353_v9, 0.0  ;;  %v5355_v26 = vadd.f32 %v5354_v49, %v5162_v55  ;;  %v4796_v14 = vadd.f32 %v12286_v8, %v4603_v44  ;;  %v12289_v55 = vld [vmem:[#allocation26_spill] sm:$0xff]  ;;  %v11046_v9 = vpop.f32.mrf.mxu1  ;;  %v5178_v49 = vadd.f32 %v10887_v40, %v12290_v20 }
 0x2b2   : > { %v5358_v6 = vpop.f32.mrf.mxu0  ;;  %v4613_v11 = vadd.f32 %v12289_v55, %v9917_v62  ;;  %v12301_v20 = vld [vmem:[#allocation50_spill] sm:$0xff] }
 0x2b3   : > { %v5539_v54 = vpack.c.bf16 %v5485_v39, %v5483_v61  ;;  %v5486_v28 = vmax.f32 %v5355_v26, 0.0  ;;  %v5359_v3 = vadd.f32 %v5358_v6, %v5166_v5  ;;  %v4989_v23 = vadd.f32 %v12287_v46, %v4796_v14  ;;  %v12291_v61 = vld [vmem:[#allocation36_spill] sm:$0xff]  ;;  %v12292_v5 = vld [vmem:[#allocation27_spill] sm:$0xff]  ;;  %v12297_v14 = vld [vmem:[#allocation46_spill] sm:$0xff] }
 0x2b4   : > { %v5360_v1 = vpop.f32.mrf.mxu0  ;;  %v5180_v39 = vadd.f32 %v10895_v18, %v12291_v61  ;;  %v12298_v46 = vld [vmem:[#allocation81_spill] sm:$0xff] }
 0x2b5   : > { %v5540_v7 = vpack.c.bf16 %v5486_v28, %v5484_v16  ;;  %v5361_v31 = vadd.f32 %v5360_v1, %v5168_v22  ;;  %v5487_v21 = vmax.f32 %v5359_v3, 0.0  ;;  %v5182_v47 = vadd.f32 %v10902_v38, %v4989_v23  ;;  %v12293_v1 = vld [vmem:[#allocation49_spill] sm:$0xff]  ;;  %v12294_v22 = vld [vmem:[#allocation40_spill] sm:$0xff] }
 0x2b6   : > { %v5362_v59 = vpop.f32.mrf.mxu0  ;;  %v4806_v16 = vadd.f32 %v12292_v5, %v4613_v11  ;;  %v5186_v45 = vadd.f32 %v10904_v12, %v12294_v22  ;;  %v12295_v3 = vld [vmem:[#allocation32_spill] sm:$0xff]  ;;  %v12300_v11 = vld [vmem:[#allocation55_spill] sm:$0xff] }
 0x2b7   : > { %v5363_v29 = vadd.f32 %v5362_v59, %v5170_v10  ;;  %5755 = vmatprep.mubr.bf16.mxu1 %v5540_v7  ;;  %v5488_v17 = vmax.f32 %v5361_v31, 0.0  ;;  %v4623_v59 = vadd.f32 %v12295_v3, %v9917_v62  ;;  %v12304_v5 = vld [vmem:[#allocation51_spill] sm:$0xff] }
 0x2b8   : > { %v5364_v57 = vpop.f32.mrf.mxu0  ;;  %5756 = vmatmul.mubr.bf16.gmra.mxu1 %v5539_v54  ;;  %v11054_v54 = vpop.f32.mrf.mxu1  ;;  %v4999_v48 = vadd.f32 %v12293_v1, %v4806_v16  ;;  %v12305_v16 = vld [vmem:[#allocation5_spill] sm:$0xff] }
 0x2b9   : > { %v5489_v43 = vmax.f32 %v5363_v29, 0.0  ;;  %v5365_v27 = vadd.f32 %v5364_v57, %v5172_v30  ;;  %v12296_v29 = vld [vmem:[#allocation41_spill] sm:$0xff]  ;;  %v5190_v57 = vadd.f32 %v10919_v51, %v12297_v14 }
 0x2ba   : > { %v5368_v33 = vpop.f32.mrf.mxu0  ;;  %v11061_v30 = vpop.f32.mrf.mxu1  ;;  %v5188_v8 = vadd.f32 %v10912_v24, %v12296_v29  ;;  %v5192_v12 = vadd.f32 %v12298_v46, %v4999_v48  ;;  %v12310_v46 = vld [vmem:[#allocation44_spill] sm:$0xff] }
 0x2bb   : > { %v5541_v58 = vpack.c.bf16 %v5489_v43, %v5487_v21  ;;  %v5490_v41 = vmax.f32 %v5365_v27, 0.0  ;;  %v5369_v4 = vadd.f32 %v5368_v33, %v5176_v19  ;;  %v4816_v19 = vadd.f32 %v12299_v15, %v4623_v59 }
 0x2bc   : > { %v5370_v25 = vpop.f32.mrf.mxu0 }
 0x2bd   : > { %v5542_v26 = vpack.c.bf16 %v5490_v41, %v5488_v17  ;;  %v5371_v6 = vadd.f32 %v5370_v25, %v5178_v49  ;;  %v5491_v50 = vmax.f32 %v5369_v4, 0.0  ;;  %v11069_v17 = vpop.f32.mrf.mxu1  ;;  %v5009_v25 = vadd.f32 %v12300_v11, %v4816_v19  ;;  %v12302_v49 = vld [vmem:[#allocation83_spill] sm:$0xff] }
 0x2be   : > { %v5372_v35 = vpop.f32.mrf.mxu0  ;;  %v5196_v61 = vadd.f32 %v12302_v49, %v12301_v20  ;;  %v6187_v20 = vld [vmem:[#allocation3 + $0x2] sm:$0xff]  ;;  %v12313_v49 = vld [vmem:[#allocation45_spill] sm:$0xff] }
 0x2bf   : > { %v5373_v37 = vadd.f32 %v5372_v35, %v5180_v39  ;;  %5763 = vmatprep.mubr.bf16.mxu1 %v5542_v26  ;;  %v5492_v10 = vmax.f32 %v5371_v6, 0.0  ;;  %v12303_v35 = vld [vmem:[#allocation37_spill] sm:$0xff]  ;;  %v11076_v6 = vpop.f32.mrf.mxu1  ;;  %6251 = vrot.lane.b32.xlu0 %v6187_v20, %s8862_s9 }
 0x2c0   : > { %v5374_v28 = vpop.f32.mrf.mxu0  ;;  %5764 = vmatmul.mubr.bf16.gmra.mxu1 %v5541_v58 }
 0x2c1   : > { %v5493_v44 = vmax.f32 %v5373_v37, 0.0  ;;  %v5375_v40 = vadd.f32 %v5374_v28, %v5182_v47  ;;  %v4633_v47 = vadd.f32 %v12303_v35, %v9917_v62  ;;  %v5198_v28 = vadd.f32 %v12305_v16, %v12304_v5  ;;  %v12314_v35 = vld [vmem:[#allocation60_spill] sm:$0xff] }
 0x2c2   : > { %v5378_v18 = vpop.f32.mrf.mxu0  ;;  %v5216_v0 = vadd.f32 %v11009_v2, %v12314_v35 }
 0x2c3   : > { %v5543_v38 = vpack.c.bf16 %v5493_v44, %v5491_v50  ;;  %v5494_v7 = vmax.f32 %v5375_v40, 0.0  ;;  %v5379_v43 = vadd.f32 %v5378_v18, %v5186_v45  ;;  %v12306_v50 = vld [vmem:[#allocation54_spill] sm:$0xff]  ;;  %v5202_v18 = vadd.f32 %v10969_v53, %v5009_v25 }
 0x2c4   : > { %v5380_v31 = vpop.f32.mrf.mxu0  ;;  %v5200_v44 = vadd.f32 %v10952_v60, %v12306_v50  ;;  %v12316_v50 = vld [vmem:[#allocation47_spill] sm:$0xff] }
 0x2c5   : > { %v5544_v21 = vpack.c.bf16 %v5494_v7, %v5492_v10  ;;  %v5381_v23 = vadd.f32 %v5380_v31, %v5188_v8  ;;  %v5495_v41 = vmax.f32 %v5379_v43, 0.0  ;;  %v11083_v10 = vpop.f32.mrf.mxu1  ;;  %v12307_v7 = vld [vmem:[#allocation38_spill] sm:$0xff]  ;;  %v12308_v8 = vld [vmem:[#allocation56_spill] sm:$0xff] }
 0x2c6   : > { %v5382_v27 = vpop.f32.mrf.mxu0  ;;  %v4826_v3 = vadd.f32 %v12307_v7, %v4633_v47  ;;  %v5206_v60 = vadd.f32 %v10977_v13, %v12308_v8  ;;  %v12315_v47 = vld [vmem:[#allocation63_spill] sm:$0xff] }
 0x2c7   : > { %v5383_v33 = vadd.f32 %v5382_v27, %v5190_v57  ;;  %5771 = vmatprep.mubr.bf16.mxu1 %v5544_v21  ;;  %v5496_v39 = vmax.f32 %v5381_v23, 0.0  ;;  %v12309_v57 = vld [vmem:[#allocation59_spill] sm:$0xff]  ;;  %v12311_v23 = vld [vmem:[#allocation57_spill] sm:$0xff]  ;;  %v11093_v15 = vpop.f32.mrf.mxu1 }
 0x2c8   : > { %v5384_v58 = vpop.f32.mrf.mxu0  ;;  %5772 = vmatmul.mubr.bf16.gmra.mxu1 %v5543_v38  ;;  %v5019_v21 = vadd.f32 %v12309_v57, %v4826_v3  ;;  %v6188_v7 = vld [vmem:[#allocation3 + $0xa] sm:$0xff]  ;;  %v6986_v3 = vld [vmem:[#allocation3 + $0x198] sm:$0xff] }
 0x2c9   : > { %v5497_v55 = vmax.f32 %v5383_v33, 0.0  ;;  %v5385_v24 = vadd.f32 %v5384_v58, %v5192_v12  ;;  %v4643_v12 = vadd.f32 %v12310_v46, %v9917_v62  ;;  %v5208_v33 = vadd.f32 %v10985_v34, %v12311_v23  ;;  %v12312_v58 = vld [vmem:[#allocation58_spill] sm:$0xff]  ;;  %v11170_v25 = vpop.f32.mrf.mxu1  ;;  %6253 = vrot.lane.b32.xlu1 %v6188_v7, %s8862_s9  ;;  %7080 = vrot.lane.b32.xlu0 %v6986_v3, %s8863_s10  ;;  %v12320_v46 = vld [vmem:[#allocation64_spill] sm:$0xff]  ;;  %v12329_v7 = vld [vmem:[#allocation69_spill] sm:$0xff] }
 0x2ca   : > { %v5388_v51 = vpop.f32.mrf.mxu0  ;;  %v5212_v34 = vadd.f32 %v11001_v36, %v5019_v21  ;;  %v5238_v3 = vadd.f32 %v11076_v6, %v12329_v7  ;;  %v12332_v6 = vld [vmem:[#allocation72_spill] sm:$0xff] }
 0x2cb   : > { %v5545_v26 = vpack.c.bf16 %v5497_v55, %v5495_v41  ;;  %v5498_v4 = vmax.f32 %v5385_v24, 0.0  ;;  %v5389_v1 = vadd.f32 %v5388_v51, %v5196_v61  ;;  %v5210_v41 = vadd.f32 %v10994_v52, %v12312_v58 }
 0x2cc   : > { %v5390_v37 = vpop.f32.mrf.mxu0  ;;  %v4836_v61 = vadd.f32 %v12313_v49, %v4643_v12  ;;  %v5226_v12 = vadd.f32 %v11039_v63, %v12320_v46 }
 0x2cd   : > { %v5546_v40 = vpack.c.bf16 %v5498_v4, %v5496_v39  ;;  %v5391_v22 = vadd.f32 %v5390_v37, %v5198_v28  ;;  %v5499_v59 = vmax.f32 %v5389_v1, 0.0 }
 0x2ce   : > { %v5392_v48 = vpop.f32.mrf.mxu0  ;;  %v5029_v37 = vadd.f32 %v12315_v47, %v4836_v61  ;;  %v12325_v47 = vld [vmem:[#allocation53_spill] sm:$0xff] }
 0x2cf   : > { %v5393_v45 = vadd.f32 %v5392_v48, %v5200_v44  ;;  %5779 = vmatprep.mubr.bf16.mxu1 %v5546_v40  ;;  %v5500_v43 = vmax.f32 %v5391_v22, 0.0  ;;  %v4653_v44 = vadd.f32 %v12316_v50, %v9917_v62  ;;  %v11179_v40 = vpop.f32.mrf.mxu1  ;;  %v12317_v48 = vld [vmem:[#allocation61_spill] sm:$0xff]  ;;  %v12318_v22 = vld [vmem:[#allocation62_spill] sm:$0xff] }
 0x2d0   : > { %v5394_v38 = vpop.f32.mrf.mxu0  ;;  %5780 = vmatmul.mubr.bf16.gmra.mxu1 %v5545_v26 }
 0x2d1   : > { %v5501_v31 = vmax.f32 %v5393_v45, 0.0  ;;  %v5395_v29 = vadd.f32 %v5394_v38, %v5202_v18  ;;  %v5218_v18 = vadd.f32 %v11016_v42, %v12317_v48  ;;  %v5220_v45 = vadd.f32 %v11024_v32, %v12318_v22  ;;  %v11188_v42 = vpop.f32.mrf.mxu1  ;;  %v12319_v32 = vld [vmem:[#allocation48_spill] sm:$0xff]  ;;  %v12328_v22 = vld [vmem:[#allocation23_spill] sm:$0xff] }
 0x2d2   : > { %v5398_v14 = vpop.f32.mrf.mxu0  ;;  %v4846_v57 = vadd.f32 %v12319_v32, %v4653_v44  ;;  %v12327_v44 = vld [vmem:[#allocation71_spill] sm:$0xff] }
 0x2d3   : > { %v5547_v53 = vpack.c.bf16 %v5501_v31, %v5499_v59  ;;  %v5502_v27 = vmax.f32 %v5395_v29, 0.0  ;;  %v5399_v13 = vadd.f32 %v5398_v14, %v5206_v60  ;;  %v5222_v31 = vadd.f32 %v11031_v56, %v5029_v37  ;;  %v6987_v60 = vld [vmem:[#allocation3 + $0x1a0] sm:$0xff]  ;;  %v12321_v56 = vld [vmem:[#allocation67_spill] sm:$0xff] }
 0x2d4   : > { %v5400_v19 = vpop.f32.mrf.mxu0  ;;  %7082 = vrot.lane.b32.xlu1 %v6987_v60, %s8863_s10 }
 0x2d5   : > { %v5548_v55 = vpack.c.bf16 %v5502_v27, %v5500_v43  ;;  %v5401_v52 = vadd.f32 %v5400_v19, %v5208_v33  ;;  %v5503_v39 = vmax.f32 %v5399_v13, 0.0  ;;  %v7178_v27 = vld [vmem:[#allocation3 + $0x199] sm:$0xff]  ;;  %v5039_v33 = vadd.f32 %v12321_v56, %v4846_v57  ;;  %v12322_v13 = vld [vmem:[#allocation52_spill] sm:$0xff]  ;;  %v12333_v56 = vld [vmem:[#allocation75_spill] sm:$0xff] }
 0x2d6   : > { %v5402_v24 = vpop.f32.mrf.mxu0  ;;  %7272 = vrot.lane.b32.xlu0 %v7178_v27, %s8864_s11 }
 0x2d7   : > { %v5403_v11 = vadd.f32 %v5402_v24, %v5210_v41  ;;  %5787 = vmatprep.mubr.bf16.mxu1 %v5548_v55  ;;  %v5504_v5 = vmax.f32 %v5401_v52, 0.0  ;;  %v7179_v55 = vld [vmem:[#allocation3 + $0x1a1] sm:$0xff]  ;;  %v4663_v24 = vadd.f32 %v12322_v13, %v9917_v62 }
 0x2d8   : > { %v5404_v51 = vpop.f32.mrf.mxu0  ;;  %5788 = vmatmul.mubr.bf16.gmra.mxu1 %v5547_v53  ;;  %7274 = vrot.lane.b32.xlu1 %v7179_v55, %s8864_s11 }
 0x2d9   : > { %v5505_v26 = vmax.f32 %v5403_v11, 0.0  ;;  %v5405_v4 = vadd.f32 %v5404_v51, %v5212_v34  ;;  %v5251_v34 = vpop.f32.mrf.mxu1  ;;  %v12323_v11 = vld [vmem:[#allocation65_spill] sm:$0xff]  ;;  %v12324_v51 = vld [vmem:[#allocation66_spill] sm:$0xff]  ;;  %v4856_v37 = vadd.f32 %v12325_v47, %v4663_v24 }
 0x2da   : > { %v5408_v36 = vpop.f32.mrf.mxu0  ;;  %v5228_v63 = vadd.f32 %v11046_v9, %v12323_v11  ;;  %v5230_v20 = vadd.f32 %v11054_v54, %v12324_v51 }
 0x2db   : > { %v5549_v16 = vpack.c.bf16 %v5505_v26, %v5503_v39  ;;  %v5506_v28 = vmax.f32 %v5405_v4, 0.0  ;;  %v5409_v2 = vadd.f32 %v5408_v36, %v5216_v0  ;;  %v5232_v26 = vadd.f32 %v11061_v30, %v5039_v33  ;;  %v5255_v0 = vpop.f32.mrf.mxu1 }
 0x2dc   : > { %v5410_v1 = vpop.f32.mrf.mxu0 }
 0x2dd   : > { %v5550_v38 = vpack.c.bf16 %v5506_v28, %v5504_v5  ;;  %v5411_v29 = vadd.f32 %v5410_v1, %v5218_v18  ;;  %v5507_v21 = vmax.f32 %v5409_v2, 0.0  ;;  %v12326_v28 = vld [vmem:[#allocation68_spill] sm:$0xff]  ;;  %v5049_v1 = vadd.f32 %v12327_v44, %v4856_v37 }
 0x2de   : > { %v5412_v59 = vpop.f32.mrf.mxu0  ;;  %v5236_v54 = vadd.f32 %v11069_v17, %v12326_v28 }
 0x2df   : > { %v5413_v8 = vadd.f32 %v5412_v59, %v5220_v45  ;;  %5795 = vmatprep.mubr.bf16.mxu1 %v5550_v38  ;;  %v5508_v19 = vmax.f32 %v5411_v29, 0.0  ;;  %v4673_v45 = vadd.f32 %v12328_v22, %v9917_v62  ;;  %v5257_v38 = vpop.f32.mrf.mxu1  ;;  %v12330_v59 = vld [vmem:[#allocation70_spill] sm:$0xff]  ;;  %v5242_v60 = vadd.f32 %v11093_v15, %v5049_v1  ;;  %v12341_v22 = vld [vmem:[#allocation77_spill] sm:$0xff] }
 0x2e0   : > { %v5414_v14 = vpop.f32.mrf.mxu0  ;;  %5796 = vmatmul.mubr.bf16.gmra.mxu1 %v5549_v16 }
 0x2e1   : > { %v5509_v43 = vmax.f32 %v5413_v8, 0.0  ;;  %v5415_v53 = vadd.f32 %v5414_v14, %v5222_v31  ;;  %v5240_v31 = vadd.f32 %v11083_v10, %v12330_v59  ;;  %v5259_v57 = vpop.f32.mrf.mxu1 }
 0x2e2   : > { %v5418_v23 = vpop.f32.mrf.mxu0 }
 0x2e3   : > { %v5551_v58 = vpack.c.bf16 %v5509_v43, %v5507_v21  ;;  %v5510_v41 = vmax.f32 %v5415_v53, 0.0  ;;  %v5419_v61 = vadd.f32 %v5418_v23, %v5226_v12  ;;  %v12331_v43 = vld [vmem:[#allocation25_spill] sm:$0xff]  ;;  %v5246_v23 = vadd.f32 %v11170_v25, %v12332_v6  ;;  %v5261_v13 = vpop.f32.mrf.mxu1 }
 0x2e4   : > { %v5420_v52 = vpop.f32.mrf.mxu0  ;;  %v4866_v53 = vadd.f32 %v12331_v43, %v4673_v45  ;;  %v5258_v45 = vadd.f32 %v5257_v38, %v12341_v22 }
 0x2e5   : > { %v5552_v49 = vpack.c.bf16 %v5510_v41, %v5508_v19  ;;  %v5421_v4 = vadd.f32 %v5420_v52, %v5228_v63  ;;  %v5511_v5 = vmax.f32 %v5419_v61, 0.0  ;;  %v12334_v41 = vld [vmem:[#allocation31_spill] sm:$0xff]  ;;  %v12335_v52 = vld [vmem:[#allocation73_spill] sm:$0xff]  ;;  %v12336_v63 = vld [vmem:[#allocation74_spill] sm:$0xff] }
 0x2e6   : > { %v5422_v39 = vpop.f32.mrf.mxu0  ;;  %v5059_v33 = vadd.f32 %v12333_v56, %v4866_v53  ;;  %v4683_v55 = vadd.f32 %v12334_v41, %v9917_v62  ;;  %v5248_v11 = vadd.f32 %v11179_v40, %v12335_v52  ;;  %v5250_v51 = vadd.f32 %v11188_v42, %v12336_v63  ;;  %v12344_v53 = vld [vmem:[#allocation84_spill] sm:$0xff] }
 0x2e7   : > { %v5423_v35 = vadd.f32 %v5422_v39, %v5230_v20  ;;  %5803 = vmatprep.mubr.bf16.mxu1 %v5552_v49  ;;  %v5512_v48 = vmax.f32 %v5421_v4, 0.0  ;;  %v12337_v4 = vld [vmem:[#allocation42_spill] sm:$0xff] }
 0x2e8   : > { %v5424_v36 = vpop.f32.mrf.mxu0  ;;  %5804 = vmatmul.mubr.bf16.gmra.mxu1 %v5551_v58  ;;  %v5252_v61 = vadd.f32 %v5251_v34, %v5059_v33  ;;  %v12340_v34 = vld [vmem:[#allocation43_spill] sm:$0xff]  ;;  %v12346_v33 = vld [vmem:[#allocation4_spill] sm:$0xff] }
 0x2e9   : > { %v5513_v9 = vmax.f32 %v5423_v35, 0.0  ;;  %v5425_v16 = vadd.f32 %v5424_v36, %v5232_v26  ;;  %v4876_v35 = vadd.f32 %v12337_v4, %v4683_v55  ;;  %v5265_v36 = vpop.f32.mrf.mxu1 }
 0x2ea   : > { %v5428_v50 = vpop.f32.mrf.mxu0 }
 0x2eb   : > { %v5553_v18 = vpack.c.bf16 %v5513_v9, %v5511_v5  ;;  %v5514_v30 = vmax.f32 %v5425_v16, 0.0  ;;  %v5429_v8 = vadd.f32 %v5428_v50, %v5236_v54  ;;  %v12338_v16 = vld [vmem:[#allocation79_spill] sm:$0xff]  ;;  %v12339_v54 = vld [vmem:[#allocation76_spill] sm:$0xff] }
 0x2ec   : > { %v5430_v2 = vpop.f32.mrf.mxu0  ;;  %v5069_v40 = vadd.f32 %v12338_v16, %v4876_v35  ;;  %v5256_v42 = vadd.f32 %v5255_v0, %v12339_v54  ;;  %v12343_v0 = vld [vmem:[#allocation14_spill] sm:$0xff] }
 0x2ed   : > { %v5554_v29 = vpack.c.bf16 %v5514_v30, %v5512_v48  ;;  %v5431_v14 = vadd.f32 %v5430_v2, %v5238_v3  ;;  %v5515_v27 = vmax.f32 %v5429_v8, 0.0  ;;  %v4693_v48 = vadd.f32 %v12340_v34, %v9917_v62  ;;  %v12342_v2 = vld [vmem:[#allocation78_spill] sm:$0xff] }
 0x2ee   : > { %v5432_v17 = vpop.f32.mrf.mxu0  ;;  %v5260_v7 = vadd.f32 %v5259_v57, %v12342_v2 }
 0x2ef   : > { %v5433_v32 = vadd.f32 %v5432_v17, %v5240_v31  ;;  %5811 = vmatprep.mubr.bf16.mxu1 %v5554_v29  ;;  %v5516_v19 = vmax.f32 %v5431_v14, 0.0  ;;  %v5262_v29 = vadd.f32 %v5261_v13, %v5069_v40 }
 0x2f0   : > { %v5434_v21 = vpop.f32.mrf.mxu0  ;;  %5812 = vmatmul.mubr.bf16.gmra.mxu1 %v5553_v18  ;;  %v5267_v18 = vpop.f32.mrf.mxu1 }
 0x2f1   : > { %v5517_v46 = vmax.f32 %v5433_v32, 0.0  ;;  %v5435_v12 = vadd.f32 %v5434_v21, %v5242_v60  ;;  %v4886_v60 = vadd.f32 %v12343_v0, %v4693_v48 }
 0x2f2   : > { %v5438_v10 = vpop.f32.mrf.mxu0  ;;  %v5269_v14 = vpop.f32.mrf.mxu1 }
 0x2f3   : > { %v5555_v58 = vpack.c.bf16 %v5517_v46, %v5515_v27  ;;  %v5518_v15 = vmax.f32 %v5435_v12, 0.0  ;;  %v5439_v49 = vadd.f32 %v5438_v10, %v5246_v23  ;;  %v5079_v27 = vadd.f32 %v12344_v53, %v4886_v60  ;;  %v12345_v46 = vld [vmem:[#allocation80_spill] sm:$0xff] }
 0x2f4   : > { %v5440_v24 = vpop.f32.mrf.mxu0  ;;  %v5266_v57 = vadd.f32 %v5265_v36, %v12345_v46  ;;  %v5271_v10 = vpop.f32.mrf.mxu1 }
 0x2f5   : > { %v5556_v20 = vpack.c.bf16 %v5518_v15, %v5516_v19  ;;  %v5441_v39 = vadd.f32 %v5440_v24, %v5248_v11  ;;  %v5519_v37 = vmax.f32 %v5439_v49, 0.0  ;;  %v5268_v19 = vadd.f32 %v5267_v18, %v12346_v33 }
 0x2f6   : > { %v5442_v25 = vpop.f32.mrf.mxu0  ;;  %v5272_v24 = vadd.f32 %v5271_v10, %v5079_v27 }
 0x2f7   : > { %v5443_v26 = vadd.f32 %v5442_v25, %v5250_v51  ;;  %5819 = vmatprep.mubr.bf16.mxu1 %v5556_v20  ;;  %v5520_v50 = vmax.f32 %v5441_v39, 0.0 }
 0x2f8   : > { %v5444_v47 = vpop.f32.mrf.mxu0  ;;  %5820 = vmatmul.mubr.bf16.gmra.mxu1 %v5555_v58  ;;  %v12347_v58 = vld [vmem:[#allocation82_spill] sm:$0xff] }
 0x2f9   : > { %v5521_v5 = vmax.f32 %v5443_v26, 0.0  ;;  %v5445_v9 = vadd.f32 %v5444_v47, %v5252_v61  ;;  %v5270_v15 = vadd.f32 %v5269_v14, %v12347_v58 }
 0x2fa   : > { %v5448_v28 = vpop.f32.mrf.mxu0 }
 0x2fb   : > { %v5557_v44 = vpack.c.bf16 %v5521_v5, %v5519_v37  ;;  %v5522_v1 = vmax.f32 %v5445_v9, 0.0  ;;  %v5449_v59 = vadd.f32 %v5448_v28, %v5256_v42 }
 0x2fc   : > { %v5450_v30 = vpop.f32.mrf.mxu0 }
 0x2fd   : > { %v5558_v3 = vpack.c.bf16 %v5522_v1, %v5520_v50  ;;  %v5451_v8 = vadd.f32 %v5450_v30, %v5258_v45  ;;  %v5523_v21 = vmax.f32 %v5449_v59, 0.0 }
 0x2fe   : > { %v5452_v31 = vpop.f32.mrf.mxu0 }
 0x2ff   : > { %v5453_v17 = vadd.f32 %v5452_v31, %v5260_v7  ;;  %5827 = vmatprep.mubr.bf16.mxu1 %v5558_v3  ;;  %v5524_v12 = vmax.f32 %v5451_v8, 0.0 }
 0x300   : > { %v5454_v32 = vpop.f32.mrf.mxu0  ;;  %5828 = vmatmul.mubr.bf16.gmra.mxu1 %v5557_v44 }
 0x301   : > { %v5525_v62 = vmax.f32 %v5453_v17, 0.0  ;;  %v5455_v43 = vadd.f32 %v5454_v32, %v5262_v29 }
 0x302   : > { %v5458_v38 = vpop.f32.mrf.mxu0 }
 0x303   : > { %v5559_v6 = vpack.c.bf16 %v5525_v62, %v5523_v21  ;;  %v5526_v23 = vmax.f32 %v5455_v43, 0.0  ;;  %v5459_v55 = vadd.f32 %v5458_v38, %v5266_v57 }
 0x304   : > { %v5460_v56 = vpop.f32.mrf.mxu0 }
 0x305   : > { %v5560_v41 = vpack.c.bf16 %v5526_v23, %v5524_v12  ;;  %v5461_v52 = vadd.f32 %v5460_v56, %v5268_v19  ;;  %v5527_v51 = vmax.f32 %v5459_v55, 0.0 }
 0x306   : > { %v5462_v13 = vpop.f32.mrf.mxu0 }
 0x307   : > { %v5463_v11 = vadd.f32 %v5462_v13, %v5270_v15  ;;  %5835 = vmatprep.mubr.bf16.mxu1 %v5560_v41  ;;  %v5528_v25 = vmax.f32 %v5461_v52, 0.0 }
 0x308   : > { %v5464_v63 = vpop.f32.mrf.mxu0  ;;  %5836 = vmatmul.mubr.bf16.gmra.mxu1 %v5559_v6 }
 0x309   : > { %v5529_v20 = vmax.f32 %v5463_v11, 0.0  ;;  %v5465_v49 = vadd.f32 %v5464_v63, %v5272_v24 }
 0x30b   : > { %v5561_v61 = vpack.c.bf16 %v5529_v20, %v5527_v51  ;;  %v5530_v39 = vmax.f32 %v5465_v49, 0.0 }
 0x30d   : > { %v5562_v26 = vpack.c.bf16 %v5530_v39, %v5528_v25 }
 0x30f   : > { %5843 = vmatprep.mubr.bf16.mxu1 %v5562_v26 }
 0x310   : > { %5844 = vmatmul.mubr.bf16.gmra.mxu1 %v5561_v61 }
 0x358   : > { %v8295_v4 = vpop.f32.mrf.mxu1 }
 0x35a   : > { %v8296_v35 = vpop.f32.mrf.mxu1 }
 0x35b   : > { %v8297_v36 = vadd.f32 %v8296_v35, %v8295_v4 }
 0x35c   : > { %v8298_v47 = vpop.f32.mrf.mxu1 }
 0x35d   : > { %5899 = vst.msk [vmem:[#allocation3 + $0x19] sm:$0xff] %vm5852_vm6, %v8297_v36 }
 0x35e   : > { %v8299_v37 = vpop.f32.mrf.mxu1 }
 0x35f   : > { %v8300_v5 = vadd.f32 %v8299_v37, %v8298_v47 }
 0x360   : > { %v8301_v9 = vpop.f32.mrf.mxu1 }
 0x361   : > { %5900 = vst.msk [vmem:[#allocation3 + $0x21] sm:$0xff] %vm5852_vm6, %v8300_v5 }
 0x362   : > { %v8302_v16 = vpop.f32.mrf.mxu1 }
 0x363   : > { %v8303_v40 = vadd.f32 %v8302_v16, %v8301_v9 }
 0x364   : > { %v8304_v28 = vpop.f32.mrf.mxu1  ;;  %v11239_v54 = vld [vmem:[#allocation3 + $0x18] sm:$0xff] }
 0x365   : > { %v5997_v42 = vld [vmem:[#allocation3 + $0x19] sm:$0xff]  ;;  %5901 = vst.msk [vmem:[#allocation3 + $0x31] sm:$0xff] %vm5852_vm6, %v8303_v40  ;;  %6443 = vrot.lane.b32.xlu0 %v11239_v54, %s8865_s12 }
 0x366   : > { %6063 = vrot.lane.b32.xlu1 %v5997_v42, %s8861_s8  ;;  %v8305_v50 = vpop.f32.mrf.mxu1 }
 0x367   : > { %v8306_v44 = vadd.f32 %v8305_v50, %v8304_v28 }
 0x368   : > { %v8307_v1 = vpop.f32.mrf.mxu1  ;;  %v5998_v34 = vld [vmem:[#allocation3 + $0x21] sm:$0xff] }
 0x369   : > { %5902 = vst.msk [vmem:[#allocation3 + $0x39] sm:$0xff] %vm5852_vm6, %v8306_v44  ;;  %6635 = vrot.lane.b32.xlu0 %v5997_v42, %s8866_s13  ;;  %v6189_v22 = vld [vmem:[#allocation3 + $0x1a] sm:$0xff]  ;;  %v6190_v45 = vld [vmem:[#allocation3 + $0x22] sm:$0xff] }
 0x36a   : > { %6065 = vrot.lane.b32.xlu1 %v5998_v34, %s8861_s8  ;;  %v8308_v48 = vpop.f32.mrf.mxu1  ;;  %v11251_v59 = vld [vmem:[#allocation3 + $0x20] sm:$0xff] }
 0x36b   : > { %v8309_v18 = vadd.f32 %v8308_v48, %v8307_v1 }
 0x36c   : > { %v8310_v30 = vpop.f32.mrf.mxu1  ;;  %v5999_v17 = vld [vmem:[#allocation3 + $0x31] sm:$0xff] }
 0x36d   : > { %5903 = vst.msk [vmem:[#allocation3 + $0x49] sm:$0xff] %vm5852_vm6, %v8309_v18  ;;  %6255 = vrot.lane.b32.xlu0 %v6189_v22, %s8862_s9  ;;  %v11260_v32 = vld [vmem:[#allocation3 + $0x30] sm:$0xff] }
 0x36e   : > { %6257 = vrot.lane.b32.xlu1 %v6190_v45, %s8862_s9  ;;  %v8311_v2 = vpop.f32.mrf.mxu1 }
 0x36f   : > { %v8312_v7 = vadd.f32 %v8311_v2, %v8310_v30 }
 0x370   : > { %v8313_v3 = vpop.f32.mrf.mxu1  ;;  %v6000_v53 = vld [vmem:[#allocation3 + $0x39] sm:$0xff] }
 0x371   : > { %5904 = vst.msk [vmem:[#allocation3 + $0x51] sm:$0xff] %vm5852_vm6, %v8312_v7  ;;  %6827 = vrot.lane.b32.xlu0 %v6189_v22, %s8867_s14  ;;  %v6192_v57 = vld [vmem:[#allocation3 + $0x3a] sm:$0xff]  ;;  %v6191_v58 = vld [vmem:[#allocation3 + $0x32] sm:$0xff] }
 0x372   : > { %6445 = vrot.lane.b32.xlu1 %v11251_v59, %s8865_s12  ;;  %v8314_v31 = vpop.f32.mrf.mxu1  ;;  %v11273_v10 = vld [vmem:[#allocation3 + $0x38] sm:$0xff] }
 0x373   : > { %v8315_v29 = vadd.f32 %v8314_v31, %v8313_v3 }
 0x374   : > { %v8316_v8 = vpop.f32.mrf.mxu1  ;;  %v6001_v20 = vld [vmem:[#allocation3 + $0x49] sm:$0xff] }
 0x375   : > { %5905 = vst.msk [vmem:[#allocation3 + $0x61] sm:$0xff] %vm5852_vm6, %v8315_v29  ;;  %6067 = vrot.lane.b32.xlu0 %v5999_v17, %s8861_s8  ;;  %v11292_v39 = vld [vmem:[#allocation3 + $0x48] sm:$0xff] }
 0x376   : > { %6637 = vrot.lane.b32.xlu1 %v5998_v34, %s8866_s13  ;;  %v8317_v0 = vpop.f32.mrf.mxu1 }
 0x377   : > { %v8318_v60 = vadd.f32 %v8317_v0, %v8316_v8 }
 0x378   : > { %v8319_v14 = vpop.f32.mrf.mxu1  ;;  %v6002_v36 = vld [vmem:[#allocation3 + $0x51] sm:$0xff] }
 0x379   : > { %5906 = vst.msk [vmem:[#allocation3 + $0x69] sm:$0xff] %vm5852_vm6, %v8318_v60  ;;  %6447 = vrot.lane.b32.xlu0 %v11260_v32, %s8865_s12  ;;  %v6194_v9 = vld [vmem:[#allocation3 + $0x52] sm:$0xff]  ;;  %v6193_v34 = vld [vmem:[#allocation3 + $0x4a] sm:$0xff] }
 0x37a   : > { %6829 = vrot.lane.b32.xlu1 %v6190_v45, %s8867_s14  ;;  %v8320_v21 = vpop.f32.mrf.mxu1  ;;  %v11305_v42 = vld [vmem:[#allocation3 + $0x50] sm:$0xff] }
 0x37b   : > { %v8321_v62 = vadd.f32 %v8320_v21, %v8319_v14  ;;  %v11330_v14 = vpop.permute.xlu0 %6059 }
 0x37c   : > { %v8322_v43 = vpop.f32.mrf.mxu1  ;;  %v6003_v29 = vld [vmem:[#allocation3 + $0x61] sm:$0xff] }
 0x37d   : > { %5907 = vst.msk [vmem:[#allocation3 + $0x79] sm:$0xff] %vm5852_vm6, %v8321_v62  ;;  %6639 = vrot.lane.b32.xlu0 %v5999_v17, %s8866_s13  ;;  %v11324_v60 = vld [vmem:[#allocation3 + $0x60] sm:$0xff] }
 0x37e   : > { %6069 = vrot.lane.b32.xlu1 %v6000_v53, %s8861_s8  ;;  %v8323_v27 = vpop.f32.mrf.mxu1 }
 0x37f   : > { %v8324_v38 = vadd.f32 %v8323_v27, %v8322_v43 }
 0x380   : > { %v8325_v46 = vpop.f32.mrf.mxu1 }
 0x381   : > { %5908 = vst.msk [vmem:[#allocation3 + $0x81] sm:$0xff] %vm5852_vm6, %v8324_v38  ;;  %7020 = vrot.lane.b32.xlu0 %v11260_v32, %s8863_s10 }
 0x382   : > { %6261 = vrot.lane.b32.xlu1 %v6192_v57, %s8862_s9  ;;  %v8326_v12 = vpop.f32.mrf.mxu1 }
 0x383   : > { %v8327_v6 = vadd.f32 %v8326_v12, %v8325_v46  ;;  %v11335_v46 = vpop.permute.xlu0 %6061  ;;  %v6196_v12 = vld [vmem:[#allocation3 + $0x6a] sm:$0xff] }
 0x384   : > { %v8328_v23 = vpop.f32.mrf.mxu1 }
 0x385   : > { %5909 = vst.msk [vmem:[#allocation3 + $0x91] sm:$0xff] %vm5852_vm6, %v8327_v6  ;;  %7212 = vrot.lane.b32.xlu0 %v5999_v17, %s8864_s11 }
 0x386   : > { %6449 = vrot.lane.b32.xlu1 %v11273_v10, %s8865_s12  ;;  %v8329_v56 = vpop.f32.mrf.mxu1 }
 0x387   : > { %v8330_v33 = vadd.f32 %v8329_v56, %v8328_v23 }
 0x388   : > { %v8331_v19 = vpop.f32.mrf.mxu1 }
 0x389   : > { %5910 = vst.msk [vmem:[#allocation3 + $0x99] sm:$0xff] %vm5852_vm6, %v8330_v33  ;;  %6259 = vrot.lane.b32.xlu0 %v6191_v58, %s8862_s9  ;;  %v11341_v33 = vld [vmem:[#allocation3 + $0x68] sm:$0xff] }
 0x38a   : > { %6641 = vrot.lane.b32.xlu1 %v6000_v53, %s8866_s13  ;;  %v8332_v15 = vpop.f32.mrf.mxu1 }
 0x38b   : > { %v8333_v41 = vadd.f32 %v8332_v15, %v8331_v19  ;;  %v11347_v19 = vpop.permute.xlu1 %6253 }
 0x38c   : > { %v8334_v55 = vpop.f32.mrf.mxu1 }
 0x38d   : > { %5911 = vst.msk [vmem:[#allocation3 + $0xa9] sm:$0xff] %vm5852_vm6, %v8333_v41  ;;  %6831 = vrot.lane.b32.xlu0 %v6191_v58, %s8867_s14 }
 0x38e   : > { %6833 = vrot.lane.b32.xlu1 %v6192_v57, %s8867_s14  ;;  %v8335_v13 = vpop.f32.mrf.mxu1 }
 0x38f   : > { %v8336_v24 = vadd.f32 %v8335_v13, %v8334_v55  ;;  %v6195_v13 = vld [vmem:[#allocation3 + $0x62] sm:$0xff] }
 0x390   : > { %v8337_v52 = vpop.f32.mrf.mxu1 }
 0x391   : > { %5912 = vst.msk [vmem:[#allocation3 + $0xb1] sm:$0xff] %vm5852_vm6, %v8336_v24  ;;  %7404 = vrot.lane.b32.xlu0 %v6191_v58, %s8868_s15  ;;  %v11349_v58 = vpop.permute.xlu0 %6251 }
 0x392   : > { %7022 = vrot.lane.b32.xlu1 %v11273_v10, %s8863_s10  ;;  %v8338_v11 = vpop.f32.mrf.mxu1 }
 0x393   : > { %v8339_v63 = vadd.f32 %v8338_v11, %v8337_v52  ;;  %v11354_v11 = vpop.permute.xlu1 %7082 }
 0x394   : > { %v8340_v51 = vpop.f32.mrf.mxu1 }
 0x395   : > { %5913 = vst.msk [vmem:[#allocation3 + $0xc1] sm:$0xff] %vm5852_vm6, %v8339_v63  ;;  %6071 = vrot.lane.b32.xlu0 %v6001_v20, %s8861_s8  ;;  %v11356_v63 = vpop.permute.xlu0 %7080 }
 0x396   : > { %7214 = vrot.lane.b32.xlu1 %v6000_v53, %s8864_s11  ;;  %v8341_v49 = vpop.f32.mrf.mxu1  ;;  %v6004_v53 = vld [vmem:[#allocation3 + $0x69] sm:$0xff] }
 0x397   : > { %v8342_v25 = vadd.f32 %v8341_v49, %v8340_v51 }
 0x398   : > { %v8343_v61 = vpop.f32.mrf.mxu1 }
 0x399   : > { %5914 = vst.msk [vmem:[#allocation3 + $0xc9] sm:$0xff] %vm5852_vm6, %v8342_v25  ;;  %6451 = vrot.lane.b32.xlu0 %v11292_v39, %s8865_s12 }
 0x39a   : > { %7406 = vrot.lane.b32.xlu1 %v6192_v57, %s8868_s15  ;;  %v8344_v26 = vpop.f32.mrf.mxu1 }
 0x39b   : > { %v8345_v4 = vadd.f32 %v8344_v26, %v8343_v61  ;;  %v11365_v61 = vpop.permute.xlu1 %7274  ;;  %v11367_v26 = vpop.permute.xlu0 %7272 }
 0x39c   : > { %v8346_v35 = vpop.f32.mrf.mxu1 }
 0x39d   : > { %5915 = vst.msk [vmem:[#allocation3 + $0xd9] sm:$0xff] %vm5852_vm6, %v8345_v4  ;;  %6643 = vrot.lane.b32.xlu0 %v6001_v20, %s8866_s13 }
 0x39e   : > { %6073 = vrot.lane.b32.xlu1 %v6002_v36, %s8861_s8  ;;  %v8347_v47 = vpop.f32.mrf.mxu1 }
 0x39f   : > { %v8348_v37 = vadd.f32 %v8347_v47, %v8346_v35  ;;  %v6005_v47 = vld [vmem:[#allocation3 + $0x79] sm:$0xff] }
 0x3a0   : > { %v8349_v5 = vpop.f32.mrf.mxu1 }
 0x3a1   : > { %5916 = vst.msk [vmem:[#allocation3 + $0xe1] sm:$0xff] %vm5852_vm6, %v8348_v37  ;;  %7024 = vrot.lane.b32.xlu0 %v11292_v39, %s8863_s10 }
 0x3a2   : > { %6265 = vrot.lane.b32.xlu1 %v6194_v9, %s8862_s9  ;;  %v8350_v16 = vpop.f32.mrf.mxu1 }
 0x3a3   : > { %v8351_v40 = vadd.f32 %v8350_v16, %v8349_v5 }
 0x3a4   : > { %v8352_v28 = vpop.f32.mrf.mxu1 }
 0x3a5   : > { %5917 = vst.msk [vmem:[#allocation3 + $0xf1] sm:$0xff] %vm5852_vm6, %v8351_v40  ;;  %7216 = vrot.lane.b32.xlu0 %v6001_v20, %s8864_s11  ;;  %v11374_v40 = vld [vmem:[#allocation3 + $0x78] sm:$0xff] }
 0x3a6   : > { %6453 = vrot.lane.b32.xlu1 %v11305_v42, %s8865_s12  ;;  %v8353_v50 = vpop.f32.mrf.mxu1 }
 0x3a7   : > { %v8354_v44 = vadd.f32 %v8353_v50, %v8352_v28 }
 0x3a8   : > { %v8355_v1 = vpop.f32.mrf.mxu1 }
 0x3a9   : > { %5918 = vst.msk [vmem:[#allocation3 + $0xf9] sm:$0xff] %vm5852_vm6, %v8354_v44  ;;  %6263 = vrot.lane.b32.xlu0 %v6193_v34, %s8862_s9  ;;  %v6006_v44 = vld [vmem:[#allocation3 + $0x81] sm:$0xff] }
 0x3aa   : > { %6645 = vrot.lane.b32.xlu1 %v6002_v36, %s8866_s13  ;;  %v8356_v48 = vpop.f32.mrf.mxu1 }
 0x3ab   : > { %v8357_v18 = vadd.f32 %v8356_v48, %v8355_v1  ;;  %v6198_v48 = vld [vmem:[#allocation3 + $0x82] sm:$0xff] }
 0x3ac   : > { %v8358_v30 = vpop.f32.mrf.mxu1 }
 0x3ad   : > { %5919 = vst.msk [vmem:[#allocation3 + $0x109] sm:$0xff] %vm5852_vm6, %v8357_v18  ;;  %6835 = vrot.lane.b32.xlu0 %v6193_v34, %s8867_s14 }
 0x3ae   : > { %6837 = vrot.lane.b32.xlu1 %v6194_v9, %s8867_s14  ;;  %v8359_v22 = vpop.f32.mrf.mxu1 }
 0x3af   : > { %v8360_v45 = vadd.f32 %v8359_v22, %v8358_v30  ;;  %v11391_v22 = vld [vmem:[#allocation3 + $0x80] sm:$0xff] }
 0x3b0   : > { %v8361_v2 = vpop.f32.mrf.mxu1 }
 0x3b1   : > { %5920 = vst.msk [vmem:[#allocation3 + $0x111] sm:$0xff] %vm5852_vm6, %v8360_v45  ;;  %7408 = vrot.lane.b32.xlu0 %v6193_v34, %s8868_s15 }
 0x3b2   : > { %7026 = vrot.lane.b32.xlu1 %v11305_v42, %s8863_s10  ;;  %v8362_v7 = vpop.f32.mrf.mxu1 }
 0x3b3   : > { %v8363_v3 = vadd.f32 %v8362_v7, %v8361_v2  ;;  %v6197_v7 = vld [vmem:[#allocation3 + $0x7a] sm:$0xff] }
 0x3b4   : > { %v8364_v31 = vpop.f32.mrf.mxu1 }
 0x3b5   : > { %5921 = vst.msk [vmem:[#allocation3 + $0x121] sm:$0xff] %vm5852_vm6, %v8363_v3  ;;  %6075 = vrot.lane.b32.xlu0 %v6003_v29, %s8861_s8 }
 0x3b6   : > { %7218 = vrot.lane.b32.xlu1 %v6002_v36, %s8864_s11  ;;  %v8365_v8 = vpop.f32.mrf.mxu1 }
 0x3b7   : > { %v8366_v17 = vadd.f32 %v8365_v8, %v8364_v31 }
 0x3b8   : > { %v8367_v0 = vpop.f32.mrf.mxu1 }
 0x3b9   : > { %5922 = vst.msk [vmem:[#allocation3 + $0x129] sm:$0xff] %vm5852_vm6, %v8366_v17  ;;  %6455 = vrot.lane.b32.xlu0 %v11324_v60, %s8865_s12  ;;  %v5931_v17 = vld [vmem:[#allocation3] sm:$0xff] }
 0x3ba   : > { %7410 = vrot.lane.b32.xlu1 %v6194_v9, %s8868_s15  ;;  %v8368_v21 = vpop.f32.mrf.mxu1 }
 0x3bb   : > { %v8369_v62 = vadd.f32 %v8368_v21, %v8367_v0 }
 0x3bc   : > { %v8370_v43 = vpop.f32.mrf.mxu1 }
 0x3bd   : > { %5923 = vst.msk [vmem:[#allocation3 + $0x139] sm:$0xff] %vm5852_vm6, %v8369_v62  ;;  %6647 = vrot.lane.b32.xlu0 %v6003_v29, %s8866_s13  ;;  %v6155_v62 = vadd.f32 %v11330_v14, %v5931_v17 }
 0x3be   : > { %6077 = vrot.lane.b32.xlu1 %v6004_v53, %s8861_s8  ;;  %v8371_v27 = vpop.f32.mrf.mxu1 }
 0x3bf   : > { %v8372_v38 = vadd.f32 %v8371_v27, %v8370_v43  ;;  %v6007_v43 = vld [vmem:[#allocation3 + $0x91] sm:$0xff] }
 0x3c0   : > { %v8373_v57 = vpop.f32.mrf.mxu1 }
 0x3c1   : > { %5924 = vst.msk [vmem:[#allocation3 + $0x141] sm:$0xff] %vm5852_vm6, %v8372_v38  ;;  %7028 = vrot.lane.b32.xlu0 %v11324_v60, %s8863_s10  ;;  %v6347_v38 = vadd.f32 %v11349_v58, %v6155_v62 }
 0x3c2   : > { %6269 = vrot.lane.b32.xlu1 %v6196_v12, %s8862_s9  ;;  %v8374_v6 = vpop.f32.mrf.mxu1 }
 0x3c3   : > { %v8375_v23 = vadd.f32 %v8374_v6, %v8373_v57  ;;  %v11419_v57 = vld [vmem:[#allocation3 + $0x90] sm:$0xff] }
 0x3c4   : > { %v8376_v56 = vpop.f32.mrf.mxu1 }
 0x3c5   : > { %5925 = vst.msk [vmem:[#allocation3 + $0x151] sm:$0xff] %vm5852_vm6, %v8375_v23  ;;  %7220 = vrot.lane.b32.xlu0 %v6003_v29, %s8864_s11 }
 0x3c6   : > { %6457 = vrot.lane.b32.xlu1 %v11341_v33, %s8865_s12  ;;  %v8377_v15 = vpop.f32.mrf.mxu1 }
 0x3c7   : > { %v8378_v41 = vadd.f32 %v8377_v15, %v8376_v56 }
 0x3c8   : > { %v8379_v55 = vpop.f32.mrf.mxu1 }
 0x3c9   : > { %5926 = vst.msk [vmem:[#allocation3 + $0x159] sm:$0xff] %vm5852_vm6, %v8378_v41  ;;  %6267 = vrot.lane.b32.xlu0 %v6195_v13, %s8862_s9  ;;  %v6008_v41 = vld [vmem:[#allocation3 + $0x99] sm:$0xff] }
 0x3ca   : > { %6649 = vrot.lane.b32.xlu1 %v6004_v53, %s8866_s13  ;;  %v8380_v24 = vpop.f32.mrf.mxu1 }
 0x3cb   : > { %v8381_v52 = vadd.f32 %v8380_v24, %v8379_v55 }
 0x3cc   : > { %v8382_v51 = vpop.f32.mrf.mxu1 }
 0x3cd   : > { %5927 = vst.msk [vmem:[#allocation3 + $0x169] sm:$0xff] %vm5852_vm6, %v8381_v52  ;;  %6839 = vrot.lane.b32.xlu0 %v6195_v13, %s8867_s14 }
 0x3ce   : > { %6841 = vrot.lane.b32.xlu1 %v6196_v12, %s8867_s14  ;;  %v8383_v20 = vpop.f32.mrf.mxu1 }
 0x3cf   : > { %v8384_v49 = vadd.f32 %v8383_v20, %v8382_v51  ;;  %v6200_v51 = vld [vmem:[#allocation3 + $0x9a] sm:$0xff] }
 0x3d0   : > { %v8385_v25 = vpop.f32.mrf.mxu1 }
 0x3d1   : > { %5928 = vst.msk [vmem:[#allocation3 + $0x171] sm:$0xff] %vm5852_vm6, %v8384_v49  ;;  %7412 = vrot.lane.b32.xlu0 %v6195_v13, %s8868_s15  ;;  %v11441_v49 = vld [vmem:[%s12123_s4] ss:$0 sm:$0xff] }
 0x3d2   : > { %7030 = vrot.lane.b32.xlu1 %v11341_v33, %s8863_s10  ;;  %v8386_v4 = vpop.f32.mrf.mxu1 }
 0x3d3   : > { %v8387_v35 = vadd.f32 %v8386_v4, %v8385_v25 }
 0x3d4   : > { %v8388_v36 = vpop.f32.mrf.mxu1 }
 0x3d5   : > { %5929 = vst.msk [vmem:[#allocation3 + $0x181] sm:$0xff] %vm5852_vm6, %v8387_v35  ;;  %6079 = vrot.lane.b32.xlu0 %v6005_v47, %s8861_s8 }
 0x3d6   : > { %7222 = vrot.lane.b32.xlu1 %v6004_v53, %s8864_s11  ;;  %v8389_v37 = vpop.f32.mrf.mxu1 }
 0x3d7   : > { %v8390_v5 = vadd.f32 %v8389_v37, %v8388_v36  ;;  %v6444_v9 = vpop.permute.xlu0 %6443 }
 0x3d8   : > { %v11372_v16 = vpop.permute.xlu1 %6063  ;;  %v6539_v6 = vadd.f32 %v6444_v9, %v6347_v38 }
 0x3d9   : > { %5930 = vst.msk [vmem:[#allocation3 + $0x189] sm:$0xff] %vm5852_vm6, %v8390_v5  ;;  %6459 = vrot.lane.b32.xlu0 %v11374_v40, %s8865_s12 }
 0x3da   : > { %7414 = vrot.lane.b32.xlu1 %v6196_v12, %s8868_s15  ;;  %v5932_v12 = vld [vmem:[#allocation3 + $0x8] sm:$0xff] }
 0x3db   : > { %v6636_v28 = vpop.permute.xlu0 %6635  ;;  %v6156_v56 = vadd.f32 %v11335_v46, %v5932_v12 }
 0x3dc   : > { %v11380_v50 = vpop.permute.xlu1 %6065  ;;  %v6731_v15 = vadd.f32 %v6636_v28, %v6539_v6 }
 0x3dd   : > { %6651 = vrot.lane.b32.xlu0 %v6005_v47, %s8866_s13  ;;  %v6348_v24 = vadd.f32 %v11347_v19, %v6156_v56  ;;  %v11443_v19 = vld [vmem:[#allocation3 + $0x98] sm:$0xff]  ;;  %v11483_v56 = vld [vmem:[#allocation3 + $0xa8] sm:$0xff] }
 0x3de   : > { %6081 = vrot.lane.b32.xlu1 %v6006_v44, %s8861_s8 }
 0x3df   : > { %v11384_v1 = vpop.permute.xlu0 %6255 }
 0x3e0   : > { %v11386_v34 = vpop.permute.xlu1 %6257 }
 0x3e1   : > { %7032 = vrot.lane.b32.xlu0 %v11374_v40, %s8863_s10 }
 0x3e2   : > { %6273 = vrot.lane.b32.xlu1 %v6198_v48, %s8862_s9 }
 0x3e3   : > { %v6828_v18 = vpop.permute.xlu0 %6827 }
 0x3e4   : > { %v6446_v30 = vpop.permute.xlu1 %6445  ;;  %v6923_v58 = vadd.f32 %v6828_v18, %v6731_v15 }
 0x3e5   : > { %7224 = vrot.lane.b32.xlu0 %v6005_v47, %s8864_s11  ;;  %v6540_v46 = vadd.f32 %v6446_v30, %v6348_v24 }
 0x3e6   : > { %6461 = vrot.lane.b32.xlu1 %v11391_v22, %s8865_s12 }
 0x3e7   : > { %v11396_v45 = vpop.permute.xlu0 %6067 }
 0x3e8   : > { %v6638_v2 = vpop.permute.xlu1 %6637 }
 0x3e9   : > { %6271 = vrot.lane.b32.xlu0 %v6197_v7, %s8862_s9  ;;  %v6732_v35 = vadd.f32 %v6638_v2, %v6540_v46 }
 0x3ea   : > { %6653 = vrot.lane.b32.xlu1 %v6006_v44, %s8866_s13 }
 0x3eb   : > { %v11400_v3 = vpop.permute.xlu0 %6447 }
 0x3ec   : > { %v6830_v31 = vpop.permute.xlu1 %6829 }
 0x3ed   : > { %6843 = vrot.lane.b32.xlu0 %v6197_v7, %s8867_s14  ;;  %v6924_v47 = vadd.f32 %v6830_v31, %v6732_v35 }
 0x3ee   : > { %6845 = vrot.lane.b32.xlu1 %v6198_v48, %s8867_s14 }
 0x3ef   : > { %v11404_v29 = vpop.permute.xlu0 %6639 }
 0x3f0   : > { %v11406_v8 = vpop.permute.xlu1 %6069 }
 0x3f1   : > { %7416 = vrot.lane.b32.xlu0 %v6197_v7, %s8868_s15 }
 0x3f2   : > { %7034 = vrot.lane.b32.xlu1 %v11391_v22, %s8863_s10 }
 0x3f3   : > { %v7021_v0 = vpop.permute.xlu0 %7020 }
 0x3f4   : > { %v11411_v21 = vpop.permute.xlu1 %6261  ;;  %v7116_v52 = vadd.f32 %v7021_v0, %v6923_v58 }
 0x3f5   : > { %6083 = vrot.lane.b32.xlu0 %v6007_v43, %s8861_s8 }
 0x3f6   : > { %7226 = vrot.lane.b32.xlu1 %v6006_v44, %s8864_s11  ;;  %v6199_v44 = vld [vmem:[#allocation3 + $0x92] sm:$0xff] }
 0x3f7   : > { %v7213_v53 = vpop.permute.xlu0 %7212 }
 0x3f8   : > { %v11416_v27 = vpop.permute.xlu1 %6449  ;;  %v7308_v20 = vadd.f32 %v7213_v53, %v7116_v52  ;;  %v6157_v53 = vadd.f32 %v11239_v54, %v11372_v16  ;;  %v6010_v16 = vld [vmem:[#allocation3 + $0xb1] sm:$0xff] }
 0x3f9   : > { %6463 = vrot.lane.b32.xlu0 %v11419_v57, %s8865_s12 }
 0x3fa   : > { %7418 = vrot.lane.b32.xlu1 %v6198_v48, %s8868_s15  ;;  %v6349_v6 = vadd.f32 %v11384_v1, %v6157_v53  ;;  %v6158_v1 = vadd.f32 %v11251_v59, %v11380_v50  ;;  %v6159_v53 = vadd.f32 %v11260_v32, %v11396_v45  ;;  %v6012_v45 = vld [vmem:[#allocation3 + $0xc9] sm:$0xff] }
 0x3fb   : > { %v11424_v14 = vpop.permute.xlu0 %6259 }
 0x3fc   : > { %v11426_v23 = vpop.permute.xlu1 %6641  ;;  %v6541_v15 = vadd.f32 %v11400_v3, %v6349_v6  ;;  %v6350_v3 = vadd.f32 %v11386_v34, %v6158_v1 }
 0x3fd   : > { %6655 = vrot.lane.b32.xlu0 %v6007_v43, %s8866_s13 }
 0x3fe   : > { %6085 = vrot.lane.b32.xlu1 %v6008_v41, %s8861_s8  ;;  %v6733_v54 = vadd.f32 %v11404_v29, %v6541_v15  ;;  %v6542_v29 = vadd.f32 %v11416_v27, %v6350_v3  ;;  %v6351_v15 = vadd.f32 %v11424_v14, %v6159_v53  ;;  %v6160_v14 = vadd.f32 %v11273_v10, %v11406_v8 }
 0x3ff   : > { %v6832_v55 = vpop.permute.xlu0 %6831 }
 0x400   : > { %v11431_v13 = vpop.permute.xlu1 %6833  ;;  %v6925_v24 = vadd.f32 %v6832_v55, %v6733_v54  ;;  %v6734_v59 = vadd.f32 %v11426_v23, %v6542_v29  ;;  %v11506_v55 = vld [vmem:[#allocation3 + $0xb0] sm:$0xff]  ;;  %v11542_v54 = vld [vmem:[#allocation3 + $0xc0] sm:$0xff] }
 0x401   : > { %7036 = vrot.lane.b32.xlu0 %v11419_v57, %s8863_s10  ;;  %v6201_v23 = vld [vmem:[#allocation3 + $0xaa] sm:$0xff] }
 0x402   : > { %6277 = vrot.lane.b32.xlu1 %v6200_v51, %s8862_s9  ;;  %v6926_v34 = vadd.f32 %v11431_v13, %v6734_v59 }
 0x403   : > { %v7405_v25 = vpop.permute.xlu0 %7404 }
 0x404   : > { %v7023_v4 = vpop.permute.xlu1 %7022  ;;  %v7500_v36 = vadd.f32 %v7405_v25, %v7308_v20  ;;  %v6202_v20 = vld [vmem:[#allocation3 + $0xb2] sm:$0xff] }
 0x405   : > { %7228 = vrot.lane.b32.xlu0 %v6007_v43, %s8864_s11  ;;  %v7117_v28 = vadd.f32 %v7023_v4, %v6924_v47  ;;  %v6009_v43 = vld [vmem:[#allocation3 + $0xa9] sm:$0xff] }
 0x406   : > { %6465 = vrot.lane.b32.xlu1 %v11443_v19, %s8865_s12  ;;  %v7539_v37 = vadd.f32 %v11441_v49, %v7500_v36 }
 0x407   : > { %v11454_v5 = vpop.permute.xlu0 %6071 }
 0x408   : > { %v7215_v9 = vpop.permute.xlu1 %7214  ;;  %7572 = vst.msk [vmem:[%s11448_s24] sm:$0xff] %vm7571_vm9, %v7539_v37  ;;  %v6161_v53 = vadd.f32 %v11292_v39, %v11454_v5  ;;  %v6014_v5 = vld [vmem:[#allocation3 + $0xe1] sm:$0xff] }
 0x409   : > { %6275 = vrot.lane.b32.xlu0 %v6199_v44, %s8862_s9  ;;  %v7309_v48 = vadd.f32 %v7215_v9, %v7117_v28 }
 0x40a   : > { %6657 = vrot.lane.b32.xlu1 %v6008_v41, %s8866_s13 }
 0x40b   : > { %v11460_v18 = vpop.permute.xlu0 %6451 }
 0x40c   : > { %v7407_v30 = vpop.permute.xlu1 %7406  ;;  %v6543_v1 = vadd.f32 %v11460_v18, %v6351_v15  ;;  %v6352_v18 = vadd.f32 %v11411_v21, %v6160_v14 }
 0x40d   : > { %v7501_v2 = vadd.f32 %v7407_v30, %v7309_v48  ;;  %6847 = vrot.lane.b32.xlu0 %v6199_v44, %s8867_s14 }
 0x40e   : > { %6849 = vrot.lane.b32.xlu1 %v6200_v51, %s8867_s14 }
 0x40f   : > { %v7540_v7 = vadd.f32 %v11441_v49, %v7501_v2  ;;  %v11465_v31 = vpop.permute.xlu0 %6643 }
 0x410   : > { %v11467_v17 = vpop.permute.xlu1 %6073  ;;  %v6735_v32 = vadd.f32 %v11465_v31, %v6543_v1 }
 0x411   : > { %7573 = vst.msk [vmem:[%s11448_s24 + $0x8] sm:$0xff] %vm7571_vm9, %v7540_v7  ;;  %7420 = vrot.lane.b32.xlu0 %v6199_v44, %s8868_s15 }
 0x412   : > { %7038 = vrot.lane.b32.xlu1 %v11443_v19, %s8863_s10 }
 0x413   : > { %v7025_v0 = vpop.permute.xlu0 %7024 }
 0x414   : > { %v11474_v62 = vpop.permute.xlu1 %6265 }
 0x415   : > { %6087 = vrot.lane.b32.xlu0 %v6009_v43, %s8861_s8 }
 0x416   : > { %7230 = vrot.lane.b32.xlu1 %v6008_v41, %s8864_s11 }
 0x417   : > { %v7217_v38 = vpop.permute.xlu0 %7216 }
 0x418   : > { %v11480_v12 = vpop.permute.xlu1 %6453 }
 0x419   : > { %6467 = vrot.lane.b32.xlu0 %v11483_v56, %s8865_s12  ;;  %v6544_v31 = vadd.f32 %v11480_v12, %v6352_v18 }
 0x41a   : > { %7422 = vrot.lane.b32.xlu1 %v6200_v51, %s8868_s15  ;;  %v7118_v51 = vadd.f32 %v7025_v0, %v6925_v24 }
 0x41b   : > { %v11489_v58 = vpop.permute.xlu0 %6263 }
 0x41c   : > { %v11491_v41 = vpop.permute.xlu1 %6645  ;;  %v7310_v25 = vadd.f32 %v7217_v38, %v7118_v51  ;;  %v6353_v1 = vadd.f32 %v11489_v58, %v6161_v53  ;;  %v6162_v58 = vadd.f32 %v11305_v42, %v11467_v17 }
 0x41d   : > { %6659 = vrot.lane.b32.xlu0 %v6009_v43, %s8866_s13  ;;  %v6736_v10 = vadd.f32 %v11491_v41, %v6544_v31  ;;  %v6203_v41 = vld [vmem:[#allocation3 + $0xc2] sm:$0xff] }
 0x41e   : > { %6089 = vrot.lane.b32.xlu1 %v6010_v16, %s8861_s8 }
 0x41f   : > { %v6836_v52 = vpop.permute.xlu0 %6835 }
 0x420   : > { %v11498_v46 = vpop.permute.xlu1 %6837  ;;  %v6927_v3 = vadd.f32 %v6836_v52, %v6735_v32  ;;  %v11565_v52 = vld [vmem:[#allocation3 + $0xc8] sm:$0xff]  ;;  %v11601_v32 = vld [vmem:[#allocation3 + $0xd8] sm:$0xff] }
 0x421   : > { %7040 = vrot.lane.b32.xlu0 %v11483_v56, %s8863_s10  ;;  %v6928_v21 = vadd.f32 %v11498_v46, %v6736_v10 }
 0x422   : > { %6281 = vrot.lane.b32.xlu1 %v6202_v20, %s8862_s9 }
 0x423   : > { %v7409_v4 = vpop.permute.xlu0 %7408 }
 0x424   : > { %v7027_v35 = vpop.permute.xlu1 %7026  ;;  %v7502_v50 = vadd.f32 %v7409_v4, %v7310_v25  ;;  %v6204_v25 = vld [vmem:[#allocation3 + $0xca] sm:$0xff] }
 0x425   : > { %7232 = vrot.lane.b32.xlu0 %v6009_v43, %s8864_s11  ;;  %v7119_v37 = vadd.f32 %v7027_v35, %v6926_v34  ;;  %v6011_v43 = vld [vmem:[#allocation3 + $0xc1] sm:$0xff] }
 0x426   : > { %6469 = vrot.lane.b32.xlu1 %v11506_v55, %s8865_s12  ;;  %v7541_v36 = vadd.f32 %v11441_v49, %v7502_v50 }
 0x427   : > { %v11513_v47 = vpop.permute.xlu0 %6075 }
 0x428   : > { %v7219_v27 = vpop.permute.xlu1 %7218  ;;  %7574 = vst.msk [vmem:[%s11448_s24 + $0x10] sm:$0xff] %vm7571_vm9, %v7541_v36  ;;  %v6163_v53 = vadd.f32 %v11324_v60, %v11513_v47  ;;  %v6016_v47 = vld [vmem:[#allocation3 + $0xf9] sm:$0xff] }
 0x429   : > { %6279 = vrot.lane.b32.xlu0 %v6201_v23, %s8862_s9  ;;  %v7311_v9 = vadd.f32 %v7219_v27, %v7119_v37 }
 0x42a   : > { %6661 = vrot.lane.b32.xlu1 %v6010_v16, %s8866_s13 }
 0x42b   : > { %v11519_v28 = vpop.permute.xlu0 %6455 }
 0x42c   : > { %v7411_v44 = vpop.permute.xlu1 %7410  ;;  %v6545_v14 = vadd.f32 %v11519_v28, %v6353_v1  ;;  %v6354_v28 = vadd.f32 %v11474_v62, %v6162_v58 }
 0x42d   : > { %v7503_v48 = vadd.f32 %v7411_v44, %v7311_v9  ;;  %6851 = vrot.lane.b32.xlu0 %v6201_v23, %s8867_s14 }
 0x42e   : > { %6853 = vrot.lane.b32.xlu1 %v6202_v20, %s8867_s14 }
 0x42f   : > { %v7542_v13 = vadd.f32 %v11441_v49, %v7503_v48  ;;  %v11524_v30 = vpop.permute.xlu0 %6647 }
 0x430   : > { %v11526_v2 = vpop.permute.xlu1 %6077  ;;  %v6737_v39 = vadd.f32 %v11524_v30, %v6545_v14 }
 0x431   : > { %7575 = vst.msk [vmem:[%s11448_s24 + $0x18] sm:$0xff] %vm7571_vm9, %v7542_v13  ;;  %7424 = vrot.lane.b32.xlu0 %v6201_v23, %s8868_s15 }
 0x432   : > { %7042 = vrot.lane.b32.xlu1 %v11506_v55, %s8863_s10 }
 0x433   : > { %v7029_v7 = vpop.permute.xlu0 %7028 }
 0x434   : > { %v11533_v0 = vpop.permute.xlu1 %6269 }
 0x435   : > { %6091 = vrot.lane.b32.xlu0 %v6011_v43, %s8861_s8 }
 0x436   : > { %7234 = vrot.lane.b32.xlu1 %v6010_v16, %s8864_s11 }
 0x437   : > { %v7221_v38 = vpop.permute.xlu0 %7220 }
 0x438   : > { %v11539_v6 = vpop.permute.xlu1 %6457 }
 0x439   : > { %6471 = vrot.lane.b32.xlu0 %v11542_v54, %s8865_s12  ;;  %v6546_v30 = vadd.f32 %v11539_v6, %v6354_v28 }
 0x43a   : > { %7426 = vrot.lane.b32.xlu1 %v6202_v20, %s8868_s15  ;;  %v7120_v20 = vadd.f32 %v7029_v7, %v6927_v3 }
 0x43b   : > { %v11548_v24 = vpop.permute.xlu0 %6267 }
 0x43c   : > { %v11550_v16 = vpop.permute.xlu1 %6649  ;;  %v7312_v4 = vadd.f32 %v7221_v38, %v7120_v20  ;;  %v6355_v14 = vadd.f32 %v11548_v24, %v6163_v53  ;;  %v6164_v24 = vadd.f32 %v11341_v33, %v11526_v2 }
 0x43d   : > { %6663 = vrot.lane.b32.xlu0 %v6011_v43, %s8866_s13  ;;  %v6738_v42 = vadd.f32 %v11550_v16, %v6546_v30  ;;  %v6205_v16 = vld [vmem:[#allocation3 + $0xda] sm:$0xff] }
 0x43e   : > { %6093 = vrot.lane.b32.xlu1 %v6012_v45, %s8861_s8 }
 0x43f   : > { %v6840_v51 = vpop.permute.xlu0 %6839 }
 0x440   : > { %v11557_v29 = vpop.permute.xlu1 %6841  ;;  %v6929_v18 = vadd.f32 %v6840_v51, %v6737_v39  ;;  %v11624_v51 = vld [vmem:[#allocation3 + $0xe0] sm:$0xff]  ;;  %v11660_v39 = vld [vmem:[#allocation3 + $0xf0] sm:$0xff] }
 0x441   : > { %7044 = vrot.lane.b32.xlu0 %v11542_v54, %s8863_s10  ;;  %v6930_v62 = vadd.f32 %v11557_v29, %v6738_v42 }
 0x442   : > { %6285 = vrot.lane.b32.xlu1 %v6204_v25, %s8862_s9 }
 0x443   : > { %v7413_v35 = vpop.permute.xlu0 %7412 }
 0x444   : > { %v7031_v59 = vpop.permute.xlu1 %7030  ;;  %v7504_v8 = vadd.f32 %v7413_v35, %v7312_v4  ;;  %v6206_v4 = vld [vmem:[#allocation3 + $0xe2] sm:$0xff] }
 0x445   : > { %7236 = vrot.lane.b32.xlu0 %v6011_v43, %s8864_s11  ;;  %v7121_v36 = vadd.f32 %v7031_v59, %v6928_v21  ;;  %v6013_v43 = vld [vmem:[#allocation3 + $0xd9] sm:$0xff] }
 0x446   : > { %6473 = vrot.lane.b32.xlu1 %v11565_v52, %s8865_s12  ;;  %v7543_v50 = vadd.f32 %v11441_v49, %v7504_v8 }
 0x447   : > { %v11572_v34 = vpop.permute.xlu0 %6079 }
 0x448   : > { %v7223_v12 = vpop.permute.xlu1 %7222  ;;  %7576 = vst.msk [vmem:[%s11448_s24 + $0x20] sm:$0xff] %vm7571_vm9, %v7543_v50  ;;  %v6165_v53 = vadd.f32 %v11374_v40, %v11572_v34  ;;  %v6018_v34 = vld [vmem:[#allocation3 + $0x111] sm:$0xff] }
 0x449   : > { %6283 = vrot.lane.b32.xlu0 %v6203_v41, %s8862_s9  ;;  %v7313_v27 = vadd.f32 %v7223_v12, %v7121_v36 }
 0x44a   : > { %6665 = vrot.lane.b32.xlu1 %v6012_v45, %s8866_s13 }
 0x44b   : > { %v11578_v37 = vpop.permute.xlu0 %6459 }
 0x44c   : > { %v7415_v23 = vpop.permute.xlu1 %7414  ;;  %v6547_v58 = vadd.f32 %v11578_v37, %v6355_v14  ;;  %v6356_v37 = vadd.f32 %v11533_v0, %v6164_v24 }
 0x44d   : > { %v7505_v9 = vadd.f32 %v7415_v23, %v7313_v27  ;;  %6855 = vrot.lane.b32.xlu0 %v6203_v41, %s8867_s14 }
 0x44e   : > { %6857 = vrot.lane.b32.xlu1 %v6204_v25, %s8867_s14 }
 0x44f   : > { %v7544_v46 = vadd.f32 %v11441_v49, %v7505_v9  ;;  %v11583_v44 = vpop.permute.xlu0 %6651 }
 0x450   : > { %v11585_v48 = vpop.permute.xlu1 %6081  ;;  %v6739_v60 = vadd.f32 %v11583_v44, %v6547_v58 }
 0x451   : > { %7577 = vst.msk [vmem:[%s11448_s24 + $0x28] sm:$0xff] %vm7571_vm9, %v7544_v46  ;;  %7428 = vrot.lane.b32.xlu0 %v6203_v41, %s8868_s15 }
 0x452   : > { %7046 = vrot.lane.b32.xlu1 %v11565_v52, %s8863_s10 }
 0x453   : > { %v7033_v13 = vpop.permute.xlu0 %7032 }
 0x454   : > { %v11592_v7 = vpop.permute.xlu1 %6273 }
 0x455   : > { %6095 = vrot.lane.b32.xlu0 %v6013_v43, %s8861_s8 }
 0x456   : > { %7238 = vrot.lane.b32.xlu1 %v6012_v45, %s8864_s11 }
 0x457   : > { %v7225_v38 = vpop.permute.xlu0 %7224 }
 0x458   : > { %v11598_v15 = vpop.permute.xlu1 %6461 }
 0x459   : > { %6475 = vrot.lane.b32.xlu0 %v11601_v32, %s8865_s12  ;;  %v6548_v44 = vadd.f32 %v11598_v15, %v6356_v37 }
 0x45a   : > { %7430 = vrot.lane.b32.xlu1 %v6204_v25, %s8868_s15  ;;  %v7122_v25 = vadd.f32 %v7033_v13, %v6929_v18 }
 0x45b   : > { %v11607_v3 = vpop.permute.xlu0 %6271 }
 0x45c   : > { %v11609_v45 = vpop.permute.xlu1 %6653  ;;  %v7314_v35 = vadd.f32 %v7225_v38, %v7122_v25  ;;  %v6357_v58 = vadd.f32 %v11607_v3, %v6165_v53  ;;  %v6166_v3 = vadd.f32 %v11391_v22, %v11585_v48 }
 0x45d   : > { %6667 = vrot.lane.b32.xlu0 %v6013_v43, %s8866_s13  ;;  %v6740_v33 = vadd.f32 %v11609_v45, %v6548_v44  ;;  %v6207_v45 = vld [vmem:[#allocation3 + $0xf2] sm:$0xff] }
 0x45e   : > { %6097 = vrot.lane.b32.xlu1 %v6014_v5, %s8861_s8 }
 0x45f   : > { %v6844_v20 = vpop.permute.xlu0 %6843 }
 0x460   : > { %v11616_v31 = vpop.permute.xlu1 %6845  ;;  %v6931_v28 = vadd.f32 %v6844_v20, %v6739_v60  ;;  %v11683_v20 = vld [vmem:[#allocation3 + $0xf8] sm:$0xff]  ;;  %v11719_v60 = vld [vmem:[#allocation3 + $0x108] sm:$0xff] }
 0x461   : > { %7048 = vrot.lane.b32.xlu0 %v11601_v32, %s8863_s10  ;;  %v6932_v0 = vadd.f32 %v11616_v31, %v6740_v33 }
 0x462   : > { %6289 = vrot.lane.b32.xlu1 %v6206_v4, %s8862_s9 }
 0x463   : > { %v7417_v59 = vpop.permute.xlu0 %7416 }
 0x464   : > { %v7035_v10 = vpop.permute.xlu1 %7034  ;;  %v7506_v17 = vadd.f32 %v7417_v59, %v7314_v35  ;;  %v6208_v35 = vld [vmem:[#allocation3 + $0xfa] sm:$0xff] }
 0x465   : > { %7240 = vrot.lane.b32.xlu0 %v6013_v43, %s8864_s11  ;;  %v7123_v50 = vadd.f32 %v7035_v10, %v6930_v62  ;;  %v6015_v43 = vld [vmem:[#allocation3 + $0xf1] sm:$0xff] }
 0x466   : > { %6477 = vrot.lane.b32.xlu1 %v11624_v51, %s8865_s12  ;;  %v7545_v8 = vadd.f32 %v11441_v49, %v7506_v17 }
 0x467   : > { %v11631_v21 = vpop.permute.xlu0 %6083 }
 0x468   : > { %v7227_v6 = vpop.permute.xlu1 %7226  ;;  %7578 = vst.msk [vmem:[%s11448_s24 + $0x30] sm:$0xff] %vm7571_vm9, %v7545_v8  ;;  %v6167_v53 = vadd.f32 %v11419_v57, %v11631_v21  ;;  %v6020_v21 = vld [vmem:[#allocation3 + $0x129] sm:$0xff] }
 0x469   : > { %6287 = vrot.lane.b32.xlu0 %v6205_v16, %s8862_s9  ;;  %v7315_v12 = vadd.f32 %v7227_v6, %v7123_v50 }
 0x46a   : > { %6669 = vrot.lane.b32.xlu1 %v6014_v5, %s8866_s13 }
 0x46b   : > { %v11637_v36 = vpop.permute.xlu0 %6463 }
 0x46c   : > { %v7419_v41 = vpop.permute.xlu1 %7418  ;;  %v6549_v24 = vadd.f32 %v11637_v36, %v6357_v58  ;;  %v6358_v36 = vadd.f32 %v11592_v7, %v6166_v3 }
 0x46d   : > { %v7507_v27 = vadd.f32 %v7419_v41, %v7315_v12  ;;  %6859 = vrot.lane.b32.xlu0 %v6205_v16, %s8867_s14 }
 0x46e   : > { %6861 = vrot.lane.b32.xlu1 %v6206_v4, %s8867_s14 }
 0x46f   : > { %v7546_v29 = vadd.f32 %v11441_v49, %v7507_v27  ;;  %v11642_v23 = vpop.permute.xlu0 %6655 }
 0x470   : > { %v11644_v9 = vpop.permute.xlu1 %6085  ;;  %v6741_v40 = vadd.f32 %v11642_v23, %v6549_v24 }
 0x471   : > { %7579 = vst.msk [vmem:[%s11448_s24 + $0x38] sm:$0xff] %vm7571_vm9, %v7546_v29  ;;  %7432 = vrot.lane.b32.xlu0 %v6205_v16, %s8868_s15 }
 0x472   : > { %7050 = vrot.lane.b32.xlu1 %v11624_v51, %s8863_s10 }
 0x473   : > { %v7037_v46 = vpop.permute.xlu0 %7036 }
 0x474   : > { %v11651_v13 = vpop.permute.xlu1 %6277 }
 0x475   : > { %6099 = vrot.lane.b32.xlu0 %v6015_v43, %s8861_s8 }
 0x476   : > { %7242 = vrot.lane.b32.xlu1 %v6014_v5, %s8864_s11 }
 0x477   : > { %v7229_v38 = vpop.permute.xlu0 %7228 }
 0x478   : > { %v11657_v1 = vpop.permute.xlu1 %6465 }
 0x479   : > { %6479 = vrot.lane.b32.xlu0 %v11660_v39, %s8865_s12  ;;  %v6550_v23 = vadd.f32 %v11657_v1, %v6358_v36 }
 0x47a   : > { %7434 = vrot.lane.b32.xlu1 %v6206_v4, %s8868_s15  ;;  %v7124_v4 = vadd.f32 %v7037_v46, %v6931_v28 }
 0x47b   : > { %v11666_v18 = vpop.permute.xlu0 %6275 }
 0x47c   : > { %v11668_v5 = vpop.permute.xlu1 %6657  ;;  %v7316_v59 = vadd.f32 %v7229_v38, %v7124_v4  ;;  %v6359_v24 = vadd.f32 %v11666_v18, %v6167_v53  ;;  %v6168_v18 = vadd.f32 %v11443_v19, %v11644_v9 }
 0x47d   : > { %6671 = vrot.lane.b32.xlu0 %v6015_v43, %s8866_s13  ;;  %v6742_v22 = vadd.f32 %v11668_v5, %v6550_v23  ;;  %v6209_v5 = vld [vmem:[#allocation3 + $0x10a] sm:$0xff] }
 0x47e   : > { %6101 = vrot.lane.b32.xlu1 %v6016_v47, %s8861_s8 }
 0x47f   : > { %v6848_v25 = vpop.permute.xlu0 %6847 }
 0x480   : > { %v11675_v30 = vpop.permute.xlu1 %6849  ;;  %v6933_v37 = vadd.f32 %v6848_v25, %v6741_v40  ;;  %v11742_v25 = vld [vmem:[#allocation3 + $0x110] sm:$0xff]  ;;  %v11778_v40 = vld [vmem:[#allocation3 + $0x120] sm:$0xff] }
 0x481   : > { %7052 = vrot.lane.b32.xlu0 %v11660_v39, %s8863_s10  ;;  %v6934_v7 = vadd.f32 %v11675_v30, %v6742_v22 }
 0x482   : > { %6293 = vrot.lane.b32.xlu1 %v6208_v35, %s8862_s9 }
 0x483   : > { %v7421_v10 = vpop.permute.xlu0 %7420 }
 0x484   : > { %v7039_v42 = vpop.permute.xlu1 %7038  ;;  %v7508_v2 = vadd.f32 %v7421_v10, %v7316_v59  ;;  %v6210_v59 = vld [vmem:[#allocation3 + $0x112] sm:$0xff] }
 0x485   : > { %7244 = vrot.lane.b32.xlu0 %v6015_v43, %s8864_s11  ;;  %v7125_v8 = vadd.f32 %v7039_v42, %v6932_v0  ;;  %v6017_v43 = vld [vmem:[#allocation3 + $0x109] sm:$0xff] }
 0x486   : > { %6481 = vrot.lane.b32.xlu1 %v11683_v20, %s8865_s12  ;;  %v7547_v17 = vadd.f32 %v11441_v49, %v7508_v2 }
 0x487   : > { %v11690_v62 = vpop.permute.xlu0 %6087 }
 0x488   : > { %v7231_v15 = vpop.permute.xlu1 %7230  ;;  %7580 = vst.msk [vmem:[%s11448_s24 + $0x40] sm:$0xff] %vm7571_vm9, %v7547_v17  ;;  %v6169_v53 = vadd.f32 %v11483_v56, %v11690_v62  ;;  %v6022_v62 = vld [vmem:[#allocation3 + $0x141] sm:$0xff] }
 0x489   : > { %6291 = vrot.lane.b32.xlu0 %v6207_v45, %s8862_s9  ;;  %v7317_v6 = vadd.f32 %v7231_v15, %v7125_v8 }
 0x48a   : > { %6673 = vrot.lane.b32.xlu1 %v6016_v47, %s8866_s13 }
 0x48b   : > { %v11696_v50 = vpop.permute.xlu0 %6467 }
 0x48c   : > { %v7423_v16 = vpop.permute.xlu1 %7422  ;;  %v6551_v3 = vadd.f32 %v11696_v50, %v6359_v24  ;;  %v6360_v50 = vadd.f32 %v11651_v13, %v6168_v18 }
 0x48d   : > { %v7509_v12 = vadd.f32 %v7423_v16, %v7317_v6  ;;  %6863 = vrot.lane.b32.xlu0 %v6207_v45, %s8867_s14 }
 0x48e   : > { %6865 = vrot.lane.b32.xlu1 %v6208_v35, %s8867_s14 }
 0x48f   : > { %v7548_v31 = vadd.f32 %v11441_v49, %v7509_v12  ;;  %v11701_v41 = vpop.permute.xlu0 %6659 }
 0x490   : > { %v11703_v27 = vpop.permute.xlu1 %6089  ;;  %v6743_v57 = vadd.f32 %v11701_v41, %v6551_v3 }
 0x491   : > { %7581 = vst.msk [vmem:[%s11448_s24 + $0x48] sm:$0xff] %vm7571_vm9, %v7548_v31  ;;  %7436 = vrot.lane.b32.xlu0 %v6207_v45, %s8868_s15 }
 0x492   : > { %7054 = vrot.lane.b32.xlu1 %v11683_v20, %s8863_s10 }
 0x493   : > { %v7041_v29 = vpop.permute.xlu0 %7040 }
 0x494   : > { %v11710_v46 = vpop.permute.xlu1 %6281 }
 0x495   : > { %6103 = vrot.lane.b32.xlu0 %v6017_v43, %s8861_s8 }
 0x496   : > { %7246 = vrot.lane.b32.xlu1 %v6016_v47, %s8864_s11 }
 0x497   : > { %v7233_v38 = vpop.permute.xlu0 %7232 }
 0x498   : > { %v11716_v14 = vpop.permute.xlu1 %6469 }
 0x499   : > { %6483 = vrot.lane.b32.xlu0 %v11719_v60, %s8865_s12  ;;  %v6552_v41 = vadd.f32 %v11716_v14, %v6360_v50 }
 0x49a   : > { %7438 = vrot.lane.b32.xlu1 %v6208_v35, %s8868_s15  ;;  %v7126_v35 = vadd.f32 %v7041_v29, %v6933_v37 }
 0x49b   : > { %v11725_v28 = vpop.permute.xlu0 %6279 }
 0x49c   : > { %v11727_v47 = vpop.permute.xlu1 %6661  ;;  %v7318_v10 = vadd.f32 %v7233_v38, %v7126_v35  ;;  %v6361_v3 = vadd.f32 %v11725_v28, %v6169_v53  ;;  %v6170_v28 = vadd.f32 %v11506_v55, %v11703_v27 }
 0x49d   : > { %6675 = vrot.lane.b32.xlu0 %v6017_v43, %s8866_s13  ;;  %v6744_v19 = vadd.f32 %v11727_v47, %v6552_v41  ;;  %v6211_v47 = vld [vmem:[#allocation3 + $0x122] sm:$0xff] }
 0x49e   : > { %6105 = vrot.lane.b32.xlu1 %v6018_v34, %s8861_s8 }
 0x49f   : > { %v6852_v4 = vpop.permute.xlu0 %6851 }
 0x4a0   : > { %v11734_v44 = vpop.permute.xlu1 %6853  ;;  %v6935_v36 = vadd.f32 %v6852_v4, %v6743_v57  ;;  %v11801_v4 = vld [vmem:[#allocation3 + $0x128] sm:$0xff]  ;;  %v11837_v57 = vld [vmem:[#allocation3 + $0x138] sm:$0xff] }
 0x4a1   : > { %7056 = vrot.lane.b32.xlu0 %v11719_v60, %s8863_s10  ;;  %v6936_v13 = vadd.f32 %v11734_v44, %v6744_v19 }
 0x4a2   : > { %6297 = vrot.lane.b32.xlu1 %v6210_v59, %s8862_s9 }
 0x4a3   : > { %v7425_v42 = vpop.permute.xlu0 %7424 }
 0x4a4   : > { %v7043_v33 = vpop.permute.xlu1 %7042  ;;  %v7510_v48 = vadd.f32 %v7425_v42, %v7318_v10  ;;  %v6212_v10 = vld [vmem:[#allocation3 + $0x12a] sm:$0xff] }
 0x4a5   : > { %7248 = vrot.lane.b32.xlu0 %v6017_v43, %s8864_s11  ;;  %v7127_v17 = vadd.f32 %v7043_v33, %v6934_v7  ;;  %v6019_v43 = vld [vmem:[#allocation3 + $0x121] sm:$0xff] }
 0x4a6   : > { %6485 = vrot.lane.b32.xlu1 %v11742_v25, %s8865_s12  ;;  %v7549_v2 = vadd.f32 %v11441_v49, %v7510_v48 }
 0x4a7   : > { %v11749_v0 = vpop.permute.xlu0 %6091 }
 0x4a8   : > { %v7235_v1 = vpop.permute.xlu1 %7234  ;;  %7582 = vst.msk [vmem:[%s11448_s24 + $0x50] sm:$0xff] %vm7571_vm9, %v7549_v2  ;;  %v6171_v53 = vadd.f32 %v11542_v54, %v11749_v0  ;;  %v6024_v0 = vld [vmem:[#allocation3 + $0x159] sm:$0xff] }
 0x4a9   : > { %6295 = vrot.lane.b32.xlu0 %v6209_v5, %s8862_s9  ;;  %v7319_v15 = vadd.f32 %v7235_v1, %v7127_v17 }
 0x4aa   : > { %6677 = vrot.lane.b32.xlu1 %v6018_v34, %s8866_s13 }
 0x4ab   : > { %v11755_v8 = vpop.permute.xlu0 %6471 }
 0x4ac   : > { %v7427_v45 = vpop.permute.xlu1 %7426  ;;  %v6553_v18 = vadd.f32 %v11755_v8, %v6361_v3  ;;  %v6362_v8 = vadd.f32 %v11710_v46, %v6170_v28 }
 0x4ad   : > { %v7511_v6 = vadd.f32 %v7427_v45, %v7319_v15  ;;  %6867 = vrot.lane.b32.xlu0 %v6209_v5, %s8867_s14 }
 0x4ae   : > { %6869 = vrot.lane.b32.xlu1 %v6210_v59, %s8867_s14 }
 0x4af   : > { %v7550_v30 = vadd.f32 %v11441_v49, %v7511_v6  ;;  %v11760_v16 = vpop.permute.xlu0 %6663 }
 0x4b0   : > { %v11762_v12 = vpop.permute.xlu1 %6093  ;;  %v6745_v56 = vadd.f32 %v11760_v16, %v6553_v18 }
 0x4b1   : > { %7583 = vst.msk [vmem:[%s11448_s24 + $0x58] sm:$0xff] %vm7571_vm9, %v7550_v30  ;;  %7440 = vrot.lane.b32.xlu0 %v6209_v5, %s8868_s15 }
 0x4b2   : > { %7058 = vrot.lane.b32.xlu1 %v11742_v25, %s8863_s10 }
 0x4b3   : > { %v7045_v31 = vpop.permute.xlu0 %7044 }
 0x4b4   : > { %v11769_v29 = vpop.permute.xlu1 %6285 }
 0x4b5   : > { %6107 = vrot.lane.b32.xlu0 %v6019_v43, %s8861_s8 }
 0x4b6   : > { %7250 = vrot.lane.b32.xlu1 %v6018_v34, %s8864_s11 }
 0x4b7   : > { %v7237_v38 = vpop.permute.xlu0 %7236 }
 0x4b8   : > { %v11775_v58 = vpop.permute.xlu1 %6473 }
 0x4b9   : > { %6487 = vrot.lane.b32.xlu0 %v11778_v40, %s8865_s12  ;;  %v6554_v16 = vadd.f32 %v11775_v58, %v6362_v8 }
 0x4ba   : > { %7442 = vrot.lane.b32.xlu1 %v6210_v59, %s8868_s15  ;;  %v7128_v59 = vadd.f32 %v7045_v31, %v6935_v36 }
 0x4bb   : > { %v11784_v37 = vpop.permute.xlu0 %6283 }
 0x4bc   : > { %v11786_v34 = vpop.permute.xlu1 %6665  ;;  %v7320_v42 = vadd.f32 %v7237_v38, %v7128_v59  ;;  %v6363_v18 = vadd.f32 %v11784_v37, %v6171_v53  ;;  %v6172_v37 = vadd.f32 %v11565_v52, %v11762_v12 }
 0x4bd   : > { %6679 = vrot.lane.b32.xlu0 %v6019_v43, %s8866_s13  ;;  %v6746_v55 = vadd.f32 %v11786_v34, %v6554_v16  ;;  %v6213_v34 = vld [vmem:[#allocation3 + $0x13a] sm:$0xff] }
 0x4be   : > { %6109 = vrot.lane.b32.xlu1 %v6020_v21, %s8861_s8 }
 0x4bf   : > { %v6856_v35 = vpop.permute.xlu0 %6855 }
 0x4c0   : > { %v11793_v23 = vpop.permute.xlu1 %6857  ;;  %v6937_v50 = vadd.f32 %v6856_v35, %v6745_v56  ;;  %v11860_v35 = vld [vmem:[#allocation3 + $0x140] sm:$0xff]  ;;  %v11896_v56 = vld [vmem:[#allocation3 + $0x150] sm:$0xff] }
 0x4c1   : > { %7060 = vrot.lane.b32.xlu0 %v11778_v40, %s8863_s10  ;;  %v6938_v46 = vadd.f32 %v11793_v23, %v6746_v55 }
 0x4c2   : > { %6301 = vrot.lane.b32.xlu1 %v6212_v10, %s8862_s9 }
 0x4c3   : > { %v7429_v33 = vpop.permute.xlu0 %7428 }
 0x4c4   : > { %v7047_v22 = vpop.permute.xlu1 %7046  ;;  %v7512_v9 = vadd.f32 %v7429_v33, %v7320_v42  ;;  %v6214_v42 = vld [vmem:[#allocation3 + $0x142] sm:$0xff] }
 0x4c5   : > { %7252 = vrot.lane.b32.xlu0 %v6019_v43, %s8864_s11  ;;  %v7129_v2 = vadd.f32 %v7047_v22, %v6936_v13  ;;  %v6021_v43 = vld [vmem:[#allocation3 + $0x139] sm:$0xff] }
 0x4c6   : > { %6489 = vrot.lane.b32.xlu1 %v11801_v4, %s8865_s12  ;;  %v7551_v48 = vadd.f32 %v11441_v49, %v7512_v9 }
 0x4c7   : > { %v11808_v7 = vpop.permute.xlu0 %6095 }
 0x4c8   : > { %v7239_v14 = vpop.permute.xlu1 %7238  ;;  %7584 = vst.msk [vmem:[%s11448_s24 + $0x60] sm:$0xff] %vm7571_vm9, %v7551_v48 }
 0x4c9   : > { %6299 = vrot.lane.b32.xlu0 %v6211_v47, %s8862_s9  ;;  %v7321_v1 = vadd.f32 %v7239_v14, %v7129_v2 }
 0x4ca   : > { %6681 = vrot.lane.b32.xlu1 %v6020_v21, %s8866_s13 }
 0x4cb   : > { %v11814_v17 = vpop.permute.xlu0 %6475 }
 0x4cc   : > { %v7431_v5 = vpop.permute.xlu1 %7430  ;;  %v6555_v28 = vadd.f32 %v11814_v17, %v6363_v18  ;;  %v6364_v17 = vadd.f32 %v11769_v29, %v6172_v37  ;;  %v11954_v37 = vld [vmem:[#allocation3 + $0x168] sm:$0xff] }
 0x4cd   : > { %v7513_v15 = vadd.f32 %v7431_v5, %v7321_v1  ;;  %6871 = vrot.lane.b32.xlu0 %v6211_v47, %s8867_s14 }
 0x4ce   : > { %6873 = vrot.lane.b32.xlu1 %v6212_v10, %s8867_s14 }
 0x4cf   : > { %v7552_v44 = vadd.f32 %v11441_v49, %v7513_v15  ;;  %v11819_v45 = vpop.permute.xlu0 %6667 }
 0x4d0   : > { %v11821_v6 = vpop.permute.xlu1 %6097  ;;  %v6747_v54 = vadd.f32 %v11819_v45, %v6555_v28 }
 0x4d1   : > { %7585 = vst.msk [vmem:[%s11448_s24 + $0x68] sm:$0xff] %vm7571_vm9, %v7552_v44  ;;  %7444 = vrot.lane.b32.xlu0 %v6211_v47, %s8868_s15 }
 0x4d2   : > { %7062 = vrot.lane.b32.xlu1 %v11801_v4, %s8863_s10 }
 0x4d3   : > { %v7049_v30 = vpop.permute.xlu0 %7048 }
 0x4d4   : > { %v11828_v31 = vpop.permute.xlu1 %6289 }
 0x4d5   : > { %6111 = vrot.lane.b32.xlu0 %v6021_v43, %s8861_s8 }
 0x4d6   : > { %7254 = vrot.lane.b32.xlu1 %v6020_v21, %s8864_s11 }
 0x4d7   : > { %v7241_v38 = vpop.permute.xlu0 %7240 }
 0x4d8   : > { %v11834_v24 = vpop.permute.xlu1 %6477 }
 0x4d9   : > { %6491 = vrot.lane.b32.xlu0 %v11837_v57, %s8865_s12  ;;  %v6556_v45 = vadd.f32 %v11834_v24, %v6364_v17 }
 0x4da   : > { %7446 = vrot.lane.b32.xlu1 %v6212_v10, %s8868_s15  ;;  %v7130_v10 = vadd.f32 %v7049_v30, %v6937_v50 }
 0x4db   : > { %v11843_v36 = vpop.permute.xlu0 %6287 }
 0x4dc   : > { %v11845_v21 = vpop.permute.xlu1 %6669  ;;  %v7322_v33 = vadd.f32 %v7241_v38, %v7130_v10 }
 0x4dd   : > { %6683 = vrot.lane.b32.xlu0 %v6021_v43, %s8866_s13  ;;  %v6748_v52 = vadd.f32 %v11845_v21, %v6556_v45  ;;  %v6215_v21 = vld [vmem:[#allocation3 + $0x152] sm:$0xff] }
 0x4de   : > { %6113 = vrot.lane.b32.xlu1 %v6022_v62, %s8861_s8 }
 0x4df   : > { %v6860_v59 = vpop.permute.xlu0 %6859 }
 0x4e0   : > { %v11852_v41 = vpop.permute.xlu1 %6861  ;;  %v6939_v8 = vadd.f32 %v6860_v59, %v6747_v54  ;;  %v11919_v59 = vld [vmem:[#allocation3 + $0x158] sm:$0xff] }
 0x4e1   : > { %7064 = vrot.lane.b32.xlu0 %v11837_v57, %s8863_s10  ;;  %v6940_v29 = vadd.f32 %v11852_v41, %v6748_v52 }
 0x4e2   : > { %6305 = vrot.lane.b32.xlu1 %v6214_v42, %s8862_s9 }
 0x4e3   : > { %v7433_v22 = vpop.permute.xlu0 %7432 }
 0x4e4   : > { %v7051_v19 = vpop.permute.xlu1 %7050  ;;  %v7514_v27 = vadd.f32 %v7433_v22, %v7322_v33  ;;  %v6216_v33 = vld [vmem:[#allocation3 + $0x15a] sm:$0xff] }
 0x4e5   : > { %7256 = vrot.lane.b32.xlu0 %v6021_v43, %s8864_s11  ;;  %v7131_v48 = vadd.f32 %v7051_v19, %v6938_v46  ;;  %v6023_v43 = vld [vmem:[#allocation3 + $0x151] sm:$0xff] }
 0x4e6   : > { %6493 = vrot.lane.b32.xlu1 %v11860_v35, %s8865_s12  ;;  %v7553_v9 = vadd.f32 %v11441_v49, %v7514_v27 }
 0x4e7   : > { %v11867_v13 = vpop.permute.xlu0 %6099 }
 0x4e8   : > { %v7243_v58 = vpop.permute.xlu1 %7242  ;;  %7586 = vst.msk [vmem:[%s11448_s24 + $0x70] sm:$0xff] %vm7571_vm9, %v7553_v9 }
 0x4e9   : > { %6303 = vrot.lane.b32.xlu0 %v6213_v34, %s8862_s9  ;;  %v7323_v14 = vadd.f32 %v7243_v58, %v7131_v48 }
 0x4ea   : > { %6685 = vrot.lane.b32.xlu1 %v6022_v62, %s8866_s13 }
 0x4eb   : > { %v11873_v2 = vpop.permute.xlu0 %6479 }
 0x4ec   : > { %v7435_v47 = vpop.permute.xlu1 %7434 }
 0x4ed   : > { %v7515_v1 = vadd.f32 %v7435_v47, %v7323_v14  ;;  %6875 = vrot.lane.b32.xlu0 %v6213_v34, %s8867_s14 }
 0x4ee   : > { %6877 = vrot.lane.b32.xlu1 %v6214_v42, %s8867_s14 }
 0x4ef   : > { %v7554_v23 = vadd.f32 %v11441_v49, %v7515_v1  ;;  %v11878_v5 = vpop.permute.xlu0 %6671 }
 0x4f0   : > { %v11880_v15 = vpop.permute.xlu1 %6101 }
 0x4f1   : > { %7587 = vst.msk [vmem:[%s11448_s24 + $0x78] sm:$0xff] %vm7571_vm9, %v7554_v23  ;;  %7448 = vrot.lane.b32.xlu0 %v6213_v34, %s8868_s15 }
 0x4f2   : > { %7066 = vrot.lane.b32.xlu1 %v11860_v35, %s8863_s10 }
 0x4f3   : > { %v7053_v44 = vpop.permute.xlu0 %7052 }
 0x4f4   : > { %v11887_v30 = vpop.permute.xlu1 %6293 }
 0x4f5   : > { %6115 = vrot.lane.b32.xlu0 %v6023_v43, %s8861_s8 }
 0x4f6   : > { %7258 = vrot.lane.b32.xlu1 %v6022_v62, %s8864_s11 }
 0x4f7   : > { %v7245_v38 = vpop.permute.xlu0 %7244 }
 0x4f8   : > { %v11893_v3 = vpop.permute.xlu1 %6481 }
 0x4f9   : > { %6495 = vrot.lane.b32.xlu0 %v11896_v56, %s8865_s12 }
 0x4fa   : > { %7450 = vrot.lane.b32.xlu1 %v6214_v42, %s8868_s15  ;;  %v7132_v42 = vadd.f32 %v7053_v44, %v6939_v8 }
 0x4fb   : > { %v11902_v50 = vpop.permute.xlu0 %6291 }
 0x4fc   : > { %v11904_v62 = vpop.permute.xlu1 %6673  ;;  %v7324_v22 = vadd.f32 %v7245_v38, %v7132_v42  ;;  %v6025_v38 = vld [vmem:[#allocation3 + $0x169] sm:$0xff] }
 0x4fd   : > { %6687 = vrot.lane.b32.xlu0 %v6023_v43, %s8866_s13 }
 0x4fe   : > { %6117 = vrot.lane.b32.xlu1 %v6024_v0, %s8861_s8 }
 0x4ff   : > { %v6864_v10 = vpop.permute.xlu0 %6863 }
 0x500   : > { %v11911_v16 = vpop.permute.xlu1 %6865 }
 0x501   : > { %7068 = vrot.lane.b32.xlu0 %v11896_v56, %s8863_s10 }
 0x502   : > { %6309 = vrot.lane.b32.xlu1 %v6216_v33, %s8862_s9 }
 0x503   : > { %v7437_v19 = vpop.permute.xlu0 %7436 }
 0x504   : > { %v7055_v55 = vpop.permute.xlu1 %7054  ;;  %v7516_v12 = vadd.f32 %v7437_v19, %v7324_v22  ;;  %v6218_v22 = vld [vmem:[#allocation3 + $0x172] sm:$0xff] }
 0x505   : > { %7260 = vrot.lane.b32.xlu0 %v6023_v43, %s8864_s11  ;;  %v7133_v9 = vadd.f32 %v7055_v55, %v6940_v29 }
 0x506   : > { %6497 = vrot.lane.b32.xlu1 %v11919_v59, %s8865_s12  ;;  %v7555_v27 = vadd.f32 %v11441_v49, %v7516_v12  ;;  %v11986_v12 = vld [vmem:[%s12123_s4] ss:$0 sm:$0xff] }
 0x507   : > { %v11926_v46 = vpop.permute.xlu0 %6103 }
 0x508   : > { %v7247_v24 = vpop.permute.xlu1 %7246  ;;  %7588 = vst.msk [vmem:[%s11448_s24 + $0x80] sm:$0xff] %vm7571_vm9, %v7555_v27 }
 0x509   : > { %6307 = vrot.lane.b32.xlu0 %v6215_v21, %s8862_s9  ;;  %v7325_v58 = vadd.f32 %v7247_v24, %v7133_v9  ;;  %v6217_v24 = vld [vmem:[#allocation3 + $0x16a] sm:$0xff] }
 0x50a   : > { %6689 = vrot.lane.b32.xlu1 %v6024_v0, %s8866_s13 }
 0x50b   : > { %v11932_v48 = vpop.permute.xlu0 %6483 }
 0x50c   : > { %v7439_v34 = vpop.permute.xlu1 %7438 }
 0x50d   : > { %v7517_v14 = vadd.f32 %v7439_v34, %v7325_v58  ;;  %6879 = vrot.lane.b32.xlu0 %v6215_v21, %s8867_s14 }
 0x50e   : > { %6881 = vrot.lane.b32.xlu1 %v6216_v33, %s8867_s14 }
 0x50f   : > { %v7556_v41 = vadd.f32 %v11441_v49, %v7517_v14  ;;  %v11937_v47 = vpop.permute.xlu0 %6675  ;;  %v6173_v49 = vadd.f32 %v11601_v32, %v11808_v7  ;;  %v6026_v7 = vld [vmem:[#allocation3 + $0x171] sm:$0xff] }
 0x510   : > { %v6106_v1 = vpop.permute.xlu1 %6105 }
 0x511   : > { %7589 = vst.msk [vmem:[%s11448_s24 + $0x88] sm:$0xff] %vm7571_vm9, %v7556_v41  ;;  %7452 = vrot.lane.b32.xlu0 %v6215_v21, %s8868_s15  ;;  %v6178_v23 = vadd.f32 %v11742_v25, %v6106_v1  ;;  %v6365_v54 = vadd.f32 %v11843_v36, %v6173_v49  ;;  %v6174_v36 = vadd.f32 %v11624_v51, %v11821_v6 }
 0x512   : > { %7070 = vrot.lane.b32.xlu1 %v11919_v59, %s8863_s10  ;;  %v6175_v49 = vadd.f32 %v11660_v39, %v11867_v13  ;;  %v6176_v39 = vadd.f32 %v11683_v20, %v11880_v15  ;;  %v6793_v15 = vld [vmem:[#allocation3 + $0x182] sm:$0xff] }
 0x513   : > { %v7057_v44 = vpop.permute.xlu0 %7056  ;;  %v6557_v25 = vadd.f32 %v11873_v2, %v6365_v54  ;;  %v6366_v2 = vadd.f32 %v11828_v31, %v6174_v36 }
 0x514   : > { %v6298_v43 = vpop.permute.xlu1 %6297 }
 0x515   : > { %v11945_v53 = vadd.f32 %v6298_v43, %v6178_v23  ;;  %6119 = vrot.lane.b32.xlu0 %v6025_v38, %s8861_s8  ;;  %v6749_v32 = vadd.f32 %v11878_v5, %v6557_v25  ;;  %v6558_v5 = vadd.f32 %v11893_v3, %v6366_v2  ;;  %v6367_v25 = vadd.f32 %v11902_v50, %v6175_v49  ;;  %v6410_v2 = vld [vmem:[#allocation3 + $0x188] sm:$0xff] }
 0x516   : > { %7262 = vrot.lane.b32.xlu1 %v6024_v0, %s8864_s11 }
 0x517   : > { %v7249_v18 = vpop.permute.xlu0 %7248  ;;  %v6941_v17 = vadd.f32 %v6864_v10, %v6749_v32  ;;  %v6750_v51 = vadd.f32 %v11904_v62, %v6558_v5  ;;  %v11977_v10 = vld [vmem:[#allocation3 + $0x170] sm:$0xff]  ;;  %v6601_v32 = vld [vmem:[#allocation3 + $0x181] sm:$0xff] }
 0x518   : > { %v11951_v28 = vpop.permute.xlu1 %6485  ;;  %v6602_v5 = vld [vmem:[#allocation3 + $0x189] sm:$0xff] }
 0x519   : > { %6499 = vrot.lane.b32.xlu0 %v11954_v37, %s8865_s12  ;;  %v6942_v31 = vadd.f32 %v11911_v16, %v6750_v51 }
 0x51a   : > { %7454 = vrot.lane.b32.xlu1 %v6216_v33, %s8868_s15  ;;  %v7134_v33 = vadd.f32 %v7057_v44, %v6941_v17 }
 0x51b   : > { %v11960_v8 = vpop.permute.xlu0 %6295 }
 0x51c   : > { %v11962_v0 = vpop.permute.xlu1 %6677  ;;  %v7326_v19 = vadd.f32 %v7249_v18, %v7134_v33 }
 0x51d   : > { %6691 = vrot.lane.b32.xlu0 %v6025_v38, %s8866_s13 }
 0x51e   : > { %6121 = vrot.lane.b32.xlu1 %v6026_v7, %s8861_s8 }
 0x51f   : > { %v6868_v42 = vpop.permute.xlu0 %6867 }
 0x520   : > { %v11969_v45 = vpop.permute.xlu1 %6869 }
 0x521   : > { %7072 = vrot.lane.b32.xlu0 %v11954_v37, %s8863_s10 }
 0x522   : > { %6313 = vrot.lane.b32.xlu1 %v6218_v22, %s8862_s9 }
 0x523   : > { %v7441_v55 = vpop.permute.xlu0 %7440 }
 0x524   : > { %v7059_v52 = vpop.permute.xlu1 %7058  ;;  %v7518_v6 = vadd.f32 %v7441_v55, %v7326_v19 }
 0x525   : > { %7264 = vrot.lane.b32.xlu0 %v6025_v38, %s8864_s11  ;;  %v7135_v27 = vadd.f32 %v7059_v52, %v6942_v31  ;;  %v6409_v38 = vld [vmem:[#allocation3 + $0x180] sm:$0xff] }
 0x526   : > { %6501 = vrot.lane.b32.xlu1 %v11977_v10, %s8865_s12  ;;  %v7557_v3 = vadd.f32 %v11986_v12, %v7518_v6 }
 0x527   : > { %v11989_v29 = vpop.permute.xlu0 %6107 }
 0x528   : > { %v7251_v62 = vpop.permute.xlu1 %7250  ;;  %7590 = vst.msk [vmem:[%s11448_s24 + $0x90] sm:$0xff] %vm7571_vm9, %v7557_v3 }
 0x529   : > { %6311 = vrot.lane.b32.xlu0 %v6217_v24, %s8862_s9  ;;  %v7327_v16 = vadd.f32 %v7251_v62, %v7135_v27  ;;  %v7370_v62 = vld [vmem:[#allocation3 + $0x19a] sm:$0xff] }
 0x52a   : > { %6693 = vrot.lane.b32.xlu1 %v6026_v7, %s8866_s13 }
 0x52b   : > { %v11995_v9 = vpop.permute.xlu0 %6487 }
 0x52c   : > { %v7443_v21 = vpop.permute.xlu1 %7442 }
 0x52d   : > { %v7519_v58 = vadd.f32 %v7443_v21, %v7327_v16  ;;  %6883 = vrot.lane.b32.xlu0 %v6217_v24, %s8867_s14 }
 0x52e   : > { %6885 = vrot.lane.b32.xlu1 %v6218_v22, %s8867_s14 }
 0x52f   : > { %v7558_v34 = vadd.f32 %v11986_v12, %v7519_v58  ;;  %v12000_v14 = vpop.permute.xlu0 %6679 }
 0x530   : > { %v6110_v41 = vpop.permute.xlu1 %6109 }
 0x531   : > { %7591 = vst.msk [vmem:[%s11448_s24 + $0x98] sm:$0xff] %vm7571_vm9, %v7558_v34  ;;  %7456 = vrot.lane.b32.xlu0 %v6217_v24, %s8868_s15  ;;  %v6180_v1 = vadd.f32 %v11801_v4, %v6110_v41  ;;  %v6559_v4 = vadd.f32 %v11932_v48, %v6367_v25  ;;  %v7371_v41 = vld [vmem:[#allocation3 + $0x1a2] sm:$0xff] }
 0x532   : > { %7074 = vrot.lane.b32.xlu1 %v11977_v10, %s8863_s10 }
 0x533   : > { %v7061_v23 = vpop.permute.xlu0 %7060 }
 0x534   : > { %v6302_v44 = vpop.permute.xlu1 %6301 }
 0x535   : > { %v12008_v43 = vadd.f32 %v6302_v44, %v6180_v1  ;;  %6503 = vrot.lane.b32.xlu0 %v6409_v38, %s8865_s12 }
 0x536   : > { %7266 = vrot.lane.b32.xlu1 %v6026_v7, %s8864_s11  ;;  %v6751_v7 = vadd.f32 %v11937_v47, %v6559_v4 }
 0x537   : > { %v7253_v18 = vpop.permute.xlu0 %7252 }
 0x538   : > { %v12014_v54 = vpop.permute.xlu1 %6489  ;;  %v6943_v13 = vadd.f32 %v6868_v42, %v6751_v7  ;;  %v6794_v42 = vld [vmem:[#allocation3 + $0x18a] sm:$0xff] }
 0x539   : > { %6695 = vrot.lane.b32.xlu0 %v6601_v32, %s8866_s13 }
 0x53a   : > { %7458 = vrot.lane.b32.xlu1 %v6218_v22, %s8868_s15  ;;  %v6368_v22 = vadd.f32 %v11887_v30, %v6176_v39  ;;  %v7136_v48 = vadd.f32 %v7061_v23, %v6943_v13 }
 0x53b   : > { %v12020_v36 = vpop.permute.xlu0 %6299 }
 0x53c   : > { %v12022_v17 = vpop.permute.xlu1 %6681  ;;  %v6560_v47 = vadd.f32 %v11951_v28, %v6368_v22  ;;  %v7328_v19 = vadd.f32 %v7253_v18, %v7136_v48  ;;  %v6562_v48 = vadd.f32 %v12014_v54, %v11945_v53 }
 0x53d   : > { %7076 = vrot.lane.b32.xlu0 %v6409_v38, %s8863_s10  ;;  %v6177_v38 = vadd.f32 %v11719_v60, %v11926_v46 }
 0x53e   : > { %6505 = vrot.lane.b32.xlu1 %v6410_v2, %s8865_s12  ;;  %v6752_v51 = vadd.f32 %v11962_v0, %v6560_v47 }
 0x53f   : > { %v6872_v50 = vpop.permute.xlu0 %6871  ;;  %v6369_v25 = vadd.f32 %v11960_v8, %v6177_v38  ;;  %v6754_v8 = vadd.f32 %v12022_v17, %v6562_v48 }
 0x540   : > { %v6874_v33 = vpop.permute.xlu1 %6873  ;;  %v6944_v30 = vadd.f32 %v11969_v45, %v6752_v51 }
 0x541   : > { %7268 = vrot.lane.b32.xlu0 %v6601_v32, %s8864_s11  ;;  %v6561_v32 = vadd.f32 %v11995_v9, %v6369_v25  ;;  %v6946_v47 = vadd.f32 %v6874_v33, %v6754_v8 }
 0x542   : > { %6697 = vrot.lane.b32.xlu1 %v6602_v5, %s8866_s13 }
 0x543   : > { %v7445_v55 = vpop.permute.xlu0 %7444 }
 0x544   : > { %v7063_v52 = vpop.permute.xlu1 %7062  ;;  %v7520_v20 = vadd.f32 %v7445_v55, %v7328_v19 }
 0x545   : > { %6887 = vrot.lane.b32.xlu0 %v6793_v15, %s8867_s14  ;;  %v7137_v3 = vadd.f32 %v7063_v52, %v6944_v30 }
 0x546   : > { %6889 = vrot.lane.b32.xlu1 %v6794_v42, %s8867_s14  ;;  %v7559_v6 = vadd.f32 %v11986_v12, %v7520_v20 }
 0x547   : > { %v12038_v31 = vpop.permute.xlu0 %6111 }
 0x548   : > { %v7255_v28 = vpop.permute.xlu1 %7254  ;;  %7592 = vst.msk [vmem:[%s11448_s24 + $0xa0] sm:$0xff] %vm7571_vm9, %v7559_v6 }
 0x549   : > { %7460 = vrot.lane.b32.xlu0 %v6793_v15, %s8868_s15  ;;  %v7329_v0 = vadd.f32 %v7255_v28, %v7137_v3  ;;  %v6179_v28 = vadd.f32 %v11778_v40, %v11989_v29 }
 0x54a   : > { %7078 = vrot.lane.b32.xlu1 %v6410_v2, %s8863_s10 }
 0x54b   : > { %v6492_v27 = vpop.permute.xlu0 %6491 }
 0x54c   : > { %v7447_v24 = vpop.permute.xlu1 %7446 }
 0x54d   : > { %v7521_v16 = vadd.f32 %v7447_v24, %v7329_v0  ;;  %7464 = vrot.lane.b32.xlu0 %v7370_v62, %s8868_s15  ;;  %v6371_v62 = vadd.f32 %v12020_v36, %v6179_v28 }
 0x54e   : > { %7270 = vrot.lane.b32.xlu1 %v6602_v5, %s8864_s11 }
 0x54f   : > { %v7560_v45 = vadd.f32 %v11986_v12, %v7521_v16  ;;  %v6684_v21 = vpop.permute.xlu0 %6683  ;;  %v6563_v24 = vadd.f32 %v6492_v27, %v6371_v62 }
 0x550   : > { %v6114_v58 = vpop.permute.xlu1 %6113 }
 0x551   : > { %7593 = vst.msk [vmem:[%s11448_s24 + $0xa8] sm:$0xff] %vm7571_vm9, %v7560_v45  ;;  %v6182_v34 = vadd.f32 %v11860_v35, %v6114_v58  ;;  %v6753_v35 = vadd.f32 %v12000_v14, %v6561_v32  ;;  %v6755_v58 = vadd.f32 %v6684_v21, %v6563_v24 }
 0x552   : > { %7462 = vrot.lane.b32.xlu1 %v6794_v42, %s8868_s15 }
 0x553   : > { %v7065_v1 = vpop.permute.xlu0 %7064  ;;  %v6945_v2 = vadd.f32 %v6872_v50, %v6753_v35 }
 0x554   : > { %v6306_v23 = vpop.permute.xlu1 %6305 }
 0x555   : > { %v12051_v44 = vadd.f32 %v6306_v23, %v6182_v34  ;;  %v7138_v22 = vadd.f32 %v7065_v1, %v6945_v2 }
 0x556   : > { %7466 = vrot.lane.b32.xlu1 %v7371_v41, %s8868_s15 }
 0x557   : > { %v7257_v49 = vpop.permute.xlu0 %7256 }
 0x558   : > { %v6494_v18 = vpop.permute.xlu1 %6493  ;;  %v7330_v60 = vadd.f32 %v7257_v49, %v7138_v22 }
 0x559   : > { %v6564_v23 = vadd.f32 %v6494_v18, %v12008_v43 }
 0x55b   : > { %v12058_v4 = vpop.permute.xlu0 %6303 }
 0x55c   : > { %v6686_v7 = vpop.permute.xlu1 %6685 }
 0x55d   : > { %v6756_v40 = vadd.f32 %v6686_v7, %v6564_v23 }
 0x55f   : > { %v6876_v39 = vpop.permute.xlu0 %6875 }
 0x560   : > { %v6878_v13 = vpop.permute.xlu1 %6877  ;;  %v6947_v34 = vadd.f32 %v6876_v39, %v6755_v58 }
 0x561   : > { %v6948_v32 = vadd.f32 %v6878_v13, %v6756_v40  ;;  %v6181_v13 = vadd.f32 %v11837_v57, %v12038_v31 }
 0x563   : > { %v7449_v46 = vpop.permute.xlu0 %7448 }
 0x564   : > { %v7067_v5 = vpop.permute.xlu1 %7066  ;;  %v7522_v9 = vadd.f32 %v7449_v46, %v7330_v60 }
 0x565   : > { %v7139_v50 = vadd.f32 %v7067_v5, %v6946_v47 }
 0x566   : > { %v7561_v19 = vadd.f32 %v11986_v12, %v7522_v9  ;;  %v6373_v9 = vadd.f32 %v12058_v4, %v6181_v13 }
 0x567   : > { %v12065_v55 = vpop.permute.xlu0 %6115 }
 0x568   : > { %v7259_v14 = vpop.permute.xlu1 %7258  ;;  %7594 = vst.msk [vmem:[%s11448_s24 + $0xb0] sm:$0xff] %vm7571_vm9, %v7561_v19 }
 0x569   : > { %v7331_v52 = vadd.f32 %v7259_v14, %v7139_v50 }
 0x56b   : > { %v6496_v51 = vpop.permute.xlu0 %6495 }
 0x56c   : > { %v7451_v20 = vpop.permute.xlu1 %7450  ;;  %v6565_v47 = vadd.f32 %v6496_v51, %v6373_v9 }
 0x56d   : > { %v7523_v53 = vadd.f32 %v7451_v20, %v7331_v52 }
 0x56f   : > { %v7562_v54 = vadd.f32 %v11986_v12, %v7523_v53  ;;  %v6688_v15 = vpop.permute.xlu0 %6687 }
 0x570   : > { %v6118_v42 = vpop.permute.xlu1 %6117  ;;  %v6757_v50 = vadd.f32 %v6688_v15, %v6565_v47 }
 0x571   : > { %7595 = vst.msk [vmem:[%s11448_s24 + $0xb8] sm:$0xff] %vm7571_vm9, %v7562_v54  ;;  %v6184_v17 = vadd.f32 %v11919_v59, %v6118_v42 }
 0x573   : > { %v7069_v33 = vpop.permute.xlu0 %7068 }
 0x574   : > { %v6310_v30 = vpop.permute.xlu1 %6309  ;;  %v7140_v59 = vadd.f32 %v7069_v33, %v6947_v34 }
 0x575   : > { %v12073_v6 = vadd.f32 %v6310_v30, %v6184_v17 }
 0x577   : > { %v7261_v3 = vpop.permute.xlu0 %7260 }
 0x578   : > { %v6498_v0 = vpop.permute.xlu1 %6497  ;;  %v7332_v38 = vadd.f32 %v7261_v3, %v7140_v59 }
 0x579   : > { %v6566_v42 = vadd.f32 %v6498_v0, %v12051_v44  ;;  %v6183_v44 = vadd.f32 %v11896_v56, %v12065_v55 }
 0x57b   : > { %v6308_v16 = vpop.permute.xlu0 %6307 }
 0x57c   : > { %v6690_v45 = vpop.permute.xlu1 %6689 }
 0x57d   : > { %v6758_v28 = vadd.f32 %v6690_v45, %v6566_v42 }
 0x57f   : > { %v6880_v41 = vpop.permute.xlu0 %6879 }
 0x580   : > { %v6882_v1 = vpop.permute.xlu1 %6881  ;;  %v6949_v52 = vadd.f32 %v6880_v41, %v6757_v50 }
 0x581   : > { %v6950_v31 = vadd.f32 %v6882_v1, %v6758_v28  ;;  %v6375_v1 = vadd.f32 %v6308_v16, %v6183_v44 }
 0x583   : > { %v7453_v49 = vpop.permute.xlu0 %7452 }
 0x584   : > { %v7071_v25 = vpop.permute.xlu1 %7070  ;;  %v7524_v29 = vadd.f32 %v7453_v49, %v7332_v38 }
 0x585   : > { %v7141_v21 = vadd.f32 %v7071_v25, %v6948_v32 }
 0x586   : > { %v7563_v36 = vadd.f32 %v11986_v12, %v7524_v29 }
 0x587   : > { %v6120_v27 = vpop.permute.xlu0 %6119 }
 0x588   : > { %v7263_v35 = vpop.permute.xlu1 %7262  ;;  %7596 = vst.msk [vmem:[%s11448_s24 + $0xc0] sm:$0xff] %vm7571_vm9, %v7563_v36  ;;  %v6185_v59 = vadd.f32 %v11954_v37, %v6120_v27 }
 0x589   : > { %v7333_v2 = vadd.f32 %v7263_v35, %v7141_v21 }
 0x58b   : > { %v6500_v39 = vpop.permute.xlu0 %6499 }
 0x58c   : > { %v7455_v22 = vpop.permute.xlu1 %7454  ;;  %v6567_v23 = vadd.f32 %v6500_v39, %v6375_v1 }
 0x58d   : > { %v7525_v48 = vadd.f32 %v7455_v22, %v7333_v2 }
 0x58f   : > { %v7564_v43 = vadd.f32 %v11986_v12, %v7525_v48  ;;  %v6692_v18 = vpop.permute.xlu0 %6691 }
 0x590   : > { %v6122_v60 = vpop.permute.xlu1 %6121  ;;  %v6759_v40 = vadd.f32 %v6692_v18, %v6567_v23 }
 0x591   : > { %7597 = vst.msk [vmem:[%s11448_s24 + $0xc8] sm:$0xff] %vm7571_vm9, %v7564_v43  ;;  %v6186_v32 = vadd.f32 %v11977_v10, %v6122_v60 }
 0x593   : > { %v7073_v7 = vpop.permute.xlu0 %7072 }
 0x594   : > { %v6314_v46 = vpop.permute.xlu1 %6313  ;;  %v7142_v54 = vadd.f32 %v7073_v7, %v6949_v52 }
 0x595   : > { %v6378_v21 = vadd.f32 %v6314_v46, %v6186_v32 }
 0x597   : > { %v7265_v5 = vpop.permute.xlu0 %7264 }
 0x598   : > { %v6502_v8 = vpop.permute.xlu1 %6501  ;;  %v7334_v17 = vadd.f32 %v7265_v5, %v7142_v54 }
 0x599   : > { %v6568_v37 = vadd.f32 %v6502_v8, %v12073_v6 }
 0x59b   : > { %v6312_v19 = vpop.permute.xlu0 %6311 }
 0x59c   : > { %v6694_v14 = vpop.permute.xlu1 %6693  ;;  %v6377_v38 = vadd.f32 %v6312_v19, %v6185_v59 }
 0x59d   : > { %v6760_v18 = vadd.f32 %v6694_v14, %v6568_v37 }
 0x59f   : > { %v6884_v20 = vpop.permute.xlu0 %6883 }
 0x5a0   : > { %v6886_v53 = vpop.permute.xlu1 %6885  ;;  %v6951_v36 = vadd.f32 %v6884_v20, %v6759_v40 }
 0x5a1   : > { %v6952_v60 = vadd.f32 %v6886_v53, %v6760_v18 }
 0x5a3   : > { %v7457_v33 = vpop.permute.xlu0 %7456 }
 0x5a4   : > { %v7075_v30 = vpop.permute.xlu1 %7074  ;;  %v7526_v57 = vadd.f32 %v7457_v33, %v7334_v17 }
 0x5a5   : > { %v7143_v15 = vadd.f32 %v7075_v30, %v6950_v31 }
 0x5a6   : > { %v7565_v4 = vadd.f32 %v11986_v12, %v7526_v57 }
 0x5a7   : > { %v6504_v51 = vpop.permute.xlu0 %6503 }
 0x5a8   : > { %v7267_v3 = vpop.permute.xlu1 %7266  ;;  %7598 = vst.msk [vmem:[%s11448_s24 + $0xd0] sm:$0xff] %vm7571_vm9, %v7565_v4  ;;  %v6569_v29 = vadd.f32 %v6504_v51, %v6377_v38 }
 0x5a9   : > { %v7335_v62 = vadd.f32 %v7267_v3, %v7143_v15 }
 0x5ab   : > { %v6696_v24 = vpop.permute.xlu0 %6695 }
 0x5ac   : > { %v7459_v58 = vpop.permute.xlu1 %7458  ;;  %v6761_v35 = vadd.f32 %v6696_v24, %v6569_v29 }
 0x5ad   : > { %v7527_v34 = vadd.f32 %v7459_v58, %v7335_v62 }
 0x5af   : > { %v7566_v0 = vadd.f32 %v11986_v12, %v7527_v34  ;;  %v7077_v45 = vpop.permute.xlu0 %7076 }
 0x5b0   : > { %v6506_v41 = vpop.permute.xlu1 %6505  ;;  %v7144_v2 = vadd.f32 %v7077_v45, %v6951_v36 }
 0x5b1   : > { %7599 = vst.msk [vmem:[%s11448_s24 + $0xd8] sm:$0xff] %vm7571_vm9, %v7566_v0  ;;  %v6570_v16 = vadd.f32 %v6506_v41, %v6378_v21 }
 0x5b3   : > { %v7269_v49 = vpop.permute.xlu0 %7268 }
 0x5b4   : > { %v6698_v25 = vpop.permute.xlu1 %6697  ;;  %v7336_v27 = vadd.f32 %v7269_v49, %v7144_v2 }
 0x5b5   : > { %v6762_v7 = vadd.f32 %v6698_v25, %v6570_v16 }
 0x5b7   : > { %v6888_v56 = vpop.permute.xlu0 %6887 }
 0x5b8   : > { %v6890_v55 = vpop.permute.xlu1 %6889  ;;  %v6953_v22 = vadd.f32 %v6888_v56, %v6761_v35 }
 0x5b9   : > { %v6954_v13 = vadd.f32 %v6890_v55, %v6762_v7 }
 0x5ba   : > { %v7146_v39 = vadd.f32 %v11356_v63, %v6953_v22 }
 0x5bb   : > { %v7461_v48 = vpop.permute.xlu0 %7460  ;;  %v7147_v8 = vadd.f32 %v11354_v11, %v6954_v13 }
 0x5bc   : > { %v7079_v43 = vpop.permute.xlu1 %7078  ;;  %v7528_v10 = vadd.f32 %v7461_v48, %v7336_v27  ;;  %v7338_v46 = vadd.f32 %v11367_v26, %v7146_v39 }
 0x5bd   : > { %v7145_v6 = vadd.f32 %v7079_v43, %v6952_v60  ;;  %v7339_v26 = vadd.f32 %v11365_v61, %v7147_v8 }
 0x5be   : > { %v7567_v5 = vadd.f32 %v11986_v12, %v7528_v10 }
 0x5bf   : > { %v7465_v9 = vpop.permute.xlu0 %7464 }
 0x5c0   : > { %v7271_v47 = vpop.permute.xlu1 %7270  ;;  %7600 = vst.msk [vmem:[%s11448_s24 + $0xe0] sm:$0xff] %vm7571_vm9, %v7567_v5  ;;  %v7530_v63 = vadd.f32 %v7465_v9, %v7338_v46 }
 0x5c1   : > { %v7337_v14 = vadd.f32 %v7271_v47, %v7145_v6 }
 0x5c2   : > { %v7569_v19 = vadd.f32 %v11986_v12, %v7530_v63 }
 0x5c4   : > { %v7463_v50 = vpop.permute.xlu1 %7462  ;;  %7602 = vst.msk [vmem:[%s11448_s24 + $0xf0] sm:$0xff] %vm7571_vm9, %v7569_v19 }
 0x5c5   : > { %v7529_v52 = vadd.f32 %v7463_v50, %v7337_v14 }
 0x5c7   : > { %v7568_v20 = vadd.f32 %v11986_v12, %v7529_v52 }
 0x5c8   : > { %v7467_v53 = vpop.permute.xlu1 %7466 }
 0x5c9   : > { %7601 = vst.msk [vmem:[%s11448_s24 + $0xe8] sm:$0xff] %vm7571_vm9, %v7568_v20  ;;  %v7531_v54 = vadd.f32 %v7467_v53, %v7339_v26 }
 0x5cb   : > { %v7570_v42 = vadd.f32 %v11986_v12, %v7531_v54 }
 0x5cd   : > { %7603 = vst.msk [vmem:[%s11448_s24 + $0xf8] sm:$0xff] %vm7571_vm9, %v7570_v42 }
 0x5ce PF: > { %s15_s18 = sadd.s32 1, %s8857_s18  }
 0x5cf   : > { %p12_p4 = scmp.ge.s32.totalorder %s15_s18, 4  }
 0x5d1   :  { %14 = sbr.rel (!%p12_p4) target bundleno = 1 (0x1), region = 75 }

</bundles_post_ra>
